<compile_context>
chip_gen: v7x
topology: tpu7x:2x2x1
jax: 0.10.0
libtpu: 0.0.40
codegen_flags: <defaults>
</compile_context>

<pallas_src>
import functools

import jax
import jax.numpy as jnp
from jax.experimental import pallas as pl
from jax.experimental.pallas import tpu as pltpu

NUM_ATOM_TYPE = 120
NUM_CHIRALITY = 3
NUM_BOND_TYPE = 6   # index 4 reserved for self-loops (chem GIN convention)
NUM_BOND_DIR = 3
CPAD = 16           # NUM_BOND_TYPE + NUM_BOND_DIR = 9, padded to 16 for the count matmul
BN_EPS = 1e-5


# ----------------------------- Pallas kernel -------------------------------
def gin_stack_kernel(h0_ref, adj_ref, cnt_ref, e_ref, w1_ref, b1_ref, w2_ref, b2_ref,
                     out_ref, *, num_layers, num_blocks, npad):
    """One grid step = `num_blocks` packed 128-row node blocks; all GIN layers in-kernel."""
    h = h0_ref[...]        # bf16 [num_blocks*npad, D]
    cnt = cnt_ref[...]     # bf16 [num_blocks*npad, CPAD] per-node bond-type/dir counts

    for l in range(num_layers):                       # static unroll over layers
        # Neighbor aggregation: adjacency is block-diagonal per 128-row block, so run
        # one [128,128]x[128,D] MXU dot per block (re-load adj from VMEM each layer to
        # keep live ranges short), then stitch rows back together.
        aggs = [
            jnp.dot(adj_ref[b], h[b * npad:(b + 1) * npad],
                    preferred_element_type=jnp.float32)
            for b in range(num_blocks)
        ]
        agg = jnp.concatenate(aggs, axis=0) if num_blocks > 1 else aggs[0]

        # Edge-embedding contribution: tiny [M,16]x[16,D] matmul replaces the old
        # streamed per-layer esum tensor.
        agg = agg + jnp.dot(cnt, e_ref[l], preferred_element_type=jnp.float32)

        # GIN MLP: Linear(D, 2D) -> ReLU -> Linear(2D, D); bf16 MXU, f32 accumulate.
        # M = num_blocks*128 fills the 256-wide MXU on v6e/v7x.
        z = jnp.dot(agg.astype(jnp.bfloat16), w1_ref[l],
                    preferred_element_type=jnp.float32) + b1_ref[l]
        z = jnp.maximum(z, 0.0)
        z = jnp.dot(z.astype(jnp.bfloat16), w2_ref[l],
                    preferred_element_type=jnp.float32) + b2_ref[l]
        # BatchNorm1d (eval running stats + affine) already folded into w2/b2.

        if l < num_layers - 1:
            h = jnp.maximum(z, 0.0).astype(jnp.bfloat16)   # relu, bf16 for next MXU pass
        else:
            out_ref[...] = z                               # last layer: f32, no activation


def token_mae_clf_forward(h0_all, adj_blocks, cnt_all, e_stack, w1, b1, w2, b2,
                          *, blocks_per_step=2):
    """h0_all [NB*128, D] bf16, adj_blocks [NB,128,128] bf16, cnt_all [NB*128, CPAD] bf16,
    e_stack [L,CPAD,D] bf16, w1 [L,D,H] bf16, w2 [L,H,D] bf16 (BN folded),
    b1 [L,1,H] f32, b2 [L,1,D] f32 (BN folded) -> out [NB*128, D] f32."""
    nblocks, npad, _ = adj_blocks.shape
    total, d = h0_all.shape
    num_layers, cpad, _ = e_stack.shape
    hdim = w1.shape[2]
    nb = blocks_per_step
    assert nblocks % nb == 0 and total == nblocks * npad
    rows = nb * npad

    grid_spec = pltpu.PrefetchScalarGridSpec(
        num_scalar_prefetch=0,
        grid=(nblocks // nb,),                                         # packed blocks (parallel)
        in_specs=[
            pl.BlockSpec((rows, d), lambda g: (g, 0)),                 # packed node features
            pl.BlockSpec((nb, npad, npad), lambda g: (g, 0, 0)),       # block-diag adjacency
            pl.BlockSpec((rows, cpad), lambda g: (g, 0)),              # bond-type/dir counts
            pl.BlockSpec((num_layers, cpad, d), lambda g: (0, 0, 0)),  # edge-emb stack (resident)
            pl.BlockSpec((num_layers, d, hdim), lambda g: (0, 0, 0)),  # W1 stack
            pl.BlockSpec((num_layers, 1, hdim), lambda g: (0, 0, 0)),  # b1 stack
            pl.BlockSpec((num_layers, hdim, d), lambda g: (0, 0, 0)),  # W2 stack (BN folded)
            pl.BlockSpec((num_layers, 1, d), lambda g: (0, 0, 0)),     # b2 stack (BN folded)
        ],
        out_specs=pl.BlockSpec((rows, d), lambda g: (g, 0)),
    )

    kernel = functools.partial(gin_stack_kernel, num_layers=num_layers,
                               num_blocks=nb, npad=npad)
    return pl.pallas_call(
        kernel,
        out_shape=jax.ShapeDtypeStruct((total, d), jnp.float32),
        grid_spec=grid_spec,
        compiler_params=pltpu.CompilerParams(
            dimension_semantics=("parallel",)),     # shard packed blocks across TCs on v7x
    )(h0_all, adj_blocks, cnt_all, e_stack, w1, b1, w2, b2)


# ------------------------------- JAX glue -----------------------------------
def build_graph_arrays(x, edge_index, edge_attr, params):
    """Per graph: embedded node features, dense adjacency A[dst,src] (with self loops),
    and the per-node incoming bond-type / bond-dir count matrix [n, 9]."""
    n = x.shape[0]
    h0 = params["atom_emb1"][x[:, 0]] + params["atom_emb2"][x[:, 1]]   # [n, D]

    src, dst = edge_index[0], edge_index[1]
    self_idx = jnp.arange(n, dtype=src.dtype)
    src = jnp.concatenate([src, self_idx])
    dst = jnp.concatenate([dst, self_idx])
    self_attr = jnp.stack(
        [jnp.full((n,), 4, edge_attr.dtype),
         jnp.zeros((n,), edge_attr.dtype)], axis=1)
    ea = jnp.concatenate([edge_attr, self_attr], axis=0)

    adj = jnp.zeros((n, n), jnp.float32).at[dst, src].add(1.0)
    cnt_bt = jnp.zeros((n, NUM_BOND_TYPE), jnp.float32).at[dst, ea[:, 0]].add(1.0)
    cnt_bd = jnp.zeros((n, NUM_BOND_DIR), jnp.float32).at[dst, ea[:, 1]].add(1.0)
    cnt = jnp.concatenate([cnt_bt, cnt_bd], axis=1)                    # [n, 9]
    return h0, adj, cnt


def pack_graphs(graphs, n_pad):
    """Pack several small graphs into one n_pad-row block (block-diagonal adjacency).
    Padding rows/cols (if any) stay zero and must be masked by the caller."""
    h0s, adjs, cnts = zip(*graphs)
    n_tot = sum(h.shape[0] for h in h0s)
    assert n_tot <= n_pad, "graphs do not fit in one block"
    h0 = jnp.pad(jnp.concatenate(h0s, axis=0), ((0, n_pad - n_tot), (0, 0)))
    cnt = jnp.pad(jnp.concatenate(cnts, axis=0), ((0, n_pad - n_tot), (0, 0)))
    adj = jax.scipy.linalg.block_diag(*adjs)
    adj = jnp.pad(adj, ((0, n_pad - n_tot), (0, n_pad - n_tot)))
    return h0, adj, cnt


def init_params(key, emb_dim, num_layers):
    hdim = 2 * emb_dim
    ks = jax.random.split(key, 10)
    p = {}
    p["atom_emb1"] = 0.1 * jax.random.normal(ks[0], (NUM_ATOM_TYPE, emb_dim), jnp.float32)
    p["atom_emb2"] = 0.1 * jax.random.normal(ks[1], (NUM_CHIRALITY, emb_dim), jnp.float32)
    p["edge_emb1"] = 0.1 * jax.random.normal(ks[2], (num_layers, NUM_BOND_TYPE, emb_dim), jnp.float32)
    p["edge_emb2"] = 0.1 * jax.random.normal(ks[3], (num_layers, NUM_BOND_DIR, emb_dim), jnp.float32)
    p["w1"] = 0.05 * jax.random.normal(ks[4], (num_layers, emb_dim, hdim), jnp.float32)
    p["b1"] = 0.01 * jax.random.normal(ks[5], (num_layers, 1, hdim), jnp.float32)
    p["w2"] = 0.05 * jax.random.normal(ks[6], (num_layers, hdim, emb_dim), jnp.float32)
    p["b2"] = 0.01 * jax.random.normal(ks[7], (num_layers, 1, emb_dim), jnp.float32)
    p["gamma"] = jnp.ones((num_layers, 1, emb_dim), jnp.float32) \
        + 0.01 * jax.random.normal(ks[8], (num_layers, 1, emb_dim), jnp.float32)
    p["beta"] = 0.01 * jax.random.normal(ks[9], (num_layers, 1, emb_dim), jnp.float32)
    p["bn_mean"] = jnp.zeros((num_layers, 1, emb_dim), jnp.float32)   # eval running stats
    p["bn_var"] = jnp.ones((num_layers, 1, emb_dim), jnp.float32)
    return p


def fold_bn_into_linear(params):
    """Fold BatchNorm (running stats + affine) into W2/b2 (f32 math, then cast)."""
    scale = params["gamma"] / jnp.sqrt(params["bn_var"] + BN_EPS)          # [L,1,D]
    w2_fold = (params["w2"] * scale).astype(jnp.bfloat16)                  # [L,H,D]
    b2_fold = (params["b2"] - params["bn_mean"]) * scale + params["beta"]  # [L,1,D] f32
    return w2_fold, b2_fold


def reference_forward(h0_all, adj_blocks, cnt_all, e_stack, w1, b1, w2, b2, npad):
    """Pure-JAX reference mirroring the kernel's packed-block / bf16-operand arithmetic."""
    num_layers = w1.shape[0]
    nblocks = adj_blocks.shape[0]
    h = h0_all
    for l in range(num_layers):
        agg = jnp.concatenate(
            [jnp.dot(adj_blocks[b], h[b * npad:(b + 1) * npad],
                     preferred_element_type=jnp.float32) for b in range(nblocks)], axis=0)
        agg = agg + jnp.dot(cnt_all, e_stack[l], preferred_element_type=jnp.float32)
        z = jnp.dot(agg.astype(jnp.bfloat16), w1[l],
                    preferred_element_type=jnp.float32) + b1[l]
        z = jnp.maximum(z, 0.0)
        z = jnp.dot(z.astype(jnp.bfloat16), w2[l],
                    preferred_element_type=jnp.float32) + b2[l]
        if l < num_layers - 1:
            h = jnp.maximum(z, 0.0).astype(jnp.bfloat16)
        else:
            h = z
    return h


# TODO(synk): PosEncoder with pe_type='none' and the transformer branch with
# trans_encoder_layer=0 are disabled in the module defaults and therefore omitted.

if __name__ == "__main__":
    key = jax.random.PRNGKey(0)

    EMB_DIM = 128
    NUM_LAYERS = 1 + (5 - 1)          # gnn_token_layer + (gnn_encoder_layer - 1)
    N_REAL, E = 16, 24                # real nodes / directed edges per molecule
    NPAD = 128                        # rows per packed node block
    GRAPHS_PER_BLOCK = NPAD // N_REAL  # 8 molecules fill one 128-row block exactly
    NBLOCKS = 4                       # 4 packed blocks -> 32 molecules total
    BLOCKS_PER_STEP = 2               # grid = 2 steps, MLP runs with M = 256

    k_par, k_graphs = jax.random.split(key)
    params = init_params(k_par, EMB_DIM, NUM_LAYERS)

    # Build per-molecule arrays, then pack GRAPHS_PER_BLOCK molecules per 128-row block.
    graph_arrays = []
    for gk in jax.random.split(k_graphs, NBLOCKS * GRAPHS_PER_BLOCK):
        k1, k2, k3, k4, k5, k6 = jax.random.split(gk, 6)
        x = jnp.stack(
            [jax.random.randint(k1, (N_REAL,), 0, NUM_ATOM_TYPE, dtype=jnp.int32),
             jax.random.randint(k2, (N_REAL,), 0, NUM_CHIRALITY, dtype=jnp.int32)], axis=1)
        edge_index = jnp.stack(
            [jax.random.randint(k3, (E,), 0, N_REAL, dtype=jnp.int32),
             jax.random.randint(k4, (E,), 0, N_REAL, dtype=jnp.int32)], axis=0)
        edge_attr = jnp.stack(
            [jax.random.randint(k5, (E,), 0, 4, dtype=jnp.int32),
             jax.random.randint(k6, (E,), 0, NUM_BOND_DIR, dtype=jnp.int32)], axis=1)
        graph_arrays.append(build_graph_arrays(x, edge_index, edge_attr, params))

    h0_blocks, adj_list, cnt_blocks = [], [], []
    for b in range(NBLOCKS):
        h0b, adjb, cntb = pack_graphs(
            graph_arrays[b * GRAPHS_PER_BLOCK:(b + 1) * GRAPHS_PER_BLOCK], NPAD)
        h0_blocks.append(h0b); adj_list.append(adjb); cnt_blocks.append(cntb)

    h0_all = jnp.concatenate(h0_blocks, axis=0).astype(jnp.bfloat16)    # [NBLOCKS*128, D]
    adj_blocks = jnp.stack(adj_list).astype(jnp.bfloat16)               # [NBLOCKS, 128, 128]
    cnt_all = jnp.concatenate(cnt_blocks, axis=0)                       # [NBLOCKS*128, 9]
    cnt_all = jnp.pad(cnt_all, ((0, 0), (0, CPAD - cnt_all.shape[1]))).astype(jnp.bfloat16)

    # Resident per-layer edge-embedding stack [L, CPAD, D] (replaces the streamed esum).
    e_stack = jnp.concatenate([params["edge_emb1"], params["edge_emb2"]], axis=1)
    e_stack = jnp.pad(e_stack, ((0, 0), (0, CPAD - e_stack.shape[1]), (0, 0))).astype(jnp.bfloat16)

    # BN folded into the second linear; bf16 MXU operands, f32 biases.
    w1_bf = params["w1"].astype(jnp.bfloat16)
    w2_fold, b2_fold = fold_bn_into_linear(params)

    out = token_mae_clf_forward(h0_all, adj_blocks, cnt_all, e_stack,
                                w1_bf, params["b1"], w2_fold, b2_fold,
                                blocks_per_step=BLOCKS_PER_STEP)
    out = jax.block_until_ready(out)
    assert out.shape == (NBLOCKS * NPAD, EMB_DIM)

    ref = reference_forward(h0_all, adj_blocks, cnt_all, e_stack,
                            w1_bf, params["b1"], w2_fold, b2_fold, NPAD)

    # Every row is a real node here (graphs exactly fill each block); compare all rows.
    assert jnp.allclose(out, ref, atol=2e-2, rtol=2e-2), "mismatch vs JAX reference"

    print("KERNEL_OK")
</pallas_src>

<mosaic_0001>
module attributes {stable_mosaic.version = 11 : i64} {
  func.func @gin_stack_kernel(%arg0: i32, %arg1: memref<256x128xbf16, #tpu.memory_space<vmem>>, %arg2: memref<2x128x128xbf16, #tpu.memory_space<vmem>>, %arg3: memref<256x16xbf16, #tpu.memory_space<vmem>>, %arg4: memref<5x16x128xbf16, #tpu.memory_space<vmem>>, %arg5: memref<5x128x256xbf16, #tpu.memory_space<vmem>>, %arg6: memref<5x1x256xf32, #tpu.memory_space<vmem>>, %arg7: memref<5x256x128xbf16, #tpu.memory_space<vmem>>, %arg8: memref<5x1x128xf32, #tpu.memory_space<vmem>>, %arg9: memref<256x128xf32, #tpu.memory_space<vmem>>) attributes {dimension_semantics = [#tpu.dimension_semantics<parallel>], iteration_bounds = array<i64: 2>, scalar_prefetch = 0 : i64, scratch_operands = 0 : i64, tpu.core_type = #tpu.core_type<tc>, window_params = [{transform_indices = @transform_0, window_bounds = array<i64: 256, 128>}, {transform_indices = @transform_1, window_bounds = array<i64: 2, 128, 128>}, {transform_indices = @transform_2, window_bounds = array<i64: 256, 16>}, {pipeline_mode = #tpu.pipeline_mode<synchronous>, transform_indices = @transform_3, window_bounds = array<i64: 5, 16, 128>}, {pipeline_mode = #tpu.pipeline_mode<synchronous>, transform_indices = @transform_4, window_bounds = array<i64: 5, 128, 256>}, {pipeline_mode = #tpu.pipeline_mode<synchronous>, transform_indices = @transform_5, window_bounds = array<i64: 5, 1, 256>}, {pipeline_mode = #tpu.pipeline_mode<synchronous>, transform_indices = @transform_6, window_bounds = array<i64: 5, 256, 128>}, {pipeline_mode = #tpu.pipeline_mode<synchronous>, transform_indices = @transform_7, window_bounds = array<i64: 5, 1, 128>}, {transform_indices = @transform_8, window_bounds = array<i64: 256, 128>}]} {
    %c0 = arith.constant 0 : index
    %c0_0 = arith.constant 0 : index
    %0 = vector.load %arg1[%c0, %c0_0] : memref<256x128xbf16, #tpu.memory_space<vmem>>, vector<256x128xbf16>
    %c0_1 = arith.constant 0 : index
    %c0_2 = arith.constant 0 : index
    %1 = vector.load %arg3[%c0_1, %c0_2] : memref<256x16xbf16, #tpu.memory_space<vmem>>, vector<256x16xbf16>
    %c0_3 = arith.constant 0 : index
    %c0_4 = arith.constant 0 : index
    %c0_5 = arith.constant 0 : index
    %2 = vector.load %arg2[%c0_3, %c0_4, %c0_5] : memref<2x128x128xbf16, #tpu.memory_space<vmem>>, vector<1x128x128xbf16>
    %3 = vector.shape_cast %2 : vector<1x128x128xbf16> to vector<128x128xbf16>
    %4 = vector.extract_strided_slice %0 {offsets = [0, 0], sizes = [128, 128], strides = [1, 1]} : vector<256x128xbf16> to vector<128x128xbf16>
    %cst = arith.constant dense<0.000000e+00> : vector<128x128xf32>
    %5 = tpu.matmul %3, %4, %cst {dimension_numbers = #tpu.dot_dimension_numbers<[1], [0], [0], [1], [0, 0, 1, 1], [], []>} : vector<128x128xbf16>, vector<128x128xbf16>, vector<128x128xf32> -> vector<128x128xf32>
    %c1 = arith.constant 1 : index
    %c0_6 = arith.constant 0 : index
    %c0_7 = arith.constant 0 : index
    %6 = vector.load %arg2[%c1, %c0_6, %c0_7] : memref<2x128x128xbf16, #tpu.memory_space<vmem>>, vector<1x128x128xbf16>
    %7 = vector.shape_cast %6 : vector<1x128x128xbf16> to vector<128x128xbf16>
    %8 = vector.extract_strided_slice %0 {offsets = [128, 0], sizes = [128, 128], strides = [1, 1]} : vector<256x128xbf16> to vector<128x128xbf16>
    %cst_8 = arith.constant dense<0.000000e+00> : vector<128x128xf32>
    %9 = tpu.matmul %7, %8, %cst_8 {dimension_numbers = #tpu.dot_dimension_numbers<[1], [0], [0], [1], [0, 0, 1, 1], [], []>} : vector<128x128xbf16>, vector<128x128xbf16>, vector<128x128xf32> -> vector<128x128xf32>
    %10 = tpu.concatenate %5, %9 in 0 : vector<128x128xf32>, vector<128x128xf32> -> vector<256x128xf32>
    %c0_9 = arith.constant 0 : index
    %c0_10 = arith.constant 0 : index
    %c0_11 = arith.constant 0 : index
    %11 = vector.load %arg4[%c0_9, %c0_10, %c0_11] : memref<5x16x128xbf16, #tpu.memory_space<vmem>>, vector<1x16x128xbf16>
    %12 = vector.shape_cast %11 : vector<1x16x128xbf16> to vector<16x128xbf16>
    %cst_12 = arith.constant dense<0.000000e+00> : vector<256x128xf32>
    %13 = tpu.matmul %1, %12, %cst_12 {dimension_numbers = #tpu.dot_dimension_numbers<[1], [0], [0], [1], [0, 0, 1, 1], [], []>} : vector<256x16xbf16>, vector<16x128xbf16>, vector<256x128xf32> -> vector<256x128xf32>
    %14 = arith.addf %10, %13 : vector<256x128xf32>
    %15 = arith.truncf %14 : vector<256x128xf32> to vector<256x128xbf16>
    %c0_13 = arith.constant 0 : index
    %c0_14 = arith.constant 0 : index
    %c0_15 = arith.constant 0 : index
    %16 = vector.load %arg5[%c0_13, %c0_14, %c0_15] : memref<5x128x256xbf16, #tpu.memory_space<vmem>>, vector<1x128x256xbf16>
    %17 = vector.shape_cast %16 : vector<1x128x256xbf16> to vector<128x256xbf16>
    %cst_16 = arith.constant dense<0.000000e+00> : vector<256x256xf32>
    %18 = tpu.matmul %15, %17, %cst_16 {dimension_numbers = #tpu.dot_dimension_numbers<[1], [0], [0], [1], [0, 0, 1, 1], [], []>} : vector<256x128xbf16>, vector<128x256xbf16>, vector<256x256xf32> -> vector<256x256xf32>
    %c0_17 = arith.constant 0 : index
    %c0_18 = arith.constant 0 : index
    %c0_19 = arith.constant 0 : index
    %19 = vector.load %arg6[%c0_17, %c0_18, %c0_19] : memref<5x1x256xf32, #tpu.memory_space<vmem>>, vector<1x1x256xf32>
    %20 = vector.shape_cast %19 : vector<1x1x256xf32> to vector<1x256xf32>
    %21 = vector.broadcast %20 : vector<1x256xf32> to vector<256x256xf32>
    %22 = arith.addf %18, %21 : vector<256x256xf32>
    %cst_20 = arith.constant 0.000000e+00 : f32
    %23 = vector.broadcast %cst_20 : f32 to vector<256x256xf32>
    %24 = arith.maximumf %22, %23 : vector<256x256xf32>
    %25 = arith.truncf %24 : vector<256x256xf32> to vector<256x256xbf16>
    %c0_21 = arith.constant 0 : index
    %c0_22 = arith.constant 0 : index
    %c0_23 = arith.constant 0 : index
    %26 = vector.load %arg7[%c0_21, %c0_22, %c0_23] : memref<5x256x128xbf16, #tpu.memory_space<vmem>>, vector<1x256x128xbf16>
    %27 = vector.shape_cast %26 : vector<1x256x128xbf16> to vector<256x128xbf16>
    %cst_24 = arith.constant dense<0.000000e+00> : vector<256x128xf32>
    %28 = tpu.matmul %25, %27, %cst_24 {dimension_numbers = #tpu.dot_dimension_numbers<[1], [0], [0], [1], [0, 0, 1, 1], [], []>} : vector<256x256xbf16>, vector<256x128xbf16>, vector<256x128xf32> -> vector<256x128xf32>
    %c0_25 = arith.constant 0 : index
    %c0_26 = arith.constant 0 : index
    %c0_27 = arith.constant 0 : index
    %29 = vector.load %arg8[%c0_25, %c0_26, %c0_27] : memref<5x1x128xf32, #tpu.memory_space<vmem>>, vector<1x1x128xf32>
    %30 = vector.shape_cast %29 : vector<1x1x128xf32> to vector<1x128xf32>
    %31 = vector.broadcast %30 : vector<1x128xf32> to vector<256x128xf32>
    %32 = arith.addf %28, %31 : vector<256x128xf32>
    %cst_28 = arith.constant 0.000000e+00 : f32
    %33 = vector.broadcast %cst_28 : f32 to vector<256x128xf32>
    %34 = arith.maximumf %32, %33 : vector<256x128xf32>
    %35 = arith.truncf %34 : vector<256x128xf32> to vector<256x128xbf16>
    %c0_29 = arith.constant 0 : index
    %c0_30 = arith.constant 0 : index
    %c0_31 = arith.constant 0 : index
    %36 = vector.load %arg2[%c0_29, %c0_30, %c0_31] : memref<2x128x128xbf16, #tpu.memory_space<vmem>>, vector<1x128x128xbf16>
    %37 = vector.shape_cast %36 : vector<1x128x128xbf16> to vector<128x128xbf16>
    %38 = vector.extract_strided_slice %35 {offsets = [0, 0], sizes = [128, 128], strides = [1, 1]} : vector<256x128xbf16> to vector<128x128xbf16>
    %cst_32 = arith.constant dense<0.000000e+00> : vector<128x128xf32>
    %39 = tpu.matmul %37, %38, %cst_32 {dimension_numbers = #tpu.dot_dimension_numbers<[1], [0], [0], [1], [0, 0, 1, 1], [], []>} : vector<128x128xbf16>, vector<128x128xbf16>, vector<128x128xf32> -> vector<128x128xf32>
    %c1_33 = arith.constant 1 : index
    %c0_34 = arith.constant 0 : index
    %c0_35 = arith.constant 0 : index
    %40 = vector.load %arg2[%c1_33, %c0_34, %c0_35] : memref<2x128x128xbf16, #tpu.memory_space<vmem>>, vector<1x128x128xbf16>
    %41 = vector.shape_cast %40 : vector<1x128x128xbf16> to vector<128x128xbf16>
    %42 = vector.extract_strided_slice %35 {offsets = [128, 0], sizes = [128, 128], strides = [1, 1]} : vector<256x128xbf16> to vector<128x128xbf16>
    %cst_36 = arith.constant dense<0.000000e+00> : vector<128x128xf32>
    %43 = tpu.matmul %41, %42, %cst_36 {dimension_numbers = #tpu.dot_dimension_numbers<[1], [0], [0], [1], [0, 0, 1, 1], [], []>} : vector<128x128xbf16>, vector<128x128xbf16>, vector<128x128xf32> -> vector<128x128xf32>
    %44 = tpu.concatenate %39, %43 in 0 : vector<128x128xf32>, vector<128x128xf32> -> vector<256x128xf32>
    %c1_37 = arith.constant 1 : index
    %c0_38 = arith.constant 0 : index
    %c0_39 = arith.constant 0 : index
    %45 = vector.load %arg4[%c1_37, %c0_38, %c0_39] : memref<5x16x128xbf16, #tpu.memory_space<vmem>>, vector<1x16x128xbf16>
    %46 = vector.shape_cast %45 : vector<1x16x128xbf16> to vector<16x128xbf16>
    %cst_40 = arith.constant dense<0.000000e+00> : vector<256x128xf32>
    %47 = tpu.matmul %1, %46, %cst_40 {dimension_numbers = #tpu.dot_dimension_numbers<[1], [0], [0], [1], [0, 0, 1, 1], [], []>} : vector<256x16xbf16>, vector<16x128xbf16>, vector<256x128xf32> -> vector<256x128xf32>
    %48 = arith.addf %44, %47 : vector<256x128xf32>
    %49 = arith.truncf %48 : vector<256x128xf32> to vector<256x128xbf16>
    %c1_41 = arith.constant 1 : index
    %c0_42 = arith.constant 0 : index
    %c0_43 = arith.constant 0 : index
    %50 = vector.load %arg5[%c1_41, %c0_42, %c0_43] : memref<5x128x256xbf16, #tpu.memory_space<vmem>>, vector<1x128x256xbf16>
    %51 = vector.shape_cast %50 : vector<1x128x256xbf16> to vector<128x256xbf16>
    %cst_44 = arith.constant dense<0.000000e+00> : vector<256x256xf32>
    %52 = tpu.matmul %49, %51, %cst_44 {dimension_numbers = #tpu.dot_dimension_numbers<[1], [0], [0], [1], [0, 0, 1, 1], [], []>} : vector<256x128xbf16>, vector<128x256xbf16>, vector<256x256xf32> -> vector<256x256xf32>
    %c1_45 = arith.constant 1 : index
    %c0_46 = arith.constant 0 : index
    %c0_47 = arith.constant 0 : index
    %53 = vector.load %arg6[%c1_45, %c0_46, %c0_47] : memref<5x1x256xf32, #tpu.memory_space<vmem>>, vector<1x1x256xf32>
    %54 = vector.shape_cast %53 : vector<1x1x256xf32> to vector<1x256xf32>
    %55 = vector.broadcast %54 : vector<1x256xf32> to vector<256x256xf32>
    %56 = arith.addf %52, %55 : vector<256x256xf32>
    %cst_48 = arith.constant 0.000000e+00 : f32
    %57 = vector.broadcast %cst_48 : f32 to vector<256x256xf32>
    %58 = arith.maximumf %56, %57 : vector<256x256xf32>
    %59 = arith.truncf %58 : vector<256x256xf32> to vector<256x256xbf16>
    %c1_49 = arith.constant 1 : index
    %c0_50 = arith.constant 0 : index
    %c0_51 = arith.constant 0 : index
    %60 = vector.load %arg7[%c1_49, %c0_50, %c0_51] : memref<5x256x128xbf16, #tpu.memory_space<vmem>>, vector<1x256x128xbf16>
    %61 = vector.shape_cast %60 : vector<1x256x128xbf16> to vector<256x128xbf16>
    %cst_52 = arith.constant dense<0.000000e+00> : vector<256x128xf32>
    %62 = tpu.matmul %59, %61, %cst_52 {dimension_numbers = #tpu.dot_dimension_numbers<[1], [0], [0], [1], [0, 0, 1, 1], [], []>} : vector<256x256xbf16>, vector<256x128xbf16>, vector<256x128xf32> -> vector<256x128xf32>
    %c1_53 = arith.constant 1 : index
    %c0_54 = arith.constant 0 : index
    %c0_55 = arith.constant 0 : index
    %63 = vector.load %arg8[%c1_53, %c0_54, %c0_55] : memref<5x1x128xf32, #tpu.memory_space<vmem>>, vector<1x1x128xf32>
    %64 = vector.shape_cast %63 : vector<1x1x128xf32> to vector<1x128xf32>
    %65 = vector.broadcast %64 : vector<1x128xf32> to vector<256x128xf32>
    %66 = arith.addf %62, %65 : vector<256x128xf32>
    %cst_56 = arith.constant 0.000000e+00 : f32
    %67 = vector.broadcast %cst_56 : f32 to vector<256x128xf32>
    %68 = arith.maximumf %66, %67 : vector<256x128xf32>
    %69 = arith.truncf %68 : vector<256x128xf32> to vector<256x128xbf16>
    %c0_57 = arith.constant 0 : index
    %c0_58 = arith.constant 0 : index
    %c0_59 = arith.constant 0 : index
    %70 = vector.load %arg2[%c0_57, %c0_58, %c0_59] : memref<2x128x128xbf16, #tpu.memory_space<vmem>>, vector<1x128x128xbf16>
    %71 = vector.shape_cast %70 : vector<1x128x128xbf16> to vector<128x128xbf16>
    %72 = vector.extract_strided_slice %69 {offsets = [0, 0], sizes = [128, 128], strides = [1, 1]} : vector<256x128xbf16> to vector<128x128xbf16>
    %cst_60 = arith.constant dense<0.000000e+00> : vector<128x128xf32>
    %73 = tpu.matmul %71, %72, %cst_60 {dimension_numbers = #tpu.dot_dimension_numbers<[1], [0], [0], [1], [0, 0, 1, 1], [], []>} : vector<128x128xbf16>, vector<128x128xbf16>, vector<128x128xf32> -> vector<128x128xf32>
    %c1_61 = arith.constant 1 : index
    %c0_62 = arith.constant 0 : index
    %c0_63 = arith.constant 0 : index
    %74 = vector.load %arg2[%c1_61, %c0_62, %c0_63] : memref<2x128x128xbf16, #tpu.memory_space<vmem>>, vector<1x128x128xbf16>
    %75 = vector.shape_cast %74 : vector<1x128x128xbf16> to vector<128x128xbf16>
    %76 = vector.extract_strided_slice %69 {offsets = [128, 0], sizes = [128, 128], strides = [1, 1]} : vector<256x128xbf16> to vector<128x128xbf16>
    %cst_64 = arith.constant dense<0.000000e+00> : vector<128x128xf32>
    %77 = tpu.matmul %75, %76, %cst_64 {dimension_numbers = #tpu.dot_dimension_numbers<[1], [0], [0], [1], [0, 0, 1, 1], [], []>} : vector<128x128xbf16>, vector<128x128xbf16>, vector<128x128xf32> -> vector<128x128xf32>
    %78 = tpu.concatenate %73, %77 in 0 : vector<128x128xf32>, vector<128x128xf32> -> vector<256x128xf32>
    %c2 = arith.constant 2 : index
    %c0_65 = arith.constant 0 : index
    %c0_66 = arith.constant 0 : index
    %79 = vector.load %arg4[%c2, %c0_65, %c0_66] : memref<5x16x128xbf16, #tpu.memory_space<vmem>>, vector<1x16x128xbf16>
    %80 = vector.shape_cast %79 : vector<1x16x128xbf16> to vector<16x128xbf16>
    %cst_67 = arith.constant dense<0.000000e+00> : vector<256x128xf32>
    %81 = tpu.matmul %1, %80, %cst_67 {dimension_numbers = #tpu.dot_dimension_numbers<[1], [0], [0], [1], [0, 0, 1, 1], [], []>} : vector<256x16xbf16>, vector<16x128xbf16>, vector<256x128xf32> -> vector<256x128xf32>
    %82 = arith.addf %78, %81 : vector<256x128xf32>
    %83 = arith.truncf %82 : vector<256x128xf32> to vector<256x128xbf16>
    %c2_68 = arith.constant 2 : index
    %c0_69 = arith.constant 0 : index
    %c0_70 = arith.constant 0 : index
    %84 = vector.load %arg5[%c2_68, %c0_69, %c0_70] : memref<5x128x256xbf16, #tpu.memory_space<vmem>>, vector<1x128x256xbf16>
    %85 = vector.shape_cast %84 : vector<1x128x256xbf16> to vector<128x256xbf16>
    %cst_71 = arith.constant dense<0.000000e+00> : vector<256x256xf32>
    %86 = tpu.matmul %83, %85, %cst_71 {dimension_numbers = #tpu.dot_dimension_numbers<[1], [0], [0], [1], [0, 0, 1, 1], [], []>} : vector<256x128xbf16>, vector<128x256xbf16>, vector<256x256xf32> -> vector<256x256xf32>
    %c2_72 = arith.constant 2 : index
    %c0_73 = arith.constant 0 : index
    %c0_74 = arith.constant 0 : index
    %87 = vector.load %arg6[%c2_72, %c0_73, %c0_74] : memref<5x1x256xf32, #tpu.memory_space<vmem>>, vector<1x1x256xf32>
    %88 = vector.shape_cast %87 : vector<1x1x256xf32> to vector<1x256xf32>
    %89 = vector.broadcast %88 : vector<1x256xf32> to vector<256x256xf32>
    %90 = arith.addf %86, %89 : vector<256x256xf32>
    %cst_75 = arith.constant 0.000000e+00 : f32
    %91 = vector.broadcast %cst_75 : f32 to vector<256x256xf32>
    %92 = arith.maximumf %90, %91 : vector<256x256xf32>
    %93 = arith.truncf %92 : vector<256x256xf32> to vector<256x256xbf16>
    %c2_76 = arith.constant 2 : index
    %c0_77 = arith.constant 0 : index
    %c0_78 = arith.constant 0 : index
    %94 = vector.load %arg7[%c2_76, %c0_77, %c0_78] : memref<5x256x128xbf16, #tpu.memory_space<vmem>>, vector<1x256x128xbf16>
    %95 = vector.shape_cast %94 : vector<1x256x128xbf16> to vector<256x128xbf16>
    %cst_79 = arith.constant dense<0.000000e+00> : vector<256x128xf32>
    %96 = tpu.matmul %93, %95, %cst_79 {dimension_numbers = #tpu.dot_dimension_numbers<[1], [0], [0], [1], [0, 0, 1, 1], [], []>} : vector<256x256xbf16>, vector<256x128xbf16>, vector<256x128xf32> -> vector<256x128xf32>
    %c2_80 = arith.constant 2 : index
    %c0_81 = arith.constant 0 : index
    %c0_82 = arith.constant 0 : index
    %97 = vector.load %arg8[%c2_80, %c0_81, %c0_82] : memref<5x1x128xf32, #tpu.memory_space<vmem>>, vector<1x1x128xf32>
    %98 = vector.shape_cast %97 : vector<1x1x128xf32> to vector<1x128xf32>
    %99 = vector.broadcast %98 : vector<1x128xf32> to vector<256x128xf32>
    %100 = arith.addf %96, %99 : vector<256x128xf32>
    %cst_83 = arith.constant 0.000000e+00 : f32
    %101 = vector.broadcast %cst_83 : f32 to vector<256x128xf32>
    %102 = arith.maximumf %100, %101 : vector<256x128xf32>
    %103 = arith.truncf %102 : vector<256x128xf32> to vector<256x128xbf16>
    %c0_84 = arith.constant 0 : index
    %c0_85 = arith.constant 0 : index
    %c0_86 = arith.constant 0 : index
    %104 = vector.load %arg2[%c0_84, %c0_85, %c0_86] : memref<2x128x128xbf16, #tpu.memory_space<vmem>>, vector<1x128x128xbf16>
    %105 = vector.shape_cast %104 : vector<1x128x128xbf16> to vector<128x128xbf16>
    %106 = vector.extract_strided_slice %103 {offsets = [0, 0], sizes = [128, 128], strides = [1, 1]} : vector<256x128xbf16> to vector<128x128xbf16>
    %cst_87 = arith.constant dense<0.000000e+00> : vector<128x128xf32>
    %107 = tpu.matmul %105, %106, %cst_87 {dimension_numbers = #tpu.dot_dimension_numbers<[1], [0], [0], [1], [0, 0, 1, 1], [], []>} : vector<128x128xbf16>, vector<128x128xbf16>, vector<128x128xf32> -> vector<128x128xf32>
    %c1_88 = arith.constant 1 : index
    %c0_89 = arith.constant 0 : index
    %c0_90 = arith.constant 0 : index
    %108 = vector.load %arg2[%c1_88, %c0_89, %c0_90] : memref<2x128x128xbf16, #tpu.memory_space<vmem>>, vector<1x128x128xbf16>
    %109 = vector.shape_cast %108 : vector<1x128x128xbf16> to vector<128x128xbf16>
    %110 = vector.extract_strided_slice %103 {offsets = [128, 0], sizes = [128, 128], strides = [1, 1]} : vector<256x128xbf16> to vector<128x128xbf16>
    %cst_91 = arith.constant dense<0.000000e+00> : vector<128x128xf32>
    %111 = tpu.matmul %109, %110, %cst_91 {dimension_numbers = #tpu.dot_dimension_numbers<[1], [0], [0], [1], [0, 0, 1, 1], [], []>} : vector<128x128xbf16>, vector<128x128xbf16>, vector<128x128xf32> -> vector<128x128xf32>
    %112 = tpu.concatenate %107, %111 in 0 : vector<128x128xf32>, vector<128x128xf32> -> vector<256x128xf32>
    %c3 = arith.constant 3 : index
    %c0_92 = arith.constant 0 : index
    %c0_93 = arith.constant 0 : index
    %113 = vector.load %arg4[%c3, %c0_92, %c0_93] : memref<5x16x128xbf16, #tpu.memory_space<vmem>>, vector<1x16x128xbf16>
    %114 = vector.shape_cast %113 : vector<1x16x128xbf16> to vector<16x128xbf16>
    %cst_94 = arith.constant dense<0.000000e+00> : vector<256x128xf32>
    %115 = tpu.matmul %1, %114, %cst_94 {dimension_numbers = #tpu.dot_dimension_numbers<[1], [0], [0], [1], [0, 0, 1, 1], [], []>} : vector<256x16xbf16>, vector<16x128xbf16>, vector<256x128xf32> -> vector<256x128xf32>
    %116 = arith.addf %112, %115 : vector<256x128xf32>
    %117 = arith.truncf %116 : vector<256x128xf32> to vector<256x128xbf16>
    %c3_95 = arith.constant 3 : index
    %c0_96 = arith.constant 0 : index
    %c0_97 = arith.constant 0 : index
    %118 = vector.load %arg5[%c3_95, %c0_96, %c0_97] : memref<5x128x256xbf16, #tpu.memory_space<vmem>>, vector<1x128x256xbf16>
    %119 = vector.shape_cast %118 : vector<1x128x256xbf16> to vector<128x256xbf16>
    %cst_98 = arith.constant dense<0.000000e+00> : vector<256x256xf32>
    %120 = tpu.matmul %117, %119, %cst_98 {dimension_numbers = #tpu.dot_dimension_numbers<[1], [0], [0], [1], [0, 0, 1, 1], [], []>} : vector<256x128xbf16>, vector<128x256xbf16>, vector<256x256xf32> -> vector<256x256xf32>
    %c3_99 = arith.constant 3 : index
    %c0_100 = arith.constant 0 : index
    %c0_101 = arith.constant 0 : index
    %121 = vector.load %arg6[%c3_99, %c0_100, %c0_101] : memref<5x1x256xf32, #tpu.memory_space<vmem>>, vector<1x1x256xf32>
    %122 = vector.shape_cast %121 : vector<1x1x256xf32> to vector<1x256xf32>
    %123 = vector.broadcast %122 : vector<1x256xf32> to vector<256x256xf32>
    %124 = arith.addf %120, %123 : vector<256x256xf32>
    %cst_102 = arith.constant 0.000000e+00 : f32
    %125 = vector.broadcast %cst_102 : f32 to vector<256x256xf32>
    %126 = arith.maximumf %124, %125 : vector<256x256xf32>
    %127 = arith.truncf %126 : vector<256x256xf32> to vector<256x256xbf16>
    %c3_103 = arith.constant 3 : index
    %c0_104 = arith.constant 0 : index
    %c0_105 = arith.constant 0 : index
    %128 = vector.load %arg7[%c3_103, %c0_104, %c0_105] : memref<5x256x128xbf16, #tpu.memory_space<vmem>>, vector<1x256x128xbf16>
    %129 = vector.shape_cast %128 : vector<1x256x128xbf16> to vector<256x128xbf16>
    %cst_106 = arith.constant dense<0.000000e+00> : vector<256x128xf32>
    %130 = tpu.matmul %127, %129, %cst_106 {dimension_numbers = #tpu.dot_dimension_numbers<[1], [0], [0], [1], [0, 0, 1, 1], [], []>} : vector<256x256xbf16>, vector<256x128xbf16>, vector<256x128xf32> -> vector<256x128xf32>
    %c3_107 = arith.constant 3 : index
    %c0_108 = arith.constant 0 : index
    %c0_109 = arith.constant 0 : index
    %131 = vector.load %arg8[%c3_107, %c0_108, %c0_109] : memref<5x1x128xf32, #tpu.memory_space<vmem>>, vector<1x1x128xf32>
    %132 = vector.shape_cast %131 : vector<1x1x128xf32> to vector<1x128xf32>
    %133 = vector.broadcast %132 : vector<1x128xf32> to vector<256x128xf32>
    %134 = arith.addf %130, %133 : vector<256x128xf32>
    %cst_110 = arith.constant 0.000000e+00 : f32
    %135 = vector.broadcast %cst_110 : f32 to vector<256x128xf32>
    %136 = arith.maximumf %134, %135 : vector<256x128xf32>
    %137 = arith.truncf %136 : vector<256x128xf32> to vector<256x128xbf16>
    %c0_111 = arith.constant 0 : index
    %c0_112 = arith.constant 0 : index
    %c0_113 = arith.constant 0 : index
    %138 = vector.load %arg2[%c0_111, %c0_112, %c0_113] : memref<2x128x128xbf16, #tpu.memory_space<vmem>>, vector<1x128x128xbf16>
    %139 = vector.shape_cast %138 : vector<1x128x128xbf16> to vector<128x128xbf16>
    %140 = vector.extract_strided_slice %137 {offsets = [0, 0], sizes = [128, 128], strides = [1, 1]} : vector<256x128xbf16> to vector<128x128xbf16>
    %cst_114 = arith.constant dense<0.000000e+00> : vector<128x128xf32>
    %141 = tpu.matmul %139, %140, %cst_114 {dimension_numbers = #tpu.dot_dimension_numbers<[1], [0], [0], [1], [0, 0, 1, 1], [], []>} : vector<128x128xbf16>, vector<128x128xbf16>, vector<128x128xf32> -> vector<128x128xf32>
    %c1_115 = arith.constant 1 : index
    %c0_116 = arith.constant 0 : index
    %c0_117 = arith.constant 0 : index
    %142 = vector.load %arg2[%c1_115, %c0_116, %c0_117] : memref<2x128x128xbf16, #tpu.memory_space<vmem>>, vector<1x128x128xbf16>
    %143 = vector.shape_cast %142 : vector<1x128x128xbf16> to vector<128x128xbf16>
    %144 = vector.extract_strided_slice %137 {offsets = [128, 0], sizes = [128, 128], strides = [1, 1]} : vector<256x128xbf16> to vector<128x128xbf16>
    %cst_118 = arith.constant dense<0.000000e+00> : vector<128x128xf32>
    %145 = tpu.matmul %143, %144, %cst_118 {dimension_numbers = #tpu.dot_dimension_numbers<[1], [0], [0], [1], [0, 0, 1, 1], [], []>} : vector<128x128xbf16>, vector<128x128xbf16>, vector<128x128xf32> -> vector<128x128xf32>
    %146 = tpu.concatenate %141, %145 in 0 : vector<128x128xf32>, vector<128x128xf32> -> vector<256x128xf32>
    %c4 = arith.constant 4 : index
    %c0_119 = arith.constant 0 : index
    %c0_120 = arith.constant 0 : index
    %147 = vector.load %arg4[%c4, %c0_119, %c0_120] : memref<5x16x128xbf16, #tpu.memory_space<vmem>>, vector<1x16x128xbf16>
    %148 = vector.shape_cast %147 : vector<1x16x128xbf16> to vector<16x128xbf16>
    %cst_121 = arith.constant dense<0.000000e+00> : vector<256x128xf32>
    %149 = tpu.matmul %1, %148, %cst_121 {dimension_numbers = #tpu.dot_dimension_numbers<[1], [0], [0], [1], [0, 0, 1, 1], [], []>} : vector<256x16xbf16>, vector<16x128xbf16>, vector<256x128xf32> -> vector<256x128xf32>
    %150 = arith.addf %146, %149 : vector<256x128xf32>
    %151 = arith.truncf %150 : vector<256x128xf32> to vector<256x128xbf16>
    %c4_122 = arith.constant 4 : index
    %c0_123 = arith.constant 0 : index
    %c0_124 = arith.constant 0 : index
    %152 = vector.load %arg5[%c4_122, %c0_123, %c0_124] : memref<5x128x256xbf16, #tpu.memory_space<vmem>>, vector<1x128x256xbf16>
    %153 = vector.shape_cast %152 : vector<1x128x256xbf16> to vector<128x256xbf16>
    %cst_125 = arith.constant dense<0.000000e+00> : vector<256x256xf32>
    %154 = tpu.matmul %151, %153, %cst_125 {dimension_numbers = #tpu.dot_dimension_numbers<[1], [0], [0], [1], [0, 0, 1, 1], [], []>} : vector<256x128xbf16>, vector<128x256xbf16>, vector<256x256xf32> -> vector<256x256xf32>
    %c4_126 = arith.constant 4 : index
    %c0_127 = arith.constant 0 : index
    %c0_128 = arith.constant 0 : index
    %155 = vector.load %arg6[%c4_126, %c0_127, %c0_128] : memref<5x1x256xf32, #tpu.memory_space<vmem>>, vector<1x1x256xf32>
    %156 = vector.shape_cast %155 : vector<1x1x256xf32> to vector<1x256xf32>
    %157 = vector.broadcast %156 : vector<1x256xf32> to vector<256x256xf32>
    %158 = arith.addf %154, %157 : vector<256x256xf32>
    %cst_129 = arith.constant 0.000000e+00 : f32
    %159 = vector.broadcast %cst_129 : f32 to vector<256x256xf32>
    %160 = arith.maximumf %158, %159 : vector<256x256xf32>
    %161 = arith.truncf %160 : vector<256x256xf32> to vector<256x256xbf16>
    %c4_130 = arith.constant 4 : index
    %c0_131 = arith.constant 0 : index
    %c0_132 = arith.constant 0 : index
    %162 = vector.load %arg7[%c4_130, %c0_131, %c0_132] : memref<5x256x128xbf16, #tpu.memory_space<vmem>>, vector<1x256x128xbf16>
    %163 = vector.shape_cast %162 : vector<1x256x128xbf16> to vector<256x128xbf16>
    %cst_133 = arith.constant dense<0.000000e+00> : vector<256x128xf32>
    %164 = tpu.matmul %161, %163, %cst_133 {dimension_numbers = #tpu.dot_dimension_numbers<[1], [0], [0], [1], [0, 0, 1, 1], [], []>} : vector<256x256xbf16>, vector<256x128xbf16>, vector<256x128xf32> -> vector<256x128xf32>
    %c4_134 = arith.constant 4 : index
    %c0_135 = arith.constant 0 : index
    %c0_136 = arith.constant 0 : index
    %165 = vector.load %arg8[%c4_134, %c0_135, %c0_136] : memref<5x1x128xf32, #tpu.memory_space<vmem>>, vector<1x1x128xf32>
    %166 = vector.shape_cast %165 : vector<1x1x128xf32> to vector<1x128xf32>
    %167 = vector.broadcast %166 : vector<1x128xf32> to vector<256x128xf32>
    %168 = arith.addf %164, %167 : vector<256x128xf32>
    %c0_137 = arith.constant 0 : index
    %c0_138 = arith.constant 0 : index
    %169 = vector.load %arg9[%c0_137, %c0_138] : memref<256x128xf32, #tpu.memory_space<vmem>>, vector<256x128xf32>
    tpu.vector_store %arg9[%c0_137, %c0_138], %168 {strides = array<i32>} : memref<256x128xf32, #tpu.memory_space<vmem>>, vector<256x128xf32>,
    return
  }
  func.func @transform_0(%arg0: i32) -> (i32, i32) {
    %c0_i32 = arith.constant 0 : i32
    %c0_i32_0 = arith.constant 0 : i32
    return %arg0, %c0_i32 : i32, i32
  }
  func.func @transform_1(%arg0: i32) -> (i32, i32, i32) {
    %c0_i32 = arith.constant 0 : i32
    %c0_i32_0 = arith.constant 0 : i32
    %c0_i32_1 = arith.constant 0 : i32
    return %arg0, %c0_i32, %c0_i32_0 : i32, i32, i32
  }
  func.func @transform_2(%arg0: i32) -> (i32, i32) {
    %c0_i32 = arith.constant 0 : i32
    %c0_i32_0 = arith.constant 0 : i32
    return %arg0, %c0_i32 : i32, i32
  }
  func.func @transform_3(%arg0: i32) -> (i32, i32, i32) {
    %c0_i32 = arith.constant 0 : i32
    %c0_i32_0 = arith.constant 0 : i32
    %c0_i32_1 = arith.constant 0 : i32
    %c0_i32_2 = arith.constant 0 : i32
    return %c0_i32, %c0_i32_0, %c0_i32_1 : i32, i32, i32
  }
  func.func @transform_4(%arg0: i32) -> (i32, i32, i32) {
    %c0_i32 = arith.constant 0 : i32
    %c0_i32_0 = arith.constant 0 : i32
    %c0_i32_1 = arith.constant 0 : i32
    %c0_i32_2 = arith.constant 0 : i32
    return %c0_i32, %c0_i32_0, %c0_i32_1 : i32, i32, i32
  }
  func.func @transform_5(%arg0: i32) -> (i32, i32, i32) {
    %c0_i32 = arith.constant 0 : i32
    %c0_i32_0 = arith.constant 0 : i32
    %c0_i32_1 = arith.constant 0 : i32
    %c0_i32_2 = arith.constant 0 : i32
    return %c0_i32, %c0_i32_0, %c0_i32_1 : i32, i32, i32
  }
  func.func @transform_6(%arg0: i32) -> (i32, i32, i32) {
    %c0_i32 = arith.constant 0 : i32
    %c0_i32_0 = arith.constant 0 : i32
    %c0_i32_1 = arith.constant 0 : i32
    %c0_i32_2 = arith.constant 0 : i32
    return %c0_i32, %c0_i32_0, %c0_i32_1 : i32, i32, i32
  }
  func.func @transform_7(%arg0: i32) -> (i32, i32, i32) {
    %c0_i32 = arith.constant 0 : i32
    %c0_i32_0 = arith.constant 0 : i32
    %c0_i32_1 = arith.constant 0 : i32
    %c0_i32_2 = arith.constant 0 : i32
    return %c0_i32, %c0_i32_0, %c0_i32_1 : i32, i32, i32
  }
  func.func @transform_8(%arg0: i32) -> (i32, i32) {
    %c0_i32 = arith.constant 0 : i32
    %c0_i32_0 = arith.constant 0 : i32
    return %arg0, %c0_i32 : i32, i32
  }
}

</mosaic_0001>

<bundles_post_ra>
// kernel: tpu_custom_call.1
= control target key start
LH: loop header
LB: loop body
LE: loop exit
PB: predicated region body
PF: predicated region fallthrough
CT: control target
= control target key end

     0   :  { %13 = vsyncpa [#allocation3], 0  ;;  %s10390_s0 = inlined_call_operand.vmem [shape: bf16[512,128], index: 0, kind: input, shape index: {}]   ;;  %s10391_s1 = inlined_call_operand.hbm [shape: bf16[4,128,128], index: 1, kind: input, shape index: {}]   ;;  %s10392_s2 = inlined_call_operand.vmem [shape: bf16[512,16], index: 2, kind: input, shape index: {}]   ;;  %s10393_s3 = inlined_call_operand.vmem [shape: bf16[5,16,128], index: 3, kind: input, shape index: {}]   ;;  %s10394_s4 = inlined_call_operand.hbm [shape: bf16[5,128,256], index: 4, kind: input, shape index: {}]   ;;  %s10395_s5 = inlined_call_operand.vmem [shape: f32[5,1,256], index: 5, kind: input, shape index: {}]   ;;  %s10396_s6 = inlined_call_operand.hbm [shape: bf16[5,256,128], index: 6, kind: input, shape index: {}]   ;;  %s10397_s7 = inlined_call_operand.vmem [shape: f32[5,1,128], index: 7, kind: input, shape index: {}]   ;;  %s10398_s8 = inlined_call_operand.hbm [shape: f32[512,128], index: 8, kind: output, shape index: {}]  }
   0x1   :  { %15 = vsyncpa [#allocation3 + $0x1], 0 }
   0x2   :  { %16 = vsyncpa [#allocation6], 0 }
   0x3   :  { %17 = vsyncpa [#allocation4], 0 }
   0x4   :  { %19 = vsyncpa [#allocation4 + $0x1], 0  ;;  %s9193_s27 = smov 0   ;;  %s9195_s28 = smov 0  }
   0x5   :  { %s9197_s29 = smov 0   ;;  %s9199_s30 = smov 0  }
   0x6 LB: > { %s9214_s9 = sadd.s32 4294967295, %s9135_s30   ;;  %s6713_s10 = sadd.s32 4294967294, %s9135_s30   ;;  %s9135_s30 = sphi %s9199_s30, %s10422_s30   ;;  %s9131_s29 = sphi %s9197_s29, %s10421_s29   ;;  %s9127_s28 = sphi %s9195_s28, %s10420_s28   ;;  %s9123_s27 = sphi %s9193_s27, %s10419_s27  }
   0x7   : > { %p71_p0 = scmp.ne.s32.totalorder %s9127_s28, %s9123_s27  ;;  %p10399_p1 = scmp.eq.s32.totalorder %s9214_s9, 0 }
   0x8   : > { %p232_p3 = scmp.eq.s32.totalorder %s6713_s10, 1  ;;  %p6714_p5 = scmp.ge.s32.totalorder %s9135_s30, 1 }
   0x9   : > { %p9223_p4 = por %p10399_p1, %p71_p0  ;;  %p239_p7 = scmp.lt.s32.totalorder %s9135_s30, 3 }
   0xa   : > { %p9228_p6 = por %p232_p3, %p71_p0  ;;  %s9137_s14 = smov [#allocation5]  }
   0xb   : > { %s10404_s11 = scalar_select %p9223_p4, 1, 0 }
   0xc   : > { %s10405_s12 = scalar_select %p9228_p6, 1, 0 }
   0xd   : > { %p9233_p8 = pnand %p6714_p5, %p239_p7  ;;  %s254_s15 = sshll.u32 %s9137_s14, 4  ;;  %s9237_s15 = int_to_ptr.vmem [resolvable:$true] %s254_s15 }
   0xe   : > { %s9138_s17 = smov [#allocation7]   ;;  %s8979_s21 = scalar_lea.hbm %s10394_s4, 10240 }
   0xf   : > { %p8536_p9 = pneg %p9233_p8  ;;  %s270_s18 = sshll.u32 %s9138_s17, 4  ;;  %s9248_s18 = int_to_ptr.vmem [resolvable:$true] %s270_s18 }
  0x10   : > { %p8980_p12 = scmp.ne.s32.totalorder %s10394_s4, %s8979_s21  ;;  %p8986_p5 = scmp.lt.u32.totalorder %s8979_s21, %s10394_s4 }
  0x11   : > { %p9244_p11 = pnand %p8536_p9, %p10399_p1 }
  0x13   : > { %p8981_p13 = pneg %p9244_p11 }
  0x15   : > { %p8982_p0 = pnand %p8981_p13, %p8980_p12 }
  0x17   : > { %p8983_p3 = pneg %p8982_p0 }
  0x19   : > { %p8988_p7 = pnand %p8986_p5, %p8983_p3 }
  0x1b   : > { %8991 = shalt.err (!%p8988_p7)
}
  0x1c   : > { %s8992_s26 = scalar_lea.vmem %s9237_s15, 10240  ;;  %p9000_p2 = scmp.lt.s32.totalorder %s9237_s15, %s9237_s15 }
  0x1d   : > { %p8993_p9 = scmp.ne.s32.totalorder %s9237_s15, %s8992_s26  ;;  %p9001_p12 = scmp.lt.s32.totalorder %s8992_s26, %s8992_s26 }
  0x1f   : > { %p8995_p10 = pnand %p8993_p9, %p8981_p13  ;;  %p9002_p0 = por %p9001_p12, %p9000_p2 }
  0x21   : > { %p8996_p1 = pneg %p8995_p10 }
  0x23   : > { %p9003_p6 = pnand %p9002_p0, %p8996_p1 }
  0x25   : > { %9006 = shalt.err (!%p9003_p6)
}
  0x26   : > { %s9139_s10 = smov 128   ;;  %s9140_s14 = smov 8  }
  0x27   : > { %8539 = dma.hbm_to_vmem [thread:$0]  (!%p9244_p11), %s10394_s4, 10240, %s9237_s15, [#allocation6], %s9139_s10, %s9139_s10, %s9140_s14  }
  0x28   : > { %s9007_s22 = scalar_lea.hbm %s10396_s6, 10240 }
  0x29   : > { %p9008_p2 = scmp.ne.s32.totalorder %s10396_s6, %s9007_s22  ;;  %p9014_p10 = scmp.lt.u32.totalorder %s9007_s22, %s10396_s6 }
  0x2b   : > { %p9010_p1 = pnand %p9008_p2, %p8981_p13 }
  0x2d   : > { %p9011_p6 = pneg %p9010_p1 }
  0x2f   : > { %p9016_p3 = pnand %p9014_p10, %p9011_p6 }
  0x31   : > { %9019 = shalt.err (!%p9016_p3)
}
  0x32   : > { %s9020_s15 = scalar_lea.vmem %s9248_s18, 10240  ;;  %p9028_p12 = scmp.lt.s32.totalorder %s9248_s18, %s9248_s18 }
  0x33   : > { %p9021_p5 = scmp.ne.s32.totalorder %s9248_s18, %s9020_s15  ;;  %p9029_p0 = scmp.lt.s32.totalorder %s9020_s15, %s9020_s15 }
  0x35   : > { %p9023_p7 = pnand %p9021_p5, %p8981_p13  ;;  %p9030_p2 = por %p9029_p0, %p9028_p12 }
  0x37   : > { %p9024_p9 = pneg %p9023_p7 }
  0x39   : > { %p9031_p1 = pnand %p9030_p2, %p9024_p9 }
  0x3b   : > { %9034 = shalt.err (!%p9031_p1)
}
  0x3c   : > { %s10400_s10 = smov 64   ;;  %s10401_s14 = smov 4  }
  0x3d   : > { %8542 = dma.hbm_to_vmem [thread:$0]  (!%p9244_p11), %s10396_s6, 10240, %s9248_s18, [#allocation6], %s10400_s10, %s10400_s10, %s10401_s14  }
  0x3e   : > { %s9306_s20 = sadd.s32 1, %s9135_s30   ;;  %s58_s22 = sadd.s32 1, %s9131_s29 }
  0x3f   : > { %s55_s21 = ssub.s32 %s9135_s30, %s9306_s20  ;;  %p65_p6 = scmp.ne.s32.totalorder %s9131_s29, %s9127_s28 }
  0x40   : > { %p56_p13 = scmp.eq.s32.totalorder %s55_s21, 0  ;;  %p66_p10 = scmp.eq.s32.totalorder %s9135_s30, 0 }
  0x41   : > { %p10408_p5 = scmp.eq.s32.totalorder %s9214_s9, 1  ;;  %p8553_p9 = scmp.lt.s32.totalorder %s9135_s30, 2 }
  0x42   : > { %s9315_s23 = scalar_select %p56_p13, %s9131_s29, %s58_s22  }
  0x43   : > { %p67_p3 = por %p66_p10, %p65_p6  ;;  %p9319_p7 = por %p10408_p5, %p65_p6 }
  0x44   : > { %s296_s24 = sand.u32 1, %s9131_s29   ;;  %s7067_s18 = sshll.u32 %s9135_s30, 11 }
  0x45   : > { %s10409_s16 = scalar_select %p9319_p7, 1, 0 }
  0x46   : > { %s6718_s25 = sshll.u32 %s296_s24, 7  ;;  %s9329_s17 = scalar_lea.hbm %s10391_s1, %s7067_s18 }
  0x47   : > { %s300_s19 = scalar_lea.vmem [#allocation2], %s6718_s25  ;;  %p9333_p11 = pnand %p8553_p9, %p67_p3 }
  0x48   : > { %s308_s21 = sshll.u32 %s300_s19, 4  ;;  %s9337_s10 = scalar_lea.sflag [#allocation3], %s296_s24  ;;  %s9331_s21 = int_to_ptr.vmem [resolvable:$true] %s308_s21 }
  0x49   : > { %s9035_s14 = scalar_lea.hbm %s9329_s17, 2048  ;;  %p9037_p0 = pneg %p9333_p11 }
  0x4a   : > { %p9036_p12 = scmp.ne.s32.totalorder %s9329_s17, %s9035_s14  ;;  %s9040_s26 = scalar_lea.hbm %s10391_s1, 4096 }
  0x4b   : > { %p9041_p13 = scmp.lt.u32.totalorder %s9329_s17, %s10391_s1  ;;  %p9042_p6 = scmp.lt.u32.totalorder %s9040_s26, %s9035_s14 }
  0x4c   : > { %p9038_p2 = pnand %p9037_p0, %p9036_p12  ;;  %p9044_p3 = scmp.lt.u32.totalorder %s9035_s14, %s9329_s17 }
  0x4d   : > { %p9043_p10 = por %p9042_p6, %p9041_p13 }
  0x4e   : > { %p9039_p1 = pneg %p9038_p2 }
  0x4f   : > { %p9045_p5 = por %p9044_p3, %p9043_p10 }
  0x51   : > { %p9046_p9 = pnand %p9045_p5, %p9039_p1 }
  0x53   : > { %9049 = shalt.err (!%p9046_p9)
}
  0x54   : > { %s9050_s24 = scalar_lea.vmem %s9331_s21, 2048  ;;  %s9143_s25 = smov [#allocation2]  }
  0x55   : > { %p9051_p12 = scmp.ne.s32.totalorder %s9331_s21, %s9050_s24  ;;  %s9055_s18 = sshll.u32 %s9143_s25, 4  ;;  %s9056_s18 = int_to_ptr.vmem [resolvable:$false] %s9055_s18 }
  0x56   : > { %s9057_s15 = scalar_lea.vmem %s9056_s18, 4096  ;;  %p9058_p4 = scmp.lt.s32.totalorder %s9331_s21, %s9056_s18 }
  0x57   : > { %p9053_p2 = pnand %p9051_p12, %p9037_p0  ;;  %p9059_p13 = scmp.lt.s32.totalorder %s9057_s15, %s9050_s24 }
  0x59   : > { %p9054_p7 = pneg %p9053_p2  ;;  %p9060_p6 = por %p9059_p13, %p9058_p4 }
  0x5b   : > { %p9061_p10 = pnand %p9060_p6, %p9054_p7 }
  0x5d   : > { %9064 = shalt.err (!%p9061_p10)
}
  0x5e   : > { %s10411_s14 = smov 4   ;;  %s10412_s26 = smov 64  }
  0x5f   : > { %8546 = dma.hbm_to_vmem [thread:$0]  (!%p9333_p11), %s9329_s17, 2048, %s9331_s21, %s9337_s10, %s10412_s26, %s10412_s26, %s10411_s14  }
  0x60   : > { %329 = sbr.rel (%p9233_p8) target bundleno = 4213 (0x1075), region = 52  ;;  %s9371_s19 = sand.u32 (!%p9233_p8), 1, %s9127_s28  }
  0x61   : > { %s6723_s24 = sshll.u32 (!%p9233_p8), %s9371_s19, 7  ;;  %s332_s25 = scalar_lea.sflag (!%p9233_p8), [#allocation3], %s9371_s19 }
  0x62   : > { %s9375_s18 = scalar_lea.vmem (!%p9233_p8), [#allocation2], %s6723_s24  ;;  %p10413_p4 = scmp.ne.s32.totalorder (!%p9233_p8), %s10404_s11, 0 }
  0x67   : > { %9110 = dma.done.wait (%p10413_p4), %s332_s25, 2048  }
  0x68   : > { %9112 = vsyncadd (%p10413_p4), %s332_s25, 4294965248  ;;  %p10414_p7 = scmp.eq.s32.totalorder %s9214_s9, 0 }
  0x6a   : > { %9114 = dma.done.wait (%p10414_p7), [#allocation6], 20480   ;;  %p10415_p8 = pmov %p10414_p7 }
  0x6b   : > { %s6727_s13 = sshll.u32 %s9214_s9, 5  ;;  %v8605_v3 = vld [vmem:[%s10393_s3] sm:$0xff]   ;;  %vm972_vm0 = vcmask 130048   ;;  %v8610_v18 = vld [vmem:[%s9375_s18 + $0x8] sm:$0xff]   ;;  %v8611_v19 = vld [vmem:[%s9375_s18 + $0x10] sm:$0xff]   ;;  %s6726_s21 = sshll.u32 %s9371_s19, 8 }
  0x6c   : > { %9116 = vsyncadd (%p10415_p8), [#allocation6], 4294946816  ;;  %p387_p11 = scmp.lt.s32.totalorder %s6727_s13, 63  ;;  %7938 = vmatprep.subr.bf16.mxu1 %v8605_v3  ;;  %v8609_v7 = vld [vmem:[%s9375_s18] sm:$0xff]   ;;  %v8613_v24 = vld [vmem:[%s9375_s18 + $0x18] sm:$0xff]   ;;  %s10274_s15 = scalar_lea.vmem [#allocation8], %s6726_s21 }
  0x6d   : > { %7939 = vmatpush3.bf16.msra.mxu1 %v8605_v3  ;;  %7890 = vmatprep.mubr.bf16.mxu0 %v8609_v7  ;;  %v8615_v25 = vld [vmem:[%s9375_s18 + $0x20] sm:$0xff]   ;;  %v8617_v30 = vld [vmem:[%s9375_s18 + $0x28] sm:$0xff]   ;;  %v8623_v31 = vld [vmem:[%s9375_s18 + $0x30] sm:$0xff]   ;;  %s7068_s26 = sshll.u32 %s9214_s9, 12  ;;  %s6597_s24 = sshll.u32 %s10274_s15, 4  ;;  %s10343_s24 = int_to_ptr.vmem [resolvable:$true] %s6597_s24 }
  0x6e   : > { %s10424_s13 = smov (!%p387_p11, %s6727_s13), 63  ;;  %v8625_v36 = vld [vmem:[%s9375_s18 + $0x38] sm:$0xff]   ;;  %v8631_v38 = vld [vmem:[%s9375_s18 + $0x40] sm:$0xff]   ;;  %v8633_v42 = vld [vmem:[%s9375_s18 + $0x48] sm:$0xff]   ;;  %s6584_s9 = scalar_lea.sflag [#allocation4], %s9371_s19 }
  0x6f   : > { %s6728_s10 = sshll.u32 %s10424_s13, 2  ;;  %v8649_v41 = vld [vmem:[#allocation5 + $0x4] ss:$8 sps:$4 sm:$0xff]   ;;  %v8635_v43 = vld [vmem:[%s9375_s18 + $0x50] sm:$0xff]   ;;  %v8647_v44 = vld [vmem:[#allocation5] ss:$8 sps:$4 sm:$0xff]  }
  0x70   : > { %s9389_s22 = scalar_lea.vmem %s10390_s0, %s6728_s10  ;;  %s9397_s14 = scalar_lea.vmem %s10392_s2, %s6728_s10  ;;  %v8652_v45 = vld [vmem:[#allocation5 + $0x14] ss:$8 sps:$4 sm:$0xff]   ;;  %v8650_v47 = vld [vmem:[#allocation5 + $0x10] ss:$8 sps:$4 sm:$0xff]   ;;  %v8655_v48 = vld [vmem:[#allocation5 + $0x24] ss:$8 sps:$4 sm:$0xff]  }
  0x71   : > { %v8598_v0 = vld [vmem:[%s9389_s22] sm:$0xff]   ;;  %v8599_v1 = vld [vmem:[%s9389_s22 + $0x8] sm:$0xff]   ;;  %v8600_v2 = vld [vmem:[%s9389_s22 + $0x10] sm:$0xff]   ;;  %s10341_s10 = scalar_lea.hbm %s10398_s8, %s7068_s26  ;;  %s9065_s17 = scalar_lea.vmem %s10343_s24, 4096 }
  0x72   : > { %7874 = vmatprep.subr.bf16.mxu0 %v8598_v0  ;;  %v8601_v4 = vld [vmem:[%s9389_s22 + $0x18] sm:$0xff]   ;;  %v8607_v5 = vld [vmem:[%s9397_s14] sm:$0xff]   ;;  %v8608_v6 = vld [vmem:[%s9397_s14 + $0x8] sm:$0xff]   ;;  %p9066_p0 = scmp.ne.s32.totalorder %s10343_s24, %s9065_s17  ;;  %p10416_p1 = scmp.ne.s32.totalorder %s10409_s16, 0 }
  0x73   : > { %7875 = vmatpush3.bf16.msra.mxu0 %v8598_v0  ;;  %7940 = vmatprep.mubr.msk.bf16.mxu1 %vm972_vm0, %v8607_v5  ;;  %v8602_v8 = vld [vmem:[%s9389_s22 + $0x20] sm:$0xff]   ;;  %v8612_v9 = vld [vmem:[%s9397_s14 + $0x10] sm:$0xff]   ;;  %v8603_v10 = vld [vmem:[%s9389_s22 + $0x28] sm:$0xff]  }
  0x74   : > { %7876 = vmatprep.subr.bf16.mxu0 %v8599_v1  ;;  %7941 = vmatmul.mubr.msk.bf16.vlgmr.msra.gmra.mrb[0].mxu1 %vm972_vm0, %v8608_v6  ;;  %v8614_v11 = vld [vmem:[%s9397_s14 + $0x18] sm:$0xff]   ;;  %v8616_v12 = vld [vmem:[%s9397_s14 + $0x20] sm:$0xff]   ;;  %v8604_v13 = vld [vmem:[%s9389_s22 + $0x30] sm:$0xff]   ;;  %p9067_p3 = pnand %p9066_p0, %p10416_p1 }
  0x75   : > { %7944 = vmatprep.mubr.msk.bf16.mxu1 %vm972_vm0, %v8612_v9  ;;  %v8606_v14 = vld [vmem:[%s9389_s22 + $0x38] sm:$0xff]   ;;  %v8619_v15 = vld [vmem:[%s9397_s14 + $0x28] sm:$0xff]   ;;  %v8624_v16 = vld [vmem:[%s9397_s14 + $0x30] sm:$0xff]  }
  0x76   : > { %v8618_v17 = vld [vmem:[%s9389_s22 + $0x40] sm:$0xff]   ;;  %v8620_v20 = vld [vmem:[%s9389_s22 + $0x48] sm:$0xff]   ;;  %v8627_v21 = vld [vmem:[%s9397_s14 + $0x38] sm:$0xff]   ;;  %p9068_p5 = pneg %p9067_p3 }
  0x77   : > { %7877 = vmatpush3.bf16.msra.mxu0 %v8599_v1  ;;  %v8632_v22 = vld [vmem:[%s9397_s14 + $0x40] sm:$0xff]   ;;  %v8621_v23 = vld [vmem:[%s9389_s22 + $0x50] sm:$0xff]   ;;  %v8622_v26 = vld [vmem:[%s9389_s22 + $0x58] sm:$0xff]   ;;  %v9144_v1 = vmov 0  }
  0x78   : > { %7878 = vmatprep.subr.bf16.mxu0 %v8600_v2  ;;  %v8634_v27 = vld [vmem:[%s9397_s14 + $0x48] sm:$0xff]   ;;  %v8636_v28 = vld [vmem:[%s9397_s14 + $0x50] sm:$0xff]   ;;  %v8626_v29 = vld [vmem:[%s9389_s22 + $0x60] sm:$0xff]  }
  0x79   : > { %v8628_v32 = vld [vmem:[%s9389_s22 + $0x68] sm:$0xff]   ;;  %v8638_v33 = vld [vmem:[%s9397_s14 + $0x58] sm:$0xff]   ;;  %v8640_v34 = vld [vmem:[%s9397_s14 + $0x60] sm:$0xff]  }
  0x7a   : > { %v8629_v35 = vld [vmem:[%s9389_s22 + $0x70] sm:$0xff]   ;;  %v8630_v37 = vld [vmem:[%s9389_s22 + $0x78] sm:$0xff]   ;;  %v8642_v39 = vld [vmem:[%s9397_s14 + $0x68] sm:$0xff]  }
  0x7b   : > { %7879 = vmatpush3.bf16.msra.mxu0 %v8600_v2  ;;  %v8644_v40 = vld [vmem:[%s9397_s14 + $0x70] sm:$0xff]   ;;  %v8646_v46 = vld [vmem:[%s9397_s14 + $0x78] sm:$0xff]   ;;  %v8639_v50 = vld [vmem:[%s9375_s18 + $0x60] sm:$0xff]  }
  0x7c   : > { %7880 = vmatprep.subr.bf16.mxu0 %v8601_v4  ;;  %7945 = vmatmul.mubr.msk.bf16.gmra.mrb[4].mxu1 %vm972_vm0, %v8614_v11  ;;  %v8637_v49 = vld [vmem:[%s9375_s18 + $0x58] sm:$0xff]   ;;  %v8653_v51 = vld [vmem:[#allocation5 + $0x20] ss:$8 sps:$4 sm:$0xff]   ;;  %v8661_v54 = vld [vmem:[#allocation5 + $0x44] ss:$8 sps:$4 sm:$0xff]  }
  0x7d   : > { %7948 = vmatprep.mubr.msk.bf16.mxu1 %vm972_vm0, %v8616_v12  ;;  %v8658_v52 = vld [vmem:[#allocation5 + $0x34] ss:$8 sps:$4 sm:$0xff]   ;;  %v8656_v53 = vld [vmem:[#allocation5 + $0x30] ss:$8 sps:$4 sm:$0xff]   ;;  %v8641_v55 = vld [vmem:[%s9375_s18 + $0x68] sm:$0xff]  }
  0x7e   : > { %v8643_v56 = vld [vmem:[%s9375_s18 + $0x70] sm:$0xff]   ;;  %v8659_v57 = vld [vmem:[#allocation5 + $0x40] ss:$8 sps:$4 sm:$0xff]   ;;  %v8645_v60 = vld [vmem:[%s9375_s18 + $0x78] sm:$0xff]  }
  0x7f   : > { %7881 = vmatpush3.bf16.msra.mxu0 %v8601_v4  ;;  %v8664_v58 = vld [vmem:[#allocation5 + $0x54] ss:$8 sps:$4 sm:$0xff]   ;;  %v8662_v59 = vld [vmem:[#allocation5 + $0x50] ss:$8 sps:$4 sm:$0xff]   ;;  %v8667_v61 = vld [vmem:[#allocation5 + $0x64] ss:$8 sps:$4 sm:$0xff]  }
  0x80   : > { %7882 = vmatprep.subr.bf16.mxu0 %v8602_v8  ;;  %v8665_v62 = vld [vmem:[#allocation5 + $0x60] ss:$8 sps:$4 sm:$0xff]   ;;  %v8670_v63 = vld [vmem:[#allocation5 + $0x74] ss:$8 sps:$4 sm:$0xff]   ;;  %v8668_v0 = vld [vmem:[#allocation5 + $0x70] ss:$8 sps:$4 sm:$0xff]  }
  0x83   : > { %7883 = vmatpush3.bf16.msra.mxu0 %v8602_v8 }
  0x84   : > { %7884 = vmatprep.subr.bf16.mxu0 %v8603_v10  ;;  %7949 = vmatmul.mubr.msk.bf16.gmra.mrb[8].mxu1 %vm972_vm0, %v8619_v15  ;;  %v8671_v15 = vld [vmem:[#allocation7 + $0x40] sm:$0xff]  }
  0x85   : > { %7952 = vmatprep.mubr.msk.bf16.mxu1 %vm972_vm0, %v8624_v16  ;;  %v8672_v16 = vld [vmem:[#allocation7] sm:$0xff]   ;;  %7118 = vmatprep.subr.bf16.mxu1 %v8671_v15 }
  0x86   : > { %7119 = vmatpush3.bf16.msra.mxu1 %v8672_v16 }
  0x87   : > { %7885 = vmatpush3.bf16.msra.mxu0 %v8603_v10 }
  0x88   : > { %7886 = vmatprep.subr.bf16.mxu0 %v8604_v13 }
  0x8b   : > { %7887 = vmatpush3.bf16.msra.mxu0 %v8604_v13 }
  0x8c   : > { %7888 = vmatprep.subr.bf16.mxu0 %v8606_v14  ;;  %7953 = vmatmul.mubr.msk.bf16.gmra.mrb[12].mxu1 %vm972_vm0, %v8627_v21 }
  0x8d   : > { %7956 = vmatprep.mubr.msk.bf16.mxu1 %vm972_vm0, %v8632_v22 }
  0x8f   : > { %7889 = vmatpush3.bf16.msra.mxu0 %v8606_v14 }
  0x90   : > { %7906 = vmatprep.subr.bf16.mxu0 %v8618_v17 }
  0x92   : > { %7891 = vmatmul.mubr.bf16.vlgmr.msra.gmra.mrb[0].mxu0 %v8610_v18 }
  0x93   : > { %7894 = vmatprep.mubr.bf16.mxu0 %v8611_v19  ;;  %7907 = vmatpush3.bf16.msra.mxu0 %v8618_v17  ;;  %v8673_v17 = vld [vmem:[#allocation7 + $0x48] sm:$0xff]  }
  0x94   : > { %7908 = vmatprep.subr.bf16.mxu0 %v8620_v20  ;;  %7957 = vmatmul.mubr.msk.bf16.gmra.mrb[16].mxu1 %vm972_vm0, %v8634_v27 }
  0x95   : > { %7960 = vmatprep.mubr.msk.bf16.mxu1 %vm972_vm0, %v8636_v28  ;;  %7120 = vmatprep.subr.bf16.mxu1 %v8673_v17  ;;  %v8675_v28 = vld [vmem:[#allocation7 + $0x50] sm:$0xff]  }
  0x97   : > { %7909 = vmatpush3.bf16.msra.mxu0 %v8620_v20 }
  0x98   : > { %7910 = vmatprep.subr.bf16.mxu0 %v8621_v23 }
  0x9a   : > { %7895 = vmatmul.mubr.bf16.gmra.mrb[4].mxu0 %v8613_v24 }
  0x9b   : > { %7898 = vmatprep.mubr.bf16.mxu0 %v8615_v25  ;;  %7911 = vmatpush3.bf16.msra.mxu0 %v8621_v23  ;;  %v8674_v25 = vld [vmem:[#allocation7 + $0x8] sm:$0xff]  }
  0x9c   : > { %7912 = vmatprep.subr.bf16.mxu0 %v8622_v26  ;;  %7961 = vmatmul.mubr.msk.bf16.gmra.mrb[20].mxu1 %vm972_vm0, %v8638_v33  ;;  %v8676_v33 = vld [vmem:[#allocation7 + $0x10] sm:$0xff]  }
  0x9d   : > { %7964 = vmatprep.mubr.msk.bf16.mxu1 %vm972_vm0, %v8640_v34  ;;  %7121 = vmatpush3.bf16.msra.mxu1 %v8674_v25 }
  0x9e   : > { %7122 = vmatprep.subr.bf16.mxu1 %v8675_v28 }
  0x9f   : > { %7913 = vmatpush3.bf16.msra.mxu0 %v8622_v26 }
  0xa0   : > { %7914 = vmatprep.subr.bf16.mxu0 %v8626_v29 }
  0xa1   : > { %7123 = vmatpush3.bf16.msra.mxu1 %v8676_v33 }
  0xa2   : > { %7899 = vmatmul.mubr.bf16.gmra.mrb[8].mxu0 %v8617_v30 }
  0xa3   : > { %7902 = vmatprep.mubr.bf16.mxu0 %v8623_v31  ;;  %7915 = vmatpush3.bf16.msra.mxu0 %v8626_v29 }
  0xa4   : > { %7916 = vmatprep.subr.bf16.mxu0 %v8628_v32  ;;  %7965 = vmatmul.mubr.msk.bf16.gmra.mrb[24].mxu1 %vm972_vm0, %v8642_v39 }
  0xa5   : > { %7968 = vmatprep.mubr.msk.bf16.mxu1 %vm972_vm0, %v8644_v40 }
  0xa7   : > { %7917 = vmatpush3.bf16.msra.mxu0 %v8628_v32 }
  0xa8   : > { %7918 = vmatprep.subr.bf16.mxu0 %v8629_v35 }
  0xaa   : > { %7903 = vmatmul.mubr.bf16.gmra.mrb[12].mxu0 %v8625_v36 }
  0xab   : > { %7919 = vmatpush3.bf16.msra.mxu0 %v8629_v35  ;;  %7922 = vmatprep.mubr.bf16.mxu0 %v8631_v38  ;;  %v8677_v35 = vld [vmem:[#allocation7 + $0x58] sm:$0xff]  }
  0xac   : > { %7920 = vmatprep.subr.bf16.mxu0 %v8630_v37  ;;  %7969 = vmatmul.mubr.msk.bf16.gmra.mrb[28].mxu1 %vm972_vm0, %v8646_v46  ;;  %v8679_v46 = vld [vmem:[#allocation7 + $0x60] sm:$0xff]  }
  0xad   : > { %7124 = vmatprep.subr.bf16.mxu1 %v8677_v35 }
  0xaf   : > { %7921 = vmatpush3.bf16.msra.mxu0 %v8630_v37 }
  0xb0   : > { %1338 = vmatprep.subr.bf16.mxu0 %v8649_v41 }
  0xb2   : > { %7923 = vmatmul.mubr.bf16.vlgmr.msra.gmra.mrb[16].mxu0 %v8633_v42 }
  0xb3   : > { %7926 = vmatprep.mubr.bf16.mxu0 %v8635_v43  ;;  %1339 = vmatpush1.bf16.msra.mxu0 %v8647_v44  ;;  %v8678_v43 = vld [vmem:[#allocation7 + $0x18] sm:$0xff]  }
  0xb4   : > { %1340 = vmatprep.subr.bf16.mxu0 %v8652_v45  ;;  %7125 = vmatpush3.bf16.msra.mxu1 %v8678_v43 }
  0xb5   : > { %7126 = vmatprep.subr.bf16.mxu1 %v8679_v46 }
  0xb7   : > { %1341 = vmatpush1.bf16.msra.mxu0 %v8650_v47 }
  0xb8   : > { %1342 = vmatprep.subr.bf16.mxu0 %v8655_v48 }
  0xba   : > { %7927 = vmatmul.mubr.bf16.gmra.mrb[20].mxu0 %v8637_v49 }
  0xbb   : > { %7930 = vmatprep.mubr.bf16.mxu0 %v8639_v50  ;;  %1343 = vmatpush1.bf16.msra.mxu0 %v8653_v51  ;;  %v8680_v51 = vld [vmem:[#allocation7 + $0x20] sm:$0xff]  }
  0xbc   : > { %1344 = vmatprep.subr.bf16.mxu0 %v8658_v52  ;;  %7127 = vmatpush3.bf16.msra.mxu1 %v8680_v51 }
  0xbf   : > { %1345 = vmatpush1.bf16.msra.mxu0 %v8656_v53  ;;  %v8681_v53 = vld [vmem:[#allocation7 + $0x68] sm:$0xff]  }
  0xc0   : > { %1346 = vmatprep.subr.bf16.mxu0 %v8661_v54  ;;  %7128 = vmatprep.subr.bf16.mxu1 %v8681_v53 }
  0xc2   : > { %7931 = vmatmul.mubr.bf16.gmra.mrb[24].mxu0 %v8641_v55 }
  0xc3   : > { %7934 = vmatprep.mubr.bf16.mxu0 %v8643_v56  ;;  %1347 = vmatpush1.bf16.msra.mxu0 %v8659_v57 }
  0xc4   : > { %1348 = vmatprep.subr.bf16.mxu0 %v8664_v58 }
  0xc7   : > { %1349 = vmatpush1.bf16.msra.mxu0 %v8662_v59 }
  0xc8   : > { %1350 = vmatprep.subr.bf16.mxu0 %v8667_v61 }
  0xca   : > { %7935 = vmatmul.mubr.bf16.gmra.mrb[28].mxu0 %v8645_v60 }
  0xcb   : > { %1351 = vmatpush1.bf16.msra.mxu0 %v8665_v62  ;;  %1370 = vmatprep.mubr.bf16.mxu0 %v9144_v1 }
  0xcc   : > { %1352 = vmatprep.subr.bf16.mxu0 %v8670_v63 }
  0xcf   : > { %1353 = vmatpush1.bf16.msra.mxu0 %v8668_v0 }
 0x147   : > { %v7942_v2 = vpop.f32.mrb[0].mxu1 }
 0x148   : > { %v1055_v3 = vpop.f32.mrb[1].mxu1 }
 0x149   : > { %v7943_v4 = vpop.f32.mrb[2].mxu1 }
 0x14a   : > { %v1058_v5 = vpop.f32.mrb[3].mxu1 }
 0x14f   : > { %v7946_v6 = vpop.f32.mrb[4].mxu1 }
 0x150   : > { %v1071_v7 = vpop.f32.mrb[5].mxu1 }
 0x151   : > { %v7947_v8 = vpop.f32.mrb[6].mxu1 }
 0x152   : > { %v1074_v9 = vpop.f32.mrb[7].mxu1 }
 0x157   : > { %v7950_v10 = vpop.f32.mrb[8].mxu1 }
 0x158   : > { %v1087_v11 = vpop.f32.mrb[9].mxu1 }
 0x159   : > { %v7951_v12 = vpop.f32.mrb[10].mxu1 }
 0x15a   : > { %v1090_v13 = vpop.f32.mrb[11].mxu1 }
 0x15f   : > { %v7954_v24 = vpop.f32.mrb[12].mxu1 }
 0x160   : > { %v1103_v27 = vpop.f32.mrb[13].mxu1 }
 0x161   : > { %v7955_v30 = vpop.f32.mrb[14].mxu1 }
 0x162   : > { %v1106_v32 = vpop.f32.mrb[15].mxu1 }
 0x165   : > { %v7892_v14 = vpop.f32.mrb[0].mxu0 }
 0x166   : > { %v1184_v18 = vadd.f32 %v7942_v2, %v7892_v14  ;;  %v611_v19 = vpop.f32.mrb[1].mxu0 }
 0x167   : > { %v1182_v20 = vadd.f32 %v1055_v3, %v611_v19  ;;  %v7893_v21 = vpop.f32.mrb[2].mxu0  ;;  %v7958_v42 = vpop.f32.mrb[16].mxu1 }
 0x168   : > { %v1185_v22 = vadd.f32 %v7943_v4, %v7893_v21  ;;  %v614_v23 = vpop.f32.mrb[3].mxu0  ;;  %v1119_v45 = vpop.f32.mrb[17].mxu1 }
 0x169   : > { %v1183_v26 = vadd.f32 %v1058_v5, %v614_v23  ;;  %v7959_v48 = vpop.f32.mrb[18].mxu1 }
 0x16a   : > { %v1215_v29 = vpack.c.bf16 %v1185_v22, %v1184_v18  ;;  %v1122_v50 = vpop.f32.mrb[19].mxu1 }
 0x16b   : > { %v1214_v31 = vpack.c.bf16 %v1183_v26, %v1182_v20 }
 0x16d   : > { %1371 = vmatmul.mubr.bf16.vlgmr.msra.gmra.mrb[32].mxu0 %v1214_v31  ;;  %v7896_v34 = vpop.f32.mrb[4].mxu0 }
 0x16e   : > { %v1188_v36 = vadd.f32 %v7946_v6, %v7896_v34  ;;  %v627_v37 = vpop.f32.mrb[5].mxu0  ;;  %1380 = vmatprep.mubr.bf16.mxu0 %v9144_v1 }
 0x16f   : > { %v1186_v38 = vadd.f32 %v1071_v7, %v627_v37  ;;  %v7897_v39 = vpop.f32.mrb[6].mxu0  ;;  %v7962_v60 = vpop.f32.mrb[20].mxu1 }
 0x170   : > { %v1189_v40 = vadd.f32 %v7947_v8, %v7897_v39  ;;  %v630_v41 = vpop.f32.mrb[7].mxu0  ;;  %v1135_v62 = vpop.f32.mrb[21].mxu1 }
 0x171   : > { %v1187_v44 = vadd.f32 %v1074_v9, %v630_v41  ;;  %v7963_v0 = vpop.f32.mrb[22].mxu1 }
 0x172   : > { %v1217_v47 = vpack.c.bf16 %v1189_v40, %v1188_v36  ;;  %v1138_v3 = vpop.f32.mrb[23].mxu1 }
 0x173   : > { %v1216_v49 = vpack.c.bf16 %v1187_v44, %v1186_v38 }
 0x175   : > { %1381 = vmatmul.mubr.bf16.gmra.mrb[36].mxu0 %v1215_v29  ;;  %v7900_v52 = vpop.f32.mrb[8].mxu0 }
 0x176   : > { %1390 = vmatprep.mubr.bf16.mxu0 %v9144_v1  ;;  %v1192_v54 = vadd.f32 %v7950_v10, %v7900_v52  ;;  %v643_v55 = vpop.f32.mrb[9].mxu0 }
 0x177   : > { %v1190_v56 = vadd.f32 %v1087_v11, %v643_v55  ;;  %v7901_v57 = vpop.f32.mrb[10].mxu0  ;;  %v7966_v11 = vpop.f32.mrb[24].mxu1 }
 0x178   : > { %v1193_v58 = vadd.f32 %v7951_v12, %v7901_v57  ;;  %v646_v59 = vpop.f32.mrb[11].mxu0 }
 0x179   : > { %v1191_v61 = vadd.f32 %v1090_v13, %v646_v59  ;;  %v1151_v13 = vpop.f32.mrb[25].mxu1 }
 0x17a   : > { %v1219_v63 = vpack.c.bf16 %v1193_v58, %v1192_v54  ;;  %v7967_v15 = vpop.f32.mrb[26].mxu1 }
 0x17b   : > { %v1218_v2 = vpack.c.bf16 %v1191_v61, %v1190_v56  ;;  %v1154_v17 = vpop.f32.mrb[27].mxu1 }
 0x17d   : > { %1391 = vmatmul.mubr.bf16.gmra.mrb[40].mxu0 %v1216_v49  ;;  %v7904_v4 = vpop.f32.mrb[12].mxu0 }
 0x17e   : > { %1400 = vmatprep.mubr.bf16.mxu0 %v9144_v1  ;;  %v9467_v5 = vadd.f32 %v7954_v24, %v7904_v4  ;;  %v659_v6 = vpop.f32.mrb[13].mxu0  ;;  %v8851_v4 = vld [vmem:[%s9375_s18] sm:$0xff]  }
 0x17f   : > { %v1194_v7 = vadd.f32 %v1103_v27, %v659_v6  ;;  %v7905_v8 = vpop.f32.mrb[14].mxu0  ;;  %v7970_v25 = vpop.f32.mrb[28].mxu1 }
 0x180   : > { %v1197_v9 = vadd.f32 %v7955_v30, %v7905_v8  ;;  %v662_v10 = vpop.f32.mrb[15].mxu0  ;;  %v1167_v27 = vpop.f32.mrb[29].mxu1  ;;  %v1246_v8 = vld [vmem:[%s10395_s5] sm:$0x3] }
 0x181   : > { %v1195_v12 = vadd.f32 %v1106_v32, %v662_v10  ;;  %v7971_v29 = vpop.f32.mrb[30].mxu1 }
 0x182   : > { %v1221_v14 = vpack.c.bf16 %v1197_v9, %v9467_v5  ;;  %v1170_v31 = vpop.f32.mrb[31].mxu1  ;;  %v1248_v5 = vlaneseq }
 0x183   : > { %v1220_v16 = vpack.c.bf16 %v1195_v12, %v1194_v7 }
 0x184   : > { %v1249_v6 = vshrl.u32 %v1248_v5, 7 }
 0x185   : > { %1401 = vmatmul.mubr.bf16.gmra.mrb[44].mxu0 %v1217_v47  ;;  %v7924_v18 = vpop.f32.mrb[16].mxu0 }
 0x186   : > { %1410 = vmatprep.mubr.bf16.mxu0 %v9144_v1  ;;  %v1200_v19 = vadd.f32 %v7958_v42, %v7924_v18  ;;  %v821_v20 = vpop.f32.mrb[17].mxu0  ;;  %v9483_v7 = vsub.s32 0, %v1249_v6  ;;  %v9488_v9 = vsub.s32 1, %v1249_v6 }
 0x187   : > { %v1198_v21 = vadd.f32 %v1119_v45, %v821_v20  ;;  %v7925_v22 = vpop.f32.mrb[18].mxu0 }
 0x188   : > { %v1201_v23 = vadd.f32 %v7959_v48, %v7925_v22  ;;  %v824_v24 = vpop.f32.mrb[19].mxu0  ;;  %v9491_v10 = vrot.slane %v1246_v8, %v9483_v7 }
 0x189   : > { %v1199_v26 = vadd.f32 %v1122_v50, %v824_v24 }
 0x18a   : > { %v1223_v28 = vpack.c.bf16 %v1201_v23, %v1200_v19 }
 0x18b   : > { %v1222_v30 = vpack.c.bf16 %v1199_v26, %v1198_v21 }
 0x18d   : > { %1411 = vmatmul.mubr.bf16.gmra.mrb[48].mxu0 %v1218_v2  ;;  %v7928_v32 = vpop.f32.mrb[20].mxu0  ;;  %v8685_v2 = vld [vmem:[#allocation7 + $0x78] sm:$0xff]  }
 0x18e   : > { %1420 = vmatprep.mubr.bf16.mxu0 %v9144_v1  ;;  %v1204_v33 = vadd.f32 %v7962_v60, %v7928_v32  ;;  %v837_v34 = vpop.f32.mrb[21].mxu0 }
 0x18f   : > { %v1202_v35 = vadd.f32 %v1135_v62, %v837_v34  ;;  %v7929_v36 = vpop.f32.mrb[22].mxu0  ;;  %v8682_v62 = vld [vmem:[#allocation7 + $0x28] sm:$0xff]  }
 0x190   : > { %v1205_v37 = vadd.f32 %v7963_v0, %v7929_v36  ;;  %v840_v38 = vpop.f32.mrb[23].mxu0  ;;  %7129 = vmatpush3.bf16.msra.mxu1 %v8682_v62  ;;  %v8684_v0 = vld [vmem:[#allocation7 + $0x30] sm:$0xff]  }
 0x191   : > { %v1203_v39 = vadd.f32 %v1138_v3, %v840_v38  ;;  %v8686_v3 = vld [vmem:[#allocation7 + $0x38] sm:$0xff]  }
 0x192   : > { %v1225_v40 = vpack.c.bf16 %v1205_v37, %v1204_v33 }
 0x193   : > { %v1224_v41 = vpack.c.bf16 %v1203_v39, %v1202_v35 }
 0x195   : > { %1421 = vmatmul.mubr.bf16.gmra.mrb[52].mxu0 %v1219_v63  ;;  %v7932_v42 = vpop.f32.mrb[24].mxu0  ;;  %v8683_v63 = vld [vmem:[#allocation7 + $0x70] sm:$0xff]  }
 0x196   : > { %1430 = vmatprep.mubr.bf16.mxu0 %v9144_v1  ;;  %v1208_v43 = vadd.f32 %v7966_v11, %v7932_v42  ;;  %v853_v44 = vpop.f32.mrb[25].mxu0  ;;  %7130 = vmatprep.subr.bf16.mxu1 %v8683_v63  ;;  %v9494_v11 = vrot.slane %v1246_v8, %v9488_v9 }
 0x197   : > { %v1206_v45 = vadd.f32 %v1151_v13, %v853_v44  ;;  %v7933_v46 = vpop.f32.mrb[26].mxu0  ;;  %7131 = vmatpush3.bf16.msra.mxu1 %v8684_v0 }
 0x198   : > { %v1209_v47 = vadd.f32 %v7967_v15, %v7933_v46  ;;  %v856_v48 = vpop.f32.mrb[27].mxu0  ;;  %7132 = vmatprep.subr.bf16.mxu1 %v8685_v2 }
 0x199   : > { %v1207_v49 = vadd.f32 %v1154_v17, %v856_v48 }
 0x19a   : > { %v1227_v50 = vpack.c.bf16 %v1209_v47, %v1208_v43 }
 0x19b   : > { %v1226_v51 = vpack.c.bf16 %v1207_v49, %v1206_v45  ;;  %7133 = vmatpush3.bf16.msra.mxu1 %v8686_v3 }
 0x19d   : > { %1431 = vmatmul.mubr.bf16.gmra.mrb[56].mxu0 %v1220_v16  ;;  %v7936_v52 = vpop.f32.mrb[28].mxu0 }
 0x19e   : > { %1440 = vmatprep.mubr.bf16.mxu0 %v9144_v1  ;;  %v1212_v53 = vadd.f32 %v7970_v25, %v7936_v52  ;;  %v869_v54 = vpop.f32.mrb[29].mxu0 }
 0x19f   : > { %v1210_v55 = vadd.f32 %v1167_v27, %v869_v54  ;;  %v7937_v56 = vpop.f32.mrb[30].mxu0 }
 0x1a0   : > { %v1213_v57 = vadd.f32 %v7971_v29, %v7937_v56  ;;  %v872_v58 = vpop.f32.mrb[31].mxu0 }
 0x1a1   : > { %v1211_v59 = vadd.f32 %v1170_v31, %v872_v58 }
 0x1a2   : > { %v1229_v60 = vpack.c.bf16 %v1213_v57, %v1212_v53 }
 0x1a3   : > { %v1228_v61 = vpack.c.bf16 %v1211_v59, %v1210_v55 }
 0x1a5   : > { %1441 = vmatmul.mubr.bf16.gmra.mrb[60].mxu0 %v1221_v14 }
 0x1a6   : > { %1450 = vmatprep.mubr.bf16.mxu0 %v9144_v1 }
 0x1ad   : > { %1451 = vmatmul.mubr.bf16.gmra.mrb[64].mxu0 %v1222_v30 }
 0x1ae   : > { %1460 = vmatprep.mubr.bf16.mxu0 %v9144_v1 }
 0x1b5   : > { %1461 = vmatmul.mubr.bf16.gmra.mrb[68].mxu0 %v1223_v28 }
 0x1b6   : > { %1470 = vmatprep.mubr.bf16.mxu0 %v9144_v1 }
 0x1bd   : > { %1471 = vmatmul.mubr.bf16.gmra.mrb[72].mxu0 %v1224_v41 }
 0x1be   : > { %1480 = vmatprep.mubr.bf16.mxu0 %v9144_v1 }
 0x1c5   : > { %1481 = vmatmul.mubr.bf16.gmra.mrb[76].mxu0 %v1225_v40 }
 0x1c6   : > { %1490 = vmatprep.mubr.bf16.mxu0 %v9144_v1 }
 0x1cd   : > { %1491 = vmatmul.mubr.bf16.gmra.mrb[80].mxu0 %v1226_v51 }
 0x1ce   : > { %1500 = vmatprep.mubr.bf16.mxu0 %v9144_v1 }
 0x1d5   : > { %1501 = vmatmul.mubr.bf16.gmra.mrb[84].mxu0 %v1227_v50 }
 0x1d6   : > { %1510 = vmatprep.mubr.bf16.mxu0 %v9144_v1 }
 0x1dd   : > { %1511 = vmatmul.mubr.bf16.gmra.mrb[88].mxu0 %v1228_v61 }
 0x1de   : > { %1520 = vmatprep.mubr.bf16.mxu0 %v9144_v1 }
 0x1e5   : > { %1521 = vmatmul.mubr.bf16.gmra.mrb[92].mxu0 %v1229_v60 }
 0x1e6   : > { %7988 = vmatprep.mubr.bf16.mxu0 %v8851_v4 }
 0x240   : > { %v1372_v12 = vpop.f32.mrb[32].mxu0 }
 0x241   : > { %v1373_v13 = vadd.f32 %v1372_v12, %v9491_v10  ;;  %v1374_v14 = vpop.f32.mrb[33].mxu0 }
 0x242   : > { %v1375_v15 = vadd.f32 %v1374_v14, %v9494_v11  ;;  %v1376_v16 = vpop.f32.mrb[34].mxu0 }
 0x243   : > { %v1377_v17 = vadd.f32 %v1376_v16, %v9491_v10  ;;  %v1378_v18 = vpop.f32.mrb[35].mxu0  ;;  %v1531_v20 = vmax.f32 %v1373_v13, 0.0 }
 0x244   : > { %v1379_v19 = vadd.f32 %v1378_v18, %v9494_v11  ;;  %v1532_v22 = vmax.f32 %v1375_v15, 0.0 }
 0x245   : > { %v1533_v21 = vmax.f32 %v1377_v17, 0.0 }
 0x246   : > { %v1534_v23 = vmax.f32 %v1379_v19, 0.0 }
 0x247   : > { %v1595_v24 = vpack.c.bf16 %v1533_v21, %v1531_v20 }
 0x248   : > { %v1382_v25 = vpop.f32.mrb[36].mxu0  ;;  %v1596_v26 = vpack.c.bf16 %v1534_v23, %v1532_v22 }
 0x249   : > { %v1383_v27 = vadd.f32 %v1382_v25, %v9491_v10  ;;  %v1384_v28 = vpop.f32.mrb[37].mxu0 }
 0x24a   : > { %v1385_v29 = vadd.f32 %v1384_v28, %v9494_v11  ;;  %v1386_v30 = vpop.f32.mrb[38].mxu0  ;;  %1794 = vmatprep.mubr.bf16.mxu1 %v1596_v26 }
 0x24b   : > { %v1387_v31 = vadd.f32 %v1386_v30, %v9491_v10  ;;  %v1388_v32 = vpop.f32.mrb[39].mxu0  ;;  %1795 = vmatmul.mubr.bf16.vlgmr.msra.gmra.mrb[32].mxu1 %v1595_v24  ;;  %v1535_v34 = vmax.f32 %v1383_v27, 0.0 }
 0x24c   : > { %v1389_v33 = vadd.f32 %v1388_v32, %v9494_v11  ;;  %v1536_v36 = vmax.f32 %v1385_v29, 0.0 }
 0x24d   : > { %v1537_v35 = vmax.f32 %v1387_v31, 0.0 }
 0x24e   : > { %v1538_v37 = vmax.f32 %v1389_v33, 0.0 }
 0x24f   : > { %v1597_v38 = vpack.c.bf16 %v1537_v35, %v1535_v34 }
 0x250   : > { %v1392_v39 = vpop.f32.mrb[40].mxu0  ;;  %v1598_v40 = vpack.c.bf16 %v1538_v37, %v1536_v36 }
 0x251   : > { %v1393_v41 = vadd.f32 %v1392_v39, %v9491_v10  ;;  %v1394_v42 = vpop.f32.mrb[41].mxu0 }
 0x252   : > { %v1395_v43 = vadd.f32 %v1394_v42, %v9494_v11  ;;  %v1396_v44 = vpop.f32.mrb[42].mxu0  ;;  %1802 = vmatprep.mubr.bf16.mxu1 %v1598_v40 }
 0x253   : > { %v1397_v45 = vadd.f32 %v1396_v44, %v9491_v10  ;;  %v1398_v46 = vpop.f32.mrb[43].mxu0  ;;  %1803 = vmatmul.mubr.bf16.gmra.mrb[36].mxu1 %v1597_v38  ;;  %v1539_v48 = vmax.f32 %v1393_v41, 0.0 }
 0x254   : > { %v1399_v47 = vadd.f32 %v1398_v46, %v9494_v11  ;;  %v1540_v50 = vmax.f32 %v1395_v43, 0.0 }
 0x255   : > { %v1541_v49 = vmax.f32 %v1397_v45, 0.0 }
 0x256   : > { %v1542_v51 = vmax.f32 %v1399_v47, 0.0 }
 0x257   : > { %v1599_v52 = vpack.c.bf16 %v1541_v49, %v1539_v48 }
 0x258   : > { %v1402_v53 = vpop.f32.mrb[44].mxu0  ;;  %v1600_v54 = vpack.c.bf16 %v1542_v51, %v1540_v50 }
 0x259   : > { %v1403_v55 = vadd.f32 %v1402_v53, %v9491_v10  ;;  %v1404_v56 = vpop.f32.mrb[45].mxu0 }
 0x25a   : > { %v1405_v57 = vadd.f32 %v1404_v56, %v9494_v11  ;;  %v1406_v58 = vpop.f32.mrb[46].mxu0  ;;  %1810 = vmatprep.mubr.bf16.mxu1 %v1600_v54 }
 0x25b   : > { %v1407_v59 = vadd.f32 %v1406_v58, %v9491_v10  ;;  %v1408_v60 = vpop.f32.mrb[47].mxu0  ;;  %1811 = vmatmul.mubr.bf16.gmra.mrb[40].mxu1 %v1599_v52  ;;  %v1543_v62 = vmax.f32 %v1403_v55, 0.0 }
 0x25c   : > { %v1409_v61 = vadd.f32 %v1408_v60, %v9494_v11  ;;  %v1544_v0 = vmax.f32 %v1405_v57, 0.0 }
 0x25d   : > { %v1545_v63 = vmax.f32 %v1407_v59, 0.0 }
 0x25e   : > { %v1546_v2 = vmax.f32 %v1409_v61, 0.0 }
 0x25f   : > { %v1601_v3 = vpack.c.bf16 %v1545_v63, %v1543_v62 }
 0x260   : > { %v1412_v4 = vpop.f32.mrb[48].mxu0  ;;  %v1602_v5 = vpack.c.bf16 %v1546_v2, %v1544_v0 }
 0x261   : > { %v1413_v6 = vadd.f32 %v1412_v4, %v9491_v10  ;;  %v1414_v8 = vpop.f32.mrb[49].mxu0 }
 0x262   : > { %v1415_v12 = vadd.f32 %v1414_v8, %v9494_v11  ;;  %v1416_v13 = vpop.f32.mrb[50].mxu0  ;;  %1818 = vmatprep.mubr.bf16.mxu1 %v1602_v5 }
 0x263   : > { %v1417_v14 = vadd.f32 %v1416_v13, %v9491_v10  ;;  %v1418_v15 = vpop.f32.mrb[51].mxu0  ;;  %1819 = vmatmul.mubr.bf16.gmra.mrb[44].mxu1 %v1601_v3  ;;  %v1547_v17 = vmax.f32 %v1413_v6, 0.0 }
 0x264   : > { %v1419_v16 = vadd.f32 %v1418_v15, %v9494_v11  ;;  %v1548_v19 = vmax.f32 %v1415_v12, 0.0 }
 0x265   : > { %v1549_v18 = vmax.f32 %v1417_v14, 0.0 }
 0x266   : > { %v1550_v20 = vmax.f32 %v1419_v16, 0.0 }
 0x267   : > { %v1603_v21 = vpack.c.bf16 %v1549_v18, %v1547_v17 }
 0x268   : > { %v1422_v22 = vpop.f32.mrb[52].mxu0  ;;  %v1604_v23 = vpack.c.bf16 %v1550_v20, %v1548_v19 }
 0x269   : > { %v1423_v24 = vadd.f32 %v1422_v22, %v9491_v10  ;;  %v1424_v25 = vpop.f32.mrb[53].mxu0 }
 0x26a   : > { %v1425_v26 = vadd.f32 %v1424_v25, %v9494_v11  ;;  %v1426_v27 = vpop.f32.mrb[54].mxu0  ;;  %1826 = vmatprep.mubr.bf16.mxu1 %v1604_v23 }
 0x26b   : > { %v1427_v28 = vadd.f32 %v1426_v27, %v9491_v10  ;;  %v1428_v29 = vpop.f32.mrb[55].mxu0  ;;  %1827 = vmatmul.mubr.bf16.gmra.mrb[48].mxu1 %v1603_v21  ;;  %v1551_v31 = vmax.f32 %v1423_v24, 0.0 }
 0x26c   : > { %v1429_v30 = vadd.f32 %v1428_v29, %v9494_v11  ;;  %v1552_v33 = vmax.f32 %v1425_v26, 0.0 }
 0x26d   : > { %v1553_v32 = vmax.f32 %v1427_v28, 0.0 }
 0x26e   : > { %v1554_v34 = vmax.f32 %v1429_v30, 0.0 }
 0x26f   : > { %v1605_v35 = vpack.c.bf16 %v1553_v32, %v1551_v31 }
 0x270   : > { %v1432_v36 = vpop.f32.mrb[56].mxu0  ;;  %v1606_v37 = vpack.c.bf16 %v1554_v34, %v1552_v33 }
 0x271   : > { %v1433_v38 = vadd.f32 %v1432_v36, %v9491_v10  ;;  %v1434_v39 = vpop.f32.mrb[57].mxu0 }
 0x272   : > { %v1435_v40 = vadd.f32 %v1434_v39, %v9494_v11  ;;  %v1436_v41 = vpop.f32.mrb[58].mxu0  ;;  %1834 = vmatprep.mubr.bf16.mxu1 %v1606_v37 }
 0x273   : > { %v1437_v42 = vadd.f32 %v1436_v41, %v9491_v10  ;;  %v1438_v43 = vpop.f32.mrb[59].mxu0  ;;  %1835 = vmatmul.mubr.bf16.gmra.mrb[52].mxu1 %v1605_v35  ;;  %v1555_v45 = vmax.f32 %v1433_v38, 0.0 }
 0x274   : > { %v1439_v44 = vadd.f32 %v1438_v43, %v9494_v11  ;;  %v1556_v47 = vmax.f32 %v1435_v40, 0.0 }
 0x275   : > { %v1557_v46 = vmax.f32 %v1437_v42, 0.0 }
 0x276   : > { %v1558_v48 = vmax.f32 %v1439_v44, 0.0 }
 0x277   : > { %v1607_v49 = vpack.c.bf16 %v1557_v46, %v1555_v45 }
 0x278   : > { %v1442_v50 = vpop.f32.mrb[60].mxu0  ;;  %v1608_v51 = vpack.c.bf16 %v1558_v48, %v1556_v47 }
 0x279   : > { %v1443_v52 = vadd.f32 %v1442_v50, %v9491_v10  ;;  %v1444_v53 = vpop.f32.mrb[61].mxu0 }
 0x27a   : > { %v1445_v54 = vadd.f32 %v1444_v53, %v9494_v11  ;;  %v1446_v55 = vpop.f32.mrb[62].mxu0  ;;  %1842 = vmatprep.mubr.bf16.mxu1 %v1608_v51 }
 0x27b   : > { %v1447_v56 = vadd.f32 %v1446_v55, %v9491_v10  ;;  %v1448_v57 = vpop.f32.mrb[63].mxu0  ;;  %1843 = vmatmul.mubr.bf16.gmra.mrb[56].mxu1 %v1607_v49  ;;  %v1559_v59 = vmax.f32 %v1443_v52, 0.0 }
 0x27c   : > { %v1449_v58 = vadd.f32 %v1448_v57, %v9494_v11  ;;  %v1560_v61 = vmax.f32 %v1445_v54, 0.0 }
 0x27d   : > { %v1561_v60 = vmax.f32 %v1447_v56, 0.0 }
 0x27e   : > { %v1562_v62 = vmax.f32 %v1449_v58, 0.0 }
 0x27f   : > { %v1609_v63 = vpack.c.bf16 %v1561_v60, %v1559_v59 }
 0x280   : > { %v1452_v0 = vpop.f32.mrb[64].mxu0  ;;  %v1610_v2 = vpack.c.bf16 %v1562_v62, %v1560_v61 }
 0x281   : > { %v1453_v3 = vadd.f32 %v1452_v0, %v9491_v10  ;;  %v1454_v4 = vpop.f32.mrb[65].mxu0 }
 0x282   : > { %v1455_v5 = vadd.f32 %v1454_v4, %v9494_v11  ;;  %v1456_v6 = vpop.f32.mrb[66].mxu0  ;;  %1850 = vmatprep.mubr.bf16.mxu1 %v1610_v2 }
 0x283   : > { %v1457_v8 = vadd.f32 %v1456_v6, %v9491_v10  ;;  %v1458_v12 = vpop.f32.mrb[67].mxu0  ;;  %1851 = vmatmul.mubr.bf16.gmra.mrb[60].mxu1 %v1609_v63  ;;  %v1563_v14 = vmax.f32 %v1453_v3, 0.0 }
 0x284   : > { %v1459_v13 = vadd.f32 %v1458_v12, %v9494_v11  ;;  %v1564_v16 = vmax.f32 %v1455_v5, 0.0 }
 0x285   : > { %v1565_v15 = vmax.f32 %v1457_v8, 0.0 }
 0x286   : > { %v1566_v17 = vmax.f32 %v1459_v13, 0.0 }
 0x287   : > { %v1611_v18 = vpack.c.bf16 %v1565_v15, %v1563_v14 }
 0x288   : > { %v1462_v19 = vpop.f32.mrb[68].mxu0  ;;  %v1612_v20 = vpack.c.bf16 %v1566_v17, %v1564_v16 }
 0x289   : > { %v1463_v21 = vadd.f32 %v1462_v19, %v9491_v10  ;;  %v1464_v22 = vpop.f32.mrb[69].mxu0 }
 0x28a   : > { %v1465_v23 = vadd.f32 %v1464_v22, %v9494_v11  ;;  %v1466_v24 = vpop.f32.mrb[70].mxu0  ;;  %1858 = vmatprep.mubr.bf16.mxu1 %v1612_v20 }
 0x28b   : > { %v1467_v25 = vadd.f32 %v1466_v24, %v9491_v10  ;;  %v1468_v26 = vpop.f32.mrb[71].mxu0  ;;  %1859 = vmatmul.mubr.bf16.gmra.mrb[64].mxu1 %v1611_v18  ;;  %v1567_v28 = vmax.f32 %v1463_v21, 0.0 }
 0x28c   : > { %v1469_v27 = vadd.f32 %v1468_v26, %v9494_v11  ;;  %v1568_v30 = vmax.f32 %v1465_v23, 0.0 }
 0x28d   : > { %v1569_v29 = vmax.f32 %v1467_v25, 0.0 }
 0x28e   : > { %v1570_v31 = vmax.f32 %v1469_v27, 0.0 }
 0x28f   : > { %v1613_v32 = vpack.c.bf16 %v1569_v29, %v1567_v28 }
 0x290   : > { %v1472_v33 = vpop.f32.mrb[72].mxu0  ;;  %v1614_v34 = vpack.c.bf16 %v1570_v31, %v1568_v30 }
 0x291   : > { %v1473_v35 = vadd.f32 %v1472_v33, %v9491_v10  ;;  %v1474_v36 = vpop.f32.mrb[73].mxu0 }
 0x292   : > { %v1475_v37 = vadd.f32 %v1474_v36, %v9494_v11  ;;  %v1476_v38 = vpop.f32.mrb[74].mxu0  ;;  %1866 = vmatprep.mubr.bf16.mxu1 %v1614_v34 }
 0x293   : > { %v1477_v39 = vadd.f32 %v1476_v38, %v9491_v10  ;;  %v1478_v40 = vpop.f32.mrb[75].mxu0  ;;  %1867 = vmatmul.mubr.bf16.gmra.mrb[68].mxu1 %v1613_v32  ;;  %v1571_v42 = vmax.f32 %v1473_v35, 0.0 }
 0x294   : > { %v1479_v41 = vadd.f32 %v1478_v40, %v9494_v11  ;;  %v1572_v44 = vmax.f32 %v1475_v37, 0.0 }
 0x295   : > { %v1573_v43 = vmax.f32 %v1477_v39, 0.0 }
 0x296   : > { %v1574_v45 = vmax.f32 %v1479_v41, 0.0 }
 0x297   : > { %v1615_v46 = vpack.c.bf16 %v1573_v43, %v1571_v42 }
 0x298   : > { %v1482_v47 = vpop.f32.mrb[76].mxu0  ;;  %v1616_v48 = vpack.c.bf16 %v1574_v45, %v1572_v44 }
 0x299   : > { %v1483_v49 = vadd.f32 %v1482_v47, %v9491_v10  ;;  %v1484_v50 = vpop.f32.mrb[77].mxu0 }
 0x29a   : > { %v1485_v51 = vadd.f32 %v1484_v50, %v9494_v11  ;;  %v1486_v52 = vpop.f32.mrb[78].mxu0  ;;  %1874 = vmatprep.mubr.bf16.mxu1 %v1616_v48 }
 0x29b   : > { %v1487_v53 = vadd.f32 %v1486_v52, %v9491_v10  ;;  %v1488_v54 = vpop.f32.mrb[79].mxu0  ;;  %1875 = vmatmul.mubr.bf16.gmra.mrb[72].mxu1 %v1615_v46  ;;  %v1575_v56 = vmax.f32 %v1483_v49, 0.0 }
 0x29c   : > { %v1489_v55 = vadd.f32 %v1488_v54, %v9494_v11  ;;  %v1576_v58 = vmax.f32 %v1485_v51, 0.0 }
 0x29d   : > { %v1577_v57 = vmax.f32 %v1487_v53, 0.0 }
 0x29e   : > { %v1578_v59 = vmax.f32 %v1489_v55, 0.0 }
 0x29f   : > { %v1617_v60 = vpack.c.bf16 %v1577_v57, %v1575_v56 }
 0x2a0   : > { %v1492_v61 = vpop.f32.mrb[80].mxu0  ;;  %v1618_v62 = vpack.c.bf16 %v1578_v59, %v1576_v58 }
 0x2a1   : > { %v1493_v63 = vadd.f32 %v1492_v61, %v9491_v10  ;;  %v1494_v0 = vpop.f32.mrb[81].mxu0 }
 0x2a2   : > { %v1495_v2 = vadd.f32 %v1494_v0, %v9494_v11  ;;  %v1496_v3 = vpop.f32.mrb[82].mxu0  ;;  %1882 = vmatprep.mubr.bf16.mxu1 %v1618_v62 }
 0x2a3   : > { %v1497_v4 = vadd.f32 %v1496_v3, %v9491_v10  ;;  %v1498_v5 = vpop.f32.mrb[83].mxu0  ;;  %1883 = vmatmul.mubr.bf16.gmra.mrb[76].mxu1 %v1617_v60  ;;  %v1579_v8 = vmax.f32 %v1493_v63, 0.0  ;;  %v9564_v60 = vld [vmem:[%s10397_s7] ss:$0 sm:$0xff] }
 0x2a4   : > { %v1499_v6 = vadd.f32 %v1498_v5, %v9494_v11  ;;  %v1580_v13 = vmax.f32 %v1495_v2, 0.0 }
 0x2a5   : > { %v1581_v12 = vmax.f32 %v1497_v4, 0.0 }
 0x2a6   : > { %v1582_v14 = vmax.f32 %v1499_v6, 0.0 }
 0x2a7   : > { %v1619_v15 = vpack.c.bf16 %v1581_v12, %v1579_v8 }
 0x2a8   : > { %v1502_v16 = vpop.f32.mrb[84].mxu0  ;;  %v1620_v17 = vpack.c.bf16 %v1582_v14, %v1580_v13 }
 0x2a9   : > { %v1503_v18 = vadd.f32 %v1502_v16, %v9491_v10  ;;  %v1504_v19 = vpop.f32.mrb[85].mxu0 }
 0x2aa   : > { %v1505_v20 = vadd.f32 %v1504_v19, %v9494_v11  ;;  %v1506_v21 = vpop.f32.mrb[86].mxu0  ;;  %1890 = vmatprep.mubr.bf16.mxu1 %v1620_v17 }
 0x2ab   : > { %v1507_v22 = vadd.f32 %v1506_v21, %v9491_v10  ;;  %v1508_v23 = vpop.f32.mrb[87].mxu0  ;;  %1891 = vmatmul.mubr.bf16.gmra.mrb[80].mxu1 %v1619_v15  ;;  %v1583_v25 = vmax.f32 %v1503_v18, 0.0 }
 0x2ac   : > { %v1509_v24 = vadd.f32 %v1508_v23, %v9494_v11  ;;  %v1584_v27 = vmax.f32 %v1505_v20, 0.0 }
 0x2ad   : > { %v1585_v26 = vmax.f32 %v1507_v22, 0.0 }
 0x2ae   : > { %v1586_v28 = vmax.f32 %v1509_v24, 0.0 }
 0x2af   : > { %v1621_v29 = vpack.c.bf16 %v1585_v26, %v1583_v25 }
 0x2b0   : > { %v1512_v30 = vpop.f32.mrb[88].mxu0  ;;  %v1622_v31 = vpack.c.bf16 %v1586_v28, %v1584_v27 }
 0x2b1   : > { %v1513_v32 = vadd.f32 %v1512_v30, %v9491_v10  ;;  %v1514_v33 = vpop.f32.mrb[89].mxu0 }
 0x2b2   : > { %v1515_v34 = vadd.f32 %v1514_v33, %v9494_v11  ;;  %v1516_v35 = vpop.f32.mrb[90].mxu0  ;;  %1898 = vmatprep.mubr.bf16.mxu1 %v1622_v31 }
 0x2b3   : > { %v1517_v36 = vadd.f32 %v1516_v35, %v9491_v10  ;;  %v1518_v37 = vpop.f32.mrb[91].mxu0  ;;  %1899 = vmatmul.mubr.bf16.gmra.mrb[84].mxu1 %v1621_v29  ;;  %v1587_v39 = vmax.f32 %v1513_v32, 0.0 }
 0x2b4   : > { %v1519_v38 = vadd.f32 %v1518_v37, %v9494_v11  ;;  %v1588_v41 = vmax.f32 %v1515_v34, 0.0 }
 0x2b5   : > { %v1589_v40 = vmax.f32 %v1517_v36, 0.0 }
 0x2b6   : > { %v1590_v42 = vmax.f32 %v1519_v38, 0.0 }
 0x2b7   : > { %v1623_v43 = vpack.c.bf16 %v1589_v40, %v1587_v39 }
 0x2b8   : > { %v1522_v44 = vpop.f32.mrb[92].mxu0  ;;  %v1624_v45 = vpack.c.bf16 %v1590_v42, %v1588_v41 }
 0x2b9   : > { %v1523_v46 = vadd.f32 %v1522_v44, %v9491_v10  ;;  %v1524_v47 = vpop.f32.mrb[93].mxu0 }
 0x2ba   : > { %v1525_v48 = vadd.f32 %v1524_v47, %v9494_v11  ;;  %v1526_v49 = vpop.f32.mrb[94].mxu0  ;;  %1906 = vmatprep.mubr.bf16.mxu1 %v1624_v45 }
 0x2bb   : > { %v1527_v50 = vadd.f32 %v1526_v49, %v9491_v10  ;;  %v1528_v51 = vpop.f32.mrb[95].mxu0  ;;  %1907 = vmatmul.mubr.bf16.gmra.mrb[88].mxu1 %v1623_v43  ;;  %v1591_v53 = vmax.f32 %v1523_v46, 0.0 }
 0x2bc   : > { %v1529_v52 = vadd.f32 %v1528_v51, %v9494_v11  ;;  %v1592_v55 = vmax.f32 %v1525_v48, 0.0 }
 0x2bd   : > { %v1593_v54 = vmax.f32 %v1527_v50, 0.0 }
 0x2be   : > { %v1594_v56 = vmax.f32 %v1529_v52, 0.0 }
 0x2bf   : > { %v1625_v57 = vpack.c.bf16 %v1593_v54, %v1591_v53 }
 0x2c0   : > { %v1626_v58 = vpack.c.bf16 %v1594_v56, %v1592_v55 }
 0x2c2   : > { %1914 = vmatprep.mubr.bf16.mxu1 %v1626_v58 }
 0x2c3   : > { %1915 = vmatmul.mubr.bf16.gmra.mrb[92].mxu1 %v1625_v57 }
 0x2c4   : > { %2525 = vmatprep.mubr.bf16.mxu1 %v9144_v1 }
 0x31e   : > { %v7134_v59 = vpop.f32.mrb[32].mxu1 }
 0x31f   : > { %v7135_v10 = vpop.f32.mrb[33].mxu1 }
 0x320   : > { %v7136_v61 = vadd.f32 %v7135_v10, %v7134_v59  ;;  %v7137_v62 = vpop.f32.mrb[34].mxu1 }
 0x321   : > { %v7138_v11 = vpop.f32.mrb[35].mxu1 }
 0x322   : > { %v1797_v63 = vadd.f32 %v7136_v61, %v9564_v60  ;;  %v7139_v0 = vadd.f32 %v7138_v11, %v7137_v62 }
 0x324   : > { %v1800_v2 = vadd.f32 %v7139_v0, %v9564_v60  ;;  %v1923_v4 = vmax.f32 %v1797_v63, 0.0 }
 0x326   : > { %v7140_v3 = vpop.f32.mrb[36].mxu1  ;;  %v1924_v5 = vmax.f32 %v1800_v2, 0.0 }
 0x327   : > { %v7141_v6 = vpop.f32.mrb[37].mxu1 }
 0x328   : > { %v7142_v8 = vadd.f32 %v7141_v6, %v7140_v3  ;;  %v7143_v12 = vpop.f32.mrb[38].mxu1  ;;  %v1955_v13 = vpack.c.bf16 %v1924_v5, %v1923_v4 }
 0x329   : > { %v7144_v14 = vpop.f32.mrb[39].mxu1 }
 0x32a   : > { %v1805_v15 = vadd.f32 %v7142_v8, %v9564_v60  ;;  %v7145_v16 = vadd.f32 %v7144_v14, %v7143_v12  ;;  %7972 = vmatprep.subr.bf16.mxu0 %v1955_v13 }
 0x32b   : > { %7973 = vmatpush3.bf16.msra.mxu0 %v1955_v13 }
 0x32c   : > { %v1808_v17 = vadd.f32 %v7145_v16, %v9564_v60  ;;  %v1925_v19 = vmax.f32 %v1805_v15, 0.0 }
 0x32e   : > { %v7146_v18 = vpop.f32.mrb[40].mxu1  ;;  %v1926_v20 = vmax.f32 %v1808_v17, 0.0 }
 0x32f   : > { %v7147_v21 = vpop.f32.mrb[41].mxu1 }
 0x330   : > { %v7148_v22 = vadd.f32 %v7147_v21, %v7146_v18  ;;  %v7149_v23 = vpop.f32.mrb[42].mxu1  ;;  %v1956_v24 = vpack.c.bf16 %v1926_v20, %v1925_v19 }
 0x331   : > { %v7150_v25 = vpop.f32.mrb[43].mxu1 }
 0x332   : > { %v1813_v26 = vadd.f32 %v7148_v22, %v9564_v60  ;;  %v7151_v27 = vadd.f32 %v7150_v25, %v7149_v23  ;;  %7974 = vmatprep.subr.bf16.mxu0 %v1956_v24 }
 0x333   : > { %7975 = vmatpush3.bf16.msra.mxu0 %v1956_v24 }
 0x334   : > { %v1816_v28 = vadd.f32 %v7151_v27, %v9564_v60  ;;  %v1927_v30 = vmax.f32 %v1813_v26, 0.0 }
 0x336   : > { %v7152_v29 = vpop.f32.mrb[44].mxu1  ;;  %v1928_v31 = vmax.f32 %v1816_v28, 0.0 }
 0x337   : > { %v7153_v32 = vpop.f32.mrb[45].mxu1 }
 0x338   : > { %v7154_v33 = vadd.f32 %v7153_v32, %v7152_v29  ;;  %v7155_v34 = vpop.f32.mrb[46].mxu1  ;;  %v1957_v35 = vpack.c.bf16 %v1928_v31, %v1927_v30 }
 0x339   : > { %v7156_v36 = vpop.f32.mrb[47].mxu1 }
 0x33a   : > { %v1821_v37 = vadd.f32 %v7154_v33, %v9564_v60  ;;  %v7157_v38 = vadd.f32 %v7156_v36, %v7155_v34  ;;  %7976 = vmatprep.subr.bf16.mxu0 %v1957_v35 }
 0x33b   : > { %7977 = vmatpush3.bf16.msra.mxu0 %v1957_v35 }
 0x33c   : > { %v1824_v39 = vadd.f32 %v7157_v38, %v9564_v60  ;;  %v1929_v41 = vmax.f32 %v1821_v37, 0.0  ;;  %v8852_v38 = vld [vmem:[%s9375_s18 + $0x8] sm:$0xff]  }
 0x33e   : > { %v7158_v40 = vpop.f32.mrb[48].mxu1  ;;  %v1930_v42 = vmax.f32 %v1824_v39, 0.0 }
 0x33f   : > { %v7159_v43 = vpop.f32.mrb[49].mxu1 }
 0x340   : > { %v7160_v44 = vadd.f32 %v7159_v43, %v7158_v40  ;;  %v7161_v45 = vpop.f32.mrb[50].mxu1  ;;  %v1958_v46 = vpack.c.bf16 %v1930_v42, %v1929_v41  ;;  %v8853_v40 = vld [vmem:[%s9375_s18 + $0x10] sm:$0xff]  }
 0x341   : > { %v7162_v47 = vpop.f32.mrb[51].mxu1 }
 0x342   : > { %v1829_v48 = vadd.f32 %v7160_v44, %v9564_v60  ;;  %v7163_v49 = vadd.f32 %v7162_v47, %v7161_v45  ;;  %7978 = vmatprep.subr.bf16.mxu0 %v1958_v46 }
 0x343   : > { %7979 = vmatpush3.bf16.msra.mxu0 %v1958_v46 }
 0x344   : > { %v1832_v50 = vadd.f32 %v7163_v49, %v9564_v60  ;;  %v1931_v52 = vmax.f32 %v1829_v48, 0.0 }
 0x346   : > { %v7164_v51 = vpop.f32.mrb[52].mxu1  ;;  %v1932_v53 = vmax.f32 %v1832_v50, 0.0 }
 0x347   : > { %v7165_v54 = vpop.f32.mrb[53].mxu1 }
 0x348   : > { %v7166_v55 = vadd.f32 %v7165_v54, %v7164_v51  ;;  %v7167_v56 = vpop.f32.mrb[54].mxu1  ;;  %v1959_v57 = vpack.c.bf16 %v1932_v53, %v1931_v52  ;;  %v8854_v51 = vld [vmem:[%s9375_s18 + $0x18] sm:$0xff]   ;;  %v8855_v53 = vld [vmem:[%s9375_s18 + $0x20] sm:$0xff]  }
 0x349   : > { %v7168_v58 = vpop.f32.mrb[55].mxu1 }
 0x34a   : > { %v1837_v59 = vadd.f32 %v7166_v55, %v9564_v60  ;;  %v7169_v10 = vadd.f32 %v7168_v58, %v7167_v56  ;;  %7980 = vmatprep.subr.bf16.mxu0 %v1959_v57 }
 0x34b   : > { %7981 = vmatpush3.bf16.msra.mxu0 %v1959_v57 }
 0x34c   : > { %v1840_v61 = vadd.f32 %v7169_v10, %v9564_v60  ;;  %v1933_v11 = vmax.f32 %v1837_v59, 0.0 }
 0x34e   : > { %v7170_v62 = vpop.f32.mrb[56].mxu1  ;;  %v1934_v63 = vmax.f32 %v1840_v61, 0.0 }
 0x34f   : > { %v7171_v0 = vpop.f32.mrb[57].mxu1 }
 0x350   : > { %v7172_v2 = vadd.f32 %v7171_v0, %v7170_v62  ;;  %v7173_v3 = vpop.f32.mrb[58].mxu1  ;;  %v1960_v4 = vpack.c.bf16 %v1934_v63, %v1933_v11  ;;  %v8856_v63 = vld [vmem:[%s9375_s18 + $0x28] sm:$0xff]  }
 0x351   : > { %v7174_v5 = vpop.f32.mrb[59].mxu1 }
 0x352   : > { %v1845_v6 = vadd.f32 %v7172_v2, %v9564_v60  ;;  %v7175_v8 = vadd.f32 %v7174_v5, %v7173_v3  ;;  %7982 = vmatprep.subr.bf16.mxu0 %v1960_v4  ;;  %v8857_v2 = vld [vmem:[%s9375_s18 + $0x30] sm:$0xff]  }
 0x353   : > { %7983 = vmatpush3.bf16.msra.mxu0 %v1960_v4 }
 0x354   : > { %v1848_v12 = vadd.f32 %v7175_v8, %v9564_v60  ;;  %v1935_v14 = vmax.f32 %v1845_v6, 0.0 }
 0x356   : > { %v7176_v13 = vpop.f32.mrb[60].mxu1  ;;  %v1936_v15 = vmax.f32 %v1848_v12, 0.0 }
 0x357   : > { %v7177_v16 = vpop.f32.mrb[61].mxu1 }
 0x358   : > { %v7178_v17 = vadd.f32 %v7177_v16, %v7176_v13  ;;  %v7179_v18 = vpop.f32.mrb[62].mxu1  ;;  %v1961_v19 = vpack.c.bf16 %v1936_v15, %v1935_v14 }
 0x359   : > { %v7180_v20 = vpop.f32.mrb[63].mxu1 }
 0x35a   : > { %v1853_v21 = vadd.f32 %v7178_v17, %v9564_v60  ;;  %v7181_v22 = vadd.f32 %v7180_v20, %v7179_v18  ;;  %7984 = vmatprep.subr.bf16.mxu0 %v1961_v19  ;;  %v8858_v17 = vld [vmem:[%s9375_s18 + $0x38] sm:$0xff]   ;;  %v8688_v18 = vld [vmem:[#allocation5 + $0x80] ss:$8 sps:$4 sm:$0xff]  }
 0x35b   : > { %7985 = vmatpush3.bf16.msra.mxu0 %v1961_v19  ;;  %v8690_v19 = vld [vmem:[#allocation5 + $0x84] ss:$8 sps:$4 sm:$0xff]  }
 0x35c   : > { %v1856_v23 = vadd.f32 %v7181_v22, %v9564_v60  ;;  %v1937_v25 = vmax.f32 %v1853_v21, 0.0  ;;  %v8859_v21 = vld [vmem:[%s9375_s18 + $0x40] sm:$0xff]   ;;  %v8693_v22 = vld [vmem:[#allocation5 + $0x94] ss:$8 sps:$4 sm:$0xff]   ;;  %2493 = vmatprep.subr.bf16.mxu1 %v8690_v19 }
 0x35d   : > { %2494 = vmatpush1.bf16.msra.mxu1 %v8688_v18  ;;  %v8860_v18 = vld [vmem:[%s9375_s18 + $0x48] sm:$0xff]   ;;  %v8861_v19 = vld [vmem:[%s9375_s18 + $0x50] sm:$0xff]  }
 0x35e   : > { %v7182_v24 = vpop.f32.mrb[64].mxu1  ;;  %v1938_v26 = vmax.f32 %v1856_v23, 0.0  ;;  %2495 = vmatprep.subr.bf16.mxu1 %v8693_v22  ;;  %v8865_v22 = vld [vmem:[%s9375_s18 + $0x70] sm:$0xff]  }
 0x35f   : > { %v7183_v27 = vpop.f32.mrb[65].mxu1 }
 0x360   : > { %v7184_v28 = vadd.f32 %v7183_v27, %v7182_v24  ;;  %v7185_v29 = vpop.f32.mrb[66].mxu1  ;;  %v1962_v30 = vpack.c.bf16 %v1938_v26, %v1937_v25  ;;  %v8691_v27 = vld [vmem:[#allocation5 + $0x90] ss:$8 sps:$4 sm:$0xff]  }
 0x361   : > { %v7186_v31 = vpop.f32.mrb[67].mxu1  ;;  %2496 = vmatpush1.bf16.msra.mxu1 %v8691_v27  ;;  %v8870_v27 = vld [vmem:[%s9397_s14 + $0x18] sm:$0xff]  }
 0x362   : > { %v7187_v32 = vadd.f32 %v7186_v31, %v7185_v29  ;;  %7986 = vmatprep.subr.bf16.mxu0 %v1962_v30  ;;  %v1861_v33 = vadd.f32 %v7184_v28, %v9564_v60 }
 0x363   : > { %7987 = vmatpush3.bf16.msra.mxu0 %v1962_v30  ;;  %v8696_v30 = vld [vmem:[#allocation5 + $0xa4] ss:$8 sps:$4 sm:$0xff]  }
 0x364   : > { %v1864_v34 = vadd.f32 %v7187_v32, %v9564_v60  ;;  %v1939_v36 = vmax.f32 %v1861_v33, 0.0  ;;  %v8694_v32 = vld [vmem:[#allocation5 + $0xa0] ss:$8 sps:$4 sm:$0xff]   ;;  %2497 = vmatprep.subr.bf16.mxu1 %v8696_v30  ;;  %v8873_v30 = vld [vmem:[%s9397_s14 + $0x30] sm:$0xff]  }
 0x365   : > { %2498 = vmatpush1.bf16.msra.mxu1 %v8694_v32  ;;  %v8875_v32 = vld [vmem:[%s9397_s14 + $0x40] sm:$0xff]  }
 0x366   : > { %v7188_v35 = vpop.f32.mrb[68].mxu1  ;;  %v1940_v37 = vmax.f32 %v1864_v34, 0.0  ;;  %7989 = vmatmul.mubr.bf16.vlgmr.msra.gmra.mrb[96].mxu0 %v8852_v38 }
 0x367   : > { %v7189_v39 = vpop.f32.mrb[69].mxu1  ;;  %7992 = vmatprep.mubr.bf16.mxu0 %v8853_v40 }
 0x368   : > { %v7190_v41 = vadd.f32 %v7189_v39, %v7188_v35  ;;  %v7191_v42 = vpop.f32.mrb[70].mxu1  ;;  %v1963_v43 = vpack.c.bf16 %v1940_v37, %v1939_v36  ;;  %v8699_v36 = vld [vmem:[#allocation5 + $0xb4] ss:$8 sps:$4 sm:$0xff]  }
 0x369   : > { %v7192_v44 = vpop.f32.mrb[71].mxu1  ;;  %2499 = vmatprep.subr.bf16.mxu1 %v8699_v36  ;;  %v8879_v36 = vld [vmem:[%s9397_s14 + $0x60] sm:$0xff]  }
 0x36a   : > { %v7193_v45 = vadd.f32 %v7192_v44, %v7191_v42  ;;  %8004 = vmatprep.subr.bf16.mxu0 %v1963_v43  ;;  %v1869_v46 = vadd.f32 %v7190_v41, %v9564_v60  ;;  %v8697_v42 = vld [vmem:[#allocation5 + $0xb0] ss:$8 sps:$4 sm:$0xff]  }
 0x36b   : > { %8005 = vmatpush3.bf16.msra.mxu0 %v1963_v43  ;;  %2500 = vmatpush1.bf16.msra.mxu1 %v8697_v42  ;;  %v8712_v42 = vld [vmem:[#allocation7 + $0xc0] sm:$0xff]  }
 0x36c   : > { %v1872_v47 = vadd.f32 %v7193_v45, %v9564_v60  ;;  %v1941_v49 = vmax.f32 %v1869_v46, 0.0  ;;  %v8702_v45 = vld [vmem:[#allocation5 + $0xc4] ss:$8 sps:$4 sm:$0xff]  }
 0x36d   : > { %2501 = vmatprep.subr.bf16.mxu1 %v8702_v45 }
 0x36e   : > { %v7194_v48 = vpop.f32.mrb[72].mxu1  ;;  %v1942_v50 = vmax.f32 %v1872_v47, 0.0  ;;  %7993 = vmatmul.mubr.bf16.gmra.mrb[100].mxu0 %v8854_v51  ;;  %v8700_v47 = vld [vmem:[#allocation5 + $0xc0] ss:$8 sps:$4 sm:$0xff]   ;;  %v8705_v51 = vld [vmem:[#allocation5 + $0xd4] ss:$8 sps:$4 sm:$0xff]  }
 0x36f   : > { %v7195_v52 = vpop.f32.mrb[73].mxu1  ;;  %7996 = vmatprep.mubr.bf16.mxu0 %v8855_v53  ;;  %2502 = vmatpush1.bf16.msra.mxu1 %v8700_v47  ;;  %v8715_v47 = vld [vmem:[#allocation7 + $0x88] sm:$0xff]  }
 0x370   : > { %v7196_v54 = vadd.f32 %v7195_v52, %v7194_v48  ;;  %v7197_v55 = vpop.f32.mrb[74].mxu1  ;;  %v1964_v56 = vpack.c.bf16 %v1942_v50, %v1941_v49  ;;  %2503 = vmatprep.subr.bf16.mxu1 %v8705_v51 }
 0x371   : > { %v7198_v57 = vpop.f32.mrb[75].mxu1 }
 0x372   : > { %v7199_v58 = vadd.f32 %v7198_v57, %v7197_v55  ;;  %8006 = vmatprep.subr.bf16.mxu0 %v1964_v56  ;;  %v1877_v59 = vadd.f32 %v7196_v54, %v9564_v60  ;;  %v8703_v57 = vld [vmem:[#allocation5 + $0xd0] ss:$8 sps:$4 sm:$0xff]  }
 0x373   : > { %8007 = vmatpush3.bf16.msra.mxu0 %v1964_v56  ;;  %2504 = vmatpush1.bf16.msra.mxu1 %v8703_v57  ;;  %v8719_v57 = vld [vmem:[#allocation7 + $0x98] sm:$0xff]  }
 0x374   : > { %v1880_v10 = vadd.f32 %v7199_v58, %v9564_v60  ;;  %v1943_v62 = vmax.f32 %v1877_v59, 0.0 }
 0x376   : > { %v7200_v61 = vpop.f32.mrb[76].mxu1  ;;  %v1944_v11 = vmax.f32 %v1880_v10, 0.0  ;;  %7997 = vmatmul.mubr.bf16.gmra.mrb[104].mxu0 %v8856_v63  ;;  %v8708_v10 = vld [vmem:[#allocation5 + $0xe4] ss:$8 sps:$4 sm:$0xff]  }
 0x377   : > { %v7201_v0 = vpop.f32.mrb[77].mxu1  ;;  %8000 = vmatprep.mubr.bf16.mxu0 %v8857_v2  ;;  %2505 = vmatprep.subr.bf16.mxu1 %v8708_v10 }
 0x378   : > { %v7202_v3 = vadd.f32 %v7201_v0, %v7200_v61  ;;  %v7203_v4 = vpop.f32.mrb[78].mxu1  ;;  %v1965_v5 = vpack.c.bf16 %v1944_v11, %v1943_v62  ;;  %v8706_v62 = vld [vmem:[#allocation5 + $0xe0] ss:$8 sps:$4 sm:$0xff]  }
 0x379   : > { %v7204_v6 = vpop.f32.mrb[79].mxu1  ;;  %2506 = vmatpush1.bf16.msra.mxu1 %v8706_v62 }
 0x37a   : > { %v7205_v8 = vadd.f32 %v7204_v6, %v7203_v4  ;;  %8008 = vmatprep.subr.bf16.mxu0 %v1965_v5  ;;  %v1885_v12 = vadd.f32 %v7202_v3, %v9564_v60 }
 0x37b   : > { %8009 = vmatpush3.bf16.msra.mxu0 %v1965_v5 }
 0x37c   : > { %v1888_v13 = vadd.f32 %v7205_v8, %v9564_v60  ;;  %v1945_v14 = vmax.f32 %v1885_v12, 0.0 }
 0x37e   : > { %v7206_v15 = vpop.f32.mrb[80].mxu1  ;;  %v1946_v16 = vmax.f32 %v1888_v13, 0.0  ;;  %8001 = vmatmul.mubr.bf16.gmra.mrb[108].mxu0 %v8858_v17  ;;  %v8687_v17 = vld [vmem:[%s10393_s3 + $0x8] sm:$0xff]  }
 0x37f   : > { %v7207_v20 = vpop.f32.mrb[81].mxu1  ;;  %8020 = vmatprep.mubr.bf16.mxu0 %v8859_v21  ;;  %v8864_v21 = vld [vmem:[%s9375_s18 + $0x68] sm:$0xff]  }
 0x380   : > { %v7208_v23 = vadd.f32 %v7207_v20, %v7206_v15  ;;  %v7209_v24 = vpop.f32.mrb[82].mxu1  ;;  %v1966_v25 = vpack.c.bf16 %v1946_v16, %v1945_v14  ;;  %v8863_v20 = vld [vmem:[%s9375_s18 + $0x60] sm:$0xff]  }
 0x381   : > { %v7210_v26 = vpop.f32.mrb[83].mxu1 }
 0x382   : > { %v7211_v28 = vadd.f32 %v7210_v26, %v7209_v24  ;;  %8010 = vmatprep.subr.bf16.mxu0 %v1966_v25  ;;  %v1893_v29 = vadd.f32 %v7208_v23, %v9564_v60  ;;  %v8866_v23 = vld [vmem:[%s9375_s18 + $0x78] sm:$0xff]   ;;  %v8867_v24 = vld [vmem:[%s9397_s14] sm:$0xff]   ;;  %v8869_v26 = vld [vmem:[%s9397_s14 + $0x10] sm:$0xff]  }
 0x383   : > { %8011 = vmatpush3.bf16.msra.mxu0 %v1966_v25  ;;  %v8868_v25 = vld [vmem:[%s9397_s14 + $0x8] sm:$0xff]  }
 0x384   : > { %v1896_v31 = vadd.f32 %v7211_v28, %v9564_v60  ;;  %v1947_v34 = vmax.f32 %v1893_v29, 0.0  ;;  %v8871_v28 = vld [vmem:[%s9397_s14 + $0x20] sm:$0xff]   ;;  %v8872_v29 = vld [vmem:[%s9397_s14 + $0x28] sm:$0xff]  }
 0x386   : > { %v7212_v33 = vpop.f32.mrb[84].mxu1  ;;  %v1948_v35 = vmax.f32 %v1896_v31, 0.0  ;;  %v8874_v31 = vld [vmem:[%s9397_s14 + $0x38] sm:$0xff]  }
 0x387   : > { %v7213_v37 = vpop.f32.mrb[85].mxu1 }
 0x388   : > { %v7214_v38 = vadd.f32 %v7213_v37, %v7212_v33  ;;  %v7215_v39 = vpop.f32.mrb[86].mxu1  ;;  %v1967_v40 = vpack.c.bf16 %v1948_v35, %v1947_v34  ;;  %v8876_v33 = vld [vmem:[%s9397_s14 + $0x48] sm:$0xff]   ;;  %v8877_v34 = vld [vmem:[%s9397_s14 + $0x50] sm:$0xff]   ;;  %v8878_v35 = vld [vmem:[%s9397_s14 + $0x58] sm:$0xff]  }
 0x389   : > { %v7216_v41 = vpop.f32.mrb[87].mxu1  ;;  %v8880_v37 = vld [vmem:[%s9397_s14 + $0x68] sm:$0xff]  }
 0x38a   : > { %v7217_v43 = vadd.f32 %v7216_v41, %v7215_v39  ;;  %8012 = vmatprep.subr.bf16.mxu0 %v1967_v40  ;;  %v1901_v44 = vadd.f32 %v7214_v38, %v9564_v60  ;;  %v8881_v38 = vld [vmem:[%s9397_s14 + $0x70] sm:$0xff]   ;;  %v8882_v39 = vld [vmem:[%s9397_s14 + $0x78] sm:$0xff]  }
 0x38b   : > { %8013 = vmatpush3.bf16.msra.mxu0 %v1967_v40  ;;  %v8711_v40 = vld [vmem:[#allocation5 + $0xf4] ss:$8 sps:$4 sm:$0xff]   ;;  %v8709_v41 = vld [vmem:[#allocation5 + $0xf0] ss:$8 sps:$4 sm:$0xff]  }
 0x38c   : > { %v1904_v46 = vadd.f32 %v7217_v43, %v9564_v60  ;;  %v1949_v49 = vmax.f32 %v1901_v44, 0.0  ;;  %2507 = vmatprep.subr.bf16.mxu1 %v8711_v40  ;;  %v8713_v43 = vld [vmem:[#allocation7 + $0x80] sm:$0xff]   ;;  %v8714_v44 = vld [vmem:[#allocation7 + $0xc8] sm:$0xff]  }
 0x38d   : > { %2508 = vmatpush1.bf16.msra.mxu1 %v8709_v41  ;;  %v8723_v40 = vld [vmem:[#allocation7 + $0xa8] sm:$0xff]   ;;  %v8724_v41 = vld [vmem:[#allocation7 + $0xf0] sm:$0xff]  }
 0x38e   : > { %v7218_v48 = vpop.f32.mrb[88].mxu1  ;;  %v1950_v50 = vmax.f32 %v1904_v46, 0.0 }
 0x38f   : > { %v7219_v52 = vpop.f32.mrb[89].mxu1 }
 0x390   : > { %v7220_v53 = vadd.f32 %v7219_v52, %v7218_v48  ;;  %v7221_v54 = vpop.f32.mrb[90].mxu1  ;;  %v1968_v55 = vpack.c.bf16 %v1950_v50, %v1949_v49  ;;  %v8716_v49 = vld [vmem:[#allocation7 + $0xd0] sm:$0xff]  }
 0x391   : > { %v7222_v56 = vpop.f32.mrb[91].mxu1 }
 0x392   : > { %v7223_v58 = vadd.f32 %v7222_v56, %v7221_v54  ;;  %8014 = vmatprep.subr.bf16.mxu0 %v1968_v55  ;;  %v1909_v59 = vadd.f32 %v7220_v53, %v9564_v60  ;;  %v8717_v53 = vld [vmem:[#allocation7 + $0x90] sm:$0xff]   ;;  %v8718_v54 = vld [vmem:[#allocation7 + $0xd8] sm:$0xff]  }
 0x393   : > { %8015 = vmatpush3.bf16.msra.mxu0 %v1968_v55 }
 0x394   : > { %v1912_v61 = vadd.f32 %v7223_v58, %v9564_v60  ;;  %v1951_v63 = vmax.f32 %v1909_v59, 0.0  ;;  %v8720_v59 = vld [vmem:[#allocation7 + $0xe0] sm:$0xff]  }
 0x396   : > { %v7224_v11 = vpop.f32.mrb[92].mxu1  ;;  %v1952_v0 = vmax.f32 %v1912_v61, 0.0 }
 0x397   : > { %v7225_v2 = vpop.f32.mrb[93].mxu1 }
 0x398   : > { %v7226_v3 = vadd.f32 %v7225_v2, %v7224_v11  ;;  %v7227_v4 = vpop.f32.mrb[94].mxu1  ;;  %v1969_v5 = vpack.c.bf16 %v1952_v0, %v1951_v63  ;;  %v8721_v11 = vld [vmem:[#allocation7 + $0xa0] sm:$0xff]   ;;  %v8722_v63 = vld [vmem:[#allocation7 + $0xe8] sm:$0xff]  }
 0x399   : > { %v7228_v6 = vpop.f32.mrb[95].mxu1 }
 0x39a   : > { %v7229_v8 = vadd.f32 %v7228_v6, %v7227_v4  ;;  %8016 = vmatprep.subr.bf16.mxu0 %v1969_v5  ;;  %v1917_v12 = vadd.f32 %v7226_v3, %v9564_v60 }
 0x39b   : > { %8017 = vmatpush3.bf16.msra.mxu0 %v1969_v5 }
 0x39c   : > { %v1920_v13 = vadd.f32 %v7229_v8, %v9564_v60  ;;  %v1953_v14 = vmax.f32 %v1917_v12, 0.0  ;;  %v8862_v60 = vld [vmem:[%s9375_s18 + $0x58] sm:$0xff]  }
 0x39e   : > { %v1954_v15 = vmax.f32 %v1920_v13, 0.0 }
 0x3a0   : > { %v1970_v16 = vpack.c.bf16 %v1954_v15, %v1953_v14 }
 0x3a2   : > { %8018 = vmatprep.subr.bf16.mxu0 %v1970_v16 }
 0x3a3   : > { %8019 = vmatpush3.bf16.msra.mxu0 %v1970_v16 }
 0x3a4   : > { %8036 = vmatprep.subr.bf16.mxu0 %v8687_v17 }
 0x3a6   : > { %8021 = vmatmul.mubr.bf16.vlgmr.msra.gmra.mrb[112].mxu0 %v8860_v18 }
 0x3a7   : > { %8024 = vmatprep.mubr.bf16.mxu0 %v8861_v19  ;;  %8037 = vmatpush3.bf16.msra.mxu0 %v8687_v17 }
 0x3a8   : > { %7279 = vmatprep.subr.bf16.mxu0 %v8712_v42  ;;  %v8725_v42 = vld [vmem:[#allocation7 + $0xb0] sm:$0xff]  }
 0x3ae   : > { %8025 = vmatmul.mubr.bf16.gmra.mrb[116].mxu0 %v8862_v60 }
 0x3af   : > { %8028 = vmatprep.mubr.bf16.mxu0 %v8863_v20 }
 0x3b6   : > { %8029 = vmatmul.mubr.bf16.gmra.mrb[120].mxu0 %v8864_v21 }
 0x3b7   : > { %8032 = vmatprep.mubr.bf16.mxu0 %v8865_v22 }
 0x3be   : > { %8033 = vmatmul.mubr.bf16.gmra.mrb[124].mxu0 %v8866_v23 }
 0x3bf   : > { %8038 = vmatprep.mubr.msk.bf16.mxu0 %vm972_vm0, %v8867_v24 }
 0x3c6   : > { %8039 = vmatmul.mubr.msk.bf16.vlgmr.msra.gmra.mrb[96].mxu0 %vm972_vm0, %v8868_v25 }
 0x3c7   : > { %8042 = vmatprep.mubr.msk.bf16.mxu0 %vm972_vm0, %v8869_v26  ;;  %7280 = vmatpush3.bf16.msra.mxu0 %v8713_v43  ;;  %v8726_v43 = vld [vmem:[#allocation7 + $0xf8] sm:$0xff]  }
 0x3c8   : > { %7281 = vmatprep.subr.bf16.mxu0 %v8714_v44  ;;  %v8727_v44 = vld [vmem:[#allocation7 + $0xb8] sm:$0xff]  }
 0x3cb   : > { %7282 = vmatpush3.bf16.msra.mxu0 %v8715_v47 }
 0x3cc   : > { %7283 = vmatprep.subr.bf16.mxu0 %v8716_v49 }
 0x3ce   : > { %8043 = vmatmul.mubr.msk.bf16.gmra.mrb[100].mxu0 %vm972_vm0, %v8870_v27 }
 0x3cf   : > { %8046 = vmatprep.mubr.msk.bf16.mxu0 %vm972_vm0, %v8871_v28  ;;  %7284 = vmatpush3.bf16.msra.mxu0 %v8717_v53 }
 0x3d0   : > { %7285 = vmatprep.subr.bf16.mxu0 %v8718_v54 }
 0x3d3   : > { %7286 = vmatpush3.bf16.msra.mxu0 %v8719_v57 }
 0x3d4   : > { %7287 = vmatprep.subr.bf16.mxu0 %v8720_v59 }
 0x3d6   : > { %8047 = vmatmul.mubr.msk.bf16.gmra.mrb[104].mxu0 %vm972_vm0, %v8872_v29 }
 0x3d7   : > { %8050 = vmatprep.mubr.msk.bf16.mxu0 %vm972_vm0, %v8873_v30  ;;  %7288 = vmatpush3.bf16.msra.mxu0 %v8721_v11 }
 0x3d8   : > { %7289 = vmatprep.subr.bf16.mxu0 %v8722_v63 }
 0x3db   : > { %7290 = vmatpush3.bf16.msra.mxu0 %v8723_v40 }
 0x3dc   : > { %7291 = vmatprep.subr.bf16.mxu0 %v8724_v41 }
 0x3de   : > { %8051 = vmatmul.mubr.msk.bf16.gmra.mrb[108].mxu0 %vm972_vm0, %v8874_v31 }
 0x3df   : > { %8054 = vmatprep.mubr.msk.bf16.mxu0 %vm972_vm0, %v8875_v32  ;;  %7292 = vmatpush3.bf16.msra.mxu0 %v8725_v42 }
 0x3e0   : > { %7293 = vmatprep.subr.bf16.mxu0 %v8726_v43 }
 0x3e3   : > { %7294 = vmatpush3.bf16.msra.mxu0 %v8727_v44 }
 0x3e6   : > { %8055 = vmatmul.mubr.msk.bf16.gmra.mrb[112].mxu0 %vm972_vm0, %v8876_v33 }
 0x3e7   : > { %8058 = vmatprep.mubr.msk.bf16.mxu0 %vm972_vm0, %v8877_v34 }
 0x3ee   : > { %8059 = vmatmul.mubr.msk.bf16.gmra.mrb[116].mxu0 %vm972_vm0, %v8878_v35 }
 0x3ef   : > { %8062 = vmatprep.mubr.msk.bf16.mxu0 %vm972_vm0, %v8879_v36 }
 0x3f6   : > { %8063 = vmatmul.mubr.msk.bf16.gmra.mrb[120].mxu0 %vm972_vm0, %v8880_v37 }
 0x3f7   : > { %8066 = vmatprep.mubr.msk.bf16.mxu0 %vm972_vm0, %v8881_v38 }
 0x3fe   : > { %8067 = vmatmul.mubr.msk.bf16.gmra.mrb[124].mxu0 %vm972_vm0, %v8882_v39 }
 0x499   : > { %v8040_v45 = vpop.f32.mrb[96].mxu0 }
 0x49a   : > { %v2208_v46 = vpop.f32.mrb[97].mxu0 }
 0x49b   : > { %v8041_v48 = vpop.f32.mrb[98].mxu0 }
 0x49c   : > { %v2368_v50 = vpack.c.bf16 %v8041_v48, %v8040_v45  ;;  %v2211_v51 = vpop.f32.mrb[99].mxu0  ;;  %v8883_v45 = vld [vmem:[%s9375_s18] sm:$0xff]  }
 0x49d   : > { %v2367_v52 = vpack.c.bf16 %v2211_v51, %v2208_v46  ;;  %v6864_v46 = vld [vmem:[%s10395_s5 + $0x2] sm:$0x3] }
 0x49e   : > { %v9668_v47 = vrot.slane %v6864_v46, %v9483_v7  ;;  %v9671_v48 = vrot.slane %v6864_v46, %v9488_v9 }
 0x49f   : > { %2526 = vmatmul.mubr.bf16.vlgmr.msra.gmra.mrb[96].mxu1 %v2367_v52 }
 0x4a0   : > { %2535 = vmatprep.mubr.bf16.mxu1 %v9144_v1 }
 0x4a1   : > { %v8044_v55 = vpop.f32.mrb[100].mxu0 }
 0x4a2   : > { %v2224_v56 = vpop.f32.mrb[101].mxu0 }
 0x4a3   : > { %v8045_v58 = vpop.f32.mrb[102].mxu0 }
 0x4a4   : > { %v2370_v10 = vpack.c.bf16 %v8045_v58, %v8044_v55  ;;  %v2227_v61 = vpop.f32.mrb[103].mxu0 }
 0x4a5   : > { %v2369_v62 = vpack.c.bf16 %v2227_v61, %v2224_v56 }
 0x4a7   : > { %2536 = vmatmul.mubr.bf16.gmra.mrb[100].mxu1 %v2368_v50 }
 0x4a8   : > { %2545 = vmatprep.mubr.bf16.mxu1 %v9144_v1 }
 0x4a9   : > { %v8048_v0 = vpop.f32.mrb[104].mxu0 }
 0x4aa   : > { %v2240_v2 = vpop.f32.mrb[105].mxu0 }
 0x4ab   : > { %v8049_v3 = vpop.f32.mrb[106].mxu0 }
 0x4ac   : > { %v2372_v4 = vpack.c.bf16 %v8049_v3, %v8048_v0  ;;  %v2243_v5 = vpop.f32.mrb[107].mxu0 }
 0x4ad   : > { %v2371_v6 = vpack.c.bf16 %v2243_v5, %v2240_v2 }
 0x4af   : > { %2546 = vmatmul.mubr.bf16.gmra.mrb[104].mxu1 %v2369_v62 }
 0x4b0   : > { %2555 = vmatprep.mubr.bf16.mxu1 %v9144_v1 }
 0x4b1   : > { %v8052_v8 = vpop.f32.mrb[108].mxu0 }
 0x4b2   : > { %v2256_v12 = vpop.f32.mrb[109].mxu0 }
 0x4b3   : > { %v8053_v13 = vpop.f32.mrb[110].mxu0 }
 0x4b4   : > { %v2374_v14 = vpack.c.bf16 %v8053_v13, %v8052_v8  ;;  %v2259_v15 = vpop.f32.mrb[111].mxu0 }
 0x4b5   : > { %v2373_v16 = vpack.c.bf16 %v2259_v15, %v2256_v12 }
 0x4b7   : > { %2556 = vmatmul.mubr.bf16.gmra.mrb[108].mxu1 %v2370_v10 }
 0x4b8   : > { %2565 = vmatprep.mubr.bf16.mxu1 %v9144_v1 }
 0x4b9   : > { %v8056_v17 = vpop.f32.mrb[112].mxu0 }
 0x4ba   : > { %v2272_v18 = vpop.f32.mrb[113].mxu0 }
 0x4bb   : > { %v8057_v19 = vpop.f32.mrb[114].mxu0 }
 0x4bc   : > { %v2376_v60 = vpack.c.bf16 %v8057_v19, %v8056_v17  ;;  %v2275_v20 = vpop.f32.mrb[115].mxu0 }
 0x4bd   : > { %v2375_v21 = vpack.c.bf16 %v2275_v20, %v2272_v18 }
 0x4bf   : > { %2566 = vmatmul.mubr.bf16.gmra.mrb[112].mxu1 %v2371_v6 }
 0x4c0   : > { %2575 = vmatprep.mubr.bf16.mxu1 %v9144_v1 }
 0x4c1   : > { %v8060_v22 = vpop.f32.mrb[116].mxu0 }
 0x4c2   : > { %v2288_v23 = vpop.f32.mrb[117].mxu0 }
 0x4c3   : > { %v8061_v24 = vpop.f32.mrb[118].mxu0 }
 0x4c4   : > { %v2378_v25 = vpack.c.bf16 %v8061_v24, %v8060_v22  ;;  %v2291_v26 = vpop.f32.mrb[119].mxu0 }
 0x4c5   : > { %v2377_v27 = vpack.c.bf16 %v2291_v26, %v2288_v23 }
 0x4c7   : > { %2576 = vmatmul.mubr.bf16.gmra.mrb[116].mxu1 %v2372_v4 }
 0x4c8   : > { %2585 = vmatprep.mubr.bf16.mxu1 %v9144_v1 }
 0x4c9   : > { %v8064_v28 = vpop.f32.mrb[120].mxu0 }
 0x4ca   : > { %v2304_v29 = vpop.f32.mrb[121].mxu0 }
 0x4cb   : > { %v8065_v30 = vpop.f32.mrb[122].mxu0 }
 0x4cc   : > { %v2380_v31 = vpack.c.bf16 %v8065_v30, %v8064_v28  ;;  %v2307_v32 = vpop.f32.mrb[123].mxu0 }
 0x4cd   : > { %v2379_v33 = vpack.c.bf16 %v2307_v32, %v2304_v29 }
 0x4cf   : > { %2586 = vmatmul.mubr.bf16.gmra.mrb[120].mxu1 %v2373_v16 }
 0x4d0   : > { %2595 = vmatprep.mubr.bf16.mxu1 %v9144_v1 }
 0x4d1   : > { %v8068_v34 = vpop.f32.mrb[124].mxu0 }
 0x4d2   : > { %v2320_v35 = vpop.f32.mrb[125].mxu0 }
 0x4d3   : > { %v8069_v36 = vpop.f32.mrb[126].mxu0 }
 0x4d4   : > { %v2382_v37 = vpack.c.bf16 %v8069_v36, %v8068_v34  ;;  %v2323_v38 = vpop.f32.mrb[127].mxu0 }
 0x4d5   : > { %v2381_v39 = vpack.c.bf16 %v2323_v38, %v2320_v35 }
 0x4d7   : > { %2596 = vmatmul.mubr.bf16.gmra.mrb[124].mxu1 %v2374_v14 }
 0x4d8   : > { %2605 = vmatprep.mubr.bf16.mxu1 %v9144_v1 }
 0x4df   : > { %2606 = vmatmul.mubr.bf16.gmra.mrb[128].mxu1 %v2375_v21 }
 0x4e0   : > { %2615 = vmatprep.mubr.bf16.mxu1 %v9144_v1 }
 0x4e7   : > { %2616 = vmatmul.mubr.bf16.gmra.mrb[132].mxu1 %v2376_v60 }
 0x4e8   : > { %2625 = vmatprep.mubr.bf16.mxu1 %v9144_v1 }
 0x4ef   : > { %2626 = vmatmul.mubr.bf16.gmra.mrb[136].mxu1 %v2377_v27 }
 0x4f0   : > { %2635 = vmatprep.mubr.bf16.mxu1 %v9144_v1 }
 0x4f7   : > { %2636 = vmatmul.mubr.bf16.gmra.mrb[140].mxu1 %v2378_v25 }
 0x4f8   : > { %2645 = vmatprep.mubr.bf16.mxu1 %v9144_v1 }
 0x4ff   : > { %2646 = vmatmul.mubr.bf16.gmra.mrb[144].mxu1 %v2379_v33 }
 0x500   : > { %2655 = vmatprep.mubr.bf16.mxu1 %v9144_v1 }
 0x507   : > { %2656 = vmatmul.mubr.bf16.gmra.mrb[148].mxu1 %v2380_v31 }
 0x508   : > { %2665 = vmatprep.mubr.bf16.mxu1 %v9144_v1 }
 0x50f   : > { %2666 = vmatmul.mubr.bf16.gmra.mrb[152].mxu1 %v2381_v39 }
 0x510   : > { %2675 = vmatprep.mubr.bf16.mxu1 %v9144_v1 }
 0x517   : > { %2676 = vmatmul.mubr.bf16.gmra.mrb[156].mxu1 %v2382_v37 }
 0x518   : > { %8086 = vmatprep.mubr.bf16.mxu1 %v8883_v45 }
 0x572   : > { %v2527_v49 = vpop.f32.mrb[96].mxu1 }
 0x573   : > { %v2528_v50 = vadd.f32 %v2527_v49, %v9668_v47  ;;  %v2529_v51 = vpop.f32.mrb[97].mxu1 }
 0x574   : > { %v2530_v52 = vadd.f32 %v2529_v51, %v9671_v48  ;;  %v2531_v53 = vpop.f32.mrb[98].mxu1 }
 0x575   : > { %v2532_v54 = vadd.f32 %v2531_v53, %v9668_v47  ;;  %v2533_v55 = vpop.f32.mrb[99].mxu1  ;;  %v2686_v57 = vmax.f32 %v2528_v50, 0.0 }
 0x576   : > { %v2534_v56 = vadd.f32 %v2533_v55, %v9671_v48  ;;  %v2687_v59 = vmax.f32 %v2530_v52, 0.0 }
 0x577   : > { %v2688_v58 = vmax.f32 %v2532_v54, 0.0 }
 0x578   : > { %v2689_v10 = vmax.f32 %v2534_v56, 0.0 }
 0x579   : > { %v2750_v61 = vpack.c.bf16 %v2688_v58, %v2686_v57 }
 0x57a   : > { %v2537_v62 = vpop.f32.mrb[100].mxu1  ;;  %v2751_v11 = vpack.c.bf16 %v2689_v10, %v2687_v59 }
 0x57b   : > { %v2538_v63 = vadd.f32 %v2537_v62, %v9668_v47  ;;  %v2539_v0 = vpop.f32.mrb[101].mxu1 }
 0x57c   : > { %v2540_v2 = vadd.f32 %v2539_v0, %v9671_v48  ;;  %v2541_v3 = vpop.f32.mrb[102].mxu1  ;;  %2951 = vmatprep.mubr.bf16.mxu0 %v2751_v11 }
 0x57d   : > { %v2542_v4 = vadd.f32 %v2541_v3, %v9668_v47  ;;  %v2543_v5 = vpop.f32.mrb[103].mxu1  ;;  %2952 = vmatmul.mubr.bf16.vlgmr.msra.gmra.mrb[128].mxu0 %v2750_v61  ;;  %v2690_v8 = vmax.f32 %v2538_v63, 0.0 }
 0x57e   : > { %v2544_v6 = vadd.f32 %v2543_v5, %v9671_v48  ;;  %v2691_v13 = vmax.f32 %v2540_v2, 0.0 }
 0x57f   : > { %v2692_v12 = vmax.f32 %v2542_v4, 0.0 }
 0x580   : > { %v2693_v14 = vmax.f32 %v2544_v6, 0.0 }
 0x581   : > { %v2752_v15 = vpack.c.bf16 %v2692_v12, %v2690_v8 }
 0x582   : > { %v2547_v16 = vpop.f32.mrb[104].mxu1  ;;  %v2753_v17 = vpack.c.bf16 %v2693_v14, %v2691_v13 }
 0x583   : > { %v2548_v18 = vadd.f32 %v2547_v16, %v9668_v47  ;;  %v2549_v19 = vpop.f32.mrb[105].mxu1 }
 0x584   : > { %v2550_v60 = vadd.f32 %v2549_v19, %v9671_v48  ;;  %v2551_v20 = vpop.f32.mrb[106].mxu1  ;;  %2959 = vmatprep.mubr.bf16.mxu0 %v2753_v17 }
 0x585   : > { %v2552_v21 = vadd.f32 %v2551_v20, %v9668_v47  ;;  %v2553_v22 = vpop.f32.mrb[107].mxu1  ;;  %2960 = vmatmul.mubr.bf16.gmra.mrb[132].mxu0 %v2752_v15  ;;  %v2694_v24 = vmax.f32 %v2548_v18, 0.0 }
 0x586   : > { %v2554_v23 = vadd.f32 %v2553_v22, %v9671_v48  ;;  %v2695_v26 = vmax.f32 %v2550_v60, 0.0 }
 0x587   : > { %v2696_v25 = vmax.f32 %v2552_v21, 0.0 }
 0x588   : > { %v2697_v27 = vmax.f32 %v2554_v23, 0.0 }
 0x589   : > { %v2754_v28 = vpack.c.bf16 %v2696_v25, %v2694_v24 }
 0x58a   : > { %v2557_v29 = vpop.f32.mrb[108].mxu1  ;;  %v2755_v30 = vpack.c.bf16 %v2697_v27, %v2695_v26 }
 0x58b   : > { %v2558_v31 = vadd.f32 %v2557_v29, %v9668_v47  ;;  %v2559_v32 = vpop.f32.mrb[109].mxu1 }
 0x58c   : > { %v2560_v33 = vadd.f32 %v2559_v32, %v9671_v48  ;;  %v2561_v34 = vpop.f32.mrb[110].mxu1  ;;  %2967 = vmatprep.mubr.bf16.mxu0 %v2755_v30 }
 0x58d   : > { %v2562_v35 = vadd.f32 %v2561_v34, %v9668_v47  ;;  %v2563_v36 = vpop.f32.mrb[111].mxu1  ;;  %2968 = vmatmul.mubr.bf16.gmra.mrb[136].mxu0 %v2754_v28  ;;  %v2698_v38 = vmax.f32 %v2558_v31, 0.0 }
 0x58e   : > { %v2564_v37 = vadd.f32 %v2563_v36, %v9671_v48  ;;  %v2699_v40 = vmax.f32 %v2560_v33, 0.0 }
 0x58f   : > { %v2700_v39 = vmax.f32 %v2562_v35, 0.0 }
 0x590   : > { %v2701_v41 = vmax.f32 %v2564_v37, 0.0 }
 0x591   : > { %v2756_v42 = vpack.c.bf16 %v2700_v39, %v2698_v38 }
 0x592   : > { %v2567_v43 = vpop.f32.mrb[112].mxu1  ;;  %v2757_v44 = vpack.c.bf16 %v2701_v41, %v2699_v40 }
 0x593   : > { %v2568_v45 = vadd.f32 %v2567_v43, %v9668_v47  ;;  %v2569_v46 = vpop.f32.mrb[113].mxu1 }
 0x594   : > { %v2570_v49 = vadd.f32 %v2569_v46, %v9671_v48  ;;  %v2571_v50 = vpop.f32.mrb[114].mxu1  ;;  %2975 = vmatprep.mubr.bf16.mxu0 %v2757_v44 }
 0x595   : > { %v2572_v51 = vadd.f32 %v2571_v50, %v9668_v47  ;;  %v2573_v52 = vpop.f32.mrb[115].mxu1  ;;  %2976 = vmatmul.mubr.bf16.gmra.mrb[140].mxu0 %v2756_v42  ;;  %v2702_v54 = vmax.f32 %v2568_v45, 0.0 }
 0x596   : > { %v2574_v53 = vadd.f32 %v2573_v52, %v9671_v48  ;;  %v2703_v56 = vmax.f32 %v2570_v49, 0.0 }
 0x597   : > { %v2704_v55 = vmax.f32 %v2572_v51, 0.0 }
 0x598   : > { %v2705_v57 = vmax.f32 %v2574_v53, 0.0 }
 0x599   : > { %v2758_v58 = vpack.c.bf16 %v2704_v55, %v2702_v54 }
 0x59a   : > { %v2577_v59 = vpop.f32.mrb[116].mxu1  ;;  %v2759_v10 = vpack.c.bf16 %v2705_v57, %v2703_v56 }
 0x59b   : > { %v2578_v61 = vadd.f32 %v2577_v59, %v9668_v47  ;;  %v2579_v62 = vpop.f32.mrb[117].mxu1 }
 0x59c   : > { %v2580_v11 = vadd.f32 %v2579_v62, %v9671_v48  ;;  %v2581_v63 = vpop.f32.mrb[118].mxu1  ;;  %2983 = vmatprep.mubr.bf16.mxu0 %v2759_v10 }
 0x59d   : > { %v2582_v0 = vadd.f32 %v2581_v63, %v9668_v47  ;;  %v2583_v2 = vpop.f32.mrb[119].mxu1  ;;  %2984 = vmatmul.mubr.bf16.gmra.mrb[144].mxu0 %v2758_v58  ;;  %v2706_v4 = vmax.f32 %v2578_v61, 0.0 }
 0x59e   : > { %v2584_v3 = vadd.f32 %v2583_v2, %v9671_v48  ;;  %v2707_v6 = vmax.f32 %v2580_v11, 0.0 }
 0x59f   : > { %v2708_v5 = vmax.f32 %v2582_v0, 0.0 }
 0x5a0   : > { %v2709_v8 = vmax.f32 %v2584_v3, 0.0 }
 0x5a1   : > { %v2760_v12 = vpack.c.bf16 %v2708_v5, %v2706_v4 }
 0x5a2   : > { %v2587_v13 = vpop.f32.mrb[120].mxu1  ;;  %v2761_v14 = vpack.c.bf16 %v2709_v8, %v2707_v6 }
 0x5a3   : > { %v2588_v15 = vadd.f32 %v2587_v13, %v9668_v47  ;;  %v2589_v16 = vpop.f32.mrb[121].mxu1 }
 0x5a4   : > { %v2590_v17 = vadd.f32 %v2589_v16, %v9671_v48  ;;  %v2591_v18 = vpop.f32.mrb[122].mxu1  ;;  %2991 = vmatprep.mubr.bf16.mxu0 %v2761_v14 }
 0x5a5   : > { %v2592_v19 = vadd.f32 %v2591_v18, %v9668_v47  ;;  %v2593_v60 = vpop.f32.mrb[123].mxu1  ;;  %2992 = vmatmul.mubr.bf16.gmra.mrb[148].mxu0 %v2760_v12  ;;  %v2710_v21 = vmax.f32 %v2588_v15, 0.0 }
 0x5a6   : > { %v2594_v20 = vadd.f32 %v2593_v60, %v9671_v48  ;;  %v2711_v23 = vmax.f32 %v2590_v17, 0.0 }
 0x5a7   : > { %v2712_v22 = vmax.f32 %v2592_v19, 0.0 }
 0x5a8   : > { %v2713_v24 = vmax.f32 %v2594_v20, 0.0 }
 0x5a9   : > { %v2762_v25 = vpack.c.bf16 %v2712_v22, %v2710_v21 }
 0x5aa   : > { %v2597_v26 = vpop.f32.mrb[124].mxu1  ;;  %v2763_v27 = vpack.c.bf16 %v2713_v24, %v2711_v23 }
 0x5ab   : > { %v2598_v28 = vadd.f32 %v2597_v26, %v9668_v47  ;;  %v2599_v29 = vpop.f32.mrb[125].mxu1 }
 0x5ac   : > { %v2600_v30 = vadd.f32 %v2599_v29, %v9671_v48  ;;  %v2601_v31 = vpop.f32.mrb[126].mxu1  ;;  %2999 = vmatprep.mubr.bf16.mxu0 %v2763_v27 }
 0x5ad   : > { %v2602_v32 = vadd.f32 %v2601_v31, %v9668_v47  ;;  %v2603_v33 = vpop.f32.mrb[127].mxu1  ;;  %3000 = vmatmul.mubr.bf16.gmra.mrb[152].mxu0 %v2762_v25  ;;  %v2714_v35 = vmax.f32 %v2598_v28, 0.0 }
 0x5ae   : > { %v2604_v34 = vadd.f32 %v2603_v33, %v9671_v48  ;;  %v2715_v37 = vmax.f32 %v2600_v30, 0.0 }
 0x5af   : > { %v2716_v36 = vmax.f32 %v2602_v32, 0.0 }
 0x5b0   : > { %v2717_v38 = vmax.f32 %v2604_v34, 0.0 }
 0x5b1   : > { %v2764_v39 = vpack.c.bf16 %v2716_v36, %v2714_v35 }
 0x5b2   : > { %v2607_v40 = vpop.f32.mrb[128].mxu1  ;;  %v2765_v41 = vpack.c.bf16 %v2717_v38, %v2715_v37 }
 0x5b3   : > { %v2608_v42 = vadd.f32 %v2607_v40, %v9668_v47  ;;  %v2609_v43 = vpop.f32.mrb[129].mxu1 }
 0x5b4   : > { %v2610_v44 = vadd.f32 %v2609_v43, %v9671_v48  ;;  %v2611_v45 = vpop.f32.mrb[130].mxu1  ;;  %3007 = vmatprep.mubr.bf16.mxu0 %v2765_v41 }
 0x5b5   : > { %v2612_v46 = vadd.f32 %v2611_v45, %v9668_v47  ;;  %v2613_v49 = vpop.f32.mrb[131].mxu1  ;;  %3008 = vmatmul.mubr.bf16.gmra.mrb[156].mxu0 %v2764_v39  ;;  %v2718_v51 = vmax.f32 %v2608_v42, 0.0 }
 0x5b6   : > { %v2614_v50 = vadd.f32 %v2613_v49, %v9671_v48  ;;  %v2719_v53 = vmax.f32 %v2610_v44, 0.0 }
 0x5b7   : > { %v2720_v52 = vmax.f32 %v2612_v46, 0.0 }
 0x5b8   : > { %v2721_v54 = vmax.f32 %v2614_v50, 0.0 }
 0x5b9   : > { %v2766_v55 = vpack.c.bf16 %v2720_v52, %v2718_v51 }
 0x5ba   : > { %v2617_v56 = vpop.f32.mrb[132].mxu1  ;;  %v2767_v57 = vpack.c.bf16 %v2721_v54, %v2719_v53 }
 0x5bb   : > { %v2618_v58 = vadd.f32 %v2617_v56, %v9668_v47  ;;  %v2619_v59 = vpop.f32.mrb[133].mxu1 }
 0x5bc   : > { %v2620_v10 = vadd.f32 %v2619_v59, %v9671_v48  ;;  %v2621_v61 = vpop.f32.mrb[134].mxu1  ;;  %3015 = vmatprep.mubr.bf16.mxu0 %v2767_v57 }
 0x5bd   : > { %v2622_v62 = vadd.f32 %v2621_v61, %v9668_v47  ;;  %v2623_v11 = vpop.f32.mrb[135].mxu1  ;;  %3016 = vmatmul.mubr.bf16.gmra.mrb[160].mxu0 %v2766_v55  ;;  %v2722_v0 = vmax.f32 %v2618_v58, 0.0 }
 0x5be   : > { %v2624_v63 = vadd.f32 %v2623_v11, %v9671_v48  ;;  %v2723_v3 = vmax.f32 %v2620_v10, 0.0 }
 0x5bf   : > { %v2724_v2 = vmax.f32 %v2622_v62, 0.0 }
 0x5c0   : > { %v2725_v4 = vmax.f32 %v2624_v63, 0.0 }
 0x5c1   : > { %v2768_v5 = vpack.c.bf16 %v2724_v2, %v2722_v0 }
 0x5c2   : > { %v2627_v6 = vpop.f32.mrb[136].mxu1  ;;  %v2769_v8 = vpack.c.bf16 %v2725_v4, %v2723_v3 }
 0x5c3   : > { %v2628_v12 = vadd.f32 %v2627_v6, %v9668_v47  ;;  %v2629_v13 = vpop.f32.mrb[137].mxu1 }
 0x5c4   : > { %v2630_v14 = vadd.f32 %v2629_v13, %v9671_v48  ;;  %v2631_v15 = vpop.f32.mrb[138].mxu1  ;;  %3023 = vmatprep.mubr.bf16.mxu0 %v2769_v8 }
 0x5c5   : > { %v2632_v16 = vadd.f32 %v2631_v15, %v9668_v47  ;;  %v2633_v17 = vpop.f32.mrb[139].mxu1  ;;  %3024 = vmatmul.mubr.bf16.gmra.mrb[164].mxu0 %v2768_v5  ;;  %v2726_v19 = vmax.f32 %v2628_v12, 0.0 }
 0x5c6   : > { %v2634_v18 = vadd.f32 %v2633_v17, %v9671_v48  ;;  %v2727_v20 = vmax.f32 %v2630_v14, 0.0 }
 0x5c7   : > { %v2728_v60 = vmax.f32 %v2632_v16, 0.0 }
 0x5c8   : > { %v2729_v21 = vmax.f32 %v2634_v18, 0.0 }
 0x5c9   : > { %v2770_v22 = vpack.c.bf16 %v2728_v60, %v2726_v19 }
 0x5ca   : > { %v2637_v23 = vpop.f32.mrb[140].mxu1  ;;  %v2771_v24 = vpack.c.bf16 %v2729_v21, %v2727_v20 }
 0x5cb   : > { %v2638_v25 = vadd.f32 %v2637_v23, %v9668_v47  ;;  %v2639_v26 = vpop.f32.mrb[141].mxu1 }
 0x5cc   : > { %v2640_v27 = vadd.f32 %v2639_v26, %v9671_v48  ;;  %v2641_v28 = vpop.f32.mrb[142].mxu1  ;;  %3031 = vmatprep.mubr.bf16.mxu0 %v2771_v24 }
 0x5cd   : > { %v2642_v29 = vadd.f32 %v2641_v28, %v9668_v47  ;;  %v2643_v30 = vpop.f32.mrb[143].mxu1  ;;  %3032 = vmatmul.mubr.bf16.gmra.mrb[168].mxu0 %v2770_v22  ;;  %v2730_v32 = vmax.f32 %v2638_v25, 0.0 }
 0x5ce   : > { %v2644_v31 = vadd.f32 %v2643_v30, %v9671_v48  ;;  %v2731_v34 = vmax.f32 %v2640_v27, 0.0 }
 0x5cf   : > { %v2732_v33 = vmax.f32 %v2642_v29, 0.0 }
 0x5d0   : > { %v2733_v35 = vmax.f32 %v2644_v31, 0.0 }
 0x5d1   : > { %v2772_v36 = vpack.c.bf16 %v2732_v33, %v2730_v32 }
 0x5d2   : > { %v2647_v37 = vpop.f32.mrb[144].mxu1  ;;  %v2773_v38 = vpack.c.bf16 %v2733_v35, %v2731_v34 }
 0x5d3   : > { %v2648_v39 = vadd.f32 %v2647_v37, %v9668_v47  ;;  %v2649_v40 = vpop.f32.mrb[145].mxu1 }
 0x5d4   : > { %v2650_v41 = vadd.f32 %v2649_v40, %v9671_v48  ;;  %v2651_v42 = vpop.f32.mrb[146].mxu1  ;;  %3039 = vmatprep.mubr.bf16.mxu0 %v2773_v38 }
 0x5d5   : > { %v2652_v43 = vadd.f32 %v2651_v42, %v9668_v47  ;;  %v2653_v44 = vpop.f32.mrb[147].mxu1  ;;  %3040 = vmatmul.mubr.bf16.gmra.mrb[172].mxu0 %v2772_v36  ;;  %v2734_v46 = vmax.f32 %v2648_v39, 0.0  ;;  %v9741_v36 = vld [vmem:[%s10397_s7 + $0x1] ss:$0 sm:$0xff] }
 0x5d6   : > { %v2654_v45 = vadd.f32 %v2653_v44, %v9671_v48  ;;  %v2735_v50 = vmax.f32 %v2650_v41, 0.0 }
 0x5d7   : > { %v2736_v49 = vmax.f32 %v2652_v43, 0.0 }
 0x5d8   : > { %v2737_v51 = vmax.f32 %v2654_v45, 0.0 }
 0x5d9   : > { %v2774_v52 = vpack.c.bf16 %v2736_v49, %v2734_v46 }
 0x5da   : > { %v2657_v53 = vpop.f32.mrb[148].mxu1  ;;  %v2775_v54 = vpack.c.bf16 %v2737_v51, %v2735_v50 }
 0x5db   : > { %v2658_v55 = vadd.f32 %v2657_v53, %v9668_v47  ;;  %v2659_v56 = vpop.f32.mrb[149].mxu1 }
 0x5dc   : > { %v2660_v57 = vadd.f32 %v2659_v56, %v9671_v48  ;;  %v2661_v58 = vpop.f32.mrb[150].mxu1  ;;  %3047 = vmatprep.mubr.bf16.mxu0 %v2775_v54 }
 0x5dd   : > { %v2662_v59 = vadd.f32 %v2661_v58, %v9668_v47  ;;  %v2663_v10 = vpop.f32.mrb[151].mxu1  ;;  %3048 = vmatmul.mubr.bf16.gmra.mrb[176].mxu0 %v2774_v52  ;;  %v2738_v62 = vmax.f32 %v2658_v55, 0.0 }
 0x5de   : > { %v2664_v61 = vadd.f32 %v2663_v10, %v9671_v48  ;;  %v2739_v63 = vmax.f32 %v2660_v57, 0.0 }
 0x5df   : > { %v2740_v11 = vmax.f32 %v2662_v59, 0.0 }
 0x5e0   : > { %v2741_v0 = vmax.f32 %v2664_v61, 0.0 }
 0x5e1   : > { %v2776_v2 = vpack.c.bf16 %v2740_v11, %v2738_v62 }
 0x5e2   : > { %v2667_v3 = vpop.f32.mrb[152].mxu1  ;;  %v2777_v4 = vpack.c.bf16 %v2741_v0, %v2739_v63 }
 0x5e3   : > { %v2668_v5 = vadd.f32 %v2667_v3, %v9668_v47  ;;  %v2669_v6 = vpop.f32.mrb[153].mxu1 }
 0x5e4   : > { %v2670_v8 = vadd.f32 %v2669_v6, %v9671_v48  ;;  %v2671_v12 = vpop.f32.mrb[154].mxu1  ;;  %3055 = vmatprep.mubr.bf16.mxu0 %v2777_v4 }
 0x5e5   : > { %v2672_v13 = vadd.f32 %v2671_v12, %v9668_v47  ;;  %v2673_v14 = vpop.f32.mrb[155].mxu1  ;;  %3056 = vmatmul.mubr.bf16.gmra.mrb[180].mxu0 %v2776_v2  ;;  %v2742_v16 = vmax.f32 %v2668_v5, 0.0 }
 0x5e6   : > { %v2674_v15 = vadd.f32 %v2673_v14, %v9671_v48  ;;  %v2743_v18 = vmax.f32 %v2670_v8, 0.0 }
 0x5e7   : > { %v2744_v17 = vmax.f32 %v2672_v13, 0.0 }
 0x5e8   : > { %v2745_v19 = vmax.f32 %v2674_v15, 0.0 }
 0x5e9   : > { %v2778_v60 = vpack.c.bf16 %v2744_v17, %v2742_v16 }
 0x5ea   : > { %v2677_v20 = vpop.f32.mrb[156].mxu1  ;;  %v2779_v21 = vpack.c.bf16 %v2745_v19, %v2743_v18 }
 0x5eb   : > { %v2678_v22 = vadd.f32 %v2677_v20, %v9668_v47  ;;  %v2679_v23 = vpop.f32.mrb[157].mxu1 }
 0x5ec   : > { %v2680_v24 = vadd.f32 %v2679_v23, %v9671_v48  ;;  %v2681_v25 = vpop.f32.mrb[158].mxu1  ;;  %3063 = vmatprep.mubr.bf16.mxu0 %v2779_v21 }
 0x5ed   : > { %v2682_v26 = vadd.f32 %v2681_v25, %v9668_v47  ;;  %v2683_v27 = vpop.f32.mrb[159].mxu1  ;;  %3064 = vmatmul.mubr.bf16.gmra.mrb[184].mxu0 %v2778_v60  ;;  %v2746_v29 = vmax.f32 %v2678_v22, 0.0 }
 0x5ee   : > { %v2684_v28 = vadd.f32 %v2683_v27, %v9671_v48  ;;  %v2747_v31 = vmax.f32 %v2680_v24, 0.0 }
 0x5ef   : > { %v2748_v30 = vmax.f32 %v2682_v26, 0.0 }
 0x5f0   : > { %v2749_v32 = vmax.f32 %v2684_v28, 0.0 }
 0x5f1   : > { %v2780_v33 = vpack.c.bf16 %v2748_v30, %v2746_v29 }
 0x5f2   : > { %v2781_v34 = vpack.c.bf16 %v2749_v32, %v2747_v31 }
 0x5f4   : > { %3071 = vmatprep.mubr.bf16.mxu0 %v2781_v34 }
 0x5f5   : > { %3072 = vmatmul.mubr.bf16.gmra.mrb[188].mxu0 %v2780_v33 }
 0x5f6   : > { %3682 = vmatprep.mubr.bf16.mxu0 %v9144_v1 }
 0x650   : > { %v7295_v35 = vpop.f32.mrb[128].mxu0 }
 0x651   : > { %v7296_v47 = vpop.f32.mrb[129].mxu0 }
 0x652   : > { %v7297_v37 = vadd.f32 %v7296_v47, %v7295_v35  ;;  %v7298_v38 = vpop.f32.mrb[130].mxu0 }
 0x653   : > { %v7299_v48 = vpop.f32.mrb[131].mxu0 }
 0x654   : > { %v2954_v39 = vadd.f32 %v7297_v37, %v9741_v36  ;;  %v7300_v40 = vadd.f32 %v7299_v48, %v7298_v38 }
 0x656   : > { %v2957_v41 = vadd.f32 %v7300_v40, %v9741_v36  ;;  %v3080_v43 = vmax.f32 %v2954_v39, 0.0 }
 0x658   : > { %v7301_v42 = vpop.f32.mrb[132].mxu0  ;;  %v3081_v44 = vmax.f32 %v2957_v41, 0.0 }
 0x659   : > { %v7302_v45 = vpop.f32.mrb[133].mxu0 }
 0x65a   : > { %v7303_v46 = vadd.f32 %v7302_v45, %v7301_v42  ;;  %v7304_v49 = vpop.f32.mrb[134].mxu0  ;;  %v3112_v50 = vpack.c.bf16 %v3081_v44, %v3080_v43 }
 0x65b   : > { %v7305_v51 = vpop.f32.mrb[135].mxu0 }
 0x65c   : > { %v2962_v52 = vadd.f32 %v7303_v46, %v9741_v36  ;;  %v7306_v53 = vadd.f32 %v7305_v51, %v7304_v49  ;;  %8070 = vmatprep.subr.bf16.mxu1 %v3112_v50 }
 0x65d   : > { %8071 = vmatpush3.bf16.msra.mxu1 %v3112_v50 }
 0x65e   : > { %v2965_v54 = vadd.f32 %v7306_v53, %v9741_v36  ;;  %v3082_v56 = vmax.f32 %v2962_v52, 0.0 }
 0x660   : > { %v7307_v55 = vpop.f32.mrb[136].mxu0  ;;  %v3083_v57 = vmax.f32 %v2965_v54, 0.0 }
 0x661   : > { %v7308_v58 = vpop.f32.mrb[137].mxu0 }
 0x662   : > { %v7309_v59 = vadd.f32 %v7308_v58, %v7307_v55  ;;  %v7310_v10 = vpop.f32.mrb[138].mxu0  ;;  %v3113_v61 = vpack.c.bf16 %v3083_v57, %v3082_v56 }
 0x663   : > { %v7311_v62 = vpop.f32.mrb[139].mxu0 }
 0x664   : > { %v2970_v11 = vadd.f32 %v7309_v59, %v9741_v36  ;;  %v7312_v63 = vadd.f32 %v7311_v62, %v7310_v10  ;;  %8072 = vmatprep.subr.bf16.mxu1 %v3113_v61 }
 0x665   : > { %8073 = vmatpush3.bf16.msra.mxu1 %v3113_v61 }
 0x666   : > { %v2973_v0 = vadd.f32 %v7312_v63, %v9741_v36  ;;  %v3084_v3 = vmax.f32 %v2970_v11, 0.0 }
 0x668   : > { %v7313_v2 = vpop.f32.mrb[140].mxu0  ;;  %v3085_v4 = vmax.f32 %v2973_v0, 0.0 }
 0x669   : > { %v7314_v5 = vpop.f32.mrb[141].mxu0 }
 0x66a   : > { %v7315_v6 = vadd.f32 %v7314_v5, %v7313_v2  ;;  %v7316_v8 = vpop.f32.mrb[142].mxu0  ;;  %v3114_v12 = vpack.c.bf16 %v3085_v4, %v3084_v3 }
 0x66b   : > { %v7317_v13 = vpop.f32.mrb[143].mxu0 }
 0x66c   : > { %v2978_v14 = vadd.f32 %v7315_v6, %v9741_v36  ;;  %v7318_v15 = vadd.f32 %v7317_v13, %v7316_v8  ;;  %8074 = vmatprep.subr.bf16.mxu1 %v3114_v12 }
 0x66d   : > { %8075 = vmatpush3.bf16.msra.mxu1 %v3114_v12 }
 0x66e   : > { %v2981_v16 = vadd.f32 %v7318_v15, %v9741_v36  ;;  %v3086_v18 = vmax.f32 %v2978_v14, 0.0  ;;  %v8884_v15 = vld [vmem:[%s9375_s18 + $0x8] sm:$0xff]  }
 0x670   : > { %v7319_v17 = vpop.f32.mrb[144].mxu0  ;;  %v3087_v19 = vmax.f32 %v2981_v16, 0.0 }
 0x671   : > { %v7320_v60 = vpop.f32.mrb[145].mxu0 }
 0x672   : > { %v7321_v20 = vadd.f32 %v7320_v60, %v7319_v17  ;;  %v7322_v21 = vpop.f32.mrb[146].mxu0  ;;  %v3115_v22 = vpack.c.bf16 %v3087_v19, %v3086_v18  ;;  %v8885_v17 = vld [vmem:[%s9375_s18 + $0x10] sm:$0xff]  }
 0x673   : > { %v7323_v23 = vpop.f32.mrb[147].mxu0 }
 0x674   : > { %v2986_v24 = vadd.f32 %v7321_v20, %v9741_v36  ;;  %v7324_v25 = vadd.f32 %v7323_v23, %v7322_v21  ;;  %8076 = vmatprep.subr.bf16.mxu1 %v3115_v22 }
 0x675   : > { %8077 = vmatpush3.bf16.msra.mxu1 %v3115_v22 }
 0x676   : > { %v2989_v26 = vadd.f32 %v7324_v25, %v9741_v36  ;;  %v3088_v28 = vmax.f32 %v2986_v24, 0.0 }
 0x678   : > { %v7325_v27 = vpop.f32.mrb[148].mxu0  ;;  %v3089_v29 = vmax.f32 %v2989_v26, 0.0 }
 0x679   : > { %v7326_v30 = vpop.f32.mrb[149].mxu0 }
 0x67a   : > { %v7327_v31 = vadd.f32 %v7326_v30, %v7325_v27  ;;  %v7328_v32 = vpop.f32.mrb[150].mxu0  ;;  %v3116_v33 = vpack.c.bf16 %v3089_v29, %v3088_v28  ;;  %v8886_v27 = vld [vmem:[%s9375_s18 + $0x18] sm:$0xff]   ;;  %v8887_v29 = vld [vmem:[%s9375_s18 + $0x20] sm:$0xff]  }
 0x67b   : > { %v7329_v34 = vpop.f32.mrb[151].mxu0 }
 0x67c   : > { %v2994_v35 = vadd.f32 %v7327_v31, %v9741_v36  ;;  %v7330_v47 = vadd.f32 %v7329_v34, %v7328_v32  ;;  %8078 = vmatprep.subr.bf16.mxu1 %v3116_v33 }
 0x67d   : > { %8079 = vmatpush3.bf16.msra.mxu1 %v3116_v33 }
 0x67e   : > { %v2997_v37 = vadd.f32 %v7330_v47, %v9741_v36  ;;  %v3090_v48 = vmax.f32 %v2994_v35, 0.0 }
 0x680   : > { %v7331_v38 = vpop.f32.mrb[152].mxu0  ;;  %v3091_v39 = vmax.f32 %v2997_v37, 0.0 }
 0x681   : > { %v7332_v40 = vpop.f32.mrb[153].mxu0 }
 0x682   : > { %v7333_v41 = vadd.f32 %v7332_v40, %v7331_v38  ;;  %v7334_v42 = vpop.f32.mrb[154].mxu0  ;;  %v3117_v43 = vpack.c.bf16 %v3091_v39, %v3090_v48  ;;  %v8888_v39 = vld [vmem:[%s9375_s18 + $0x28] sm:$0xff]  }
 0x683   : > { %v7335_v44 = vpop.f32.mrb[155].mxu0 }
 0x684   : > { %v3002_v45 = vadd.f32 %v7333_v41, %v9741_v36  ;;  %v7336_v46 = vadd.f32 %v7335_v44, %v7334_v42  ;;  %8080 = vmatprep.subr.bf16.mxu1 %v3117_v43  ;;  %v8889_v41 = vld [vmem:[%s9375_s18 + $0x30] sm:$0xff]  }
 0x685   : > { %8081 = vmatpush3.bf16.msra.mxu1 %v3117_v43 }
 0x686   : > { %v3005_v49 = vadd.f32 %v7336_v46, %v9741_v36  ;;  %v3092_v51 = vmax.f32 %v3002_v45, 0.0 }
 0x688   : > { %v7337_v50 = vpop.f32.mrb[156].mxu0  ;;  %v3093_v52 = vmax.f32 %v3005_v49, 0.0 }
 0x689   : > { %v7338_v53 = vpop.f32.mrb[157].mxu0 }
 0x68a   : > { %v7339_v54 = vadd.f32 %v7338_v53, %v7337_v50  ;;  %v7340_v55 = vpop.f32.mrb[158].mxu0  ;;  %v3118_v56 = vpack.c.bf16 %v3093_v52, %v3092_v51 }
 0x68b   : > { %v7341_v57 = vpop.f32.mrb[159].mxu0 }
 0x68c   : > { %v3010_v58 = vadd.f32 %v7339_v54, %v9741_v36  ;;  %v7342_v59 = vadd.f32 %v7341_v57, %v7340_v55  ;;  %8082 = vmatprep.subr.bf16.mxu1 %v3118_v56  ;;  %v8890_v54 = vld [vmem:[%s9375_s18 + $0x38] sm:$0xff]   ;;  %v8729_v55 = vld [vmem:[#allocation5 + $0x100] ss:$8 sps:$4 sm:$0xff]  }
 0x68d   : > { %8083 = vmatpush3.bf16.msra.mxu1 %v3118_v56  ;;  %v8731_v56 = vld [vmem:[#allocation5 + $0x104] ss:$8 sps:$4 sm:$0xff]  }
 0x68e   : > { %v3013_v10 = vadd.f32 %v7342_v59, %v9741_v36  ;;  %v3094_v62 = vmax.f32 %v3010_v58, 0.0  ;;  %v8891_v58 = vld [vmem:[%s9375_s18 + $0x40] sm:$0xff]   ;;  %v8734_v59 = vld [vmem:[#allocation5 + $0x114] ss:$8 sps:$4 sm:$0xff]   ;;  %3650 = vmatprep.subr.bf16.mxu0 %v8731_v56 }
 0x68f   : > { %3651 = vmatpush1.bf16.msra.mxu0 %v8729_v55  ;;  %v8892_v55 = vld [vmem:[%s9375_s18 + $0x48] sm:$0xff]   ;;  %v8893_v56 = vld [vmem:[%s9375_s18 + $0x50] sm:$0xff]  }
 0x690   : > { %v7343_v61 = vpop.f32.mrb[160].mxu0  ;;  %v3095_v11 = vmax.f32 %v3013_v10, 0.0  ;;  %3652 = vmatprep.subr.bf16.mxu0 %v8734_v59  ;;  %v8897_v59 = vld [vmem:[%s9375_s18 + $0x70] sm:$0xff]  }
 0x691   : > { %v7344_v63 = vpop.f32.mrb[161].mxu0 }
 0x692   : > { %v7345_v0 = vadd.f32 %v7344_v63, %v7343_v61  ;;  %v7346_v2 = vpop.f32.mrb[162].mxu0  ;;  %v3119_v3 = vpack.c.bf16 %v3095_v11, %v3094_v62  ;;  %v8732_v63 = vld [vmem:[#allocation5 + $0x110] ss:$8 sps:$4 sm:$0xff]  }
 0x693   : > { %v7347_v4 = vpop.f32.mrb[163].mxu0  ;;  %3653 = vmatpush1.bf16.msra.mxu0 %v8732_v63  ;;  %v8902_v63 = vld [vmem:[%s9397_s14 + $0x18] sm:$0xff]  }
 0x694   : > { %v3018_v5 = vadd.f32 %v7345_v0, %v9741_v36  ;;  %v7348_v6 = vadd.f32 %v7347_v4, %v7346_v2  ;;  %8084 = vmatprep.subr.bf16.mxu1 %v3119_v3 }
 0x695   : > { %8085 = vmatpush3.bf16.msra.mxu1 %v3119_v3  ;;  %v8737_v3 = vld [vmem:[#allocation5 + $0x124] ss:$8 sps:$4 sm:$0xff]  }
 0x696   : > { %v3021_v8 = vadd.f32 %v7348_v6, %v9741_v36  ;;  %v3096_v12 = vmax.f32 %v3018_v5, 0.0  ;;  %v8735_v5 = vld [vmem:[#allocation5 + $0x120] ss:$8 sps:$4 sm:$0xff]   ;;  %3654 = vmatprep.subr.bf16.mxu0 %v8737_v3  ;;  %v8905_v3 = vld [vmem:[%s9397_s14 + $0x30] sm:$0xff]  }
 0x697   : > { %3655 = vmatpush1.bf16.msra.mxu0 %v8735_v5  ;;  %v8907_v5 = vld [vmem:[%s9397_s14 + $0x40] sm:$0xff]  }
 0x698   : > { %v3097_v13 = vmax.f32 %v3021_v8, 0.0  ;;  %v7349_v14 = vpop.f32.mrb[164].mxu0  ;;  %8087 = vmatmul.mubr.bf16.vlgmr.msra.gmra.mrb[160].mxu1 %v8884_v15 }
 0x699   : > { %v7350_v16 = vpop.f32.mrb[165].mxu0  ;;  %8090 = vmatprep.mubr.bf16.mxu1 %v8885_v17 }
 0x69a   : > { %v7351_v18 = vadd.f32 %v7350_v16, %v7349_v14  ;;  %v7352_v19 = vpop.f32.mrb[166].mxu0  ;;  %v3120_v60 = vpack.c.bf16 %v3097_v13, %v3096_v12  ;;  %v8740_v13 = vld [vmem:[#allocation5 + $0x134] ss:$8 sps:$4 sm:$0xff]  }
 0x69b   : > { %v7353_v20 = vpop.f32.mrb[167].mxu0  ;;  %3656 = vmatprep.subr.bf16.mxu0 %v8740_v13  ;;  %v8911_v13 = vld [vmem:[%s9397_s14 + $0x60] sm:$0xff]  }
 0x69c   : > { %v3026_v21 = vadd.f32 %v7351_v18, %v9741_v36  ;;  %v7354_v22 = vadd.f32 %v7353_v20, %v7352_v19  ;;  %8102 = vmatprep.subr.bf16.mxu1 %v3120_v60  ;;  %v8738_v19 = vld [vmem:[#allocation5 + $0x130] ss:$8 sps:$4 sm:$0xff]  }
 0x69d   : > { %8103 = vmatpush3.bf16.msra.mxu1 %v3120_v60  ;;  %3657 = vmatpush1.bf16.msra.mxu0 %v8738_v19  ;;  %v8753_v19 = vld [vmem:[#allocation7 + $0x140] sm:$0xff]  }
 0x69e   : > { %v3029_v23 = vadd.f32 %v7354_v22, %v9741_v36  ;;  %v3098_v24 = vmax.f32 %v3026_v21, 0.0  ;;  %v8743_v21 = vld [vmem:[#allocation5 + $0x144] ss:$8 sps:$4 sm:$0xff]  }
 0x69f   : > { %3658 = vmatprep.subr.bf16.mxu0 %v8743_v21 }
 0x6a0   : > { %v3099_v25 = vmax.f32 %v3029_v23, 0.0  ;;  %v7355_v26 = vpop.f32.mrb[168].mxu0  ;;  %8091 = vmatmul.mubr.bf16.gmra.mrb[164].mxu1 %v8886_v27  ;;  %v8741_v23 = vld [vmem:[#allocation5 + $0x140] ss:$8 sps:$4 sm:$0xff]   ;;  %v8746_v27 = vld [vmem:[#allocation5 + $0x154] ss:$8 sps:$4 sm:$0xff]  }
 0x6a1   : > { %v7356_v28 = vpop.f32.mrb[169].mxu0  ;;  %8094 = vmatprep.mubr.bf16.mxu1 %v8887_v29  ;;  %3659 = vmatpush1.bf16.msra.mxu0 %v8741_v23  ;;  %v8756_v23 = vld [vmem:[#allocation7 + $0x108] sm:$0xff]  }
 0x6a2   : > { %v7357_v30 = vadd.f32 %v7356_v28, %v7355_v26  ;;  %v7358_v31 = vpop.f32.mrb[170].mxu0  ;;  %v3121_v32 = vpack.c.bf16 %v3099_v25, %v3098_v24  ;;  %3660 = vmatprep.subr.bf16.mxu0 %v8746_v27 }
 0x6a3   : > { %v7359_v33 = vpop.f32.mrb[171].mxu0 }
 0x6a4   : > { %v3034_v34 = vadd.f32 %v7357_v30, %v9741_v36  ;;  %v7360_v35 = vadd.f32 %v7359_v33, %v7358_v31  ;;  %8104 = vmatprep.subr.bf16.mxu1 %v3121_v32  ;;  %v8744_v33 = vld [vmem:[#allocation5 + $0x150] ss:$8 sps:$4 sm:$0xff]  }
 0x6a5   : > { %8105 = vmatpush3.bf16.msra.mxu1 %v3121_v32  ;;  %3661 = vmatpush1.bf16.msra.mxu0 %v8744_v33  ;;  %v8760_v33 = vld [vmem:[#allocation7 + $0x118] sm:$0xff]  }
 0x6a6   : > { %v3037_v47 = vadd.f32 %v7360_v35, %v9741_v36  ;;  %v3100_v37 = vmax.f32 %v3034_v34, 0.0 }
 0x6a8   : > { %v3101_v38 = vmax.f32 %v3037_v47, 0.0  ;;  %v7361_v48 = vpop.f32.mrb[172].mxu0  ;;  %8095 = vmatmul.mubr.bf16.gmra.mrb[168].mxu1 %v8888_v39  ;;  %v8749_v47 = vld [vmem:[#allocation5 + $0x164] ss:$8 sps:$4 sm:$0xff]  }
 0x6a9   : > { %v7362_v40 = vpop.f32.mrb[173].mxu0  ;;  %8098 = vmatprep.mubr.bf16.mxu1 %v8889_v41  ;;  %3662 = vmatprep.subr.bf16.mxu0 %v8749_v47 }
 0x6aa   : > { %v7363_v42 = vadd.f32 %v7362_v40, %v7361_v48  ;;  %v7364_v43 = vpop.f32.mrb[174].mxu0  ;;  %v3122_v44 = vpack.c.bf16 %v3101_v38, %v3100_v37  ;;  %v8747_v38 = vld [vmem:[#allocation5 + $0x160] ss:$8 sps:$4 sm:$0xff]  }
 0x6ab   : > { %v7365_v45 = vpop.f32.mrb[175].mxu0  ;;  %3663 = vmatpush1.bf16.msra.mxu0 %v8747_v38 }
 0x6ac   : > { %v3042_v46 = vadd.f32 %v7363_v42, %v9741_v36  ;;  %v7366_v49 = vadd.f32 %v7365_v45, %v7364_v43  ;;  %8106 = vmatprep.subr.bf16.mxu1 %v3122_v44 }
 0x6ad   : > { %8107 = vmatpush3.bf16.msra.mxu1 %v3122_v44 }
 0x6ae   : > { %v3045_v50 = vadd.f32 %v7366_v49, %v9741_v36  ;;  %v3102_v51 = vmax.f32 %v3042_v46, 0.0 }
 0x6b0   : > { %v3103_v52 = vmax.f32 %v3045_v50, 0.0  ;;  %v7367_v53 = vpop.f32.mrb[176].mxu0  ;;  %8099 = vmatmul.mubr.bf16.gmra.mrb[172].mxu1 %v8890_v54  ;;  %v8728_v54 = vld [vmem:[%s10393_s3 + $0x10] sm:$0xff]  }
 0x6b1   : > { %v7368_v57 = vpop.f32.mrb[177].mxu0  ;;  %8118 = vmatprep.mubr.bf16.mxu1 %v8891_v58  ;;  %v8896_v58 = vld [vmem:[%s9375_s18 + $0x68] sm:$0xff]  }
 0x6b2   : > { %v7369_v10 = vadd.f32 %v7368_v57, %v7367_v53  ;;  %v7370_v61 = vpop.f32.mrb[178].mxu0  ;;  %v3123_v62 = vpack.c.bf16 %v3103_v52, %v3102_v51  ;;  %v8895_v57 = vld [vmem:[%s9375_s18 + $0x60] sm:$0xff]  }
 0x6b3   : > { %v7371_v11 = vpop.f32.mrb[179].mxu0 }
 0x6b4   : > { %v3050_v0 = vadd.f32 %v7369_v10, %v9741_v36  ;;  %v7372_v2 = vadd.f32 %v7371_v11, %v7370_v61  ;;  %8108 = vmatprep.subr.bf16.mxu1 %v3123_v62  ;;  %v8898_v10 = vld [vmem:[%s9375_s18 + $0x78] sm:$0xff]   ;;  %v8899_v61 = vld [vmem:[%s9397_s14] sm:$0xff]   ;;  %v8901_v11 = vld [vmem:[%s9397_s14 + $0x10] sm:$0xff]  }
 0x6b5   : > { %8109 = vmatpush3.bf16.msra.mxu1 %v3123_v62  ;;  %v8900_v62 = vld [vmem:[%s9397_s14 + $0x8] sm:$0xff]  }
 0x6b6   : > { %v3053_v4 = vadd.f32 %v7372_v2, %v9741_v36  ;;  %v3104_v6 = vmax.f32 %v3050_v0, 0.0  ;;  %v8903_v0 = vld [vmem:[%s9397_s14 + $0x20] sm:$0xff]   ;;  %v8904_v2 = vld [vmem:[%s9397_s14 + $0x28] sm:$0xff]  }
 0x6b8   : > { %v3105_v8 = vmax.f32 %v3053_v4, 0.0  ;;  %v7373_v12 = vpop.f32.mrb[180].mxu0  ;;  %v8906_v4 = vld [vmem:[%s9397_s14 + $0x38] sm:$0xff]  }
 0x6b9   : > { %v7374_v14 = vpop.f32.mrb[181].mxu0 }
 0x6ba   : > { %v7375_v15 = vadd.f32 %v7374_v14, %v7373_v12  ;;  %v7376_v16 = vpop.f32.mrb[182].mxu0  ;;  %v3124_v17 = vpack.c.bf16 %v3105_v8, %v3104_v6  ;;  %v8908_v6 = vld [vmem:[%s9397_s14 + $0x48] sm:$0xff]   ;;  %v8909_v8 = vld [vmem:[%s9397_s14 + $0x50] sm:$0xff]   ;;  %v8910_v12 = vld [vmem:[%s9397_s14 + $0x58] sm:$0xff]  }
 0x6bb   : > { %v7377_v18 = vpop.f32.mrb[183].mxu0  ;;  %v8912_v14 = vld [vmem:[%s9397_s14 + $0x68] sm:$0xff]  }
 0x6bc   : > { %v3058_v60 = vadd.f32 %v7375_v15, %v9741_v36  ;;  %v7378_v20 = vadd.f32 %v7377_v18, %v7376_v16  ;;  %8110 = vmatprep.subr.bf16.mxu1 %v3124_v17  ;;  %v8913_v15 = vld [vmem:[%s9397_s14 + $0x70] sm:$0xff]   ;;  %v8914_v16 = vld [vmem:[%s9397_s14 + $0x78] sm:$0xff]  }
 0x6bd   : > { %8111 = vmatpush3.bf16.msra.mxu1 %v3124_v17  ;;  %v8752_v17 = vld [vmem:[#allocation5 + $0x174] ss:$8 sps:$4 sm:$0xff]   ;;  %v8750_v18 = vld [vmem:[#allocation5 + $0x170] ss:$8 sps:$4 sm:$0xff]  }
 0x6be   : > { %v3061_v22 = vadd.f32 %v7378_v20, %v9741_v36  ;;  %v3106_v24 = vmax.f32 %v3058_v60, 0.0  ;;  %3664 = vmatprep.subr.bf16.mxu0 %v8752_v17  ;;  %v8754_v60 = vld [vmem:[#allocation7 + $0x100] sm:$0xff]   ;;  %v8755_v20 = vld [vmem:[#allocation7 + $0x148] sm:$0xff]  }
 0x6bf   : > { %3665 = vmatpush1.bf16.msra.mxu0 %v8750_v18  ;;  %v8764_v17 = vld [vmem:[#allocation7 + $0x128] sm:$0xff]   ;;  %v8765_v18 = vld [vmem:[#allocation7 + $0x170] sm:$0xff]  }
 0x6c0   : > { %v3107_v25 = vmax.f32 %v3061_v22, 0.0  ;;  %v7379_v26 = vpop.f32.mrb[184].mxu0 }
 0x6c1   : > { %v7380_v28 = vpop.f32.mrb[185].mxu0 }
 0x6c2   : > { %v7381_v29 = vadd.f32 %v7380_v28, %v7379_v26  ;;  %v7382_v30 = vpop.f32.mrb[186].mxu0  ;;  %v3125_v31 = vpack.c.bf16 %v3107_v25, %v3106_v24  ;;  %v8757_v25 = vld [vmem:[#allocation7 + $0x150] sm:$0xff]  }
 0x6c3   : > { %v7383_v32 = vpop.f32.mrb[187].mxu0 }
 0x6c4   : > { %v3066_v34 = vadd.f32 %v7381_v29, %v9741_v36  ;;  %v7384_v35 = vadd.f32 %v7383_v32, %v7382_v30  ;;  %8112 = vmatprep.subr.bf16.mxu1 %v3125_v31  ;;  %v8758_v29 = vld [vmem:[#allocation7 + $0x110] sm:$0xff]   ;;  %v8759_v30 = vld [vmem:[#allocation7 + $0x158] sm:$0xff]  }
 0x6c5   : > { %8113 = vmatpush3.bf16.msra.mxu1 %v3125_v31 }
 0x6c6   : > { %v3069_v37 = vadd.f32 %v7384_v35, %v9741_v36  ;;  %v3108_v48 = vmax.f32 %v3066_v34, 0.0  ;;  %v8761_v35 = vld [vmem:[#allocation7 + $0x160] sm:$0xff]  }
 0x6c8   : > { %v3109_v39 = vmax.f32 %v3069_v37, 0.0  ;;  %v7385_v40 = vpop.f32.mrb[188].mxu0 }
 0x6c9   : > { %v7386_v41 = vpop.f32.mrb[189].mxu0 }
 0x6ca   : > { %v7387_v42 = vadd.f32 %v7386_v41, %v7385_v40  ;;  %v7388_v43 = vpop.f32.mrb[190].mxu0  ;;  %v3126_v44 = vpack.c.bf16 %v3109_v39, %v3108_v48  ;;  %v8762_v48 = vld [vmem:[#allocation7 + $0x120] sm:$0xff]   ;;  %v8763_v39 = vld [vmem:[#allocation7 + $0x168] sm:$0xff]  }
 0x6cb   : > { %v7389_v45 = vpop.f32.mrb[191].mxu0 }
 0x6cc   : > { %v3074_v46 = vadd.f32 %v7387_v42, %v9741_v36  ;;  %v7390_v49 = vadd.f32 %v7389_v45, %v7388_v43  ;;  %8114 = vmatprep.subr.bf16.mxu1 %v3126_v44 }
 0x6cd   : > { %8115 = vmatpush3.bf16.msra.mxu1 %v3126_v44 }
 0x6ce   : > { %v3077_v50 = vadd.f32 %v7390_v49, %v9741_v36  ;;  %v3110_v51 = vmax.f32 %v3074_v46, 0.0  ;;  %v8894_v36 = vld [vmem:[%s9375_s18 + $0x58] sm:$0xff]  }
 0x6d0   : > { %v3111_v52 = vmax.f32 %v3077_v50, 0.0 }
 0x6d2   : > { %v3127_v53 = vpack.c.bf16 %v3111_v52, %v3110_v51 }
 0x6d4   : > { %8116 = vmatprep.subr.bf16.mxu1 %v3127_v53 }
 0x6d5   : > { %8117 = vmatpush3.bf16.msra.mxu1 %v3127_v53 }
 0x6d6   : > { %8134 = vmatprep.subr.bf16.mxu1 %v8728_v54 }
 0x6d8   : > { %8119 = vmatmul.mubr.bf16.vlgmr.msra.gmra.mrb[176].mxu1 %v8892_v55 }
 0x6d9   : > { %8122 = vmatprep.mubr.bf16.mxu1 %v8893_v56  ;;  %8135 = vmatpush3.bf16.msra.mxu1 %v8728_v54 }
 0x6da   : > { %7440 = vmatprep.subr.bf16.mxu1 %v8753_v19  ;;  %v8766_v19 = vld [vmem:[#allocation7 + $0x130] sm:$0xff]  }
 0x6e0   : > { %8123 = vmatmul.mubr.bf16.gmra.mrb[180].mxu1 %v8894_v36 }
 0x6e1   : > { %8126 = vmatprep.mubr.bf16.mxu1 %v8895_v57 }
 0x6e8   : > { %8127 = vmatmul.mubr.bf16.gmra.mrb[184].mxu1 %v8896_v58 }
 0x6e9   : > { %8130 = vmatprep.mubr.bf16.mxu1 %v8897_v59 }
 0x6f0   : > { %8131 = vmatmul.mubr.bf16.gmra.mrb[188].mxu1 %v8898_v10 }
 0x6f1   : > { %8136 = vmatprep.mubr.msk.bf16.mxu1 %vm972_vm0, %v8899_v61 }
 0x6f8   : > { %8137 = vmatmul.mubr.msk.bf16.vlgmr.msra.gmra.mrb[160].mxu1 %vm972_vm0, %v8900_v62 }
 0x6f9   : > { %8140 = vmatprep.mubr.msk.bf16.mxu1 %vm972_vm0, %v8901_v11  ;;  %7441 = vmatpush3.bf16.msra.mxu1 %v8754_v60  ;;  %v8767_v60 = vld [vmem:[#allocation7 + $0x178] sm:$0xff]  }
 0x6fa   : > { %7442 = vmatprep.subr.bf16.mxu1 %v8755_v20  ;;  %v8768_v20 = vld [vmem:[#allocation7 + $0x138] sm:$0xff]  }
 0x6fd   : > { %7443 = vmatpush3.bf16.msra.mxu1 %v8756_v23 }
 0x6fe   : > { %7444 = vmatprep.subr.bf16.mxu1 %v8757_v25 }
 0x700   : > { %8141 = vmatmul.mubr.msk.bf16.gmra.mrb[164].mxu1 %vm972_vm0, %v8902_v63 }
 0x701   : > { %8144 = vmatprep.mubr.msk.bf16.mxu1 %vm972_vm0, %v8903_v0  ;;  %7445 = vmatpush3.bf16.msra.mxu1 %v8758_v29 }
 0x702   : > { %7446 = vmatprep.subr.bf16.mxu1 %v8759_v30 }
 0x705   : > { %7447 = vmatpush3.bf16.msra.mxu1 %v8760_v33 }
 0x706   : > { %7448 = vmatprep.subr.bf16.mxu1 %v8761_v35 }
 0x708   : > { %8145 = vmatmul.mubr.msk.bf16.gmra.mrb[168].mxu1 %vm972_vm0, %v8904_v2 }
 0x709   : > { %8148 = vmatprep.mubr.msk.bf16.mxu1 %vm972_vm0, %v8905_v3  ;;  %7449 = vmatpush3.bf16.msra.mxu1 %v8762_v48 }
 0x70a   : > { %7450 = vmatprep.subr.bf16.mxu1 %v8763_v39 }
 0x70d   : > { %7451 = vmatpush3.bf16.msra.mxu1 %v8764_v17 }
 0x70e   : > { %7452 = vmatprep.subr.bf16.mxu1 %v8765_v18 }
 0x710   : > { %8149 = vmatmul.mubr.msk.bf16.gmra.mrb[172].mxu1 %vm972_vm0, %v8906_v4 }
 0x711   : > { %8152 = vmatprep.mubr.msk.bf16.mxu1 %vm972_vm0, %v8907_v5  ;;  %7453 = vmatpush3.bf16.msra.mxu1 %v8766_v19 }
 0x712   : > { %7454 = vmatprep.subr.bf16.mxu1 %v8767_v60 }
 0x715   : > { %7455 = vmatpush3.bf16.msra.mxu1 %v8768_v20 }
 0x718   : > { %8153 = vmatmul.mubr.msk.bf16.gmra.mrb[176].mxu1 %vm972_vm0, %v8908_v6 }
 0x719   : > { %8156 = vmatprep.mubr.msk.bf16.mxu1 %vm972_vm0, %v8909_v8 }
 0x720   : > { %8157 = vmatmul.mubr.msk.bf16.gmra.mrb[180].mxu1 %vm972_vm0, %v8910_v12 }
 0x721   : > { %8160 = vmatprep.mubr.msk.bf16.mxu1 %vm972_vm0, %v8911_v13 }
 0x728   : > { %8161 = vmatmul.mubr.msk.bf16.gmra.mrb[184].mxu1 %vm972_vm0, %v8912_v14 }
 0x729   : > { %8164 = vmatprep.mubr.msk.bf16.mxu1 %vm972_vm0, %v8913_v15 }
 0x730   : > { %8165 = vmatmul.mubr.msk.bf16.gmra.mrb[188].mxu1 %vm972_vm0, %v8914_v16 }
 0x7cb   : > { %v8138_v21 = vpop.f32.mrb[160].mxu1 }
 0x7cc   : > { %v3365_v22 = vpop.f32.mrb[161].mxu1 }
 0x7cd   : > { %v8139_v24 = vpop.f32.mrb[162].mxu1 }
 0x7ce   : > { %v3525_v26 = vpack.c.bf16 %v8139_v24, %v8138_v21  ;;  %v3368_v27 = vpop.f32.mrb[163].mxu1  ;;  %v8915_v21 = vld [vmem:[%s9375_s18] sm:$0xff]  }
 0x7cf   : > { %v3524_v28 = vpack.c.bf16 %v3368_v27, %v3365_v22  ;;  %v6918_v22 = vld [vmem:[%s10395_s5 + $0x4] sm:$0x3] }
 0x7d0   : > { %v9845_v23 = vrot.slane %v6918_v22, %v9483_v7  ;;  %v9848_v24 = vrot.slane %v6918_v22, %v9488_v9 }
 0x7d1   : > { %3683 = vmatmul.mubr.bf16.vlgmr.msra.gmra.mrb[192].mxu0 %v3524_v28 }
 0x7d2   : > { %3692 = vmatprep.mubr.bf16.mxu0 %v9144_v1 }
 0x7d3   : > { %v8142_v31 = vpop.f32.mrb[164].mxu1 }
 0x7d4   : > { %v3381_v32 = vpop.f32.mrb[165].mxu1 }
 0x7d5   : > { %v8143_v34 = vpop.f32.mrb[166].mxu1 }
 0x7d6   : > { %v3527_v47 = vpack.c.bf16 %v8143_v34, %v8142_v31  ;;  %v3384_v37 = vpop.f32.mrb[167].mxu1 }
 0x7d7   : > { %v3526_v38 = vpack.c.bf16 %v3384_v37, %v3381_v32 }
 0x7d9   : > { %3693 = vmatmul.mubr.bf16.gmra.mrb[196].mxu0 %v3525_v26 }
 0x7da   : > { %3702 = vmatprep.mubr.bf16.mxu0 %v9144_v1 }
 0x7db   : > { %v8146_v40 = vpop.f32.mrb[168].mxu1 }
 0x7dc   : > { %v3397_v41 = vpop.f32.mrb[169].mxu1 }
 0x7dd   : > { %v8147_v42 = vpop.f32.mrb[170].mxu1 }
 0x7de   : > { %v3529_v43 = vpack.c.bf16 %v8147_v42, %v8146_v40  ;;  %v3400_v44 = vpop.f32.mrb[171].mxu1 }
 0x7df   : > { %v3528_v45 = vpack.c.bf16 %v3400_v44, %v3397_v41 }
 0x7e1   : > { %3703 = vmatmul.mubr.bf16.gmra.mrb[200].mxu0 %v3526_v38 }
 0x7e2   : > { %3712 = vmatprep.mubr.bf16.mxu0 %v9144_v1 }
 0x7e3   : > { %v8150_v46 = vpop.f32.mrb[172].mxu1 }
 0x7e4   : > { %v3413_v49 = vpop.f32.mrb[173].mxu1 }
 0x7e5   : > { %v8151_v50 = vpop.f32.mrb[174].mxu1 }
 0x7e6   : > { %v3531_v51 = vpack.c.bf16 %v8151_v50, %v8150_v46  ;;  %v3416_v52 = vpop.f32.mrb[175].mxu1 }
 0x7e7   : > { %v3530_v53 = vpack.c.bf16 %v3416_v52, %v3413_v49 }
 0x7e9   : > { %3713 = vmatmul.mubr.bf16.gmra.mrb[204].mxu0 %v3527_v47 }
 0x7ea   : > { %3722 = vmatprep.mubr.bf16.mxu0 %v9144_v1 }
 0x7eb   : > { %v8154_v54 = vpop.f32.mrb[176].mxu1 }
 0x7ec   : > { %v3429_v55 = vpop.f32.mrb[177].mxu1 }
 0x7ed   : > { %v8155_v56 = vpop.f32.mrb[178].mxu1 }
 0x7ee   : > { %v3533_v36 = vpack.c.bf16 %v8155_v56, %v8154_v54  ;;  %v3432_v57 = vpop.f32.mrb[179].mxu1 }
 0x7ef   : > { %v3532_v58 = vpack.c.bf16 %v3432_v57, %v3429_v55 }
 0x7f1   : > { %3723 = vmatmul.mubr.bf16.gmra.mrb[208].mxu0 %v3528_v45 }
 0x7f2   : > { %3732 = vmatprep.mubr.bf16.mxu0 %v9144_v1 }
 0x7f3   : > { %v8158_v59 = vpop.f32.mrb[180].mxu1 }
 0x7f4   : > { %v3445_v10 = vpop.f32.mrb[181].mxu1 }
 0x7f5   : > { %v8159_v61 = vpop.f32.mrb[182].mxu1 }
 0x7f6   : > { %v3535_v62 = vpack.c.bf16 %v8159_v61, %v8158_v59  ;;  %v3448_v11 = vpop.f32.mrb[183].mxu1 }
 0x7f7   : > { %v3534_v63 = vpack.c.bf16 %v3448_v11, %v3445_v10 }
 0x7f9   : > { %3733 = vmatmul.mubr.bf16.gmra.mrb[212].mxu0 %v3529_v43 }
 0x7fa   : > { %3742 = vmatprep.mubr.bf16.mxu0 %v9144_v1 }
 0x7fb   : > { %v8162_v0 = vpop.f32.mrb[184].mxu1 }
 0x7fc   : > { %v3461_v2 = vpop.f32.mrb[185].mxu1 }
 0x7fd   : > { %v8163_v3 = vpop.f32.mrb[186].mxu1 }
 0x7fe   : > { %v3537_v4 = vpack.c.bf16 %v8163_v3, %v8162_v0  ;;  %v3464_v5 = vpop.f32.mrb[187].mxu1 }
 0x7ff   : > { %v3536_v6 = vpack.c.bf16 %v3464_v5, %v3461_v2 }
 0x801   : > { %3743 = vmatmul.mubr.bf16.gmra.mrb[216].mxu0 %v3530_v53 }
 0x802   : > { %3752 = vmatprep.mubr.bf16.mxu0 %v9144_v1 }
 0x803   : > { %v8166_v8 = vpop.f32.mrb[188].mxu1 }
 0x804   : > { %v3477_v12 = vpop.f32.mrb[189].mxu1 }
 0x805   : > { %v8167_v13 = vpop.f32.mrb[190].mxu1 }
 0x806   : > { %v3539_v14 = vpack.c.bf16 %v8167_v13, %v8166_v8  ;;  %v3480_v15 = vpop.f32.mrb[191].mxu1 }
 0x807   : > { %v3538_v16 = vpack.c.bf16 %v3480_v15, %v3477_v12 }
 0x809   : > { %3753 = vmatmul.mubr.bf16.gmra.mrb[220].mxu0 %v3531_v51 }
 0x80a   : > { %3762 = vmatprep.mubr.bf16.mxu0 %v9144_v1 }
 0x811   : > { %3763 = vmatmul.mubr.bf16.gmra.mrb[224].mxu0 %v3532_v58 }
 0x812   : > { %3772 = vmatprep.mubr.bf16.mxu0 %v9144_v1 }
 0x819   : > { %3773 = vmatmul.mubr.bf16.gmra.mrb[228].mxu0 %v3533_v36 }
 0x81a   : > { %3782 = vmatprep.mubr.bf16.mxu0 %v9144_v1 }
 0x821   : > { %3783 = vmatmul.mubr.bf16.gmra.mrb[232].mxu0 %v3534_v63 }
 0x822   : > { %3792 = vmatprep.mubr.bf16.mxu0 %v9144_v1 }
 0x829   : > { %3793 = vmatmul.mubr.bf16.gmra.mrb[236].mxu0 %v3535_v62 }
 0x82a   : > { %3802 = vmatprep.mubr.bf16.mxu0 %v9144_v1 }
 0x831   : > { %3803 = vmatmul.mubr.bf16.gmra.mrb[240].mxu0 %v3536_v6 }
 0x832   : > { %3812 = vmatprep.mubr.bf16.mxu0 %v9144_v1 }
 0x839   : > { %3813 = vmatmul.mubr.bf16.gmra.mrb[244].mxu0 %v3537_v4 }
 0x83a   : > { %3822 = vmatprep.mubr.bf16.mxu0 %v9144_v1 }
 0x841   : > { %3823 = vmatmul.mubr.bf16.gmra.mrb[248].mxu0 %v3538_v16 }
 0x842   : > { %3832 = vmatprep.mubr.bf16.mxu0 %v9144_v1 }
 0x849   : > { %3833 = vmatmul.mubr.bf16.gmra.mrb[252].mxu0 %v3539_v14 }
 0x84a   : > { %8184 = vmatprep.mubr.bf16.mxu0 %v8915_v21 }
 0x8a4   : > { %v3684_v25 = vpop.f32.mrb[192].mxu0 }
 0x8a5   : > { %v3685_v26 = vadd.f32 %v3684_v25, %v9845_v23  ;;  %v3686_v27 = vpop.f32.mrb[193].mxu0 }
 0x8a6   : > { %v3687_v28 = vadd.f32 %v3686_v27, %v9848_v24  ;;  %v3688_v29 = vpop.f32.mrb[194].mxu0 }
 0x8a7   : > { %v3689_v30 = vadd.f32 %v3688_v29, %v9845_v23  ;;  %v3690_v31 = vpop.f32.mrb[195].mxu0  ;;  %v3843_v33 = vmax.f32 %v3685_v26, 0.0 }
 0x8a8   : > { %v3691_v32 = vadd.f32 %v3690_v31, %v9848_v24  ;;  %v3844_v35 = vmax.f32 %v3687_v28, 0.0 }
 0x8a9   : > { %v3845_v34 = vmax.f32 %v3689_v30, 0.0 }
 0x8aa   : > { %v3846_v47 = vmax.f32 %v3691_v32, 0.0 }
 0x8ab   : > { %v3907_v37 = vpack.c.bf16 %v3845_v34, %v3843_v33 }
 0x8ac   : > { %v3908_v38 = vpack.c.bf16 %v3846_v47, %v3844_v35  ;;  %v3694_v48 = vpop.f32.mrb[196].mxu0 }
 0x8ad   : > { %v3695_v39 = vadd.f32 %v3694_v48, %v9845_v23  ;;  %v3696_v40 = vpop.f32.mrb[197].mxu0 }
 0x8ae   : > { %v3697_v41 = vadd.f32 %v3696_v40, %v9848_v24  ;;  %v3698_v42 = vpop.f32.mrb[198].mxu0  ;;  %4108 = vmatprep.mubr.bf16.mxu1 %v3908_v38 }
 0x8af   : > { %v3699_v43 = vadd.f32 %v3698_v42, %v9845_v23  ;;  %v3700_v44 = vpop.f32.mrb[199].mxu0  ;;  %4109 = vmatmul.mubr.bf16.vlgmr.msra.gmra.mrb[192].mxu1 %v3907_v37  ;;  %v3847_v46 = vmax.f32 %v3695_v39, 0.0 }
 0x8b0   : > { %v3701_v45 = vadd.f32 %v3700_v44, %v9848_v24  ;;  %v3848_v50 = vmax.f32 %v3697_v41, 0.0 }
 0x8b1   : > { %v3849_v49 = vmax.f32 %v3699_v43, 0.0 }
 0x8b2   : > { %v3850_v51 = vmax.f32 %v3701_v45, 0.0 }
 0x8b3   : > { %v3909_v52 = vpack.c.bf16 %v3849_v49, %v3847_v46 }
 0x8b4   : > { %v3910_v53 = vpack.c.bf16 %v3850_v51, %v3848_v50  ;;  %v3704_v54 = vpop.f32.mrb[200].mxu0 }
 0x8b5   : > { %v3705_v55 = vadd.f32 %v3704_v54, %v9845_v23  ;;  %v3706_v56 = vpop.f32.mrb[201].mxu0 }
 0x8b6   : > { %v3707_v36 = vadd.f32 %v3706_v56, %v9848_v24  ;;  %v3708_v57 = vpop.f32.mrb[202].mxu0  ;;  %4116 = vmatprep.mubr.bf16.mxu1 %v3910_v53 }
 0x8b7   : > { %v3709_v58 = vadd.f32 %v3708_v57, %v9845_v23  ;;  %v3710_v59 = vpop.f32.mrb[203].mxu0  ;;  %4117 = vmatmul.mubr.bf16.gmra.mrb[196].mxu1 %v3909_v52  ;;  %v3851_v61 = vmax.f32 %v3705_v55, 0.0 }
 0x8b8   : > { %v3711_v10 = vadd.f32 %v3710_v59, %v9848_v24  ;;  %v3852_v11 = vmax.f32 %v3707_v36, 0.0 }
 0x8b9   : > { %v3853_v62 = vmax.f32 %v3709_v58, 0.0 }
 0x8ba   : > { %v3854_v63 = vmax.f32 %v3711_v10, 0.0 }
 0x8bb   : > { %v3911_v0 = vpack.c.bf16 %v3853_v62, %v3851_v61 }
 0x8bc   : > { %v3912_v2 = vpack.c.bf16 %v3854_v63, %v3852_v11  ;;  %v3714_v3 = vpop.f32.mrb[204].mxu0 }
 0x8bd   : > { %v3715_v4 = vadd.f32 %v3714_v3, %v9845_v23  ;;  %v3716_v5 = vpop.f32.mrb[205].mxu0 }
 0x8be   : > { %v3717_v6 = vadd.f32 %v3716_v5, %v9848_v24  ;;  %v3718_v8 = vpop.f32.mrb[206].mxu0  ;;  %4124 = vmatprep.mubr.bf16.mxu1 %v3912_v2 }
 0x8bf   : > { %v3719_v12 = vadd.f32 %v3718_v8, %v9845_v23  ;;  %v3720_v13 = vpop.f32.mrb[207].mxu0  ;;  %4125 = vmatmul.mubr.bf16.gmra.mrb[200].mxu1 %v3911_v0  ;;  %v3855_v15 = vmax.f32 %v3715_v4, 0.0 }
 0x8c0   : > { %v3721_v14 = vadd.f32 %v3720_v13, %v9848_v24  ;;  %v3856_v17 = vmax.f32 %v3717_v6, 0.0 }
 0x8c1   : > { %v3857_v16 = vmax.f32 %v3719_v12, 0.0 }
 0x8c2   : > { %v3858_v18 = vmax.f32 %v3721_v14, 0.0 }
 0x8c3   : > { %v3913_v19 = vpack.c.bf16 %v3857_v16, %v3855_v15 }
 0x8c4   : > { %v3914_v60 = vpack.c.bf16 %v3858_v18, %v3856_v17  ;;  %v3724_v20 = vpop.f32.mrb[208].mxu0 }
 0x8c5   : > { %v3725_v21 = vadd.f32 %v3724_v20, %v9845_v23  ;;  %v3726_v22 = vpop.f32.mrb[209].mxu0 }
 0x8c6   : > { %v3727_v25 = vadd.f32 %v3726_v22, %v9848_v24  ;;  %v3728_v26 = vpop.f32.mrb[210].mxu0  ;;  %4132 = vmatprep.mubr.bf16.mxu1 %v3914_v60 }
 0x8c7   : > { %v3729_v27 = vadd.f32 %v3728_v26, %v9845_v23  ;;  %v3730_v28 = vpop.f32.mrb[211].mxu0  ;;  %4133 = vmatmul.mubr.bf16.gmra.mrb[204].mxu1 %v3913_v19  ;;  %v3859_v30 = vmax.f32 %v3725_v21, 0.0 }
 0x8c8   : > { %v3731_v29 = vadd.f32 %v3730_v28, %v9848_v24  ;;  %v3860_v32 = vmax.f32 %v3727_v25, 0.0 }
 0x8c9   : > { %v3861_v31 = vmax.f32 %v3729_v27, 0.0 }
 0x8ca   : > { %v3862_v33 = vmax.f32 %v3731_v29, 0.0 }
 0x8cb   : > { %v3915_v34 = vpack.c.bf16 %v3861_v31, %v3859_v30 }
 0x8cc   : > { %v3916_v35 = vpack.c.bf16 %v3862_v33, %v3860_v32  ;;  %v3734_v47 = vpop.f32.mrb[212].mxu0 }
 0x8cd   : > { %v3735_v37 = vadd.f32 %v3734_v47, %v9845_v23  ;;  %v3736_v38 = vpop.f32.mrb[213].mxu0 }
 0x8ce   : > { %v3737_v48 = vadd.f32 %v3736_v38, %v9848_v24  ;;  %v3738_v39 = vpop.f32.mrb[214].mxu0  ;;  %4140 = vmatprep.mubr.bf16.mxu1 %v3916_v35 }
 0x8cf   : > { %v3739_v40 = vadd.f32 %v3738_v39, %v9845_v23  ;;  %v3740_v41 = vpop.f32.mrb[215].mxu0  ;;  %4141 = vmatmul.mubr.bf16.gmra.mrb[208].mxu1 %v3915_v34  ;;  %v3863_v43 = vmax.f32 %v3735_v37, 0.0 }
 0x8d0   : > { %v3741_v42 = vadd.f32 %v3740_v41, %v9848_v24  ;;  %v3864_v45 = vmax.f32 %v3737_v48, 0.0 }
 0x8d1   : > { %v3865_v44 = vmax.f32 %v3739_v40, 0.0 }
 0x8d2   : > { %v3866_v46 = vmax.f32 %v3741_v42, 0.0 }
 0x8d3   : > { %v3917_v49 = vpack.c.bf16 %v3865_v44, %v3863_v43 }
 0x8d4   : > { %v3918_v50 = vpack.c.bf16 %v3866_v46, %v3864_v45  ;;  %v3744_v51 = vpop.f32.mrb[216].mxu0 }
 0x8d5   : > { %v3745_v52 = vadd.f32 %v3744_v51, %v9845_v23  ;;  %v3746_v53 = vpop.f32.mrb[217].mxu0 }
 0x8d6   : > { %v3747_v54 = vadd.f32 %v3746_v53, %v9848_v24  ;;  %v3748_v55 = vpop.f32.mrb[218].mxu0  ;;  %4148 = vmatprep.mubr.bf16.mxu1 %v3918_v50 }
 0x8d7   : > { %v3749_v56 = vadd.f32 %v3748_v55, %v9845_v23  ;;  %v3750_v36 = vpop.f32.mrb[219].mxu0  ;;  %4149 = vmatmul.mubr.bf16.gmra.mrb[212].mxu1 %v3917_v49  ;;  %v3867_v58 = vmax.f32 %v3745_v52, 0.0 }
 0x8d8   : > { %v3751_v57 = vadd.f32 %v3750_v36, %v9848_v24  ;;  %v3868_v10 = vmax.f32 %v3747_v54, 0.0 }
 0x8d9   : > { %v3869_v59 = vmax.f32 %v3749_v56, 0.0 }
 0x8da   : > { %v3870_v61 = vmax.f32 %v3751_v57, 0.0 }
 0x8db   : > { %v3919_v62 = vpack.c.bf16 %v3869_v59, %v3867_v58 }
 0x8dc   : > { %v3920_v11 = vpack.c.bf16 %v3870_v61, %v3868_v10  ;;  %v3754_v63 = vpop.f32.mrb[220].mxu0 }
 0x8dd   : > { %v3755_v0 = vadd.f32 %v3754_v63, %v9845_v23  ;;  %v3756_v2 = vpop.f32.mrb[221].mxu0 }
 0x8de   : > { %v3757_v3 = vadd.f32 %v3756_v2, %v9848_v24  ;;  %v3758_v4 = vpop.f32.mrb[222].mxu0  ;;  %4156 = vmatprep.mubr.bf16.mxu1 %v3920_v11 }
 0x8df   : > { %v3759_v5 = vadd.f32 %v3758_v4, %v9845_v23  ;;  %v3760_v6 = vpop.f32.mrb[223].mxu0  ;;  %4157 = vmatmul.mubr.bf16.gmra.mrb[216].mxu1 %v3919_v62  ;;  %v3871_v12 = vmax.f32 %v3755_v0, 0.0 }
 0x8e0   : > { %v3761_v8 = vadd.f32 %v3760_v6, %v9848_v24  ;;  %v3872_v14 = vmax.f32 %v3757_v3, 0.0 }
 0x8e1   : > { %v3873_v13 = vmax.f32 %v3759_v5, 0.0 }
 0x8e2   : > { %v3874_v15 = vmax.f32 %v3761_v8, 0.0 }
 0x8e3   : > { %v3921_v16 = vpack.c.bf16 %v3873_v13, %v3871_v12 }
 0x8e4   : > { %v3922_v17 = vpack.c.bf16 %v3874_v15, %v3872_v14  ;;  %v3764_v18 = vpop.f32.mrb[224].mxu0 }
 0x8e5   : > { %v3765_v19 = vadd.f32 %v3764_v18, %v9845_v23  ;;  %v3766_v60 = vpop.f32.mrb[225].mxu0 }
 0x8e6   : > { %v3767_v20 = vadd.f32 %v3766_v60, %v9848_v24  ;;  %v3768_v21 = vpop.f32.mrb[226].mxu0  ;;  %4164 = vmatprep.mubr.bf16.mxu1 %v3922_v17 }
 0x8e7   : > { %v3769_v22 = vadd.f32 %v3768_v21, %v9845_v23  ;;  %v3770_v25 = vpop.f32.mrb[227].mxu0  ;;  %4165 = vmatmul.mubr.bf16.gmra.mrb[220].mxu1 %v3921_v16  ;;  %v3875_v27 = vmax.f32 %v3765_v19, 0.0 }
 0x8e8   : > { %v3771_v26 = vadd.f32 %v3770_v25, %v9848_v24  ;;  %v3876_v29 = vmax.f32 %v3767_v20, 0.0 }
 0x8e9   : > { %v3877_v28 = vmax.f32 %v3769_v22, 0.0 }
 0x8ea   : > { %v3878_v30 = vmax.f32 %v3771_v26, 0.0 }
 0x8eb   : > { %v3923_v31 = vpack.c.bf16 %v3877_v28, %v3875_v27 }
 0x8ec   : > { %v3924_v32 = vpack.c.bf16 %v3878_v30, %v3876_v29  ;;  %v3774_v33 = vpop.f32.mrb[228].mxu0 }
 0x8ed   : > { %v3775_v34 = vadd.f32 %v3774_v33, %v9845_v23  ;;  %v3776_v35 = vpop.f32.mrb[229].mxu0 }
 0x8ee   : > { %v3777_v47 = vadd.f32 %v3776_v35, %v9848_v24  ;;  %v3778_v37 = vpop.f32.mrb[230].mxu0  ;;  %4172 = vmatprep.mubr.bf16.mxu1 %v3924_v32 }
 0x8ef   : > { %v3779_v38 = vadd.f32 %v3778_v37, %v9845_v23  ;;  %v3780_v48 = vpop.f32.mrb[231].mxu0  ;;  %4173 = vmatmul.mubr.bf16.gmra.mrb[224].mxu1 %v3923_v31  ;;  %v3879_v40 = vmax.f32 %v3775_v34, 0.0 }
 0x8f0   : > { %v3781_v39 = vadd.f32 %v3780_v48, %v9848_v24  ;;  %v3880_v42 = vmax.f32 %v3777_v47, 0.0 }
 0x8f1   : > { %v3881_v41 = vmax.f32 %v3779_v38, 0.0 }
 0x8f2   : > { %v3882_v43 = vmax.f32 %v3781_v39, 0.0 }
 0x8f3   : > { %v3925_v44 = vpack.c.bf16 %v3881_v41, %v3879_v40 }
 0x8f4   : > { %v3926_v45 = vpack.c.bf16 %v3882_v43, %v3880_v42  ;;  %v3784_v46 = vpop.f32.mrb[232].mxu0 }
 0x8f5   : > { %v3785_v49 = vadd.f32 %v3784_v46, %v9845_v23  ;;  %v3786_v50 = vpop.f32.mrb[233].mxu0 }
 0x8f6   : > { %v3787_v51 = vadd.f32 %v3786_v50, %v9848_v24  ;;  %v3788_v52 = vpop.f32.mrb[234].mxu0  ;;  %4180 = vmatprep.mubr.bf16.mxu1 %v3926_v45 }
 0x8f7   : > { %v3789_v53 = vadd.f32 %v3788_v52, %v9845_v23  ;;  %v3790_v54 = vpop.f32.mrb[235].mxu0  ;;  %4181 = vmatmul.mubr.bf16.gmra.mrb[228].mxu1 %v3925_v44  ;;  %v3883_v56 = vmax.f32 %v3785_v49, 0.0 }
 0x8f8   : > { %v3791_v55 = vadd.f32 %v3790_v54, %v9848_v24  ;;  %v3884_v57 = vmax.f32 %v3787_v51, 0.0 }
 0x8f9   : > { %v3885_v36 = vmax.f32 %v3789_v53, 0.0 }
 0x8fa   : > { %v3886_v58 = vmax.f32 %v3791_v55, 0.0 }
 0x8fb   : > { %v3927_v59 = vpack.c.bf16 %v3885_v36, %v3883_v56 }
 0x8fc   : > { %v3928_v10 = vpack.c.bf16 %v3886_v58, %v3884_v57  ;;  %v3794_v61 = vpop.f32.mrb[236].mxu0 }
 0x8fd   : > { %v3795_v62 = vadd.f32 %v3794_v61, %v9845_v23  ;;  %v3796_v11 = vpop.f32.mrb[237].mxu0 }
 0x8fe   : > { %v3797_v63 = vadd.f32 %v3796_v11, %v9848_v24  ;;  %v3798_v0 = vpop.f32.mrb[238].mxu0  ;;  %4188 = vmatprep.mubr.bf16.mxu1 %v3928_v10 }
 0x8ff   : > { %v3799_v2 = vadd.f32 %v3798_v0, %v9845_v23  ;;  %v3800_v3 = vpop.f32.mrb[239].mxu0  ;;  %4189 = vmatmul.mubr.bf16.gmra.mrb[232].mxu1 %v3927_v59  ;;  %v3887_v5 = vmax.f32 %v3795_v62, 0.0 }
 0x900   : > { %v3801_v4 = vadd.f32 %v3800_v3, %v9848_v24  ;;  %v3888_v8 = vmax.f32 %v3797_v63, 0.0 }
 0x901   : > { %v3889_v6 = vmax.f32 %v3799_v2, 0.0 }
 0x902   : > { %v3890_v12 = vmax.f32 %v3801_v4, 0.0 }
 0x903   : > { %v3929_v13 = vpack.c.bf16 %v3889_v6, %v3887_v5 }
 0x904   : > { %v3930_v14 = vpack.c.bf16 %v3890_v12, %v3888_v8  ;;  %v3804_v15 = vpop.f32.mrb[240].mxu0 }
 0x905   : > { %v3805_v16 = vadd.f32 %v3804_v15, %v9845_v23  ;;  %v3806_v17 = vpop.f32.mrb[241].mxu0 }
 0x906   : > { %v3807_v18 = vadd.f32 %v3806_v17, %v9848_v24  ;;  %v3808_v19 = vpop.f32.mrb[242].mxu0  ;;  %4196 = vmatprep.mubr.bf16.mxu1 %v3930_v14 }
 0x907   : > { %v3809_v60 = vadd.f32 %v3808_v19, %v9845_v23  ;;  %v3810_v20 = vpop.f32.mrb[243].mxu0  ;;  %4197 = vmatmul.mubr.bf16.gmra.mrb[236].mxu1 %v3929_v13  ;;  %v3891_v22 = vmax.f32 %v3805_v16, 0.0  ;;  %v9918_v13 = vld [vmem:[%s10397_s7 + $0x2] ss:$0 sm:$0xff] }
 0x908   : > { %v3811_v21 = vadd.f32 %v3810_v20, %v9848_v24  ;;  %v3892_v26 = vmax.f32 %v3807_v18, 0.0 }
 0x909   : > { %v3893_v25 = vmax.f32 %v3809_v60, 0.0 }
 0x90a   : > { %v3894_v27 = vmax.f32 %v3811_v21, 0.0 }
 0x90b   : > { %v3931_v28 = vpack.c.bf16 %v3893_v25, %v3891_v22 }
 0x90c   : > { %v3932_v29 = vpack.c.bf16 %v3894_v27, %v3892_v26  ;;  %v3814_v30 = vpop.f32.mrb[244].mxu0 }
 0x90d   : > { %v3815_v31 = vadd.f32 %v3814_v30, %v9845_v23  ;;  %v3816_v32 = vpop.f32.mrb[245].mxu0 }
 0x90e   : > { %v3817_v33 = vadd.f32 %v3816_v32, %v9848_v24  ;;  %v3818_v34 = vpop.f32.mrb[246].mxu0  ;;  %4204 = vmatprep.mubr.bf16.mxu1 %v3932_v29 }
 0x90f   : > { %v3819_v35 = vadd.f32 %v3818_v34, %v9845_v23  ;;  %v3820_v47 = vpop.f32.mrb[247].mxu0  ;;  %4205 = vmatmul.mubr.bf16.gmra.mrb[240].mxu1 %v3931_v28  ;;  %v3895_v38 = vmax.f32 %v3815_v31, 0.0 }
 0x910   : > { %v3821_v37 = vadd.f32 %v3820_v47, %v9848_v24  ;;  %v3896_v39 = vmax.f32 %v3817_v33, 0.0 }
 0x911   : > { %v3897_v48 = vmax.f32 %v3819_v35, 0.0 }
 0x912   : > { %v3898_v40 = vmax.f32 %v3821_v37, 0.0 }
 0x913   : > { %v3933_v41 = vpack.c.bf16 %v3897_v48, %v3895_v38 }
 0x914   : > { %v3934_v42 = vpack.c.bf16 %v3898_v40, %v3896_v39  ;;  %v3824_v43 = vpop.f32.mrb[248].mxu0 }
 0x915   : > { %v3825_v44 = vadd.f32 %v3824_v43, %v9845_v23  ;;  %v3826_v45 = vpop.f32.mrb[249].mxu0 }
 0x916   : > { %v3827_v46 = vadd.f32 %v3826_v45, %v9848_v24  ;;  %v3828_v49 = vpop.f32.mrb[250].mxu0  ;;  %4212 = vmatprep.mubr.bf16.mxu1 %v3934_v42 }
 0x917   : > { %v3829_v50 = vadd.f32 %v3828_v49, %v9845_v23  ;;  %v3830_v51 = vpop.f32.mrb[251].mxu0  ;;  %4213 = vmatmul.mubr.bf16.gmra.mrb[244].mxu1 %v3933_v41  ;;  %v3899_v53 = vmax.f32 %v3825_v44, 0.0 }
 0x918   : > { %v3831_v52 = vadd.f32 %v3830_v51, %v9848_v24  ;;  %v3900_v55 = vmax.f32 %v3827_v46, 0.0 }
 0x919   : > { %v3901_v54 = vmax.f32 %v3829_v50, 0.0 }
 0x91a   : > { %v3902_v56 = vmax.f32 %v3831_v52, 0.0 }
 0x91b   : > { %v3935_v36 = vpack.c.bf16 %v3901_v54, %v3899_v53 }
 0x91c   : > { %v3936_v57 = vpack.c.bf16 %v3902_v56, %v3900_v55  ;;  %v3834_v58 = vpop.f32.mrb[252].mxu0 }
 0x91d   : > { %v3835_v59 = vadd.f32 %v3834_v58, %v9845_v23  ;;  %v3836_v10 = vpop.f32.mrb[253].mxu0 }
 0x91e   : > { %v3837_v61 = vadd.f32 %v3836_v10, %v9848_v24  ;;  %v3838_v62 = vpop.f32.mrb[254].mxu0  ;;  %4220 = vmatprep.mubr.bf16.mxu1 %v3936_v57 }
 0x91f   : > { %v3839_v11 = vadd.f32 %v3838_v62, %v9845_v23  ;;  %v3840_v63 = vpop.f32.mrb[255].mxu0  ;;  %4221 = vmatmul.mubr.bf16.gmra.mrb[248].mxu1 %v3935_v36  ;;  %v3903_v2 = vmax.f32 %v3835_v59, 0.0 }
 0x920   : > { %v3841_v0 = vadd.f32 %v3840_v63, %v9848_v24  ;;  %v3904_v4 = vmax.f32 %v3837_v61, 0.0 }
 0x921   : > { %v3905_v3 = vmax.f32 %v3839_v11, 0.0 }
 0x922   : > { %v3906_v5 = vmax.f32 %v3841_v0, 0.0 }
 0x923   : > { %v3937_v6 = vpack.c.bf16 %v3905_v3, %v3903_v2 }
 0x924   : > { %v3938_v8 = vpack.c.bf16 %v3906_v5, %v3904_v4 }
 0x926   : > { %4228 = vmatprep.mubr.bf16.mxu1 %v3938_v8 }
 0x927   : > { %4229 = vmatmul.mubr.bf16.gmra.mrb[252].mxu1 %v3937_v6 }
 0x928   : > { %4839 = vmatprep.mubr.bf16.mxu1 %v9144_v1 }
 0x982   : > { %v7456_v12 = vpop.f32.mrb[192].mxu1 }
 0x983   : > { %v7457_v23 = vpop.f32.mrb[193].mxu1 }
 0x984   : > { %v7458_v14 = vadd.f32 %v7457_v23, %v7456_v12  ;;  %v7459_v15 = vpop.f32.mrb[194].mxu1 }
 0x985   : > { %v7460_v24 = vpop.f32.mrb[195].mxu1 }
 0x986   : > { %v4111_v16 = vadd.f32 %v7458_v14, %v9918_v13  ;;  %v7461_v17 = vadd.f32 %v7460_v24, %v7459_v15 }
 0x988   : > { %v4114_v18 = vadd.f32 %v7461_v17, %v9918_v13  ;;  %v4237_v19 = vmax.f32 %v4111_v16, 0.0 }
 0x98a   : > { %v4238_v60 = vmax.f32 %v4114_v18, 0.0  ;;  %v7462_v20 = vpop.f32.mrb[196].mxu1 }
 0x98b   : > { %v7463_v21 = vpop.f32.mrb[197].mxu1 }
 0x98c   : > { %v7464_v22 = vadd.f32 %v7463_v21, %v7462_v20  ;;  %v7465_v25 = vpop.f32.mrb[198].mxu1  ;;  %v4269_v26 = vpack.c.bf16 %v4238_v60, %v4237_v19 }
 0x98d   : > { %v7466_v27 = vpop.f32.mrb[199].mxu1 }
 0x98e   : > { %v4119_v28 = vadd.f32 %v7464_v22, %v9918_v13  ;;  %v7467_v29 = vadd.f32 %v7466_v27, %v7465_v25  ;;  %8168 = vmatprep.subr.bf16.mxu0 %v4269_v26 }
 0x98f   : > { %8169 = vmatpush3.bf16.msra.mxu0 %v4269_v26 }
 0x990   : > { %v4122_v30 = vadd.f32 %v7467_v29, %v9918_v13  ;;  %v4239_v31 = vmax.f32 %v4119_v28, 0.0 }
 0x992   : > { %v4240_v32 = vmax.f32 %v4122_v30, 0.0  ;;  %v7468_v33 = vpop.f32.mrb[200].mxu1 }
 0x993   : > { %v7469_v34 = vpop.f32.mrb[201].mxu1 }
 0x994   : > { %v7470_v35 = vadd.f32 %v7469_v34, %v7468_v33  ;;  %v7471_v47 = vpop.f32.mrb[202].mxu1  ;;  %v4270_v37 = vpack.c.bf16 %v4240_v32, %v4239_v31 }
 0x995   : > { %v7472_v38 = vpop.f32.mrb[203].mxu1 }
 0x996   : > { %v4127_v48 = vadd.f32 %v7470_v35, %v9918_v13  ;;  %v7473_v39 = vadd.f32 %v7472_v38, %v7471_v47  ;;  %8170 = vmatprep.subr.bf16.mxu0 %v4270_v37 }
 0x997   : > { %8171 = vmatpush3.bf16.msra.mxu0 %v4270_v37 }
 0x998   : > { %v4130_v40 = vadd.f32 %v7473_v39, %v9918_v13  ;;  %v4241_v41 = vmax.f32 %v4127_v48, 0.0 }
 0x99a   : > { %v4242_v42 = vmax.f32 %v4130_v40, 0.0  ;;  %v7474_v43 = vpop.f32.mrb[204].mxu1 }
 0x99b   : > { %v7475_v44 = vpop.f32.mrb[205].mxu1 }
 0x99c   : > { %v7476_v45 = vadd.f32 %v7475_v44, %v7474_v43  ;;  %v7477_v46 = vpop.f32.mrb[206].mxu1  ;;  %v4271_v49 = vpack.c.bf16 %v4242_v42, %v4241_v41 }
 0x99d   : > { %v7478_v50 = vpop.f32.mrb[207].mxu1 }
 0x99e   : > { %v4135_v51 = vadd.f32 %v7476_v45, %v9918_v13  ;;  %v7479_v52 = vadd.f32 %v7478_v50, %v7477_v46  ;;  %8172 = vmatprep.subr.bf16.mxu0 %v4271_v49 }
 0x99f   : > { %8173 = vmatpush3.bf16.msra.mxu0 %v4271_v49 }
 0x9a0   : > { %v4138_v53 = vadd.f32 %v7479_v52, %v9918_v13  ;;  %v4243_v54 = vmax.f32 %v4135_v51, 0.0  ;;  %v8916_v52 = vld [vmem:[%s9375_s18 + $0x8] sm:$0xff]  }
 0x9a2   : > { %v4244_v55 = vmax.f32 %v4138_v53, 0.0  ;;  %v7480_v56 = vpop.f32.mrb[208].mxu1 }
 0x9a3   : > { %v7481_v36 = vpop.f32.mrb[209].mxu1 }
 0x9a4   : > { %v7482_v57 = vadd.f32 %v7481_v36, %v7480_v56  ;;  %v7483_v58 = vpop.f32.mrb[210].mxu1  ;;  %v4272_v59 = vpack.c.bf16 %v4244_v55, %v4243_v54  ;;  %v8917_v54 = vld [vmem:[%s9375_s18 + $0x10] sm:$0xff]  }
 0x9a5   : > { %v7484_v10 = vpop.f32.mrb[211].mxu1 }
 0x9a6   : > { %v4143_v61 = vadd.f32 %v7482_v57, %v9918_v13  ;;  %v7485_v62 = vadd.f32 %v7484_v10, %v7483_v58  ;;  %8174 = vmatprep.subr.bf16.mxu0 %v4272_v59 }
 0x9a7   : > { %8175 = vmatpush3.bf16.msra.mxu0 %v4272_v59 }
 0x9a8   : > { %v4146_v11 = vadd.f32 %v7485_v62, %v9918_v13  ;;  %v4245_v63 = vmax.f32 %v4143_v61, 0.0 }
 0x9aa   : > { %v4246_v0 = vmax.f32 %v4146_v11, 0.0  ;;  %v7486_v2 = vpop.f32.mrb[212].mxu1 }
 0x9ab   : > { %v7487_v3 = vpop.f32.mrb[213].mxu1 }
 0x9ac   : > { %v7488_v4 = vadd.f32 %v7487_v3, %v7486_v2  ;;  %v7489_v5 = vpop.f32.mrb[214].mxu1  ;;  %v4273_v6 = vpack.c.bf16 %v4246_v0, %v4245_v63  ;;  %v8918_v63 = vld [vmem:[%s9375_s18 + $0x18] sm:$0xff]   ;;  %v8919_v2 = vld [vmem:[%s9375_s18 + $0x20] sm:$0xff]  }
 0x9ad   : > { %v7490_v8 = vpop.f32.mrb[215].mxu1 }
 0x9ae   : > { %v4151_v12 = vadd.f32 %v7488_v4, %v9918_v13  ;;  %v7491_v23 = vadd.f32 %v7490_v8, %v7489_v5  ;;  %8176 = vmatprep.subr.bf16.mxu0 %v4273_v6 }
 0x9af   : > { %8177 = vmatpush3.bf16.msra.mxu0 %v4273_v6 }
 0x9b0   : > { %v4154_v14 = vadd.f32 %v7491_v23, %v9918_v13  ;;  %v4247_v15 = vmax.f32 %v4151_v12, 0.0 }
 0x9b2   : > { %v4248_v24 = vmax.f32 %v4154_v14, 0.0  ;;  %v7492_v16 = vpop.f32.mrb[216].mxu1 }
 0x9b3   : > { %v7493_v17 = vpop.f32.mrb[217].mxu1 }
 0x9b4   : > { %v7494_v18 = vadd.f32 %v7493_v17, %v7492_v16  ;;  %v7495_v19 = vpop.f32.mrb[218].mxu1  ;;  %v4274_v60 = vpack.c.bf16 %v4248_v24, %v4247_v15  ;;  %v8920_v16 = vld [vmem:[%s9375_s18 + $0x28] sm:$0xff]  }
 0x9b5   : > { %v7496_v20 = vpop.f32.mrb[219].mxu1 }
 0x9b6   : > { %v4159_v21 = vadd.f32 %v7494_v18, %v9918_v13  ;;  %v7497_v22 = vadd.f32 %v7496_v20, %v7495_v19  ;;  %8178 = vmatprep.subr.bf16.mxu0 %v4274_v60  ;;  %v8921_v18 = vld [vmem:[%s9375_s18 + $0x30] sm:$0xff]  }
 0x9b7   : > { %8179 = vmatpush3.bf16.msra.mxu0 %v4274_v60 }
 0x9b8   : > { %v4162_v25 = vadd.f32 %v7497_v22, %v9918_v13  ;;  %v4249_v26 = vmax.f32 %v4159_v21, 0.0 }
 0x9ba   : > { %v4250_v27 = vmax.f32 %v4162_v25, 0.0  ;;  %v7498_v28 = vpop.f32.mrb[220].mxu1 }
 0x9bb   : > { %v7499_v29 = vpop.f32.mrb[221].mxu1 }
 0x9bc   : > { %v7500_v30 = vadd.f32 %v7499_v29, %v7498_v28  ;;  %v7501_v31 = vpop.f32.mrb[222].mxu1  ;;  %v4275_v32 = vpack.c.bf16 %v4250_v27, %v4249_v26 }
 0x9bd   : > { %v7502_v33 = vpop.f32.mrb[223].mxu1 }
 0x9be   : > { %v4167_v34 = vadd.f32 %v7500_v30, %v9918_v13  ;;  %v7503_v35 = vadd.f32 %v7502_v33, %v7501_v31  ;;  %8180 = vmatprep.subr.bf16.mxu0 %v4275_v32  ;;  %v8922_v30 = vld [vmem:[%s9375_s18 + $0x38] sm:$0xff]   ;;  %v8770_v31 = vld [vmem:[#allocation5 + $0x180] ss:$8 sps:$4 sm:$0xff]  }
 0x9bf   : > { %8181 = vmatpush3.bf16.msra.mxu0 %v4275_v32  ;;  %v8772_v32 = vld [vmem:[#allocation5 + $0x184] ss:$8 sps:$4 sm:$0xff]  }
 0x9c0   : > { %v4170_v47 = vadd.f32 %v7503_v35, %v9918_v13  ;;  %v4251_v37 = vmax.f32 %v4167_v34, 0.0  ;;  %v8923_v34 = vld [vmem:[%s9375_s18 + $0x40] sm:$0xff]   ;;  %v8775_v35 = vld [vmem:[#allocation5 + $0x194] ss:$8 sps:$4 sm:$0xff]   ;;  %4807 = vmatprep.subr.bf16.mxu1 %v8772_v32 }
 0x9c1   : > { %4808 = vmatpush1.bf16.msra.mxu1 %v8770_v31  ;;  %v8924_v31 = vld [vmem:[%s9375_s18 + $0x48] sm:$0xff]   ;;  %v8925_v32 = vld [vmem:[%s9375_s18 + $0x50] sm:$0xff]  }
 0x9c2   : > { %v4252_v38 = vmax.f32 %v4170_v47, 0.0  ;;  %v7504_v48 = vpop.f32.mrb[224].mxu1  ;;  %4809 = vmatprep.subr.bf16.mxu1 %v8775_v35  ;;  %v8929_v35 = vld [vmem:[%s9375_s18 + $0x70] sm:$0xff]  }
 0x9c3   : > { %v7505_v39 = vpop.f32.mrb[225].mxu1 }
 0x9c4   : > { %v7506_v40 = vadd.f32 %v7505_v39, %v7504_v48  ;;  %v7507_v41 = vpop.f32.mrb[226].mxu1  ;;  %v4276_v42 = vpack.c.bf16 %v4252_v38, %v4251_v37  ;;  %v8773_v39 = vld [vmem:[#allocation5 + $0x190] ss:$8 sps:$4 sm:$0xff]  }
 0x9c5   : > { %v7508_v43 = vpop.f32.mrb[227].mxu1  ;;  %4810 = vmatpush1.bf16.msra.mxu1 %v8773_v39  ;;  %v8934_v39 = vld [vmem:[%s9397_s14 + $0x18] sm:$0xff]  }
 0x9c6   : > { %v4175_v44 = vadd.f32 %v7506_v40, %v9918_v13  ;;  %v7509_v45 = vadd.f32 %v7508_v43, %v7507_v41  ;;  %8182 = vmatprep.subr.bf16.mxu0 %v4276_v42 }
 0x9c7   : > { %8183 = vmatpush3.bf16.msra.mxu0 %v4276_v42  ;;  %v8778_v42 = vld [vmem:[#allocation5 + $0x1a4] ss:$8 sps:$4 sm:$0xff]  }
 0x9c8   : > { %v4178_v46 = vadd.f32 %v7509_v45, %v9918_v13  ;;  %v4253_v49 = vmax.f32 %v4175_v44, 0.0  ;;  %v8776_v44 = vld [vmem:[#allocation5 + $0x1a0] ss:$8 sps:$4 sm:$0xff]   ;;  %4811 = vmatprep.subr.bf16.mxu1 %v8778_v42  ;;  %v8937_v42 = vld [vmem:[%s9397_s14 + $0x30] sm:$0xff]  }
 0x9c9   : > { %4812 = vmatpush1.bf16.msra.mxu1 %v8776_v44  ;;  %v8939_v44 = vld [vmem:[%s9397_s14 + $0x40] sm:$0xff]  }
 0x9ca   : > { %v4254_v50 = vmax.f32 %v4178_v46, 0.0  ;;  %v7510_v51 = vpop.f32.mrb[228].mxu1  ;;  %8185 = vmatmul.mubr.bf16.vlgmr.msra.gmra.mrb[0].mxu0 %v8916_v52 }
 0x9cb   : > { %v7511_v53 = vpop.f32.mrb[229].mxu1  ;;  %8188 = vmatprep.mubr.bf16.mxu0 %v8917_v54 }
 0x9cc   : > { %v7512_v55 = vadd.f32 %v7511_v53, %v7510_v51  ;;  %v7513_v56 = vpop.f32.mrb[230].mxu1  ;;  %v4277_v36 = vpack.c.bf16 %v4254_v50, %v4253_v49  ;;  %v8781_v50 = vld [vmem:[#allocation5 + $0x1b4] ss:$8 sps:$4 sm:$0xff]  }
 0x9cd   : > { %v7514_v57 = vpop.f32.mrb[231].mxu1  ;;  %4813 = vmatprep.subr.bf16.mxu1 %v8781_v50  ;;  %v8943_v50 = vld [vmem:[%s9397_s14 + $0x60] sm:$0xff]  }
 0x9ce   : > { %v4183_v58 = vadd.f32 %v7512_v55, %v9918_v13  ;;  %v7515_v59 = vadd.f32 %v7514_v57, %v7513_v56  ;;  %8200 = vmatprep.subr.bf16.mxu0 %v4277_v36  ;;  %v8779_v56 = vld [vmem:[#allocation5 + $0x1b0] ss:$8 sps:$4 sm:$0xff]  }
 0x9cf   : > { %8201 = vmatpush3.bf16.msra.mxu0 %v4277_v36  ;;  %4814 = vmatpush1.bf16.msra.mxu1 %v8779_v56  ;;  %v8794_v56 = vld [vmem:[#allocation7 + $0x1c0] sm:$0xff]  }
 0x9d0   : > { %v4186_v10 = vadd.f32 %v7515_v59, %v9918_v13  ;;  %v4255_v61 = vmax.f32 %v4183_v58, 0.0  ;;  %v8784_v58 = vld [vmem:[#allocation5 + $0x1c4] ss:$8 sps:$4 sm:$0xff]  }
 0x9d1   : > { %4815 = vmatprep.subr.bf16.mxu1 %v8784_v58 }
 0x9d2   : > { %v4256_v62 = vmax.f32 %v4186_v10, 0.0  ;;  %v7516_v11 = vpop.f32.mrb[232].mxu1  ;;  %8189 = vmatmul.mubr.bf16.gmra.mrb[4].mxu0 %v8918_v63  ;;  %v8782_v10 = vld [vmem:[#allocation5 + $0x1c0] ss:$8 sps:$4 sm:$0xff]   ;;  %v8787_v63 = vld [vmem:[#allocation5 + $0x1d4] ss:$8 sps:$4 sm:$0xff]  }
 0x9d3   : > { %v7517_v0 = vpop.f32.mrb[233].mxu1  ;;  %8192 = vmatprep.mubr.bf16.mxu0 %v8919_v2  ;;  %4816 = vmatpush1.bf16.msra.mxu1 %v8782_v10  ;;  %v8797_v10 = vld [vmem:[#allocation7 + $0x188] sm:$0xff]  }
 0x9d4   : > { %v7518_v3 = vadd.f32 %v7517_v0, %v7516_v11  ;;  %v7519_v4 = vpop.f32.mrb[234].mxu1  ;;  %v4278_v5 = vpack.c.bf16 %v4256_v62, %v4255_v61  ;;  %4817 = vmatprep.subr.bf16.mxu1 %v8787_v63 }
 0x9d5   : > { %v7520_v6 = vpop.f32.mrb[235].mxu1 }
 0x9d6   : > { %v4191_v8 = vadd.f32 %v7518_v3, %v9918_v13  ;;  %v7521_v12 = vadd.f32 %v7520_v6, %v7519_v4  ;;  %8202 = vmatprep.subr.bf16.mxu0 %v4278_v5  ;;  %v8785_v6 = vld [vmem:[#allocation5 + $0x1d0] ss:$8 sps:$4 sm:$0xff]  }
 0x9d7   : > { %8203 = vmatpush3.bf16.msra.mxu0 %v4278_v5  ;;  %4818 = vmatpush1.bf16.msra.mxu1 %v8785_v6  ;;  %v8801_v6 = vld [vmem:[#allocation7 + $0x198] sm:$0xff]  }
 0x9d8   : > { %v4194_v23 = vadd.f32 %v7521_v12, %v9918_v13  ;;  %v4257_v14 = vmax.f32 %v4191_v8, 0.0 }
 0x9da   : > { %v4258_v15 = vmax.f32 %v4194_v23, 0.0  ;;  %v7522_v24 = vpop.f32.mrb[236].mxu1  ;;  %8193 = vmatmul.mubr.bf16.gmra.mrb[8].mxu0 %v8920_v16  ;;  %v8790_v23 = vld [vmem:[#allocation5 + $0x1e4] ss:$8 sps:$4 sm:$0xff]  }
 0x9db   : > { %v7523_v17 = vpop.f32.mrb[237].mxu1  ;;  %8196 = vmatprep.mubr.bf16.mxu0 %v8921_v18  ;;  %4819 = vmatprep.subr.bf16.mxu1 %v8790_v23 }
 0x9dc   : > { %v7524_v19 = vadd.f32 %v7523_v17, %v7522_v24  ;;  %v7525_v60 = vpop.f32.mrb[238].mxu1  ;;  %v4279_v20 = vpack.c.bf16 %v4258_v15, %v4257_v14  ;;  %v8788_v15 = vld [vmem:[#allocation5 + $0x1e0] ss:$8 sps:$4 sm:$0xff]  }
 0x9dd   : > { %v7526_v21 = vpop.f32.mrb[239].mxu1  ;;  %4820 = vmatpush1.bf16.msra.mxu1 %v8788_v15 }
 0x9de   : > { %v4199_v22 = vadd.f32 %v7524_v19, %v9918_v13  ;;  %v7527_v25 = vadd.f32 %v7526_v21, %v7525_v60  ;;  %8204 = vmatprep.subr.bf16.mxu0 %v4279_v20 }
 0x9df   : > { %8205 = vmatpush3.bf16.msra.mxu0 %v4279_v20 }
 0x9e0   : > { %v4202_v26 = vadd.f32 %v7527_v25, %v9918_v13  ;;  %v4259_v27 = vmax.f32 %v4199_v22, 0.0 }
 0x9e2   : > { %v4260_v28 = vmax.f32 %v4202_v26, 0.0  ;;  %v7528_v29 = vpop.f32.mrb[240].mxu1  ;;  %8197 = vmatmul.mubr.bf16.gmra.mrb[12].mxu0 %v8922_v30  ;;  %v8769_v30 = vld [vmem:[%s10393_s3 + $0x18] sm:$0xff]  }
 0x9e3   : > { %v7529_v33 = vpop.f32.mrb[241].mxu1  ;;  %8216 = vmatprep.mubr.bf16.mxu0 %v8923_v34  ;;  %v8928_v34 = vld [vmem:[%s9375_s18 + $0x68] sm:$0xff]  }
 0x9e4   : > { %v7530_v47 = vadd.f32 %v7529_v33, %v7528_v29  ;;  %v7531_v37 = vpop.f32.mrb[242].mxu1  ;;  %v4280_v38 = vpack.c.bf16 %v4260_v28, %v4259_v27  ;;  %v8927_v33 = vld [vmem:[%s9375_s18 + $0x60] sm:$0xff]  }
 0x9e5   : > { %v7532_v48 = vpop.f32.mrb[243].mxu1 }
 0x9e6   : > { %v4207_v40 = vadd.f32 %v7530_v47, %v9918_v13  ;;  %v7533_v41 = vadd.f32 %v7532_v48, %v7531_v37  ;;  %8206 = vmatprep.subr.bf16.mxu0 %v4280_v38  ;;  %v8930_v47 = vld [vmem:[%s9375_s18 + $0x78] sm:$0xff]   ;;  %v8931_v37 = vld [vmem:[%s9397_s14] sm:$0xff]   ;;  %v8933_v48 = vld [vmem:[%s9397_s14 + $0x10] sm:$0xff]  }
 0x9e7   : > { %8207 = vmatpush3.bf16.msra.mxu0 %v4280_v38  ;;  %v8932_v38 = vld [vmem:[%s9397_s14 + $0x8] sm:$0xff]  }
 0x9e8   : > { %v4210_v43 = vadd.f32 %v7533_v41, %v9918_v13  ;;  %v4261_v45 = vmax.f32 %v4207_v40, 0.0  ;;  %v8935_v40 = vld [vmem:[%s9397_s14 + $0x20] sm:$0xff]   ;;  %v8936_v41 = vld [vmem:[%s9397_s14 + $0x28] sm:$0xff]  }
 0x9ea   : > { %v4262_v46 = vmax.f32 %v4210_v43, 0.0  ;;  %v7534_v49 = vpop.f32.mrb[244].mxu1  ;;  %v8938_v43 = vld [vmem:[%s9397_s14 + $0x38] sm:$0xff]  }
 0x9eb   : > { %v7535_v51 = vpop.f32.mrb[245].mxu1 }
 0x9ec   : > { %v7536_v52 = vadd.f32 %v7535_v51, %v7534_v49  ;;  %v7537_v53 = vpop.f32.mrb[246].mxu1  ;;  %v4281_v54 = vpack.c.bf16 %v4262_v46, %v4261_v45  ;;  %v8940_v45 = vld [vmem:[%s9397_s14 + $0x48] sm:$0xff]   ;;  %v8941_v46 = vld [vmem:[%s9397_s14 + $0x50] sm:$0xff]   ;;  %v8942_v49 = vld [vmem:[%s9397_s14 + $0x58] sm:$0xff]  }
 0x9ed   : > { %v7538_v55 = vpop.f32.mrb[247].mxu1  ;;  %v8944_v51 = vld [vmem:[%s9397_s14 + $0x68] sm:$0xff]  }
 0x9ee   : > { %v4215_v36 = vadd.f32 %v7536_v52, %v9918_v13  ;;  %v7539_v57 = vadd.f32 %v7538_v55, %v7537_v53  ;;  %8208 = vmatprep.subr.bf16.mxu0 %v4281_v54  ;;  %v8945_v52 = vld [vmem:[%s9397_s14 + $0x70] sm:$0xff]   ;;  %v8946_v53 = vld [vmem:[%s9397_s14 + $0x78] sm:$0xff]  }
 0x9ef   : > { %8209 = vmatpush3.bf16.msra.mxu0 %v4281_v54  ;;  %v8793_v54 = vld [vmem:[#allocation5 + $0x1f4] ss:$8 sps:$4 sm:$0xff]   ;;  %v8791_v55 = vld [vmem:[#allocation5 + $0x1f0] ss:$8 sps:$4 sm:$0xff]  }
 0x9f0   : > { %v4218_v59 = vadd.f32 %v7539_v57, %v9918_v13  ;;  %v4263_v61 = vmax.f32 %v4215_v36, 0.0  ;;  %4821 = vmatprep.subr.bf16.mxu1 %v8793_v54  ;;  %v8795_v36 = vld [vmem:[#allocation7 + $0x180] sm:$0xff]   ;;  %v8796_v57 = vld [vmem:[#allocation7 + $0x1c8] sm:$0xff]  }
 0x9f1   : > { %4822 = vmatpush1.bf16.msra.mxu1 %v8791_v55  ;;  %v8805_v54 = vld [vmem:[#allocation7 + $0x1a8] sm:$0xff]   ;;  %v8806_v55 = vld [vmem:[#allocation7 + $0x1f0] sm:$0xff]  }
 0x9f2   : > { %v4264_v62 = vmax.f32 %v4218_v59, 0.0  ;;  %v7540_v11 = vpop.f32.mrb[248].mxu1 }
 0x9f3   : > { %v7541_v0 = vpop.f32.mrb[249].mxu1 }
 0x9f4   : > { %v7542_v2 = vadd.f32 %v7541_v0, %v7540_v11  ;;  %v7543_v3 = vpop.f32.mrb[250].mxu1  ;;  %v4282_v4 = vpack.c.bf16 %v4264_v62, %v4263_v61  ;;  %v8798_v62 = vld [vmem:[#allocation7 + $0x1d0] sm:$0xff]  }
 0x9f5   : > { %v7544_v5 = vpop.f32.mrb[251].mxu1 }
 0x9f6   : > { %v4223_v8 = vadd.f32 %v7542_v2, %v9918_v13  ;;  %v7545_v12 = vadd.f32 %v7544_v5, %v7543_v3  ;;  %8210 = vmatprep.subr.bf16.mxu0 %v4282_v4  ;;  %v8799_v2 = vld [vmem:[#allocation7 + $0x190] sm:$0xff]   ;;  %v8800_v3 = vld [vmem:[#allocation7 + $0x1d8] sm:$0xff]  }
 0x9f7   : > { %8211 = vmatpush3.bf16.msra.mxu0 %v4282_v4 }
 0x9f8   : > { %v4226_v14 = vadd.f32 %v7545_v12, %v9918_v13  ;;  %v4265_v24 = vmax.f32 %v4223_v8, 0.0  ;;  %v8802_v12 = vld [vmem:[#allocation7 + $0x1e0] sm:$0xff]  }
 0x9fa   : > { %v4266_v16 = vmax.f32 %v4226_v14, 0.0  ;;  %v7546_v17 = vpop.f32.mrb[252].mxu1 }
 0x9fb   : > { %v7547_v18 = vpop.f32.mrb[253].mxu1 }
 0x9fc   : > { %v7548_v19 = vadd.f32 %v7547_v18, %v7546_v17  ;;  %v7549_v60 = vpop.f32.mrb[254].mxu1  ;;  %v4283_v20 = vpack.c.bf16 %v4266_v16, %v4265_v24  ;;  %v8803_v24 = vld [vmem:[#allocation7 + $0x1a0] sm:$0xff]   ;;  %v8804_v16 = vld [vmem:[#allocation7 + $0x1e8] sm:$0xff]  }
 0x9fd   : > { %v7550_v21 = vpop.f32.mrb[255].mxu1 }
 0x9fe   : > { %v4231_v22 = vadd.f32 %v7548_v19, %v9918_v13  ;;  %v7551_v25 = vadd.f32 %v7550_v21, %v7549_v60  ;;  %8212 = vmatprep.subr.bf16.mxu0 %v4283_v20 }
 0x9ff   : > { %8213 = vmatpush3.bf16.msra.mxu0 %v4283_v20 }
 0xa00   : > { %v4234_v26 = vadd.f32 %v7551_v25, %v9918_v13  ;;  %v4267_v27 = vmax.f32 %v4231_v22, 0.0  ;;  %v8926_v13 = vld [vmem:[%s9375_s18 + $0x58] sm:$0xff]  }
 0xa02   : > { %v4268_v28 = vmax.f32 %v4234_v26, 0.0 }
 0xa04   : > { %v4284_v29 = vpack.c.bf16 %v4268_v28, %v4267_v27 }
 0xa06   : > { %8214 = vmatprep.subr.bf16.mxu0 %v4284_v29 }
 0xa07   : > { %8215 = vmatpush3.bf16.msra.mxu0 %v4284_v29 }
 0xa08   : > { %8232 = vmatprep.subr.bf16.mxu0 %v8769_v30 }
 0xa0a   : > { %8217 = vmatmul.mubr.bf16.vlgmr.msra.gmra.mrb[16].mxu0 %v8924_v31 }
 0xa0b   : > { %8220 = vmatprep.mubr.bf16.mxu0 %v8925_v32  ;;  %8233 = vmatpush3.bf16.msra.mxu0 %v8769_v30 }
 0xa0c   : > { %7601 = vmatprep.subr.bf16.mxu0 %v8794_v56  ;;  %v8807_v56 = vld [vmem:[#allocation7 + $0x1b0] sm:$0xff]  }
 0xa12   : > { %8221 = vmatmul.mubr.bf16.gmra.mrb[20].mxu0 %v8926_v13 }
 0xa13   : > { %8224 = vmatprep.mubr.bf16.mxu0 %v8927_v33 }
 0xa1a   : > { %8225 = vmatmul.mubr.bf16.gmra.mrb[24].mxu0 %v8928_v34 }
 0xa1b   : > { %8228 = vmatprep.mubr.bf16.mxu0 %v8929_v35 }
 0xa22   : > { %8229 = vmatmul.mubr.bf16.gmra.mrb[28].mxu0 %v8930_v47 }
 0xa23   : > { %8234 = vmatprep.mubr.msk.bf16.mxu0 %vm972_vm0, %v8931_v37 }
 0xa2a   : > { %8235 = vmatmul.mubr.msk.bf16.vlgmr.msra.gmra.mrb[0].mxu0 %vm972_vm0, %v8932_v38 }
 0xa2b   : > { %8238 = vmatprep.mubr.msk.bf16.mxu0 %vm972_vm0, %v8933_v48  ;;  %7602 = vmatpush3.bf16.msra.mxu0 %v8795_v36  ;;  %v8808_v36 = vld [vmem:[#allocation7 + $0x1f8] sm:$0xff]  }
 0xa2c   : > { %7603 = vmatprep.subr.bf16.mxu0 %v8796_v57  ;;  %v8809_v57 = vld [vmem:[#allocation7 + $0x1b8] sm:$0xff]  }
 0xa2f   : > { %7604 = vmatpush3.bf16.msra.mxu0 %v8797_v10 }
 0xa30   : > { %7605 = vmatprep.subr.bf16.mxu0 %v8798_v62 }
 0xa32   : > { %8239 = vmatmul.mubr.msk.bf16.gmra.mrb[4].mxu0 %vm972_vm0, %v8934_v39 }
 0xa33   : > { %8242 = vmatprep.mubr.msk.bf16.mxu0 %vm972_vm0, %v8935_v40  ;;  %7606 = vmatpush3.bf16.msra.mxu0 %v8799_v2 }
 0xa34   : > { %7607 = vmatprep.subr.bf16.mxu0 %v8800_v3 }
 0xa37   : > { %7608 = vmatpush3.bf16.msra.mxu0 %v8801_v6 }
 0xa38   : > { %7609 = vmatprep.subr.bf16.mxu0 %v8802_v12 }
 0xa3a   : > { %8243 = vmatmul.mubr.msk.bf16.gmra.mrb[8].mxu0 %vm972_vm0, %v8936_v41 }
 0xa3b   : > { %8246 = vmatprep.mubr.msk.bf16.mxu0 %vm972_vm0, %v8937_v42  ;;  %7610 = vmatpush3.bf16.msra.mxu0 %v8803_v24 }
 0xa3c   : > { %7611 = vmatprep.subr.bf16.mxu0 %v8804_v16 }
 0xa3f   : > { %7612 = vmatpush3.bf16.msra.mxu0 %v8805_v54 }
 0xa40   : > { %7613 = vmatprep.subr.bf16.mxu0 %v8806_v55 }
 0xa42   : > { %8247 = vmatmul.mubr.msk.bf16.gmra.mrb[12].mxu0 %vm972_vm0, %v8938_v43 }
 0xa43   : > { %8250 = vmatprep.mubr.msk.bf16.mxu0 %vm972_vm0, %v8939_v44  ;;  %7614 = vmatpush3.bf16.msra.mxu0 %v8807_v56 }
 0xa44   : > { %7615 = vmatprep.subr.bf16.mxu0 %v8808_v36 }
 0xa47   : > { %7616 = vmatpush3.bf16.msra.mxu0 %v8809_v57 }
 0xa4a   : > { %8251 = vmatmul.mubr.msk.bf16.gmra.mrb[16].mxu0 %vm972_vm0, %v8940_v45 }
 0xa4b   : > { %8254 = vmatprep.mubr.msk.bf16.mxu0 %vm972_vm0, %v8941_v46 }
 0xa52   : > { %8255 = vmatmul.mubr.msk.bf16.gmra.mrb[20].mxu0 %vm972_vm0, %v8942_v49 }
 0xa53   : > { %8258 = vmatprep.mubr.msk.bf16.mxu0 %vm972_vm0, %v8943_v50 }
 0xa5a   : > { %8259 = vmatmul.mubr.msk.bf16.gmra.mrb[24].mxu0 %vm972_vm0, %v8944_v51 }
 0xa5b   : > { %8262 = vmatprep.mubr.msk.bf16.mxu0 %vm972_vm0, %v8945_v52 }
 0xa62   : > { %8263 = vmatmul.mubr.msk.bf16.gmra.mrb[28].mxu0 %vm972_vm0, %v8946_v53 }
 0xafd   : > { %v8236_v58 = vpop.f32.mrb[0].mxu0 }
 0xafe   : > { %v4522_v59 = vpop.f32.mrb[1].mxu0 }
 0xaff   : > { %v8237_v61 = vpop.f32.mrb[2].mxu0 }
 0xb00   : > { %v4682_v11 = vpack.c.bf16 %v8237_v61, %v8236_v58  ;;  %v4525_v63 = vpop.f32.mrb[3].mxu0  ;;  %v8947_v58 = vld [vmem:[%s9375_s18] sm:$0xff]  }
 0xb01   : > { %v4681_v0 = vpack.c.bf16 %v4525_v63, %v4522_v59  ;;  %v6972_v59 = vld [vmem:[%s10395_s5 + $0x6] sm:$0x3] }
 0xb02   : > { %v10022_v10 = vrot.slane %v6972_v59, %v9483_v7  ;;  %v10025_v61 = vrot.slane %v6972_v59, %v9488_v9 }
 0xb03   : > { %4840 = vmatmul.mubr.bf16.vlgmr.msra.gmra.mrb[0].mxu1 %v4681_v0 }
 0xb04   : > { %4849 = vmatprep.mubr.bf16.mxu1 %v9144_v1 }
 0xb05   : > { %v8240_v4 = vpop.f32.mrb[4].mxu0 }
 0xb06   : > { %v4538_v5 = vpop.f32.mrb[5].mxu0 }
 0xb07   : > { %v8241_v8 = vpop.f32.mrb[6].mxu0 }
 0xb08   : > { %v4684_v23 = vpack.c.bf16 %v8241_v8, %v8240_v4  ;;  %v4541_v14 = vpop.f32.mrb[7].mxu0 }
 0xb09   : > { %v4683_v15 = vpack.c.bf16 %v4541_v14, %v4538_v5 }
 0xb0b   : > { %4850 = vmatmul.mubr.bf16.gmra.mrb[4].mxu1 %v4682_v11 }
 0xb0c   : > { %4859 = vmatprep.mubr.bf16.mxu1 %v9144_v1 }
 0xb0d   : > { %v8244_v17 = vpop.f32.mrb[8].mxu0 }
 0xb0e   : > { %v4554_v18 = vpop.f32.mrb[9].mxu0 }
 0xb0f   : > { %v8245_v19 = vpop.f32.mrb[10].mxu0 }
 0xb10   : > { %v4686_v60 = vpack.c.bf16 %v8245_v19, %v8244_v17  ;;  %v4557_v20 = vpop.f32.mrb[11].mxu0 }
 0xb11   : > { %v4685_v21 = vpack.c.bf16 %v4557_v20, %v4554_v18 }
 0xb13   : > { %4860 = vmatmul.mubr.bf16.gmra.mrb[8].mxu1 %v4683_v15 }
 0xb14   : > { %4869 = vmatprep.mubr.bf16.mxu1 %v9144_v1 }
 0xb15   : > { %v8248_v22 = vpop.f32.mrb[12].mxu0 }
 0xb16   : > { %v4570_v25 = vpop.f32.mrb[13].mxu0 }
 0xb17   : > { %v8249_v26 = vpop.f32.mrb[14].mxu0 }
 0xb18   : > { %v4688_v27 = vpack.c.bf16 %v8249_v26, %v8248_v22  ;;  %v4573_v28 = vpop.f32.mrb[15].mxu0 }
 0xb19   : > { %v4687_v29 = vpack.c.bf16 %v4573_v28, %v4570_v25 }
 0xb1b   : > { %4870 = vmatmul.mubr.bf16.gmra.mrb[12].mxu1 %v4684_v23 }
 0xb1c   : > { %4879 = vmatprep.mubr.bf16.mxu1 %v9144_v1 }
 0xb1d   : > { %v8252_v30 = vpop.f32.mrb[16].mxu0 }
 0xb1e   : > { %v4586_v31 = vpop.f32.mrb[17].mxu0 }
 0xb1f   : > { %v8253_v32 = vpop.f32.mrb[18].mxu0 }
 0xb20   : > { %v4690_v13 = vpack.c.bf16 %v8253_v32, %v8252_v30  ;;  %v4589_v33 = vpop.f32.mrb[19].mxu0 }
 0xb21   : > { %v4689_v34 = vpack.c.bf16 %v4589_v33, %v4586_v31 }
 0xb23   : > { %4880 = vmatmul.mubr.bf16.gmra.mrb[16].mxu1 %v4685_v21 }
 0xb24   : > { %4889 = vmatprep.mubr.bf16.mxu1 %v9144_v1 }
 0xb25   : > { %v8256_v35 = vpop.f32.mrb[20].mxu0 }
 0xb26   : > { %v4602_v47 = vpop.f32.mrb[21].mxu0 }
 0xb27   : > { %v8257_v37 = vpop.f32.mrb[22].mxu0 }
 0xb28   : > { %v4692_v38 = vpack.c.bf16 %v8257_v37, %v8256_v35  ;;  %v4605_v48 = vpop.f32.mrb[23].mxu0 }
 0xb29   : > { %v4691_v39 = vpack.c.bf16 %v4605_v48, %v4602_v47 }
 0xb2b   : > { %4890 = vmatmul.mubr.bf16.gmra.mrb[20].mxu1 %v4686_v60 }
 0xb2c   : > { %4899 = vmatprep.mubr.bf16.mxu1 %v9144_v1 }
 0xb2d   : > { %v8260_v40 = vpop.f32.mrb[24].mxu0 }
 0xb2e   : > { %v4618_v41 = vpop.f32.mrb[25].mxu0 }
 0xb2f   : > { %v8261_v42 = vpop.f32.mrb[26].mxu0 }
 0xb30   : > { %v4694_v43 = vpack.c.bf16 %v8261_v42, %v8260_v40  ;;  %v4621_v44 = vpop.f32.mrb[27].mxu0 }
 0xb31   : > { %v4693_v45 = vpack.c.bf16 %v4621_v44, %v4618_v41 }
 0xb33   : > { %4900 = vmatmul.mubr.bf16.gmra.mrb[24].mxu1 %v4687_v29 }
 0xb34   : > { %4909 = vmatprep.mubr.bf16.mxu1 %v9144_v1 }
 0xb35   : > { %v8264_v46 = vpop.f32.mrb[28].mxu0 }
 0xb36   : > { %v4634_v49 = vpop.f32.mrb[29].mxu0 }
 0xb37   : > { %v8265_v50 = vpop.f32.mrb[30].mxu0 }
 0xb38   : > { %v4696_v51 = vpack.c.bf16 %v8265_v50, %v8264_v46  ;;  %v4637_v52 = vpop.f32.mrb[31].mxu0 }
 0xb39   : > { %v4695_v53 = vpack.c.bf16 %v4637_v52, %v4634_v49 }
 0xb3b   : > { %4910 = vmatmul.mubr.bf16.gmra.mrb[28].mxu1 %v4688_v27 }
 0xb3c   : > { %4919 = vmatprep.mubr.bf16.mxu1 %v9144_v1 }
 0xb43   : > { %4920 = vmatmul.mubr.bf16.gmra.mrb[32].mxu1 %v4689_v34 }
 0xb44   : > { %4929 = vmatprep.mubr.bf16.mxu1 %v9144_v1 }
 0xb4b   : > { %4930 = vmatmul.mubr.bf16.gmra.mrb[36].mxu1 %v4690_v13 }
 0xb4c   : > { %4939 = vmatprep.mubr.bf16.mxu1 %v9144_v1 }
 0xb53   : > { %4940 = vmatmul.mubr.bf16.gmra.mrb[40].mxu1 %v4691_v39 }
 0xb54   : > { %4949 = vmatprep.mubr.bf16.mxu1 %v9144_v1 }
 0xb5b   : > { %4950 = vmatmul.mubr.bf16.gmra.mrb[44].mxu1 %v4692_v38 }
 0xb5c   : > { %4959 = vmatprep.mubr.bf16.mxu1 %v9144_v1 }
 0xb63   : > { %4960 = vmatmul.mubr.bf16.gmra.mrb[48].mxu1 %v4693_v45 }
 0xb64   : > { %4969 = vmatprep.mubr.bf16.mxu1 %v9144_v1 }
 0xb6b   : > { %4970 = vmatmul.mubr.bf16.gmra.mrb[52].mxu1 %v4694_v43 }
 0xb6c   : > { %4979 = vmatprep.mubr.bf16.mxu1 %v9144_v1 }
 0xb73   : > { %4980 = vmatmul.mubr.bf16.gmra.mrb[56].mxu1 %v4695_v53 }
 0xb74   : > { %4989 = vmatprep.mubr.bf16.mxu1 %v9144_v1 }
 0xb7b   : > { %4990 = vmatmul.mubr.bf16.gmra.mrb[60].mxu1 %v4696_v51 }
 0xb7c   : > { %8282 = vmatprep.mubr.bf16.mxu1 %v8947_v58 }
 0xbd6   : > { %v4841_v62 = vpop.f32.mrb[0].mxu1 }
 0xbd7   : > { %v4842_v11 = vadd.f32 %v4841_v62, %v10022_v10  ;;  %v4843_v63 = vpop.f32.mrb[1].mxu1 }
 0xbd8   : > { %v4844_v0 = vadd.f32 %v4843_v63, %v10025_v61  ;;  %v4845_v2 = vpop.f32.mrb[2].mxu1 }
 0xbd9   : > { %v4846_v3 = vadd.f32 %v4845_v2, %v10022_v10  ;;  %v4847_v4 = vpop.f32.mrb[3].mxu1  ;;  %v5000_v6 = vmax.f32 %v4842_v11, 0.0 }
 0xbda   : > { %v4848_v5 = vadd.f32 %v4847_v4, %v10025_v61  ;;  %v5001_v12 = vmax.f32 %v4844_v0, 0.0 }
 0xbdb   : > { %v5002_v8 = vmax.f32 %v4846_v3, 0.0 }
 0xbdc   : > { %v5003_v23 = vmax.f32 %v4848_v5, 0.0 }
 0xbdd   : > { %v5064_v14 = vpack.c.bf16 %v5002_v8, %v5000_v6 }
 0xbde   : > { %v5065_v15 = vpack.c.bf16 %v5003_v23, %v5001_v12  ;;  %v4851_v24 = vpop.f32.mrb[4].mxu1 }
 0xbdf   : > { %v4852_v16 = vadd.f32 %v4851_v24, %v10022_v10  ;;  %v4853_v17 = vpop.f32.mrb[5].mxu1 }
 0xbe0   : > { %v4854_v18 = vadd.f32 %v4853_v17, %v10025_v61  ;;  %v4855_v19 = vpop.f32.mrb[6].mxu1  ;;  %5265 = vmatprep.mubr.bf16.mxu0 %v5065_v15 }
 0xbe1   : > { %v4856_v60 = vadd.f32 %v4855_v19, %v10022_v10  ;;  %v4857_v20 = vpop.f32.mrb[7].mxu1  ;;  %5266 = vmatmul.mubr.bf16.vlgmr.msra.gmra.mrb[32].mxu0 %v5064_v14  ;;  %v5004_v22 = vmax.f32 %v4852_v16, 0.0 }
 0xbe2   : > { %v4858_v21 = vadd.f32 %v4857_v20, %v10025_v61  ;;  %v5005_v26 = vmax.f32 %v4854_v18, 0.0 }
 0xbe3   : > { %v5006_v25 = vmax.f32 %v4856_v60, 0.0 }
 0xbe4   : > { %v5007_v27 = vmax.f32 %v4858_v21, 0.0 }
 0xbe5   : > { %v5066_v28 = vpack.c.bf16 %v5006_v25, %v5004_v22 }
 0xbe6   : > { %v5067_v29 = vpack.c.bf16 %v5007_v27, %v5005_v26  ;;  %v4861_v30 = vpop.f32.mrb[8].mxu1 }
 0xbe7   : > { %v4862_v31 = vadd.f32 %v4861_v30, %v10022_v10  ;;  %v4863_v32 = vpop.f32.mrb[9].mxu1 }
 0xbe8   : > { %v4864_v13 = vadd.f32 %v4863_v32, %v10025_v61  ;;  %v4865_v33 = vpop.f32.mrb[10].mxu1  ;;  %5273 = vmatprep.mubr.bf16.mxu0 %v5067_v29 }
 0xbe9   : > { %v4866_v34 = vadd.f32 %v4865_v33, %v10022_v10  ;;  %v4867_v35 = vpop.f32.mrb[11].mxu1  ;;  %5274 = vmatmul.mubr.bf16.gmra.mrb[36].mxu0 %v5066_v28  ;;  %v5008_v37 = vmax.f32 %v4862_v31, 0.0 }
 0xbea   : > { %v4868_v47 = vadd.f32 %v4867_v35, %v10025_v61  ;;  %v5009_v48 = vmax.f32 %v4864_v13, 0.0 }
 0xbeb   : > { %v5010_v38 = vmax.f32 %v4866_v34, 0.0 }
 0xbec   : > { %v5011_v39 = vmax.f32 %v4868_v47, 0.0 }
 0xbed   : > { %v5068_v40 = vpack.c.bf16 %v5010_v38, %v5008_v37 }
 0xbee   : > { %v5069_v41 = vpack.c.bf16 %v5011_v39, %v5009_v48  ;;  %v4871_v42 = vpop.f32.mrb[12].mxu1 }
 0xbef   : > { %v4872_v43 = vadd.f32 %v4871_v42, %v10022_v10  ;;  %v4873_v44 = vpop.f32.mrb[13].mxu1 }
 0xbf0   : > { %v4874_v45 = vadd.f32 %v4873_v44, %v10025_v61  ;;  %v4875_v46 = vpop.f32.mrb[14].mxu1  ;;  %5281 = vmatprep.mubr.bf16.mxu0 %v5069_v41 }
 0xbf1   : > { %v4876_v49 = vadd.f32 %v4875_v46, %v10022_v10  ;;  %v4877_v50 = vpop.f32.mrb[15].mxu1  ;;  %5282 = vmatmul.mubr.bf16.gmra.mrb[40].mxu0 %v5068_v40  ;;  %v5012_v52 = vmax.f32 %v4872_v43, 0.0 }
 0xbf2   : > { %v4878_v51 = vadd.f32 %v4877_v50, %v10025_v61  ;;  %v5013_v54 = vmax.f32 %v4874_v45, 0.0 }
 0xbf3   : > { %v5014_v53 = vmax.f32 %v4876_v49, 0.0 }
 0xbf4   : > { %v5015_v55 = vmax.f32 %v4878_v51, 0.0 }
 0xbf5   : > { %v5070_v56 = vpack.c.bf16 %v5014_v53, %v5012_v52 }
 0xbf6   : > { %v5071_v36 = vpack.c.bf16 %v5015_v55, %v5013_v54  ;;  %v4881_v57 = vpop.f32.mrb[16].mxu1 }
 0xbf7   : > { %v4882_v58 = vadd.f32 %v4881_v57, %v10022_v10  ;;  %v4883_v59 = vpop.f32.mrb[17].mxu1 }
 0xbf8   : > { %v4884_v62 = vadd.f32 %v4883_v59, %v10025_v61  ;;  %v4885_v11 = vpop.f32.mrb[18].mxu1  ;;  %5289 = vmatprep.mubr.bf16.mxu0 %v5071_v36 }
 0xbf9   : > { %v4886_v63 = vadd.f32 %v4885_v11, %v10022_v10  ;;  %v4887_v0 = vpop.f32.mrb[19].mxu1  ;;  %5290 = vmatmul.mubr.bf16.gmra.mrb[44].mxu0 %v5070_v56  ;;  %v5016_v3 = vmax.f32 %v4882_v58, 0.0 }
 0xbfa   : > { %v4888_v2 = vadd.f32 %v4887_v0, %v10025_v61  ;;  %v5017_v5 = vmax.f32 %v4884_v62, 0.0 }
 0xbfb   : > { %v5018_v4 = vmax.f32 %v4886_v63, 0.0 }
 0xbfc   : > { %v5019_v6 = vmax.f32 %v4888_v2, 0.0 }
 0xbfd   : > { %v5072_v8 = vpack.c.bf16 %v5018_v4, %v5016_v3 }
 0xbfe   : > { %v5073_v12 = vpack.c.bf16 %v5019_v6, %v5017_v5  ;;  %v4891_v23 = vpop.f32.mrb[20].mxu1 }
 0xbff   : > { %v4892_v14 = vadd.f32 %v4891_v23, %v10022_v10  ;;  %v4893_v15 = vpop.f32.mrb[21].mxu1 }
 0xc00   : > { %v4894_v24 = vadd.f32 %v4893_v15, %v10025_v61  ;;  %v4895_v16 = vpop.f32.mrb[22].mxu1  ;;  %5297 = vmatprep.mubr.bf16.mxu0 %v5073_v12 }
 0xc01   : > { %v4896_v17 = vadd.f32 %v4895_v16, %v10022_v10  ;;  %v4897_v18 = vpop.f32.mrb[23].mxu1  ;;  %5298 = vmatmul.mubr.bf16.gmra.mrb[48].mxu0 %v5072_v8  ;;  %v5020_v60 = vmax.f32 %v4892_v14, 0.0 }
 0xc02   : > { %v4898_v19 = vadd.f32 %v4897_v18, %v10025_v61  ;;  %v5021_v21 = vmax.f32 %v4894_v24, 0.0 }
 0xc03   : > { %v5022_v20 = vmax.f32 %v4896_v17, 0.0 }
 0xc04   : > { %v5023_v22 = vmax.f32 %v4898_v19, 0.0 }
 0xc05   : > { %v5074_v25 = vpack.c.bf16 %v5022_v20, %v5020_v60 }
 0xc06   : > { %v5075_v26 = vpack.c.bf16 %v5023_v22, %v5021_v21  ;;  %v4901_v27 = vpop.f32.mrb[24].mxu1 }
 0xc07   : > { %v4902_v28 = vadd.f32 %v4901_v27, %v10022_v10  ;;  %v4903_v29 = vpop.f32.mrb[25].mxu1 }
 0xc08   : > { %v4904_v30 = vadd.f32 %v4903_v29, %v10025_v61  ;;  %v4905_v31 = vpop.f32.mrb[26].mxu1  ;;  %5305 = vmatprep.mubr.bf16.mxu0 %v5075_v26 }
 0xc09   : > { %v4906_v32 = vadd.f32 %v4905_v31, %v10022_v10  ;;  %v4907_v13 = vpop.f32.mrb[27].mxu1  ;;  %5306 = vmatmul.mubr.bf16.gmra.mrb[52].mxu0 %v5074_v25  ;;  %v5024_v34 = vmax.f32 %v4902_v28, 0.0 }
 0xc0a   : > { %v4908_v33 = vadd.f32 %v4907_v13, %v10025_v61  ;;  %v5025_v47 = vmax.f32 %v4904_v30, 0.0 }
 0xc0b   : > { %v5026_v35 = vmax.f32 %v4906_v32, 0.0 }
 0xc0c   : > { %v5027_v37 = vmax.f32 %v4908_v33, 0.0 }
 0xc0d   : > { %v5076_v38 = vpack.c.bf16 %v5026_v35, %v5024_v34 }
 0xc0e   : > { %v5077_v48 = vpack.c.bf16 %v5027_v37, %v5025_v47  ;;  %v4911_v39 = vpop.f32.mrb[28].mxu1 }
 0xc0f   : > { %v4912_v40 = vadd.f32 %v4911_v39, %v10022_v10  ;;  %v4913_v41 = vpop.f32.mrb[29].mxu1 }
 0xc10   : > { %v4914_v42 = vadd.f32 %v4913_v41, %v10025_v61  ;;  %v4915_v43 = vpop.f32.mrb[30].mxu1  ;;  %5313 = vmatprep.mubr.bf16.mxu0 %v5077_v48 }
 0xc11   : > { %v4916_v44 = vadd.f32 %v4915_v43, %v10022_v10  ;;  %v4917_v45 = vpop.f32.mrb[31].mxu1  ;;  %5314 = vmatmul.mubr.bf16.gmra.mrb[56].mxu0 %v5076_v38  ;;  %v5028_v49 = vmax.f32 %v4912_v40, 0.0 }
 0xc12   : > { %v4918_v46 = vadd.f32 %v4917_v45, %v10025_v61  ;;  %v5029_v51 = vmax.f32 %v4914_v42, 0.0 }
 0xc13   : > { %v5030_v50 = vmax.f32 %v4916_v44, 0.0 }
 0xc14   : > { %v5031_v52 = vmax.f32 %v4918_v46, 0.0 }
 0xc15   : > { %v5078_v53 = vpack.c.bf16 %v5030_v50, %v5028_v49 }
 0xc16   : > { %v5079_v54 = vpack.c.bf16 %v5031_v52, %v5029_v51  ;;  %v4921_v55 = vpop.f32.mrb[32].mxu1 }
 0xc17   : > { %v4922_v56 = vadd.f32 %v4921_v55, %v10022_v10  ;;  %v4923_v36 = vpop.f32.mrb[33].mxu1 }
 0xc18   : > { %v4924_v57 = vadd.f32 %v4923_v36, %v10025_v61  ;;  %v4925_v58 = vpop.f32.mrb[34].mxu1  ;;  %5321 = vmatprep.mubr.bf16.mxu0 %v5079_v54 }
 0xc19   : > { %v4926_v59 = vadd.f32 %v4925_v58, %v10022_v10  ;;  %v4927_v62 = vpop.f32.mrb[35].mxu1  ;;  %5322 = vmatmul.mubr.bf16.gmra.mrb[60].mxu0 %v5078_v53  ;;  %v5032_v63 = vmax.f32 %v4922_v56, 0.0 }
 0xc1a   : > { %v4928_v11 = vadd.f32 %v4927_v62, %v10025_v61  ;;  %v5033_v2 = vmax.f32 %v4924_v57, 0.0 }
 0xc1b   : > { %v5034_v0 = vmax.f32 %v4926_v59, 0.0 }
 0xc1c   : > { %v5035_v3 = vmax.f32 %v4928_v11, 0.0 }
 0xc1d   : > { %v5080_v4 = vpack.c.bf16 %v5034_v0, %v5032_v63 }
 0xc1e   : > { %v5081_v5 = vpack.c.bf16 %v5035_v3, %v5033_v2  ;;  %v4931_v6 = vpop.f32.mrb[36].mxu1 }
 0xc1f   : > { %v4932_v8 = vadd.f32 %v4931_v6, %v10022_v10  ;;  %v4933_v12 = vpop.f32.mrb[37].mxu1 }
 0xc20   : > { %v4934_v23 = vadd.f32 %v4933_v12, %v10025_v61  ;;  %v4935_v14 = vpop.f32.mrb[38].mxu1  ;;  %5329 = vmatprep.mubr.bf16.mxu0 %v5081_v5 }
 0xc21   : > { %v4936_v15 = vadd.f32 %v4935_v14, %v10022_v10  ;;  %v4937_v24 = vpop.f32.mrb[39].mxu1  ;;  %5330 = vmatmul.mubr.bf16.gmra.mrb[64].mxu0 %v5080_v4  ;;  %v5036_v17 = vmax.f32 %v4932_v8, 0.0 }
 0xc22   : > { %v4938_v16 = vadd.f32 %v4937_v24, %v10025_v61  ;;  %v5037_v19 = vmax.f32 %v4934_v23, 0.0 }
 0xc23   : > { %v5038_v18 = vmax.f32 %v4936_v15, 0.0 }
 0xc24   : > { %v5039_v60 = vmax.f32 %v4938_v16, 0.0 }
 0xc25   : > { %v5082_v20 = vpack.c.bf16 %v5038_v18, %v5036_v17 }
 0xc26   : > { %v5083_v21 = vpack.c.bf16 %v5039_v60, %v5037_v19  ;;  %v4941_v22 = vpop.f32.mrb[40].mxu1 }
 0xc27   : > { %v4942_v25 = vadd.f32 %v4941_v22, %v10022_v10  ;;  %v4943_v26 = vpop.f32.mrb[41].mxu1 }
 0xc28   : > { %v4944_v27 = vadd.f32 %v4943_v26, %v10025_v61  ;;  %v4945_v28 = vpop.f32.mrb[42].mxu1  ;;  %5337 = vmatprep.mubr.bf16.mxu0 %v5083_v21 }
 0xc29   : > { %v4946_v29 = vadd.f32 %v4945_v28, %v10022_v10  ;;  %v4947_v30 = vpop.f32.mrb[43].mxu1  ;;  %5338 = vmatmul.mubr.bf16.gmra.mrb[68].mxu0 %v5082_v20  ;;  %v5040_v32 = vmax.f32 %v4942_v25, 0.0 }
 0xc2a   : > { %v4948_v31 = vadd.f32 %v4947_v30, %v10025_v61  ;;  %v5041_v33 = vmax.f32 %v4944_v27, 0.0 }
 0xc2b   : > { %v5042_v13 = vmax.f32 %v4946_v29, 0.0 }
 0xc2c   : > { %v5043_v34 = vmax.f32 %v4948_v31, 0.0 }
 0xc2d   : > { %v5084_v35 = vpack.c.bf16 %v5042_v13, %v5040_v32 }
 0xc2e   : > { %v5085_v47 = vpack.c.bf16 %v5043_v34, %v5041_v33  ;;  %v4951_v37 = vpop.f32.mrb[44].mxu1 }
 0xc2f   : > { %v4952_v38 = vadd.f32 %v4951_v37, %v10022_v10  ;;  %v4953_v48 = vpop.f32.mrb[45].mxu1 }
 0xc30   : > { %v4954_v39 = vadd.f32 %v4953_v48, %v10025_v61  ;;  %v4955_v40 = vpop.f32.mrb[46].mxu1  ;;  %5345 = vmatprep.mubr.bf16.mxu0 %v5085_v47 }
 0xc31   : > { %v4956_v41 = vadd.f32 %v4955_v40, %v10022_v10  ;;  %v4957_v42 = vpop.f32.mrb[47].mxu1  ;;  %5346 = vmatmul.mubr.bf16.gmra.mrb[72].mxu0 %v5084_v35  ;;  %v5044_v44 = vmax.f32 %v4952_v38, 0.0 }
 0xc32   : > { %v4958_v43 = vadd.f32 %v4957_v42, %v10025_v61  ;;  %v5045_v46 = vmax.f32 %v4954_v39, 0.0 }
 0xc33   : > { %v5046_v45 = vmax.f32 %v4956_v41, 0.0 }
 0xc34   : > { %v5047_v49 = vmax.f32 %v4958_v43, 0.0 }
 0xc35   : > { %v5086_v50 = vpack.c.bf16 %v5046_v45, %v5044_v44 }
 0xc36   : > { %v5087_v51 = vpack.c.bf16 %v5047_v49, %v5045_v46  ;;  %v4961_v52 = vpop.f32.mrb[48].mxu1 }
 0xc37   : > { %v4962_v53 = vadd.f32 %v4961_v52, %v10022_v10  ;;  %v4963_v54 = vpop.f32.mrb[49].mxu1 }
 0xc38   : > { %v4964_v55 = vadd.f32 %v4963_v54, %v10025_v61  ;;  %v4965_v56 = vpop.f32.mrb[50].mxu1  ;;  %5353 = vmatprep.mubr.bf16.mxu0 %v5087_v51 }
 0xc39   : > { %v4966_v36 = vadd.f32 %v4965_v56, %v10022_v10  ;;  %v4967_v57 = vpop.f32.mrb[51].mxu1  ;;  %5354 = vmatmul.mubr.bf16.gmra.mrb[76].mxu0 %v5086_v50  ;;  %v5048_v59 = vmax.f32 %v4962_v53, 0.0  ;;  %v10095_v50 = vld [vmem:[%s10397_s7 + $0x3] ss:$0 sm:$0xff] }
 0xc3a   : > { %v4968_v58 = vadd.f32 %v4967_v57, %v10025_v61  ;;  %v5049_v11 = vmax.f32 %v4964_v55, 0.0 }
 0xc3b   : > { %v5050_v62 = vmax.f32 %v4966_v36, 0.0 }
 0xc3c   : > { %v5051_v63 = vmax.f32 %v4968_v58, 0.0 }
 0xc3d   : > { %v5088_v0 = vpack.c.bf16 %v5050_v62, %v5048_v59 }
 0xc3e   : > { %v5089_v2 = vpack.c.bf16 %v5051_v63, %v5049_v11  ;;  %v4971_v3 = vpop.f32.mrb[52].mxu1 }
 0xc3f   : > { %v4972_v4 = vadd.f32 %v4971_v3, %v10022_v10  ;;  %v4973_v5 = vpop.f32.mrb[53].mxu1 }
 0xc40   : > { %v4974_v6 = vadd.f32 %v4973_v5, %v10025_v61  ;;  %v4975_v8 = vpop.f32.mrb[54].mxu1  ;;  %5361 = vmatprep.mubr.bf16.mxu0 %v5089_v2 }
 0xc41   : > { %v4976_v12 = vadd.f32 %v4975_v8, %v10022_v10  ;;  %v4977_v23 = vpop.f32.mrb[55].mxu1  ;;  %5362 = vmatmul.mubr.bf16.gmra.mrb[80].mxu0 %v5088_v0  ;;  %v5052_v15 = vmax.f32 %v4972_v4, 0.0 }
 0xc42   : > { %v4978_v14 = vadd.f32 %v4977_v23, %v10025_v61  ;;  %v5053_v16 = vmax.f32 %v4974_v6, 0.0 }
 0xc43   : > { %v5054_v24 = vmax.f32 %v4976_v12, 0.0 }
 0xc44   : > { %v5055_v17 = vmax.f32 %v4978_v14, 0.0 }
 0xc45   : > { %v5090_v18 = vpack.c.bf16 %v5054_v24, %v5052_v15 }
 0xc46   : > { %v5091_v19 = vpack.c.bf16 %v5055_v17, %v5053_v16  ;;  %v4981_v60 = vpop.f32.mrb[56].mxu1 }
 0xc47   : > { %v4982_v20 = vadd.f32 %v4981_v60, %v10022_v10  ;;  %v4983_v21 = vpop.f32.mrb[57].mxu1 }
 0xc48   : > { %v4984_v22 = vadd.f32 %v4983_v21, %v10025_v61  ;;  %v4985_v25 = vpop.f32.mrb[58].mxu1  ;;  %5369 = vmatprep.mubr.bf16.mxu0 %v5091_v19 }
 0xc49   : > { %v4986_v26 = vadd.f32 %v4985_v25, %v10022_v10  ;;  %v4987_v27 = vpop.f32.mrb[59].mxu1  ;;  %5370 = vmatmul.mubr.bf16.gmra.mrb[84].mxu0 %v5090_v18  ;;  %v5056_v29 = vmax.f32 %v4982_v20, 0.0 }
 0xc4a   : > { %v4988_v28 = vadd.f32 %v4987_v27, %v10025_v61  ;;  %v5057_v31 = vmax.f32 %v4984_v22, 0.0 }
 0xc4b   : > { %v5058_v30 = vmax.f32 %v4986_v26, 0.0 }
 0xc4c   : > { %v5059_v32 = vmax.f32 %v4988_v28, 0.0 }
 0xc4d   : > { %v5092_v13 = vpack.c.bf16 %v5058_v30, %v5056_v29 }
 0xc4e   : > { %v5093_v33 = vpack.c.bf16 %v5059_v32, %v5057_v31  ;;  %v4991_v34 = vpop.f32.mrb[60].mxu1 }
 0xc4f   : > { %v4992_v35 = vadd.f32 %v4991_v34, %v10022_v10  ;;  %v4993_v47 = vpop.f32.mrb[61].mxu1 }
 0xc50   : > { %v4994_v37 = vadd.f32 %v4993_v47, %v10025_v61  ;;  %v4995_v38 = vpop.f32.mrb[62].mxu1  ;;  %5377 = vmatprep.mubr.bf16.mxu0 %v5093_v33 }
 0xc51   : > { %v4996_v48 = vadd.f32 %v4995_v38, %v10022_v10  ;;  %v4997_v39 = vpop.f32.mrb[63].mxu1  ;;  %5378 = vmatmul.mubr.bf16.gmra.mrb[88].mxu0 %v5092_v13  ;;  %v5060_v41 = vmax.f32 %v4992_v35, 0.0 }
 0xc52   : > { %v4998_v40 = vadd.f32 %v4997_v39, %v10025_v61  ;;  %v5061_v43 = vmax.f32 %v4994_v37, 0.0 }
 0xc53   : > { %v5062_v42 = vmax.f32 %v4996_v48, 0.0 }
 0xc54   : > { %v5063_v44 = vmax.f32 %v4998_v40, 0.0 }
 0xc55   : > { %v5094_v45 = vpack.c.bf16 %v5062_v42, %v5060_v41 }
 0xc56   : > { %v5095_v46 = vpack.c.bf16 %v5063_v44, %v5061_v43 }
 0xc58   : > { %5385 = vmatprep.mubr.bf16.mxu0 %v5095_v46 }
 0xc59   : > { %5386 = vmatmul.mubr.bf16.gmra.mrb[92].mxu0 %v5094_v45 }
 0xc5a   : > { %5996 = vmatprep.mubr.bf16.mxu0 %v9144_v1 }
 0xcb4   : > { %v7617_v49 = vpop.f32.mrb[32].mxu0 }
 0xcb5   : > { %v7618_v10 = vpop.f32.mrb[33].mxu0 }
 0xcb6   : > { %v7619_v51 = vadd.f32 %v7618_v10, %v7617_v49  ;;  %v7620_v52 = vpop.f32.mrb[34].mxu0 }
 0xcb7   : > { %v7621_v61 = vpop.f32.mrb[35].mxu0 }
 0xcb8   : > { %v5268_v53 = vadd.f32 %v7619_v51, %v10095_v50  ;;  %v7622_v54 = vadd.f32 %v7621_v61, %v7620_v52 }
 0xcba   : > { %v5271_v55 = vadd.f32 %v7622_v54, %v10095_v50  ;;  %v5394_v56 = vmax.f32 %v5268_v53, 0.0 }
 0xcbc   : > { %v5395_v36 = vmax.f32 %v5271_v55, 0.0  ;;  %v7623_v57 = vpop.f32.mrb[36].mxu0 }
 0xcbd   : > { %v7624_v58 = vpop.f32.mrb[37].mxu0 }
 0xcbe   : > { %v7625_v59 = vadd.f32 %v7624_v58, %v7623_v57  ;;  %v7626_v62 = vpop.f32.mrb[38].mxu0  ;;  %v5426_v11 = vpack.c.bf16 %v5395_v36, %v5394_v56 }
 0xcbf   : > { %v7627_v63 = vpop.f32.mrb[39].mxu0 }
 0xcc0   : > { %v5276_v0 = vadd.f32 %v7625_v59, %v10095_v50  ;;  %v7628_v2 = vadd.f32 %v7627_v63, %v7626_v62  ;;  %8266 = vmatprep.subr.bf16.mxu1 %v5426_v11 }
 0xcc1   : > { %8267 = vmatpush3.bf16.msra.mxu1 %v5426_v11 }
 0xcc2   : > { %v5279_v3 = vadd.f32 %v7628_v2, %v10095_v50  ;;  %v5396_v4 = vmax.f32 %v5276_v0, 0.0 }
 0xcc4   : > { %v5397_v5 = vmax.f32 %v5279_v3, 0.0  ;;  %v7629_v6 = vpop.f32.mrb[40].mxu0 }
 0xcc5   : > { %v7630_v8 = vpop.f32.mrb[41].mxu0 }
 0xcc6   : > { %v7631_v12 = vadd.f32 %v7630_v8, %v7629_v6  ;;  %v7632_v23 = vpop.f32.mrb[42].mxu0  ;;  %v5427_v14 = vpack.c.bf16 %v5397_v5, %v5396_v4 }
 0xcc7   : > { %v7633_v15 = vpop.f32.mrb[43].mxu0 }
 0xcc8   : > { %v5284_v24 = vadd.f32 %v7631_v12, %v10095_v50  ;;  %v7634_v16 = vadd.f32 %v7633_v15, %v7632_v23  ;;  %8268 = vmatprep.subr.bf16.mxu1 %v5427_v14 }
 0xcc9   : > { %8269 = vmatpush3.bf16.msra.mxu1 %v5427_v14 }
 0xcca   : > { %v5287_v17 = vadd.f32 %v7634_v16, %v10095_v50  ;;  %v5398_v18 = vmax.f32 %v5284_v24, 0.0 }
 0xccc   : > { %v5399_v19 = vmax.f32 %v5287_v17, 0.0  ;;  %v7635_v60 = vpop.f32.mrb[44].mxu0 }
 0xccd   : > { %v7636_v20 = vpop.f32.mrb[45].mxu0 }
 0xcce   : > { %v7637_v21 = vadd.f32 %v7636_v20, %v7635_v60  ;;  %v7638_v22 = vpop.f32.mrb[46].mxu0  ;;  %v5428_v25 = vpack.c.bf16 %v5399_v19, %v5398_v18 }
 0xccf   : > { %v7639_v26 = vpop.f32.mrb[47].mxu0 }
 0xcd0   : > { %v5292_v27 = vadd.f32 %v7637_v21, %v10095_v50  ;;  %v7640_v28 = vadd.f32 %v7639_v26, %v7638_v22  ;;  %8270 = vmatprep.subr.bf16.mxu1 %v5428_v25 }
 0xcd1   : > { %8271 = vmatpush3.bf16.msra.mxu1 %v5428_v25 }
 0xcd2   : > { %v5295_v29 = vadd.f32 %v7640_v28, %v10095_v50  ;;  %v5400_v30 = vmax.f32 %v5292_v27, 0.0  ;;  %v8948_v28 = vld [vmem:[%s9375_s18 + $0x8] sm:$0xff]  }
 0xcd4   : > { %v5401_v31 = vmax.f32 %v5295_v29, 0.0  ;;  %v7641_v32 = vpop.f32.mrb[48].mxu0 }
 0xcd5   : > { %v7642_v13 = vpop.f32.mrb[49].mxu0 }
 0xcd6   : > { %v7643_v33 = vadd.f32 %v7642_v13, %v7641_v32  ;;  %v7644_v34 = vpop.f32.mrb[50].mxu0  ;;  %v5429_v35 = vpack.c.bf16 %v5401_v31, %v5400_v30  ;;  %v8949_v30 = vld [vmem:[%s9375_s18 + $0x10] sm:$0xff]  }
 0xcd7   : > { %v7645_v47 = vpop.f32.mrb[51].mxu0 }
 0xcd8   : > { %v5300_v37 = vadd.f32 %v7643_v33, %v10095_v50  ;;  %v7646_v38 = vadd.f32 %v7645_v47, %v7644_v34  ;;  %8272 = vmatprep.subr.bf16.mxu1 %v5429_v35 }
 0xcd9   : > { %8273 = vmatpush3.bf16.msra.mxu1 %v5429_v35 }
 0xcda   : > { %v5303_v48 = vadd.f32 %v7646_v38, %v10095_v50  ;;  %v5402_v39 = vmax.f32 %v5300_v37, 0.0 }
 0xcdc   : > { %v5403_v40 = vmax.f32 %v5303_v48, 0.0  ;;  %v7647_v41 = vpop.f32.mrb[52].mxu0 }
 0xcdd   : > { %v7648_v42 = vpop.f32.mrb[53].mxu0 }
 0xcde   : > { %v7649_v43 = vadd.f32 %v7648_v42, %v7647_v41  ;;  %v7650_v44 = vpop.f32.mrb[54].mxu0  ;;  %v5430_v45 = vpack.c.bf16 %v5403_v40, %v5402_v39  ;;  %v8950_v39 = vld [vmem:[%s9375_s18 + $0x18] sm:$0xff]   ;;  %v8951_v41 = vld [vmem:[%s9375_s18 + $0x20] sm:$0xff]  }
 0xcdf   : > { %v7651_v46 = vpop.f32.mrb[55].mxu0 }
 0xce0   : > { %v5308_v49 = vadd.f32 %v7649_v43, %v10095_v50  ;;  %v7652_v10 = vadd.f32 %v7651_v46, %v7650_v44  ;;  %8274 = vmatprep.subr.bf16.mxu1 %v5430_v45 }
 0xce1   : > { %8275 = vmatpush3.bf16.msra.mxu1 %v5430_v45 }
 0xce2   : > { %v5311_v51 = vadd.f32 %v7652_v10, %v10095_v50  ;;  %v5404_v52 = vmax.f32 %v5308_v49, 0.0 }
 0xce4   : > { %v5405_v61 = vmax.f32 %v5311_v51, 0.0  ;;  %v7653_v53 = vpop.f32.mrb[56].mxu0 }
 0xce5   : > { %v7654_v54 = vpop.f32.mrb[57].mxu0 }
 0xce6   : > { %v7655_v55 = vadd.f32 %v7654_v54, %v7653_v53  ;;  %v7656_v56 = vpop.f32.mrb[58].mxu0  ;;  %v5431_v36 = vpack.c.bf16 %v5405_v61, %v5404_v52  ;;  %v8952_v53 = vld [vmem:[%s9375_s18 + $0x28] sm:$0xff]  }
 0xce7   : > { %v7657_v57 = vpop.f32.mrb[59].mxu0 }
 0xce8   : > { %v5316_v58 = vadd.f32 %v7655_v55, %v10095_v50  ;;  %v7658_v59 = vadd.f32 %v7657_v57, %v7656_v56  ;;  %8276 = vmatprep.subr.bf16.mxu1 %v5431_v36  ;;  %v8953_v55 = vld [vmem:[%s9375_s18 + $0x30] sm:$0xff]  }
 0xce9   : > { %8277 = vmatpush3.bf16.msra.mxu1 %v5431_v36 }
 0xcea   : > { %v5319_v62 = vadd.f32 %v7658_v59, %v10095_v50  ;;  %v5406_v11 = vmax.f32 %v5316_v58, 0.0 }
 0xcec   : > { %v5407_v63 = vmax.f32 %v5319_v62, 0.0  ;;  %v7659_v0 = vpop.f32.mrb[60].mxu0 }
 0xced   : > { %v7660_v2 = vpop.f32.mrb[61].mxu0 }
 0xcee   : > { %v7661_v3 = vadd.f32 %v7660_v2, %v7659_v0  ;;  %v7662_v4 = vpop.f32.mrb[62].mxu0  ;;  %v5432_v5 = vpack.c.bf16 %v5407_v63, %v5406_v11 }
 0xcef   : > { %v7663_v6 = vpop.f32.mrb[63].mxu0 }
 0xcf0   : > { %v5324_v8 = vadd.f32 %v7661_v3, %v10095_v50  ;;  %v7664_v12 = vadd.f32 %v7663_v6, %v7662_v4  ;;  %8278 = vmatprep.subr.bf16.mxu1 %v5432_v5  ;;  %v8954_v3 = vld [vmem:[%s9375_s18 + $0x38] sm:$0xff]   ;;  %v8811_v4 = vld [vmem:[#allocation5 + $0x200] ss:$8 sps:$4 sm:$0xff]  }
 0xcf1   : > { %8279 = vmatpush3.bf16.msra.mxu1 %v5432_v5  ;;  %v8813_v5 = vld [vmem:[#allocation5 + $0x204] ss:$8 sps:$4 sm:$0xff]  }
 0xcf2   : > { %v5327_v23 = vadd.f32 %v7664_v12, %v10095_v50  ;;  %v5408_v14 = vmax.f32 %v5324_v8, 0.0  ;;  %v8955_v8 = vld [vmem:[%s9375_s18 + $0x40] sm:$0xff]   ;;  %v8816_v12 = vld [vmem:[#allocation5 + $0x214] ss:$8 sps:$4 sm:$0xff]   ;;  %5964 = vmatprep.subr.bf16.mxu0 %v8813_v5 }
 0xcf3   : > { %5965 = vmatpush1.bf16.msra.mxu0 %v8811_v4  ;;  %v8956_v4 = vld [vmem:[%s9375_s18 + $0x48] sm:$0xff]   ;;  %v8957_v5 = vld [vmem:[%s9375_s18 + $0x50] sm:$0xff]  }
 0xcf4   : > { %v5409_v15 = vmax.f32 %v5327_v23, 0.0  ;;  %v7665_v24 = vpop.f32.mrb[64].mxu0  ;;  %5966 = vmatprep.subr.bf16.mxu0 %v8816_v12  ;;  %v8961_v12 = vld [vmem:[%s9375_s18 + $0x70] sm:$0xff]  }
 0xcf5   : > { %v7666_v16 = vpop.f32.mrb[65].mxu0 }
 0xcf6   : > { %v7667_v17 = vadd.f32 %v7666_v16, %v7665_v24  ;;  %v7668_v18 = vpop.f32.mrb[66].mxu0  ;;  %v5433_v19 = vpack.c.bf16 %v5409_v15, %v5408_v14  ;;  %v8814_v16 = vld [vmem:[#allocation5 + $0x210] ss:$8 sps:$4 sm:$0xff]  }
 0xcf7   : > { %v7669_v60 = vpop.f32.mrb[67].mxu0  ;;  %5967 = vmatpush1.bf16.msra.mxu0 %v8814_v16  ;;  %v8966_v16 = vld [vmem:[%s9397_s14 + $0x18] sm:$0xff]  }
 0xcf8   : > { %v5332_v20 = vadd.f32 %v7667_v17, %v10095_v50  ;;  %v7670_v21 = vadd.f32 %v7669_v60, %v7668_v18  ;;  %8280 = vmatprep.subr.bf16.mxu1 %v5433_v19 }
 0xcf9   : > { %8281 = vmatpush3.bf16.msra.mxu1 %v5433_v19  ;;  %v8819_v19 = vld [vmem:[#allocation5 + $0x224] ss:$8 sps:$4 sm:$0xff]  }
 0xcfa   : > { %v5335_v22 = vadd.f32 %v7670_v21, %v10095_v50  ;;  %v5410_v25 = vmax.f32 %v5332_v20, 0.0  ;;  %v8817_v20 = vld [vmem:[#allocation5 + $0x220] ss:$8 sps:$4 sm:$0xff]   ;;  %5968 = vmatprep.subr.bf16.mxu0 %v8819_v19  ;;  %v8969_v19 = vld [vmem:[%s9397_s14 + $0x30] sm:$0xff]  }
 0xcfb   : > { %5969 = vmatpush1.bf16.msra.mxu0 %v8817_v20  ;;  %v8971_v20 = vld [vmem:[%s9397_s14 + $0x40] sm:$0xff]  }
 0xcfc   : > { %v5411_v26 = vmax.f32 %v5335_v22, 0.0  ;;  %v7671_v27 = vpop.f32.mrb[68].mxu0  ;;  %8283 = vmatmul.mubr.bf16.vlgmr.msra.gmra.mrb[64].mxu1 %v8948_v28 }
 0xcfd   : > { %v7672_v29 = vpop.f32.mrb[69].mxu0  ;;  %8286 = vmatprep.mubr.bf16.mxu1 %v8949_v30 }
 0xcfe   : > { %v7673_v31 = vadd.f32 %v7672_v29, %v7671_v27  ;;  %v7674_v32 = vpop.f32.mrb[70].mxu0  ;;  %v5434_v13 = vpack.c.bf16 %v5411_v26, %v5410_v25  ;;  %v8822_v26 = vld [vmem:[#allocation5 + $0x234] ss:$8 sps:$4 sm:$0xff]  }
 0xcff   : > { %v7675_v33 = vpop.f32.mrb[71].mxu0  ;;  %5970 = vmatprep.subr.bf16.mxu0 %v8822_v26  ;;  %v8975_v26 = vld [vmem:[%s9397_s14 + $0x60] sm:$0xff]  }
 0xd00   : > { %v5340_v34 = vadd.f32 %v7673_v31, %v10095_v50  ;;  %v7676_v35 = vadd.f32 %v7675_v33, %v7674_v32  ;;  %8298 = vmatprep.subr.bf16.mxu1 %v5434_v13  ;;  %v8820_v32 = vld [vmem:[#allocation5 + $0x230] ss:$8 sps:$4 sm:$0xff]  }
 0xd01   : > { %8299 = vmatpush3.bf16.msra.mxu1 %v5434_v13  ;;  %5971 = vmatpush1.bf16.msra.mxu0 %v8820_v32  ;;  %v8835_v32 = vld [vmem:[#allocation7 + $0x240] sm:$0xff]  }
 0xd02   : > { %v5343_v47 = vadd.f32 %v7676_v35, %v10095_v50  ;;  %v5412_v37 = vmax.f32 %v5340_v34, 0.0  ;;  %v8825_v34 = vld [vmem:[#allocation5 + $0x244] ss:$8 sps:$4 sm:$0xff]  }
 0xd03   : > { %5972 = vmatprep.subr.bf16.mxu0 %v8825_v34 }
 0xd04   : > { %v5413_v38 = vmax.f32 %v5343_v47, 0.0  ;;  %v7677_v48 = vpop.f32.mrb[72].mxu0  ;;  %8287 = vmatmul.mubr.bf16.gmra.mrb[68].mxu1 %v8950_v39  ;;  %v8823_v47 = vld [vmem:[#allocation5 + $0x240] ss:$8 sps:$4 sm:$0xff]   ;;  %v8828_v39 = vld [vmem:[#allocation5 + $0x254] ss:$8 sps:$4 sm:$0xff]  }
 0xd05   : > { %v7678_v40 = vpop.f32.mrb[73].mxu0  ;;  %8290 = vmatprep.mubr.bf16.mxu1 %v8951_v41  ;;  %5973 = vmatpush1.bf16.msra.mxu0 %v8823_v47  ;;  %v8838_v47 = vld [vmem:[#allocation7 + $0x208] sm:$0xff]  }
 0xd06   : > { %v7679_v42 = vadd.f32 %v7678_v40, %v7677_v48  ;;  %v7680_v43 = vpop.f32.mrb[74].mxu0  ;;  %v5435_v44 = vpack.c.bf16 %v5413_v38, %v5412_v37  ;;  %5974 = vmatprep.subr.bf16.mxu0 %v8828_v39 }
 0xd07   : > { %v7681_v45 = vpop.f32.mrb[75].mxu0 }
 0xd08   : > { %v5348_v46 = vadd.f32 %v7679_v42, %v10095_v50  ;;  %v7682_v49 = vadd.f32 %v7681_v45, %v7680_v43  ;;  %8300 = vmatprep.subr.bf16.mxu1 %v5435_v44  ;;  %v8826_v45 = vld [vmem:[#allocation5 + $0x250] ss:$8 sps:$4 sm:$0xff]  }
 0xd09   : > { %8301 = vmatpush3.bf16.msra.mxu1 %v5435_v44  ;;  %5975 = vmatpush1.bf16.msra.mxu0 %v8826_v45  ;;  %v8842_v45 = vld [vmem:[#allocation7 + $0x218] sm:$0xff]  }
 0xd0a   : > { %v5351_v10 = vadd.f32 %v7682_v49, %v10095_v50  ;;  %v5414_v51 = vmax.f32 %v5348_v46, 0.0 }
 0xd0c   : > { %v5415_v52 = vmax.f32 %v5351_v10, 0.0  ;;  %v7683_v61 = vpop.f32.mrb[76].mxu0  ;;  %8291 = vmatmul.mubr.bf16.gmra.mrb[72].mxu1 %v8952_v53  ;;  %v8831_v10 = vld [vmem:[#allocation5 + $0x264] ss:$8 sps:$4 sm:$0xff]  }
 0xd0d   : > { %v7684_v54 = vpop.f32.mrb[77].mxu0  ;;  %8294 = vmatprep.mubr.bf16.mxu1 %v8953_v55  ;;  %5976 = vmatprep.subr.bf16.mxu0 %v8831_v10 }
 0xd0e   : > { %v7685_v56 = vadd.f32 %v7684_v54, %v7683_v61  ;;  %v7686_v36 = vpop.f32.mrb[78].mxu0  ;;  %v5436_v57 = vpack.c.bf16 %v5415_v52, %v5414_v51  ;;  %v8829_v52 = vld [vmem:[#allocation5 + $0x260] ss:$8 sps:$4 sm:$0xff]  }
 0xd0f   : > { %v7687_v58 = vpop.f32.mrb[79].mxu0  ;;  %5977 = vmatpush1.bf16.msra.mxu0 %v8829_v52 }
 0xd10   : > { %v5356_v59 = vadd.f32 %v7685_v56, %v10095_v50  ;;  %v7688_v62 = vadd.f32 %v7687_v58, %v7686_v36  ;;  %8302 = vmatprep.subr.bf16.mxu1 %v5436_v57 }
 0xd11   : > { %8303 = vmatpush3.bf16.msra.mxu1 %v5436_v57 }
 0xd12   : > { %v5359_v11 = vadd.f32 %v7688_v62, %v10095_v50  ;;  %v5416_v63 = vmax.f32 %v5356_v59, 0.0 }
 0xd14   : > { %v5417_v0 = vmax.f32 %v5359_v11, 0.0  ;;  %v7689_v2 = vpop.f32.mrb[80].mxu0  ;;  %8295 = vmatmul.mubr.bf16.gmra.mrb[76].mxu1 %v8954_v3  ;;  %v8810_v3 = vld [vmem:[%s10393_s3 + $0x20] sm:$0xff]  }
 0xd15   : > { %v7690_v6 = vpop.f32.mrb[81].mxu0  ;;  %8314 = vmatprep.mubr.bf16.mxu1 %v8955_v8  ;;  %v8960_v8 = vld [vmem:[%s9375_s18 + $0x68] sm:$0xff]  }
 0xd16   : > { %v7691_v23 = vadd.f32 %v7690_v6, %v7689_v2  ;;  %v7692_v14 = vpop.f32.mrb[82].mxu0  ;;  %v5437_v15 = vpack.c.bf16 %v5417_v0, %v5416_v63  ;;  %v8959_v6 = vld [vmem:[%s9375_s18 + $0x60] sm:$0xff]  }
 0xd17   : > { %v7693_v24 = vpop.f32.mrb[83].mxu0 }
 0xd18   : > { %v5364_v17 = vadd.f32 %v7691_v23, %v10095_v50  ;;  %v7694_v18 = vadd.f32 %v7693_v24, %v7692_v14  ;;  %8304 = vmatprep.subr.bf16.mxu1 %v5437_v15  ;;  %v8962_v23 = vld [vmem:[%s9375_s18 + $0x78] sm:$0xff]   ;;  %v8963_v14 = vld [vmem:[%s9397_s14] sm:$0xff]   ;;  %v8965_v24 = vld [vmem:[%s9397_s14 + $0x10] sm:$0xff]  }
 0xd19   : > { %8305 = vmatpush3.bf16.msra.mxu1 %v5437_v15  ;;  %v8964_v15 = vld [vmem:[%s9397_s14 + $0x8] sm:$0xff]  }
 0xd1a   : > { %v5367_v60 = vadd.f32 %v7694_v18, %v10095_v50  ;;  %v5418_v21 = vmax.f32 %v5364_v17, 0.0  ;;  %v8967_v17 = vld [vmem:[%s9397_s14 + $0x20] sm:$0xff]   ;;  %v8968_v18 = vld [vmem:[%s9397_s14 + $0x28] sm:$0xff]  }
 0xd1c   : > { %v5419_v22 = vmax.f32 %v5367_v60, 0.0  ;;  %v7695_v25 = vpop.f32.mrb[84].mxu0  ;;  %v8970_v60 = vld [vmem:[%s9397_s14 + $0x38] sm:$0xff]  }
 0xd1d   : > { %v7696_v27 = vpop.f32.mrb[85].mxu0 }
 0xd1e   : > { %v7697_v28 = vadd.f32 %v7696_v27, %v7695_v25  ;;  %v7698_v29 = vpop.f32.mrb[86].mxu0  ;;  %v5438_v30 = vpack.c.bf16 %v5419_v22, %v5418_v21  ;;  %v8972_v21 = vld [vmem:[%s9397_s14 + $0x48] sm:$0xff]   ;;  %v8973_v22 = vld [vmem:[%s9397_s14 + $0x50] sm:$0xff]   ;;  %v8974_v25 = vld [vmem:[%s9397_s14 + $0x58] sm:$0xff]  }
 0xd1f   : > { %v7699_v31 = vpop.f32.mrb[87].mxu0  ;;  %v8976_v27 = vld [vmem:[%s9397_s14 + $0x68] sm:$0xff]  }
 0xd20   : > { %v5372_v13 = vadd.f32 %v7697_v28, %v10095_v50  ;;  %v7700_v33 = vadd.f32 %v7699_v31, %v7698_v29  ;;  %8306 = vmatprep.subr.bf16.mxu1 %v5438_v30  ;;  %v8977_v28 = vld [vmem:[%s9397_s14 + $0x70] sm:$0xff]   ;;  %v8978_v29 = vld [vmem:[%s9397_s14 + $0x78] sm:$0xff]  }
 0xd21   : > { %8307 = vmatpush3.bf16.msra.mxu1 %v5438_v30  ;;  %v8834_v30 = vld [vmem:[#allocation5 + $0x274] ss:$8 sps:$4 sm:$0xff]   ;;  %v8832_v31 = vld [vmem:[#allocation5 + $0x270] ss:$8 sps:$4 sm:$0xff]  }
 0xd22   : > { %v5375_v35 = vadd.f32 %v7700_v33, %v10095_v50  ;;  %v5420_v37 = vmax.f32 %v5372_v13, 0.0  ;;  %5978 = vmatprep.subr.bf16.mxu0 %v8834_v30  ;;  %v8836_v13 = vld [vmem:[#allocation7 + $0x200] sm:$0xff]   ;;  %v8837_v33 = vld [vmem:[#allocation7 + $0x248] sm:$0xff]  }
 0xd23   : > { %5979 = vmatpush1.bf16.msra.mxu0 %v8832_v31  ;;  %v8846_v30 = vld [vmem:[#allocation7 + $0x228] sm:$0xff]   ;;  %v8847_v31 = vld [vmem:[#allocation7 + $0x270] sm:$0xff]  }
 0xd24   : > { %v5421_v38 = vmax.f32 %v5375_v35, 0.0  ;;  %v7701_v48 = vpop.f32.mrb[88].mxu0 }
 0xd25   : > { %v7702_v40 = vpop.f32.mrb[89].mxu0 }
 0xd26   : > { %v7703_v41 = vadd.f32 %v7702_v40, %v7701_v48  ;;  %v7704_v42 = vpop.f32.mrb[90].mxu0  ;;  %v5439_v43 = vpack.c.bf16 %v5421_v38, %v5420_v37  ;;  %v8839_v38 = vld [vmem:[#allocation7 + $0x250] sm:$0xff]  }
 0xd27   : > { %v7705_v44 = vpop.f32.mrb[91].mxu0 }
 0xd28   : > { %v5380_v46 = vadd.f32 %v7703_v41, %v10095_v50  ;;  %v7706_v49 = vadd.f32 %v7705_v44, %v7704_v42  ;;  %8308 = vmatprep.subr.bf16.mxu1 %v5439_v43  ;;  %v8840_v41 = vld [vmem:[#allocation7 + $0x210] sm:$0xff]   ;;  %v8841_v42 = vld [vmem:[#allocation7 + $0x258] sm:$0xff]  }
 0xd29   : > { %8309 = vmatpush3.bf16.msra.mxu1 %v5439_v43 }
 0xd2a   : > { %v5383_v51 = vadd.f32 %v7706_v49, %v10095_v50  ;;  %v5422_v61 = vmax.f32 %v5380_v46, 0.0  ;;  %v8843_v49 = vld [vmem:[#allocation7 + $0x260] sm:$0xff]  }
 0xd2c   : > { %v5423_v53 = vmax.f32 %v5383_v51, 0.0  ;;  %v7707_v54 = vpop.f32.mrb[92].mxu0 }
 0xd2d   : > { %v7708_v55 = vpop.f32.mrb[93].mxu0 }
 0xd2e   : > { %v7709_v56 = vadd.f32 %v7708_v55, %v7707_v54  ;;  %v7710_v36 = vpop.f32.mrb[94].mxu0  ;;  %v5440_v57 = vpack.c.bf16 %v5423_v53, %v5422_v61  ;;  %v8844_v61 = vld [vmem:[#allocation7 + $0x220] sm:$0xff]   ;;  %v8845_v53 = vld [vmem:[#allocation7 + $0x268] sm:$0xff]  }
 0xd2f   : > { %v7711_v58 = vpop.f32.mrb[95].mxu0 }
 0xd30   : > { %v5388_v59 = vadd.f32 %v7709_v56, %v10095_v50  ;;  %v7712_v62 = vadd.f32 %v7711_v58, %v7710_v36  ;;  %8310 = vmatprep.subr.bf16.mxu1 %v5440_v57 }
 0xd31   : > { %8311 = vmatpush3.bf16.msra.mxu1 %v5440_v57 }
 0xd32   : > { %v5391_v11 = vadd.f32 %v7712_v62, %v10095_v50  ;;  %v5424_v63 = vmax.f32 %v5388_v59, 0.0  ;;  %v8958_v50 = vld [vmem:[%s9375_s18 + $0x58] sm:$0xff]   ;;  %s9145_s18 = smov [#allocation8]  }
 0xd33   : > { %s9069_s14 = sshll.u32 %s9145_s18, 4  ;;  %s9070_s14 = int_to_ptr.vmem [resolvable:$false] %s9069_s14 }
 0xd34   : > { %v5425_v0 = vmax.f32 %v5391_v11, 0.0  ;;  %s9071_s21 = scalar_lea.vmem %s9070_s14, 8192  ;;  %p9072_p9 = scmp.lt.s32.totalorder %s10343_s24, %s9070_s14 }
 0xd35   : > { %p9073_p12 = scmp.lt.s32.totalorder %s9071_s21, %s9065_s17 }
 0xd36   : > { %v5441_v2 = vpack.c.bf16 %v5425_v0, %v5424_v63 }
 0xd37   : > { %p9074_p2 = por %p9073_p12, %p9072_p9 }
 0xd38   : > { %8312 = vmatprep.subr.bf16.mxu1 %v5441_v2 }
 0xd39   : > { %8313 = vmatpush3.bf16.msra.mxu1 %v5441_v2  ;;  %p9075_p13 = pnand %p9074_p2, %p9068_p5 }
 0xd3a   : > { %8330 = vmatprep.subr.bf16.mxu1 %v8810_v3 }
 0xd3c   : > { %8315 = vmatmul.mubr.bf16.vlgmr.msra.gmra.mrb[80].mxu1 %v8956_v4 }
 0xd3d   : > { %8318 = vmatprep.mubr.bf16.mxu1 %v8957_v5  ;;  %8331 = vmatpush3.bf16.msra.mxu1 %v8810_v3 }
 0xd3e   : > { %7762 = vmatprep.subr.bf16.mxu1 %v8835_v32  ;;  %v8848_v32 = vld [vmem:[#allocation7 + $0x230] sm:$0xff]  }
 0xd44   : > { %8319 = vmatmul.mubr.bf16.gmra.mrb[84].mxu1 %v8958_v50 }
 0xd45   : > { %8322 = vmatprep.mubr.bf16.mxu1 %v8959_v6 }
 0xd4c   : > { %8323 = vmatmul.mubr.bf16.gmra.mrb[88].mxu1 %v8960_v8 }
 0xd4d   : > { %8326 = vmatprep.mubr.bf16.mxu1 %v8961_v12 }
 0xd54   : > { %8327 = vmatmul.mubr.bf16.gmra.mrb[92].mxu1 %v8962_v23 }
 0xd55   : > { %8332 = vmatprep.mubr.msk.bf16.mxu1 %vm972_vm0, %v8963_v14 }
 0xd5c   : > { %8333 = vmatmul.mubr.msk.bf16.vlgmr.msra.gmra.mrb[64].mxu1 %vm972_vm0, %v8964_v15 }
 0xd5d   : > { %8336 = vmatprep.mubr.msk.bf16.mxu1 %vm972_vm0, %v8965_v24  ;;  %7763 = vmatpush3.bf16.msra.mxu1 %v8836_v13  ;;  %v8849_v13 = vld [vmem:[#allocation7 + $0x278] sm:$0xff]  }
 0xd5e   : > { %7764 = vmatprep.subr.bf16.mxu1 %v8837_v33  ;;  %v8850_v33 = vld [vmem:[#allocation7 + $0x238] sm:$0xff]  }
 0xd61   : > { %7765 = vmatpush3.bf16.msra.mxu1 %v8838_v47 }
 0xd62   : > { %7766 = vmatprep.subr.bf16.mxu1 %v8839_v38 }
 0xd64   : > { %8337 = vmatmul.mubr.msk.bf16.gmra.mrb[68].mxu1 %vm972_vm0, %v8966_v16 }
 0xd65   : > { %8340 = vmatprep.mubr.msk.bf16.mxu1 %vm972_vm0, %v8967_v17  ;;  %7767 = vmatpush3.bf16.msra.mxu1 %v8840_v41 }
 0xd66   : > { %7768 = vmatprep.subr.bf16.mxu1 %v8841_v42 }
 0xd69   : > { %7769 = vmatpush3.bf16.msra.mxu1 %v8842_v45 }
 0xd6a   : > { %7770 = vmatprep.subr.bf16.mxu1 %v8843_v49 }
 0xd6c   : > { %8341 = vmatmul.mubr.msk.bf16.gmra.mrb[72].mxu1 %vm972_vm0, %v8968_v18 }
 0xd6d   : > { %8344 = vmatprep.mubr.msk.bf16.mxu1 %vm972_vm0, %v8969_v19  ;;  %7771 = vmatpush3.bf16.msra.mxu1 %v8844_v61 }
 0xd6e   : > { %7772 = vmatprep.subr.bf16.mxu1 %v8845_v53 }
 0xd71   : > { %7773 = vmatpush3.bf16.msra.mxu1 %v8846_v30 }
 0xd72   : > { %7774 = vmatprep.subr.bf16.mxu1 %v8847_v31 }
 0xd74   : > { %8345 = vmatmul.mubr.msk.bf16.gmra.mrb[76].mxu1 %vm972_vm0, %v8970_v60 }
 0xd75   : > { %8348 = vmatprep.mubr.msk.bf16.mxu1 %vm972_vm0, %v8971_v20  ;;  %7775 = vmatpush3.bf16.msra.mxu1 %v8848_v32 }
 0xd76   : > { %7776 = vmatprep.subr.bf16.mxu1 %v8849_v13 }
 0xd79   : > { %7777 = vmatpush3.bf16.msra.mxu1 %v8850_v33 }
 0xd7c   : > { %8349 = vmatmul.mubr.msk.bf16.gmra.mrb[80].mxu1 %vm972_vm0, %v8972_v21 }
 0xd7d   : > { %8352 = vmatprep.mubr.msk.bf16.mxu1 %vm972_vm0, %v8973_v22 }
 0xd84   : > { %8353 = vmatmul.mubr.msk.bf16.gmra.mrb[84].mxu1 %vm972_vm0, %v8974_v25 }
 0xd85   : > { %8356 = vmatprep.mubr.msk.bf16.mxu1 %vm972_vm0, %v8975_v26 }
 0xd8c   : > { %8357 = vmatmul.mubr.msk.bf16.gmra.mrb[88].mxu1 %vm972_vm0, %v8976_v27 }
 0xd8d   : > { %8360 = vmatprep.mubr.msk.bf16.mxu1 %vm972_vm0, %v8977_v28 }
 0xd94   : > { %8361 = vmatmul.mubr.msk.bf16.gmra.mrb[92].mxu1 %vm972_vm0, %v8978_v29 }
 0xe2f   : > { %v8334_v34 = vpop.f32.mrb[64].mxu1 }
 0xe30   : > { %v5679_v35 = vpop.f32.mrb[65].mxu1 }
 0xe31   : > { %v8335_v37 = vpop.f32.mrb[66].mxu1 }
 0xe32   : > { %v5839_v48 = vpack.c.bf16 %v8335_v37, %v8334_v34  ;;  %v5682_v39 = vpop.f32.mrb[67].mxu1  ;;  %v7026_v34 = vld [vmem:[%s10395_s5 + $0x8] sm:$0x3] }
 0xe33   : > { %v5838_v40 = vpack.c.bf16 %v5682_v39, %v5679_v35  ;;  %v10198_v35 = vrot.slane %v7026_v34, %v9483_v7  ;;  %v10201_v47 = vrot.slane %v7026_v34, %v9488_v9 }
 0xe35   : > { %5997 = vmatmul.mubr.bf16.vlgmr.msra.gmra.mrb[96].mxu0 %v5838_v40 }
 0xe36   : > { %6006 = vmatprep.mubr.bf16.mxu0 %v9144_v1 }
 0xe37   : > { %v8338_v43 = vpop.f32.mrb[68].mxu1 }
 0xe38   : > { %v5695_v44 = vpop.f32.mrb[69].mxu1 }
 0xe39   : > { %v8339_v46 = vpop.f32.mrb[70].mxu1 }
 0xe3a   : > { %v5841_v10 = vpack.c.bf16 %v8339_v46, %v8338_v43  ;;  %v5698_v51 = vpop.f32.mrb[71].mxu1 }
 0xe3b   : > { %v5840_v52 = vpack.c.bf16 %v5698_v51, %v5695_v44 }
 0xe3d   : > { %6007 = vmatmul.mubr.bf16.gmra.mrb[100].mxu0 %v5839_v48 }
 0xe3e   : > { %6016 = vmatprep.mubr.bf16.mxu0 %v9144_v1 }
 0xe3f   : > { %v8342_v54 = vpop.f32.mrb[72].mxu1 }
 0xe40   : > { %v5711_v55 = vpop.f32.mrb[73].mxu1 }
 0xe41   : > { %v8343_v56 = vpop.f32.mrb[74].mxu1 }
 0xe42   : > { %v5843_v36 = vpack.c.bf16 %v8343_v56, %v8342_v54  ;;  %v5714_v57 = vpop.f32.mrb[75].mxu1 }
 0xe43   : > { %v5842_v58 = vpack.c.bf16 %v5714_v57, %v5711_v55 }
 0xe45   : > { %6017 = vmatmul.mubr.bf16.gmra.mrb[104].mxu0 %v5840_v52 }
 0xe46   : > { %6026 = vmatprep.mubr.bf16.mxu0 %v9144_v1 }
 0xe47   : > { %v8346_v59 = vpop.f32.mrb[76].mxu1 }
 0xe48   : > { %v5727_v62 = vpop.f32.mrb[77].mxu1 }
 0xe49   : > { %v8347_v11 = vpop.f32.mrb[78].mxu1 }
 0xe4a   : > { %v5845_v63 = vpack.c.bf16 %v8347_v11, %v8346_v59  ;;  %v5730_v0 = vpop.f32.mrb[79].mxu1 }
 0xe4b   : > { %v5844_v2 = vpack.c.bf16 %v5730_v0, %v5727_v62 }
 0xe4d   : > { %6027 = vmatmul.mubr.bf16.gmra.mrb[108].mxu0 %v5841_v10 }
 0xe4e   : > { %6036 = vmatprep.mubr.bf16.mxu0 %v9144_v1 }
 0xe4f   : > { %v8350_v3 = vpop.f32.mrb[80].mxu1 }
 0xe50   : > { %v5743_v4 = vpop.f32.mrb[81].mxu1 }
 0xe51   : > { %v8351_v5 = vpop.f32.mrb[82].mxu1 }
 0xe52   : > { %v5847_v50 = vpack.c.bf16 %v8351_v5, %v8350_v3  ;;  %v5746_v6 = vpop.f32.mrb[83].mxu1 }
 0xe53   : > { %v5846_v8 = vpack.c.bf16 %v5746_v6, %v5743_v4 }
 0xe55   : > { %6037 = vmatmul.mubr.bf16.gmra.mrb[112].mxu0 %v5842_v58 }
 0xe56   : > { %6046 = vmatprep.mubr.bf16.mxu0 %v9144_v1 }
 0xe57   : > { %v8354_v12 = vpop.f32.mrb[84].mxu1 }
 0xe58   : > { %v5759_v23 = vpop.f32.mrb[85].mxu1 }
 0xe59   : > { %v8355_v14 = vpop.f32.mrb[86].mxu1 }
 0xe5a   : > { %v5849_v15 = vpack.c.bf16 %v8355_v14, %v8354_v12  ;;  %v5762_v24 = vpop.f32.mrb[87].mxu1 }
 0xe5b   : > { %v5848_v16 = vpack.c.bf16 %v5762_v24, %v5759_v23 }
 0xe5d   : > { %6047 = vmatmul.mubr.bf16.gmra.mrb[116].mxu0 %v5843_v36 }
 0xe5e   : > { %6056 = vmatprep.mubr.bf16.mxu0 %v9144_v1 }
 0xe5f   : > { %v8358_v17 = vpop.f32.mrb[88].mxu1 }
 0xe60   : > { %v5775_v18 = vpop.f32.mrb[89].mxu1 }
 0xe61   : > { %v8359_v19 = vpop.f32.mrb[90].mxu1 }
 0xe62   : > { %v5851_v60 = vpack.c.bf16 %v8359_v19, %v8358_v17  ;;  %v5778_v20 = vpop.f32.mrb[91].mxu1 }
 0xe63   : > { %v5850_v21 = vpack.c.bf16 %v5778_v20, %v5775_v18 }
 0xe65   : > { %6057 = vmatmul.mubr.bf16.gmra.mrb[120].mxu0 %v5844_v2 }
 0xe66   : > { %6066 = vmatprep.mubr.bf16.mxu0 %v9144_v1 }
 0xe67   : > { %v8362_v22 = vpop.f32.mrb[92].mxu1 }
 0xe68   : > { %v5791_v25 = vpop.f32.mrb[93].mxu1 }
 0xe69   : > { %v8363_v26 = vpop.f32.mrb[94].mxu1 }
 0xe6a   : > { %v5853_v27 = vpack.c.bf16 %v8363_v26, %v8362_v22  ;;  %v5794_v28 = vpop.f32.mrb[95].mxu1 }
 0xe6b   : > { %v5852_v29 = vpack.c.bf16 %v5794_v28, %v5791_v25 }
 0xe6d   : > { %6067 = vmatmul.mubr.bf16.gmra.mrb[124].mxu0 %v5845_v63 }
 0xe6e   : > { %6076 = vmatprep.mubr.bf16.mxu0 %v9144_v1 }
 0xe75   : > { %6077 = vmatmul.mubr.bf16.gmra.mrb[128].mxu0 %v5846_v8 }
 0xe76   : > { %6086 = vmatprep.mubr.bf16.mxu0 %v9144_v1 }
 0xe7d   : > { %6087 = vmatmul.mubr.bf16.gmra.mrb[132].mxu0 %v5847_v50 }
 0xe7e   : > { %6096 = vmatprep.mubr.bf16.mxu0 %v9144_v1 }
 0xe85   : > { %6097 = vmatmul.mubr.bf16.gmra.mrb[136].mxu0 %v5848_v16 }
 0xe86   : > { %6106 = vmatprep.mubr.bf16.mxu0 %v9144_v1 }
 0xe8d   : > { %6107 = vmatmul.mubr.bf16.gmra.mrb[140].mxu0 %v5849_v15 }
 0xe8e   : > { %6116 = vmatprep.mubr.bf16.mxu0 %v9144_v1 }
 0xe95   : > { %6117 = vmatmul.mubr.bf16.gmra.mrb[144].mxu0 %v5850_v21 }
 0xe96   : > { %6126 = vmatprep.mubr.bf16.mxu0 %v9144_v1 }
 0xe9d   : > { %6127 = vmatmul.mubr.bf16.gmra.mrb[148].mxu0 %v5851_v60 }
 0xe9e   : > { %6136 = vmatprep.mubr.bf16.mxu0 %v9144_v1 }
 0xea5   : > { %6137 = vmatmul.mubr.bf16.gmra.mrb[152].mxu0 %v5852_v29 }
 0xea6   : > { %6146 = vmatprep.mubr.bf16.mxu0 %v9144_v1 }
 0xead   : > { %6147 = vmatmul.mubr.bf16.gmra.mrb[156].mxu0 %v5853_v27 }
 0xf08   : > { %v5998_v37 = vpop.f32.mrb[96].mxu0 }
 0xf09   : > { %v5999_v38 = vadd.f32 %v5998_v37, %v10198_v35  ;;  %v6000_v48 = vpop.f32.mrb[97].mxu0 }
 0xf0a   : > { %v6001_v39 = vadd.f32 %v6000_v48, %v10201_v47  ;;  %v6002_v40 = vpop.f32.mrb[98].mxu0 }
 0xf0b   : > { %v6003_v1 = vadd.f32 %v6002_v40, %v10198_v35  ;;  %v6004_v41 = vpop.f32.mrb[99].mxu0  ;;  %v6157_v43 = vmax.f32 %v5999_v38, 0.0 }
 0xf0c   : > { %v6005_v42 = vadd.f32 %v6004_v41, %v10201_v47  ;;  %v6158_v45 = vmax.f32 %v6001_v39, 0.0 }
 0xf0d   : > { %v6159_v44 = vmax.f32 %v6003_v1, 0.0 }
 0xf0e   : > { %v6160_v7 = vmax.f32 %v6005_v42, 0.0 }
 0xf0f   : > { %v6221_v46 = vpack.c.bf16 %v6159_v44, %v6157_v43 }
 0xf10   : > { %v6222_v49 = vpack.c.bf16 %v6160_v7, %v6158_v45  ;;  %v6008_v9 = vpop.f32.mrb[100].mxu0 }
 0xf11   : > { %v6009_v10 = vadd.f32 %v6008_v9, %v10198_v35  ;;  %v6010_v51 = vpop.f32.mrb[101].mxu0 }
 0xf12   : > { %v6011_v52 = vadd.f32 %v6010_v51, %v10201_v47  ;;  %v6012_v61 = vpop.f32.mrb[102].mxu0  ;;  %6422 = vmatprep.mubr.bf16.mxu1 %v6222_v49 }
 0xf13   : > { %v6013_v53 = vadd.f32 %v6012_v61, %v10198_v35  ;;  %v6014_v54 = vpop.f32.mrb[103].mxu0  ;;  %6423 = vmatmul.mubr.bf16.vlgmr.msra.gmra.mrb[96].mxu1 %v6221_v46  ;;  %v6161_v56 = vmax.f32 %v6009_v10, 0.0 }
 0xf14   : > { %v6015_v55 = vadd.f32 %v6014_v54, %v10201_v47  ;;  %v6162_v57 = vmax.f32 %v6011_v52, 0.0 }
 0xf15   : > { %v6163_v36 = vmax.f32 %v6013_v53, 0.0 }
 0xf16   : > { %v6164_v58 = vmax.f32 %v6015_v55, 0.0 }
 0xf17   : > { %v6223_v59 = vpack.c.bf16 %v6163_v36, %v6161_v56 }
 0xf18   : > { %v6224_v62 = vpack.c.bf16 %v6164_v58, %v6162_v57  ;;  %v6018_v11 = vpop.f32.mrb[104].mxu0 }
 0xf19   : > { %v6019_v63 = vadd.f32 %v6018_v11, %v10198_v35  ;;  %v6020_v0 = vpop.f32.mrb[105].mxu0 }
 0xf1a   : > { %v6021_v2 = vadd.f32 %v6020_v0, %v10201_v47  ;;  %v6022_v3 = vpop.f32.mrb[106].mxu0  ;;  %6430 = vmatprep.mubr.bf16.mxu1 %v6224_v62 }
 0xf1b   : > { %v6023_v4 = vadd.f32 %v6022_v3, %v10198_v35  ;;  %v6024_v5 = vpop.f32.mrb[107].mxu0  ;;  %6431 = vmatmul.mubr.bf16.gmra.mrb[100].mxu1 %v6223_v59  ;;  %v6165_v6 = vmax.f32 %v6019_v63, 0.0 }
 0xf1c   : > { %v6025_v50 = vadd.f32 %v6024_v5, %v10201_v47  ;;  %v6166_v12 = vmax.f32 %v6021_v2, 0.0 }
 0xf1d   : > { %v6167_v8 = vmax.f32 %v6023_v4, 0.0 }
 0xf1e   : > { %v6168_v23 = vmax.f32 %v6025_v50, 0.0 }
 0xf1f   : > { %v6225_v14 = vpack.c.bf16 %v6167_v8, %v6165_v6 }
 0xf20   : > { %v6226_v15 = vpack.c.bf16 %v6168_v23, %v6166_v12  ;;  %v6028_v24 = vpop.f32.mrb[108].mxu0 }
 0xf21   : > { %v6029_v16 = vadd.f32 %v6028_v24, %v10198_v35  ;;  %v6030_v17 = vpop.f32.mrb[109].mxu0 }
 0xf22   : > { %v6031_v18 = vadd.f32 %v6030_v17, %v10201_v47  ;;  %v6032_v19 = vpop.f32.mrb[110].mxu0  ;;  %6438 = vmatprep.mubr.bf16.mxu1 %v6226_v15 }
 0xf23   : > { %v6033_v60 = vadd.f32 %v6032_v19, %v10198_v35  ;;  %v6034_v20 = vpop.f32.mrb[111].mxu0  ;;  %6439 = vmatmul.mubr.bf16.gmra.mrb[104].mxu1 %v6225_v14  ;;  %v6169_v22 = vmax.f32 %v6029_v16, 0.0 }
 0xf24   : > { %v6035_v21 = vadd.f32 %v6034_v20, %v10201_v47  ;;  %v6170_v26 = vmax.f32 %v6031_v18, 0.0 }
 0xf25   : > { %v6171_v25 = vmax.f32 %v6033_v60, 0.0 }
 0xf26   : > { %v6172_v27 = vmax.f32 %v6035_v21, 0.0 }
 0xf27   : > { %v6227_v28 = vpack.c.bf16 %v6171_v25, %v6169_v22 }
 0xf28   : > { %v6228_v29 = vpack.c.bf16 %v6172_v27, %v6170_v26  ;;  %v6038_v30 = vpop.f32.mrb[112].mxu0 }
 0xf29   : > { %v6039_v31 = vadd.f32 %v6038_v30, %v10198_v35  ;;  %v6040_v32 = vpop.f32.mrb[113].mxu0 }
 0xf2a   : > { %v6041_v13 = vadd.f32 %v6040_v32, %v10201_v47  ;;  %v6042_v33 = vpop.f32.mrb[114].mxu0  ;;  %6446 = vmatprep.mubr.bf16.mxu1 %v6228_v29 }
 0xf2b   : > { %v6043_v34 = vadd.f32 %v6042_v33, %v10198_v35  ;;  %v6044_v37 = vpop.f32.mrb[115].mxu0  ;;  %6447 = vmatmul.mubr.bf16.gmra.mrb[108].mxu1 %v6227_v28  ;;  %v6173_v48 = vmax.f32 %v6039_v31, 0.0 }
 0xf2c   : > { %v6045_v38 = vadd.f32 %v6044_v37, %v10201_v47  ;;  %v6174_v40 = vmax.f32 %v6041_v13, 0.0 }
 0xf2d   : > { %v6175_v39 = vmax.f32 %v6043_v34, 0.0 }
 0xf2e   : > { %v6176_v1 = vmax.f32 %v6045_v38, 0.0 }
 0xf2f   : > { %v6229_v41 = vpack.c.bf16 %v6175_v39, %v6173_v48 }
 0xf30   : > { %v6230_v42 = vpack.c.bf16 %v6176_v1, %v6174_v40  ;;  %v6048_v43 = vpop.f32.mrb[116].mxu0 }
 0xf31   : > { %v6049_v44 = vadd.f32 %v6048_v43, %v10198_v35  ;;  %v6050_v45 = vpop.f32.mrb[117].mxu0 }
 0xf32   : > { %v6051_v7 = vadd.f32 %v6050_v45, %v10201_v47  ;;  %v6052_v46 = vpop.f32.mrb[118].mxu0  ;;  %6454 = vmatprep.mubr.bf16.mxu1 %v6230_v42 }
 0xf33   : > { %v6053_v49 = vadd.f32 %v6052_v46, %v10198_v35  ;;  %v6054_v9 = vpop.f32.mrb[119].mxu0  ;;  %6455 = vmatmul.mubr.bf16.gmra.mrb[112].mxu1 %v6229_v41  ;;  %v6177_v51 = vmax.f32 %v6049_v44, 0.0 }
 0xf34   : > { %v6055_v10 = vadd.f32 %v6054_v9, %v10201_v47  ;;  %v6178_v61 = vmax.f32 %v6051_v7, 0.0 }
 0xf35   : > { %v6179_v52 = vmax.f32 %v6053_v49, 0.0 }
 0xf36   : > { %v6180_v53 = vmax.f32 %v6055_v10, 0.0 }
 0xf37   : > { %v6231_v54 = vpack.c.bf16 %v6179_v52, %v6177_v51 }
 0xf38   : > { %v6232_v55 = vpack.c.bf16 %v6180_v53, %v6178_v61  ;;  %v6058_v56 = vpop.f32.mrb[120].mxu0 }
 0xf39   : > { %v6059_v36 = vadd.f32 %v6058_v56, %v10198_v35  ;;  %v6060_v57 = vpop.f32.mrb[121].mxu0 }
 0xf3a   : > { %v6061_v58 = vadd.f32 %v6060_v57, %v10201_v47  ;;  %v6062_v59 = vpop.f32.mrb[122].mxu0  ;;  %6462 = vmatprep.mubr.bf16.mxu1 %v6232_v55 }
 0xf3b   : > { %v6063_v62 = vadd.f32 %v6062_v59, %v10198_v35  ;;  %v6064_v11 = vpop.f32.mrb[123].mxu0  ;;  %6463 = vmatmul.mubr.bf16.gmra.mrb[116].mxu1 %v6231_v54  ;;  %v6181_v0 = vmax.f32 %v6059_v36, 0.0 }
 0xf3c   : > { %v6065_v63 = vadd.f32 %v6064_v11, %v10201_v47  ;;  %v6182_v3 = vmax.f32 %v6061_v58, 0.0 }
 0xf3d   : > { %v6183_v2 = vmax.f32 %v6063_v62, 0.0 }
 0xf3e   : > { %v6184_v4 = vmax.f32 %v6065_v63, 0.0 }
 0xf3f   : > { %v6233_v5 = vpack.c.bf16 %v6183_v2, %v6181_v0 }
 0xf40   : > { %v6234_v50 = vpack.c.bf16 %v6184_v4, %v6182_v3  ;;  %v6068_v6 = vpop.f32.mrb[124].mxu0 }
 0xf41   : > { %v6069_v8 = vadd.f32 %v6068_v6, %v10198_v35  ;;  %v6070_v12 = vpop.f32.mrb[125].mxu0 }
 0xf42   : > { %v6071_v23 = vadd.f32 %v6070_v12, %v10201_v47  ;;  %v6072_v14 = vpop.f32.mrb[126].mxu0  ;;  %6470 = vmatprep.mubr.bf16.mxu1 %v6234_v50 }
 0xf43   : > { %v6073_v15 = vadd.f32 %v6072_v14, %v10198_v35  ;;  %v6074_v24 = vpop.f32.mrb[127].mxu0  ;;  %6471 = vmatmul.mubr.bf16.gmra.mrb[120].mxu1 %v6233_v5  ;;  %v6185_v17 = vmax.f32 %v6069_v8, 0.0 }
 0xf44   : > { %v6075_v16 = vadd.f32 %v6074_v24, %v10201_v47  ;;  %v6186_v19 = vmax.f32 %v6071_v23, 0.0 }
 0xf45   : > { %v6187_v18 = vmax.f32 %v6073_v15, 0.0 }
 0xf46   : > { %v6188_v60 = vmax.f32 %v6075_v16, 0.0 }
 0xf47   : > { %v6235_v20 = vpack.c.bf16 %v6187_v18, %v6185_v17 }
 0xf48   : > { %v6236_v21 = vpack.c.bf16 %v6188_v60, %v6186_v19  ;;  %v6078_v22 = vpop.f32.mrb[128].mxu0 }
 0xf49   : > { %v6079_v25 = vadd.f32 %v6078_v22, %v10198_v35  ;;  %v6080_v26 = vpop.f32.mrb[129].mxu0 }
 0xf4a   : > { %v6081_v27 = vadd.f32 %v6080_v26, %v10201_v47  ;;  %v6082_v28 = vpop.f32.mrb[130].mxu0  ;;  %6478 = vmatprep.mubr.bf16.mxu1 %v6236_v21 }
 0xf4b   : > { %v6083_v29 = vadd.f32 %v6082_v28, %v10198_v35  ;;  %v6084_v30 = vpop.f32.mrb[131].mxu0  ;;  %6479 = vmatmul.mubr.bf16.gmra.mrb[124].mxu1 %v6235_v20  ;;  %v6189_v32 = vmax.f32 %v6079_v25, 0.0 }
 0xf4c   : > { %v6085_v31 = vadd.f32 %v6084_v30, %v10201_v47  ;;  %v6190_v33 = vmax.f32 %v6081_v27, 0.0 }
 0xf4d   : > { %v6191_v13 = vmax.f32 %v6083_v29, 0.0 }
 0xf4e   : > { %v6192_v34 = vmax.f32 %v6085_v31, 0.0 }
 0xf4f   : > { %v6237_v37 = vpack.c.bf16 %v6191_v13, %v6189_v32 }
 0xf50   : > { %v6238_v38 = vpack.c.bf16 %v6192_v34, %v6190_v33  ;;  %v6088_v48 = vpop.f32.mrb[132].mxu0 }
 0xf51   : > { %v6089_v39 = vadd.f32 %v6088_v48, %v10198_v35  ;;  %v6090_v40 = vpop.f32.mrb[133].mxu0 }
 0xf52   : > { %v6091_v1 = vadd.f32 %v6090_v40, %v10201_v47  ;;  %v6092_v41 = vpop.f32.mrb[134].mxu0  ;;  %6486 = vmatprep.mubr.bf16.mxu1 %v6238_v38 }
 0xf53   : > { %v6093_v42 = vadd.f32 %v6092_v41, %v10198_v35  ;;  %v6094_v43 = vpop.f32.mrb[135].mxu0  ;;  %6487 = vmatmul.mubr.bf16.gmra.mrb[128].mxu1 %v6237_v37  ;;  %v6193_v45 = vmax.f32 %v6089_v39, 0.0 }
 0xf54   : > { %v6095_v44 = vadd.f32 %v6094_v43, %v10201_v47  ;;  %v6194_v46 = vmax.f32 %v6091_v1, 0.0 }
 0xf55   : > { %v6195_v7 = vmax.f32 %v6093_v42, 0.0 }
 0xf56   : > { %v6196_v49 = vmax.f32 %v6095_v44, 0.0 }
 0xf57   : > { %v6239_v9 = vpack.c.bf16 %v6195_v7, %v6193_v45 }
 0xf58   : > { %v6240_v10 = vpack.c.bf16 %v6196_v49, %v6194_v46  ;;  %v6098_v51 = vpop.f32.mrb[136].mxu0 }
 0xf59   : > { %v6099_v52 = vadd.f32 %v6098_v51, %v10198_v35  ;;  %v6100_v61 = vpop.f32.mrb[137].mxu0 }
 0xf5a   : > { %v6101_v53 = vadd.f32 %v6100_v61, %v10201_v47  ;;  %v6102_v54 = vpop.f32.mrb[138].mxu0  ;;  %6494 = vmatprep.mubr.bf16.mxu1 %v6240_v10 }
 0xf5b   : > { %v6103_v55 = vadd.f32 %v6102_v54, %v10198_v35  ;;  %v6104_v56 = vpop.f32.mrb[139].mxu0  ;;  %6495 = vmatmul.mubr.bf16.gmra.mrb[132].mxu1 %v6239_v9  ;;  %v6197_v57 = vmax.f32 %v6099_v52, 0.0 }
 0xf5c   : > { %v6105_v36 = vadd.f32 %v6104_v56, %v10201_v47  ;;  %v6198_v59 = vmax.f32 %v6101_v53, 0.0 }
 0xf5d   : > { %v6199_v58 = vmax.f32 %v6103_v55, 0.0 }
 0xf5e   : > { %v6200_v62 = vmax.f32 %v6105_v36, 0.0 }
 0xf5f   : > { %v6241_v11 = vpack.c.bf16 %v6199_v58, %v6197_v57 }
 0xf60   : > { %v6242_v63 = vpack.c.bf16 %v6200_v62, %v6198_v59  ;;  %v6108_v0 = vpop.f32.mrb[140].mxu0 }
 0xf61   : > { %v6109_v2 = vadd.f32 %v6108_v0, %v10198_v35  ;;  %v6110_v3 = vpop.f32.mrb[141].mxu0 }
 0xf62   : > { %v6111_v4 = vadd.f32 %v6110_v3, %v10201_v47  ;;  %v6112_v5 = vpop.f32.mrb[142].mxu0  ;;  %6502 = vmatprep.mubr.bf16.mxu1 %v6242_v63 }
 0xf63   : > { %v6113_v50 = vadd.f32 %v6112_v5, %v10198_v35  ;;  %v6114_v6 = vpop.f32.mrb[143].mxu0  ;;  %6503 = vmatmul.mubr.bf16.gmra.mrb[136].mxu1 %v6241_v11  ;;  %v6201_v12 = vmax.f32 %v6109_v2, 0.0 }
 0xf64   : > { %v6115_v8 = vadd.f32 %v6114_v6, %v10201_v47  ;;  %v6202_v14 = vmax.f32 %v6111_v4, 0.0 }
 0xf65   : > { %v6203_v23 = vmax.f32 %v6113_v50, 0.0 }
 0xf66   : > { %v6204_v15 = vmax.f32 %v6115_v8, 0.0 }
 0xf67   : > { %v6243_v24 = vpack.c.bf16 %v6203_v23, %v6201_v12  ;;  %v10271_v23 = vld [vmem:[%s10397_s7 + $0x4] ss:$0 sm:$0xff] }
 0xf68   : > { %v6244_v16 = vpack.c.bf16 %v6204_v15, %v6202_v14  ;;  %v6118_v17 = vpop.f32.mrb[144].mxu0 }
 0xf69   : > { %v6119_v18 = vadd.f32 %v6118_v17, %v10198_v35  ;;  %v6120_v19 = vpop.f32.mrb[145].mxu0 }
 0xf6a   : > { %v6121_v60 = vadd.f32 %v6120_v19, %v10201_v47  ;;  %v6122_v20 = vpop.f32.mrb[146].mxu0  ;;  %6510 = vmatprep.mubr.bf16.mxu1 %v6244_v16 }
 0xf6b   : > { %v6123_v21 = vadd.f32 %v6122_v20, %v10198_v35  ;;  %v6124_v22 = vpop.f32.mrb[147].mxu0  ;;  %6511 = vmatmul.mubr.bf16.gmra.mrb[140].mxu1 %v6243_v24  ;;  %v6205_v26 = vmax.f32 %v6119_v18, 0.0 }
 0xf6c   : > { %v6125_v25 = vadd.f32 %v6124_v22, %v10201_v47  ;;  %v6206_v28 = vmax.f32 %v6121_v60, 0.0 }
 0xf6d   : > { %v6207_v27 = vmax.f32 %v6123_v21, 0.0 }
 0xf6e   : > { %v6208_v29 = vmax.f32 %v6125_v25, 0.0 }
 0xf6f   : > { %v6245_v30 = vpack.c.bf16 %v6207_v27, %v6205_v26 }
 0xf70   : > { %v6246_v31 = vpack.c.bf16 %v6208_v29, %v6206_v28  ;;  %v6128_v32 = vpop.f32.mrb[148].mxu0 }
 0xf71   : > { %v6129_v13 = vadd.f32 %v6128_v32, %v10198_v35  ;;  %v6130_v33 = vpop.f32.mrb[149].mxu0 }
 0xf72   : > { %v6131_v34 = vadd.f32 %v6130_v33, %v10201_v47  ;;  %v6132_v37 = vpop.f32.mrb[150].mxu0  ;;  %6518 = vmatprep.mubr.bf16.mxu1 %v6246_v31 }
 0xf73   : > { %v6133_v38 = vadd.f32 %v6132_v37, %v10198_v35  ;;  %v6134_v48 = vpop.f32.mrb[151].mxu0  ;;  %6519 = vmatmul.mubr.bf16.gmra.mrb[144].mxu1 %v6245_v30  ;;  %v6209_v40 = vmax.f32 %v6129_v13, 0.0 }
 0xf74   : > { %v6135_v39 = vadd.f32 %v6134_v48, %v10201_v47  ;;  %v6210_v41 = vmax.f32 %v6131_v34, 0.0 }
 0xf75   : > { %v6211_v1 = vmax.f32 %v6133_v38, 0.0 }
 0xf76   : > { %v6212_v42 = vmax.f32 %v6135_v39, 0.0 }
 0xf77   : > { %v6247_v43 = vpack.c.bf16 %v6211_v1, %v6209_v40 }
 0xf78   : > { %v6248_v44 = vpack.c.bf16 %v6212_v42, %v6210_v41  ;;  %v6138_v45 = vpop.f32.mrb[152].mxu0 }
 0xf79   : > { %v6139_v7 = vadd.f32 %v6138_v45, %v10198_v35  ;;  %v6140_v46 = vpop.f32.mrb[153].mxu0 }
 0xf7a   : > { %v6141_v49 = vadd.f32 %v6140_v46, %v10201_v47  ;;  %v6142_v9 = vpop.f32.mrb[154].mxu0  ;;  %6526 = vmatprep.mubr.bf16.mxu1 %v6248_v44 }
 0xf7b   : > { %v6143_v10 = vadd.f32 %v6142_v9, %v10198_v35  ;;  %v6144_v51 = vpop.f32.mrb[155].mxu0  ;;  %6527 = vmatmul.mubr.bf16.gmra.mrb[148].mxu1 %v6247_v43  ;;  %v6213_v61 = vmax.f32 %v6139_v7, 0.0 }
 0xf7c   : > { %v6145_v52 = vadd.f32 %v6144_v51, %v10201_v47  ;;  %v6214_v54 = vmax.f32 %v6141_v49, 0.0 }
 0xf7d   : > { %v6215_v53 = vmax.f32 %v6143_v10, 0.0 }
 0xf7e   : > { %v6216_v55 = vmax.f32 %v6145_v52, 0.0 }
 0xf7f   : > { %v6249_v56 = vpack.c.bf16 %v6215_v53, %v6213_v61 }
 0xf80   : > { %v6250_v36 = vpack.c.bf16 %v6216_v55, %v6214_v54  ;;  %v6148_v57 = vpop.f32.mrb[156].mxu0 }
 0xf81   : > { %v6149_v58 = vadd.f32 %v6148_v57, %v10198_v35  ;;  %v6150_v59 = vpop.f32.mrb[157].mxu0 }
 0xf82   : > { %v6151_v62 = vadd.f32 %v6150_v59, %v10201_v47  ;;  %v6152_v11 = vpop.f32.mrb[158].mxu0  ;;  %6534 = vmatprep.mubr.bf16.mxu1 %v6250_v36 }
 0xf83   : > { %v6153_v63 = vadd.f32 %v6152_v11, %v10198_v35  ;;  %v6154_v0 = vpop.f32.mrb[159].mxu0  ;;  %6535 = vmatmul.mubr.bf16.gmra.mrb[152].mxu1 %v6249_v56  ;;  %v6217_v3 = vmax.f32 %v6149_v58, 0.0 }
 0xf84   : > { %v6155_v2 = vadd.f32 %v6154_v0, %v10201_v47  ;;  %v6218_v5 = vmax.f32 %v6151_v62, 0.0 }
 0xf85   : > { %v6219_v4 = vmax.f32 %v6153_v63, 0.0 }
 0xf86   : > { %v6220_v50 = vmax.f32 %v6155_v2, 0.0 }
 0xf87   : > { %v6251_v6 = vpack.c.bf16 %v6219_v4, %v6217_v3 }
 0xf88   : > { %v6252_v8 = vpack.c.bf16 %v6220_v50, %v6218_v5 }
 0xf8a   : > { %6542 = vmatprep.mubr.bf16.mxu1 %v6252_v8 }
 0xf8b   : > { %6543 = vmatmul.mubr.bf16.gmra.mrb[156].mxu1 %v6251_v6 }
 0xfe6   : > { %v7778_v12 = vpop.f32.mrb[96].mxu1 }
 0xfe7   : > { %v7779_v35 = vpop.f32.mrb[97].mxu1 }
 0xfe8   : > { %v7780_v14 = vadd.f32 %v7779_v35, %v7778_v12  ;;  %v7781_v15 = vpop.f32.mrb[98].mxu1 }
 0xfe9   : > { %v7782_v24 = vpop.f32.mrb[99].mxu1 }
 0xfea   : > { %v6425_v47 = vadd.f32 %v7780_v14, %v10271_v23  ;;  %v7783_v16 = vadd.f32 %v7782_v24, %v7781_v15 }
 0xfec   : > { %6551 = vst [vmem:[%s10274_s15] sm:$0xff] %v6425_v47  ;;  %v6428_v17 = vadd.f32 %v7783_v16, %v10271_v23 }
 0xfee   : > { %6552 = vst [vmem:[%s10274_s15 + $0x8] sm:$0xff] %v6428_v17  ;;  %v7784_v18 = vpop.f32.mrb[100].mxu1 }
 0xfef   : > { %v7785_v19 = vpop.f32.mrb[101].mxu1 }
 0xff0   : > { %v7786_v60 = vadd.f32 %v7785_v19, %v7784_v18  ;;  %v7787_v20 = vpop.f32.mrb[102].mxu1 }
 0xff1   : > { %v7788_v21 = vpop.f32.mrb[103].mxu1 }
 0xff2   : > { %v6433_v22 = vadd.f32 %v7786_v60, %v10271_v23  ;;  %v7789_v25 = vadd.f32 %v7788_v21, %v7787_v20 }
 0xff4   : > { %6553 = vst [vmem:[%s10274_s15 + $0x10] sm:$0xff] %v6433_v22  ;;  %v6436_v26 = vadd.f32 %v7789_v25, %v10271_v23 }
 0xff6   : > { %6554 = vst [vmem:[%s10274_s15 + $0x18] sm:$0xff] %v6436_v26  ;;  %v7790_v27 = vpop.f32.mrb[104].mxu1 }
 0xff7   : > { %v7791_v28 = vpop.f32.mrb[105].mxu1 }
 0xff8   : > { %v7792_v29 = vadd.f32 %v7791_v28, %v7790_v27  ;;  %v7793_v30 = vpop.f32.mrb[106].mxu1 }
 0xff9   : > { %v7794_v31 = vpop.f32.mrb[107].mxu1 }
 0xffa   : > { %v6441_v32 = vadd.f32 %v7792_v29, %v10271_v23  ;;  %v7795_v13 = vadd.f32 %v7794_v31, %v7793_v30 }
 0xffc   : > { %6555 = vst [vmem:[%s10274_s15 + $0x20] sm:$0xff] %v6441_v32  ;;  %v6444_v33 = vadd.f32 %v7795_v13, %v10271_v23 }
 0xffe   : > { %6556 = vst [vmem:[%s10274_s15 + $0x28] sm:$0xff] %v6444_v33  ;;  %v7796_v34 = vpop.f32.mrb[108].mxu1 }
 0xfff   : > { %v7797_v37 = vpop.f32.mrb[109].mxu1 }
0x1000   : > { %v7798_v38 = vadd.f32 %v7797_v37, %v7796_v34  ;;  %v7799_v48 = vpop.f32.mrb[110].mxu1 }
0x1001   : > { %v7800_v39 = vpop.f32.mrb[111].mxu1 }
0x1002   : > { %v6449_v40 = vadd.f32 %v7798_v38, %v10271_v23  ;;  %v7801_v1 = vadd.f32 %v7800_v39, %v7799_v48 }
0x1004   : > { %6557 = vst [vmem:[%s10274_s15 + $0x30] sm:$0xff] %v6449_v40  ;;  %v6452_v41 = vadd.f32 %v7801_v1, %v10271_v23 }
0x1006   : > { %6558 = vst [vmem:[%s10274_s15 + $0x38] sm:$0xff] %v6452_v41  ;;  %v7802_v42 = vpop.f32.mrb[112].mxu1 }
0x1007   : > { %v7803_v43 = vpop.f32.mrb[113].mxu1 }
0x1008   : > { %v7804_v44 = vadd.f32 %v7803_v43, %v7802_v42  ;;  %v7805_v45 = vpop.f32.mrb[114].mxu1 }
0x1009   : > { %v7806_v7 = vpop.f32.mrb[115].mxu1 }
0x100a   : > { %v6457_v46 = vadd.f32 %v7804_v44, %v10271_v23  ;;  %v7807_v49 = vadd.f32 %v7806_v7, %v7805_v45 }
0x100c   : > { %6559 = vst [vmem:[%s10274_s15 + $0x40] sm:$0xff] %v6457_v46  ;;  %v6460_v9 = vadd.f32 %v7807_v49, %v10271_v23 }
0x100e   : > { %6560 = vst [vmem:[%s10274_s15 + $0x48] sm:$0xff] %v6460_v9  ;;  %v7808_v10 = vpop.f32.mrb[116].mxu1 }
0x100f   : > { %v7809_v51 = vpop.f32.mrb[117].mxu1 }
0x1010   : > { %v7810_v52 = vadd.f32 %v7809_v51, %v7808_v10  ;;  %v7811_v61 = vpop.f32.mrb[118].mxu1 }
0x1011   : > { %v7812_v53 = vpop.f32.mrb[119].mxu1 }
0x1012   : > { %v6465_v54 = vadd.f32 %v7810_v52, %v10271_v23  ;;  %v7813_v55 = vadd.f32 %v7812_v53, %v7811_v61 }
0x1014   : > { %6561 = vst [vmem:[%s10274_s15 + $0x50] sm:$0xff] %v6465_v54  ;;  %v6468_v56 = vadd.f32 %v7813_v55, %v10271_v23 }
0x1016   : > { %6562 = vst [vmem:[%s10274_s15 + $0x58] sm:$0xff] %v6468_v56  ;;  %v7814_v36 = vpop.f32.mrb[120].mxu1 }
0x1017   : > { %v7815_v57 = vpop.f32.mrb[121].mxu1 }
0x1018   : > { %v7816_v58 = vadd.f32 %v7815_v57, %v7814_v36  ;;  %v7817_v59 = vpop.f32.mrb[122].mxu1 }
0x1019   : > { %v7818_v62 = vpop.f32.mrb[123].mxu1 }
0x101a   : > { %v6473_v11 = vadd.f32 %v7816_v58, %v10271_v23  ;;  %v7819_v63 = vadd.f32 %v7818_v62, %v7817_v59 }
0x101c   : > { %6563 = vst [vmem:[%s10274_s15 + $0x60] sm:$0xff] %v6473_v11  ;;  %v6476_v0 = vadd.f32 %v7819_v63, %v10271_v23 }
0x101e   : > { %6564 = vst [vmem:[%s10274_s15 + $0x68] sm:$0xff] %v6476_v0  ;;  %v7820_v2 = vpop.f32.mrb[124].mxu1 }
0x101f   : > { %v7821_v3 = vpop.f32.mrb[125].mxu1 }
0x1020   : > { %v7822_v4 = vadd.f32 %v7821_v3, %v7820_v2  ;;  %v7823_v5 = vpop.f32.mrb[126].mxu1 }
0x1021   : > { %v7824_v50 = vpop.f32.mrb[127].mxu1 }
0x1022   : > { %v6481_v6 = vadd.f32 %v7822_v4, %v10271_v23  ;;  %v7825_v8 = vadd.f32 %v7824_v50, %v7823_v5 }
0x1024   : > { %6565 = vst [vmem:[%s10274_s15 + $0x70] sm:$0xff] %v6481_v6  ;;  %v6484_v12 = vadd.f32 %v7825_v8, %v10271_v23 }
0x1026   : > { %6566 = vst [vmem:[%s10274_s15 + $0x78] sm:$0xff] %v6484_v12  ;;  %v7826_v35 = vpop.f32.mrb[128].mxu1 }
0x1027   : > { %v7827_v14 = vpop.f32.mrb[129].mxu1 }
0x1028   : > { %v7828_v15 = vadd.f32 %v7827_v14, %v7826_v35  ;;  %v7829_v24 = vpop.f32.mrb[130].mxu1 }
0x1029   : > { %v7830_v47 = vpop.f32.mrb[131].mxu1 }
0x102a   : > { %v6489_v16 = vadd.f32 %v7828_v15, %v10271_v23  ;;  %v7831_v17 = vadd.f32 %v7830_v47, %v7829_v24 }
0x102c   : > { %6567 = vst [vmem:[%s10274_s15 + $0x80] sm:$0xff] %v6489_v16  ;;  %v6492_v18 = vadd.f32 %v7831_v17, %v10271_v23 }
0x102e   : > { %6568 = vst [vmem:[%s10274_s15 + $0x88] sm:$0xff] %v6492_v18  ;;  %v7832_v19 = vpop.f32.mrb[132].mxu1 }
0x102f   : > { %v7833_v60 = vpop.f32.mrb[133].mxu1 }
0x1030   : > { %v7834_v20 = vadd.f32 %v7833_v60, %v7832_v19  ;;  %v7835_v21 = vpop.f32.mrb[134].mxu1 }
0x1031   : > { %v7836_v22 = vpop.f32.mrb[135].mxu1 }
0x1032   : > { %v6497_v25 = vadd.f32 %v7834_v20, %v10271_v23  ;;  %v7837_v26 = vadd.f32 %v7836_v22, %v7835_v21 }
0x1034   : > { %6569 = vst [vmem:[%s10274_s15 + $0x90] sm:$0xff] %v6497_v25  ;;  %v6500_v27 = vadd.f32 %v7837_v26, %v10271_v23 }
0x1036   : > { %6570 = vst [vmem:[%s10274_s15 + $0x98] sm:$0xff] %v6500_v27  ;;  %v7838_v28 = vpop.f32.mrb[136].mxu1 }
0x1037   : > { %v7839_v29 = vpop.f32.mrb[137].mxu1 }
0x1038   : > { %v7840_v30 = vadd.f32 %v7839_v29, %v7838_v28  ;;  %v7841_v31 = vpop.f32.mrb[138].mxu1 }
0x1039   : > { %v7842_v32 = vpop.f32.mrb[139].mxu1 }
0x103a   : > { %v6505_v13 = vadd.f32 %v7840_v30, %v10271_v23  ;;  %v7843_v33 = vadd.f32 %v7842_v32, %v7841_v31 }
0x103c   : > { %6571 = vst [vmem:[%s10274_s15 + $0xa0] sm:$0xff] %v6505_v13  ;;  %v6508_v34 = vadd.f32 %v7843_v33, %v10271_v23 }
0x103e   : > { %6572 = vst [vmem:[%s10274_s15 + $0xa8] sm:$0xff] %v6508_v34  ;;  %v7844_v37 = vpop.f32.mrb[140].mxu1 }
0x103f   : > { %v7845_v38 = vpop.f32.mrb[141].mxu1 }
0x1040   : > { %v7846_v48 = vadd.f32 %v7845_v38, %v7844_v37  ;;  %v7847_v39 = vpop.f32.mrb[142].mxu1 }
0x1041   : > { %v7848_v40 = vpop.f32.mrb[143].mxu1 }
0x1042   : > { %v6513_v1 = vadd.f32 %v7846_v48, %v10271_v23  ;;  %v7849_v41 = vadd.f32 %v7848_v40, %v7847_v39 }
0x1044   : > { %6573 = vst [vmem:[%s10274_s15 + $0xb0] sm:$0xff] %v6513_v1  ;;  %v6516_v42 = vadd.f32 %v7849_v41, %v10271_v23 }
0x1046   : > { %6574 = vst [vmem:[%s10274_s15 + $0xb8] sm:$0xff] %v6516_v42  ;;  %v7850_v43 = vpop.f32.mrb[144].mxu1 }
0x1047   : > { %v7851_v44 = vpop.f32.mrb[145].mxu1 }
0x1048   : > { %v7852_v45 = vadd.f32 %v7851_v44, %v7850_v43  ;;  %v7853_v7 = vpop.f32.mrb[146].mxu1 }
0x1049   : > { %v7854_v46 = vpop.f32.mrb[147].mxu1 }
0x104a   : > { %v6521_v49 = vadd.f32 %v7852_v45, %v10271_v23  ;;  %v7855_v9 = vadd.f32 %v7854_v46, %v7853_v7 }
0x104c   : > { %6575 = vst [vmem:[%s10274_s15 + $0xc0] sm:$0xff] %v6521_v49  ;;  %v6524_v10 = vadd.f32 %v7855_v9, %v10271_v23 }
0x104e   : > { %6576 = vst [vmem:[%s10274_s15 + $0xc8] sm:$0xff] %v6524_v10  ;;  %v7856_v51 = vpop.f32.mrb[148].mxu1 }
0x104f   : > { %v7857_v52 = vpop.f32.mrb[149].mxu1 }
0x1050   : > { %v7858_v61 = vadd.f32 %v7857_v52, %v7856_v51  ;;  %v7859_v53 = vpop.f32.mrb[150].mxu1 }
0x1051   : > { %v7860_v54 = vpop.f32.mrb[151].mxu1 }
0x1052   : > { %v6529_v55 = vadd.f32 %v7858_v61, %v10271_v23  ;;  %v7861_v56 = vadd.f32 %v7860_v54, %v7859_v53 }
0x1054   : > { %6577 = vst [vmem:[%s10274_s15 + $0xd0] sm:$0xff] %v6529_v55  ;;  %v6532_v36 = vadd.f32 %v7861_v56, %v10271_v23 }
0x1056   : > { %6578 = vst [vmem:[%s10274_s15 + $0xd8] sm:$0xff] %v6532_v36  ;;  %v7862_v57 = vpop.f32.mrb[152].mxu1 }
0x1057   : > { %v7863_v58 = vpop.f32.mrb[153].mxu1 }
0x1058   : > { %v7864_v59 = vadd.f32 %v7863_v58, %v7862_v57  ;;  %v7865_v62 = vpop.f32.mrb[154].mxu1 }
0x1059   : > { %v7866_v11 = vpop.f32.mrb[155].mxu1 }
0x105a   : > { %v6537_v63 = vadd.f32 %v7864_v59, %v10271_v23  ;;  %v7867_v0 = vadd.f32 %v7866_v11, %v7865_v62 }
0x105c   : > { %6579 = vst [vmem:[%s10274_s15 + $0xe0] sm:$0xff] %v6537_v63  ;;  %v6540_v2 = vadd.f32 %v7867_v0, %v10271_v23 }
0x105e   : > { %6580 = vst [vmem:[%s10274_s15 + $0xe8] sm:$0xff] %v6540_v2  ;;  %v7868_v3 = vpop.f32.mrb[156].mxu1 }
0x105f   : > { %v7869_v4 = vpop.f32.mrb[157].mxu1 }
0x1060   : > { %v7870_v5 = vadd.f32 %v7869_v4, %v7868_v3  ;;  %v7871_v50 = vpop.f32.mrb[158].mxu1 }
0x1061   : > { %v7872_v6 = vpop.f32.mrb[159].mxu1 }
0x1062   : > { %v6545_v8 = vadd.f32 %v7870_v5, %v10271_v23  ;;  %v7873_v12 = vadd.f32 %v7872_v6, %v7871_v50 }
0x1064   : > { %6581 = vst [vmem:[%s10274_s15 + $0xf0] sm:$0xff] %v6545_v8  ;;  %v6548_v35 = vadd.f32 %v7873_v12, %v10271_v23 }
0x1066   : > { %6582 = vst [vmem:[%s10274_s15 + $0xf8] sm:$0xff] %v6548_v35 }
0x1067   : > { %9078 = shalt.err (!%p9075_p13)
}
0x1068   : > { %s9079_s22 = scalar_lea.hbm %s10341_s10, 4096  ;;  %s9083_s26 = scalar_lea.hbm %s10398_s8, 8192 }
0x1069   : > { %p9080_p6 = scmp.ne.s32.totalorder %s10341_s10, %s9079_s22  ;;  %p9084_p7 = scmp.lt.u32.totalorder %s10341_s10, %s10398_s8 }
0x106a   : > { %p9085_p8 = scmp.lt.u32.totalorder %s9083_s26, %s9079_s22  ;;  %p9087_p0 = scmp.lt.u32.totalorder %s9079_s22, %s10341_s10 }
0x106b   : > { %p9081_p10 = pnand %p9080_p6, %p10416_p1 }
0x106c   : > { %p9086_p11 = por %p9085_p8, %p9084_p7 }
0x106d   : > { %p9082_p4 = pneg %p9081_p10 }
0x106e   : > { %p9088_p3 = por %p9087_p0, %p9086_p11 }
0x1070   : > { %p9089_p5 = pnand %p9088_p3, %p9082_p4 }
0x1072   : > { %9092 = shalt.err (!%p9089_p5)
}
0x1073   : > { %s9146_s17 = smov 128   ;;  %s9147_s18 = smov 8  }
0x1074   : > { %8534 = dma.vmem_to_hbm [thread:$0]  (%p10416_p1), %s10343_s24, 4096, %s10341_s10, %s6584_s9, %s9146_s17, %s9146_s17, %s9147_s18  }
0x1075 PF: > { %s6612_s14 = sand.u32 1, %s9123_s27   ;;  %p10417_p9 = scmp.ne.s32.totalorder %s10405_s12, 0 }
0x1076   : > { %p10418_p12 = scmp.ge.s32.totalorder %s9135_s30, 2  ;;  %s6613_s21 = scalar_lea.sflag [#allocation4], %s6612_s14 }
0x1078   : > { %p8548_p2 = pnand %p10418_p12, %p10417_p9 }
0x107a   : > { %9118 = dma.done.wait (!%p8548_p2), %s6613_s21, 4096  }
0x107b   : > { %9120 = vsyncadd (!%p8548_p2), %s6613_s21, 4294963200  ;;  %p22_p13 = scmp.ge.s32.totalorder %s9306_s20, 4   ;;  %s10419_s27 = smov %s9127_s28 }
0x107c   : > { %s10420_s28 = smov %s9131_s29  ;;  %s10421_s29 = smov %s9315_s23 }
0x107d   : > { %s10422_s30 = smov %s9306_s20  ;;  %24 = sbr.rel (!%p22_p13) target bundleno = 6 (0x6), region = 132 }
0x1084   :  { %6618 = vsyncpa [#allocation3], 1 }
0x1085   :  { %6620 = vsyncpa [#allocation3 + $0x1], 1 }
0x1086   :  { %6621 = vsyncpa [#allocation6], 1 }
0x1087   :  { %6622 = vsyncpa [#allocation4], 1 }
0x1088   :  { %6624 = vsyncpa [#allocation4 + $0x1], 1 }

</bundles_post_ra>
